<compile_context>
chip_gen: v7x
topology: tpu7x:2x2x1
jax: 0.10.0
libtpu: 0.0.40
codegen_flags: <defaults>
</compile_context>

<pallas_src>
import functools

import numpy as np

import jax
import jax.numpy as jnp
from jax import lax
from jax.experimental import pallas as pl
from jax.experimental.pallas import tpu as pltpu


# ----------------------------------------------------------------------------
# The fused kernel: conv1+relu+pool1+conv2+relu+pool2+fc1+relu+fc_out.
# ----------------------------------------------------------------------------
def _fused_small_cnn_kernel(x_ref, t1_ref, l1_ref, b1_ref,
                            t2_ref, l2_ref, b2_ref,
                            wfc1_ref, bfc1_ref, wout_ref, bout_ref,
                            out_ref, *, n, h1, w1, c0, c1, c2):
    f32 = jnp.float32
    h2, w2 = h1 // 2, w1 // 2
    h3 = h2 // 2

    for b in range(n):                         # tiny static batch -> unrolled
        xval = x_ref[b * h1:(b + 1) * h1, :]                    # (h1, w1*c0)

        # ---- conv1 (3x3, pad 1) + ReLU: 3 row-Toeplitz taps on the MXU ----
        acc1 = b1_ref[...]                                      # (1, w1*c1)
        for dh in range(3):
            shifted = jnp.dot(l1_ref[dh], xval,                 # vertical pad/shift
                              preferred_element_type=f32)
            acc1 = acc1 + jnp.dot(shifted, t1_ref[dh],
                                  preferred_element_type=f32)
        y1 = jnp.maximum(acc1, 0.0)                             # (h1, w1*c1)

        # ---- max-pool 2x2 #1 (fused epilogue, stays in vregs) ----
        m1 = jnp.maximum(y1[:, :(w1 - 1) * c1], y1[:, c1:])     # w-pair max
        rm1 = jnp.maximum(m1[:h1 - 1, :], m1[1:, :])            # h-pair max

        # ---- conv2 (3x3, pad 1) + ReLU.  Pool-1 row/col selection and the
        #      vertical pad are folded into l2 / t2 at packing time. ----
        acc2 = b2_ref[...]                                      # (1, w2*c2)
        for dh in range(3):
            rows = jnp.dot(l2_ref[dh], rm1, preferred_element_type=f32)
            acc2 = acc2 + jnp.dot(rows, t2_ref[dh],
                                  preferred_element_type=f32)
        y2 = jnp.maximum(acc2, 0.0)                             # (h2, w2*c2)

        # ---- max-pool 2x2 #2 ----
        m2 = jnp.maximum(y2[:, :(w2 - 1) * c2], y2[:, c2:])
        rm2 = jnp.maximum(m2[:h2 - 1, :], m2[1:, :])            # (h2-1, (w2-1)*c2)

        # ---- fc1 + ReLU (pool-2 selection + NCHW flatten folded into wfc1) ----
        z = bfc1_ref[...]                                       # (1, 128)
        for ho in range(h3):
            z = z + jnp.dot(rm2[2 * ho:2 * ho + 1, :], wfc1_ref[ho],
                            preferred_element_type=f32)
        z = jnp.maximum(z, 0.0)

        # ---- output layer (lane-dense: padded to 128 columns) ----
        out_ref[b:b + 1, :] = (jnp.dot(z, wout_ref[...],
                                       preferred_element_type=f32)
                               + bout_ref[...])


# ----------------------------------------------------------------------------
# One-time weight packing (plain JAX/numpy, outside the kernel / hot path).
# ----------------------------------------------------------------------------
def _band_select(num_row_blocks, num_out_blocks, kw, row_stride=1):
    """S[row_stride*(w+kw-1), w] = 1 for in-range horizontal taps."""
    s = np.zeros((num_row_blocks, num_out_blocks), np.float32)
    for wo in range(num_out_blocks):
        src = wo + kw - 1
        if 0 <= src < num_out_blocks:
            s[row_stride * src, wo] = 1.0
    return s


def _conv_row_taps(w_conv, sel_per_kw):
    """w_conv: (cout, cin, 3, 3) torch OIHW -> (3, rows*cin, cols*cout) taps."""
    taps = []
    for dh in range(3):
        t = None
        for kw in range(3):
            blk = jnp.transpose(w_conv[:, :, dh, kw])            # (cin, cout)
            term = jnp.kron(jnp.asarray(sel_per_kw[kw]), blk)
            t = term if t is None else t + term
        taps.append(t)
    return jnp.stack(taps, axis=0).astype(jnp.float32)


def pack_params(params, *, in_channels=4, num_classes=10, h=16, w=16,
                c1=32, c2=64, d1=128, lane=128):
    assert h % 4 == 0 and w % 4 == 0
    h1, w1 = h, w
    h2, w2 = h1 // 2, w1 // 2
    h3, w3 = h2 // 2, w2 // 2

    # conv1: banded taps over the (w, cin) row layout + vertical shift matrices.
    sel1 = [_band_select(w1, w1, kw, row_stride=1) for kw in range(3)]
    t1 = _conv_row_taps(params["conv1_w"], sel1)                 # (3, w1*c0, w1*c1)
    l1 = jnp.asarray(np.stack([np.eye(h1, h1, k=dh - 1, dtype=np.float32)
                               for dh in range(3)]))             # (3, h1, h1)
    b1row = jnp.tile(params["conv1_b"], w1)[None, :]             # (1, w1*c1)

    # conv2: pool-1 column (w) selection folded into the banded taps (rows are
    # indexed by the (w1-1)*c1-wide "pair-max" layout); pool-1 row selection
    # and the vertical pad/shift folded into l2.
    sel2 = [_band_select(w1 - 1, w2, kw, row_stride=2) for kw in range(3)]
    t2 = _conv_row_taps(params["conv2_w"], sel2)                 # (3, (w1-1)*c1, w2*c2)
    l2 = np.zeros((3, h2, h1 - 1), np.float32)
    for dh in range(3):
        for hh in range(h2):
            src = hh + dh - 1
            if 0 <= src < h2:
                l2[dh, hh, 2 * src] = 1.0
    l2 = jnp.asarray(l2)                                         # (3, h2, h1-1)
    b2row = jnp.tile(params["conv2_b"], w2)[None, :]             # (1, w2*c2)

    # fc1: pool-2 column selection + PyTorch NCHW flatten order folded in.
    fw = params["fc1_w"].reshape(d1, c2, h3, w3)                 # (d, co, ho, wo)
    fw = jnp.transpose(fw, (2, 3, 1, 0))                         # (ho, wo, co, d)
    wfc1 = jnp.zeros((h3, 2 * w3 - 1, c2, d1), jnp.float32)
    wfc1 = wfc1.at[:, 0::2, :, :].set(fw)
    wfc1 = wfc1.reshape(h3, (2 * w3 - 1) * c2, d1)               # (h3, (w2-1)*c2, d1)
    bfc1 = params["fc1_b"][None, :]                              # (1, d1)

    # output layer, padded to a lane-dense width (masked-store free).
    wout = jnp.zeros((d1, lane), jnp.float32).at[:, :num_classes].set(
        jnp.transpose(params["out_w"]))
    bout = jnp.zeros((1, lane), jnp.float32).at[0, :num_classes].set(
        params["out_b"])

    return {"t1": t1, "l1": l1, "b1": b1row,
            "t2": t2, "l2": l2, "b2": b2row,
            "wfc1": wfc1, "bfc1": bfc1, "wout": wout, "bout": bout}


# ----------------------------------------------------------------------------
# Forward wrapper: one reshape of x + one pallas_call + final slice.
# ----------------------------------------------------------------------------
def small_cnn_forward(x_nchw, packed, *, num_classes=10, c1=32, c2=64):
    n, c0, h1, w1 = x_nchw.shape
    # NCHW -> NHWC -> (n*h, w*c) row layout (the only XLA-side data movement).
    x2d = jnp.transpose(x_nchw, (0, 2, 3, 1)).reshape(
        n * h1, w1 * c0).astype(jnp.float32)

    kernel = functools.partial(_fused_small_cnn_kernel,
                               n=n, h1=h1, w1=w1, c0=c0, c1=c1, c2=c2)
    vmem = pl.BlockSpec(memory_space=pltpu.MemorySpace.VMEM)
    out = pl.pallas_call(
        kernel,
        out_shape=jax.ShapeDtypeStruct((n, 128), jnp.float32),
        in_specs=[vmem] * 11,
        out_specs=vmem,
    )(x2d, packed["t1"], packed["l1"], packed["b1"],
      packed["t2"], packed["l2"], packed["b2"],
      packed["wfc1"], packed["bfc1"], packed["wout"], packed["bout"])
    return out[:, :num_classes]


# ----------------------------------------------------------------------------
# Synthetic parameters with SmallCNN's exact (torch) shapes, plus a pure-XLA
# reference forward used to verify the fused kernel.
# ----------------------------------------------------------------------------
def init_params(key, in_channels=4, num_classes=10, h=16, w=16):
    ks = jax.random.split(key, 8)
    s = 0.05
    f32 = jnp.float32
    fc1_in = 64 * (h // 4) * (w // 4)
    return {
        "conv1_w": jax.random.normal(ks[0], (32, in_channels, 3, 3), f32) * s,
        "conv1_b": jax.random.normal(ks[1], (32,), f32) * s,
        "conv2_w": jax.random.normal(ks[2], (64, 32, 3, 3), f32) * s,
        "conv2_b": jax.random.normal(ks[3], (64,), f32) * s,
        "fc1_w": jax.random.normal(ks[4], (128, fc1_in), f32) * s,
        "fc1_b": jax.random.normal(ks[5], (128,), f32) * s,
        "out_w": jax.random.normal(ks[6], (num_classes, 128), f32) * s,
        "out_b": jax.random.normal(ks[7], (num_classes,), f32) * s,
    }


def small_cnn_reference(x_nchw, params):
    """Pure-JAX reference replicating the PyTorch SmallCNN forward."""
    dn = ("NCHW", "OIHW", "NCHW")
    y = lax.conv_general_dilated(x_nchw, params["conv1_w"], (1, 1),
                                 ((1, 1), (1, 1)), dimension_numbers=dn)
    y = jnp.maximum(y + params["conv1_b"][None, :, None, None], 0.0)
    y = lax.reduce_window(y, -jnp.inf, lax.max, (1, 1, 2, 2), (1, 1, 2, 2), "VALID")
    y = lax.conv_general_dilated(y, params["conv2_w"], (1, 1),
                                 ((1, 1), (1, 1)), dimension_numbers=dn)
    y = jnp.maximum(y + params["conv2_b"][None, :, None, None], 0.0)
    y = lax.reduce_window(y, -jnp.inf, lax.max, (1, 1, 2, 2), (1, 1, 2, 2), "VALID")
    y = y.reshape(y.shape[0], -1)                 # NCHW flatten, like nn.Flatten
    y = jnp.maximum(y @ params["fc1_w"].T + params["fc1_b"], 0.0)
    return y @ params["out_w"].T + params["out_b"]


if __name__ == "__main__":
    key = jax.random.PRNGKey(0)
    k_x, k_p = jax.random.split(key)

    batch, in_ch, height, width = 2, 4, 16, 16
    num_classes = 10

    x = jax.random.normal(k_x, (batch, in_ch, height, width), jnp.float32)
    params = init_params(k_p, in_channels=in_ch, num_classes=num_classes,
                         h=height, w=width)
    packed = pack_params(params, in_channels=in_ch, num_classes=num_classes,
                         h=height, w=width)

    fwd = jax.jit(functools.partial(small_cnn_forward, num_classes=num_classes))
    out = jax.block_until_ready(fwd(x, packed))

    assert out.shape == (batch, num_classes), out.shape
    assert bool(jnp.all(jnp.isfinite(out)))

    # Correctness: compare the fused Pallas kernel against the XLA reference.
    ref = small_cnn_reference(x, params)
    max_err = float(jnp.max(jnp.abs(out - ref)))
    assert max_err < 3e-2, f"kernel deviates from reference: max|err|={max_err}"

    print("KERNEL_OK")
</pallas_src>

<mosaic_0001>
module attributes {stable_mosaic.version = 11 : i64} {
  func.func @_fused_small_cnn_kernel(%arg0: memref<32x64xf32, #tpu.memory_space<vmem>>, %arg1: memref<3x64x512xf32, #tpu.memory_space<vmem>>, %arg2: memref<3x16x16xf32, #tpu.memory_space<vmem>>, %arg3: memref<1x512xf32, #tpu.memory_space<vmem>>, %arg4: memref<3x480x512xf32, #tpu.memory_space<vmem>>, %arg5: memref<3x8x15xf32, #tpu.memory_space<vmem>>, %arg6: memref<1x512xf32, #tpu.memory_space<vmem>>, %arg7: memref<4x448x128xf32, #tpu.memory_space<vmem>>, %arg8: memref<1x128xf32, #tpu.memory_space<vmem>>, %arg9: memref<128x128xf32, #tpu.memory_space<vmem>>, %arg10: memref<1x128xf32, #tpu.memory_space<vmem>>, %arg11: memref<2x128xf32, #tpu.memory_space<vmem>>) attributes {dimension_semantics = [], scalar_prefetch = 0 : i64, scratch_operands = 0 : i64, tpu.core_type = #tpu.core_type<tc>} {
    %c0 = arith.constant 0 : index
    %c0_0 = arith.constant 0 : index
    %0 = vector.load %arg0[%c0, %c0_0] : memref<32x64xf32, #tpu.memory_space<vmem>>, vector<16x64xf32>
    %c0_1 = arith.constant 0 : index
    %c0_2 = arith.constant 0 : index
    %1 = vector.load %arg3[%c0_1, %c0_2] : memref<1x512xf32, #tpu.memory_space<vmem>>, vector<1x512xf32>
    %c0_3 = arith.constant 0 : index
    %c0_4 = arith.constant 0 : index
    %c0_5 = arith.constant 0 : index
    %2 = vector.load %arg2[%c0_3, %c0_4, %c0_5] : memref<3x16x16xf32, #tpu.memory_space<vmem>>, vector<1x16x16xf32>
    %3 = vector.shape_cast %2 : vector<1x16x16xf32> to vector<16x16xf32>
    %cst = arith.constant dense<0.000000e+00> : vector<16x64xf32>
    %4 = tpu.matmul %3, %0, %cst {dimension_numbers = #tpu.dot_dimension_numbers<[1], [0], [0], [1], [0, 0, 1, 1], [], []>} : vector<16x16xf32>, vector<16x64xf32>, vector<16x64xf32> -> vector<16x64xf32>
    %c0_6 = arith.constant 0 : index
    %c0_7 = arith.constant 0 : index
    %c0_8 = arith.constant 0 : index
    %5 = vector.load %arg1[%c0_6, %c0_7, %c0_8] : memref<3x64x512xf32, #tpu.memory_space<vmem>>, vector<1x64x512xf32>
    %6 = vector.shape_cast %5 : vector<1x64x512xf32> to vector<64x512xf32>
    %cst_9 = arith.constant dense<0.000000e+00> : vector<16x512xf32>
    %7 = tpu.matmul %4, %6, %cst_9 {dimension_numbers = #tpu.dot_dimension_numbers<[1], [0], [0], [1], [0, 0, 1, 1], [], []>} : vector<16x64xf32>, vector<64x512xf32>, vector<16x512xf32> -> vector<16x512xf32>
    %8 = vector.broadcast %1 : vector<1x512xf32> to vector<16x512xf32>
    %9 = arith.addf %8, %7 : vector<16x512xf32>
    %c1 = arith.constant 1 : index
    %c0_10 = arith.constant 0 : index
    %c0_11 = arith.constant 0 : index
    %10 = vector.load %arg2[%c1, %c0_10, %c0_11] : memref<3x16x16xf32, #tpu.memory_space<vmem>>, vector<1x16x16xf32>
    %11 = vector.shape_cast %10 : vector<1x16x16xf32> to vector<16x16xf32>
    %cst_12 = arith.constant dense<0.000000e+00> : vector<16x64xf32>
    %12 = tpu.matmul %11, %0, %cst_12 {dimension_numbers = #tpu.dot_dimension_numbers<[1], [0], [0], [1], [0, 0, 1, 1], [], []>} : vector<16x16xf32>, vector<16x64xf32>, vector<16x64xf32> -> vector<16x64xf32>
    %c1_13 = arith.constant 1 : index
    %c0_14 = arith.constant 0 : index
    %c0_15 = arith.constant 0 : index
    %13 = vector.load %arg1[%c1_13, %c0_14, %c0_15] : memref<3x64x512xf32, #tpu.memory_space<vmem>>, vector<1x64x512xf32>
    %14 = vector.shape_cast %13 : vector<1x64x512xf32> to vector<64x512xf32>
    %cst_16 = arith.constant dense<0.000000e+00> : vector<16x512xf32>
    %15 = tpu.matmul %12, %14, %cst_16 {dimension_numbers = #tpu.dot_dimension_numbers<[1], [0], [0], [1], [0, 0, 1, 1], [], []>} : vector<16x64xf32>, vector<64x512xf32>, vector<16x512xf32> -> vector<16x512xf32>
    %16 = arith.addf %9, %15 : vector<16x512xf32>
    %c2 = arith.constant 2 : index
    %c0_17 = arith.constant 0 : index
    %c0_18 = arith.constant 0 : index
    %17 = vector.load %arg2[%c2, %c0_17, %c0_18] : memref<3x16x16xf32, #tpu.memory_space<vmem>>, vector<1x16x16xf32>
    %18 = vector.shape_cast %17 : vector<1x16x16xf32> to vector<16x16xf32>
    %cst_19 = arith.constant dense<0.000000e+00> : vector<16x64xf32>
    %19 = tpu.matmul %18, %0, %cst_19 {dimension_numbers = #tpu.dot_dimension_numbers<[1], [0], [0], [1], [0, 0, 1, 1], [], []>} : vector<16x16xf32>, vector<16x64xf32>, vector<16x64xf32> -> vector<16x64xf32>
    %c2_20 = arith.constant 2 : index
    %c0_21 = arith.constant 0 : index
    %c0_22 = arith.constant 0 : index
    %20 = vector.load %arg1[%c2_20, %c0_21, %c0_22] : memref<3x64x512xf32, #tpu.memory_space<vmem>>, vector<1x64x512xf32>
    %21 = vector.shape_cast %20 : vector<1x64x512xf32> to vector<64x512xf32>
    %cst_23 = arith.constant dense<0.000000e+00> : vector<16x512xf32>
    %22 = tpu.matmul %19, %21, %cst_23 {dimension_numbers = #tpu.dot_dimension_numbers<[1], [0], [0], [1], [0, 0, 1, 1], [], []>} : vector<16x64xf32>, vector<64x512xf32>, vector<16x512xf32> -> vector<16x512xf32>
    %23 = arith.addf %16, %22 : vector<16x512xf32>
    %cst_24 = arith.constant 0.000000e+00 : f32
    %24 = vector.broadcast %cst_24 : f32 to vector<16x512xf32>
    %25 = arith.maximumf %23, %24 : vector<16x512xf32>
    %26 = vector.extract_strided_slice %25 {offsets = [0, 0], sizes = [16, 480], strides = [1, 1]} : vector<16x512xf32> to vector<16x480xf32>
    %27 = vector.extract_strided_slice %25 {offsets = [0, 32], sizes = [16, 480], strides = [1, 1]} : vector<16x512xf32> to vector<16x480xf32>
    %28 = arith.maximumf %26, %27 : vector<16x480xf32>
    %29 = vector.extract_strided_slice %28 {offsets = [0, 0], sizes = [15, 480], strides = [1, 1]} : vector<16x480xf32> to vector<15x480xf32>
    %30 = vector.extract_strided_slice %28 {offsets = [1, 0], sizes = [15, 480], strides = [1, 1]} : vector<16x480xf32> to vector<15x480xf32>
    %31 = arith.maximumf %29, %30 : vector<15x480xf32>
    %c0_25 = arith.constant 0 : index
    %c0_26 = arith.constant 0 : index
    %32 = vector.load %arg6[%c0_25, %c0_26] : memref<1x512xf32, #tpu.memory_space<vmem>>, vector<1x512xf32>
    %c0_27 = arith.constant 0 : index
    %c0_28 = arith.constant 0 : index
    %c0_29 = arith.constant 0 : index
    %33 = vector.load %arg5[%c0_27, %c0_28, %c0_29] : memref<3x8x15xf32, #tpu.memory_space<vmem>>, vector<1x8x15xf32>
    %34 = vector.shape_cast %33 : vector<1x8x15xf32> to vector<8x15xf32>
    %cst_30 = arith.constant dense<0.000000e+00> : vector<8x480xf32>
    %35 = tpu.matmul %34, %31, %cst_30 {dimension_numbers = #tpu.dot_dimension_numbers<[1], [0], [0], [1], [0, 0, 1, 1], [], []>} : vector<8x15xf32>, vector<15x480xf32>, vector<8x480xf32> -> vector<8x480xf32>
    %c0_31 = arith.constant 0 : index
    %c0_32 = arith.constant 0 : index
    %c0_33 = arith.constant 0 : index
    %36 = vector.load %arg4[%c0_31, %c0_32, %c0_33] : memref<3x480x512xf32, #tpu.memory_space<vmem>>, vector<1x480x512xf32>
    %37 = vector.shape_cast %36 : vector<1x480x512xf32> to vector<480x512xf32>
    %cst_34 = arith.constant dense<0.000000e+00> : vector<8x512xf32>
    %38 = tpu.matmul %35, %37, %cst_34 {dimension_numbers = #tpu.dot_dimension_numbers<[1], [0], [0], [1], [0, 0, 1, 1], [], []>} : vector<8x480xf32>, vector<480x512xf32>, vector<8x512xf32> -> vector<8x512xf32>
    %39 = vector.broadcast %32 : vector<1x512xf32> to vector<8x512xf32>
    %40 = arith.addf %39, %38 : vector<8x512xf32>
    %c1_35 = arith.constant 1 : index
    %c0_36 = arith.constant 0 : index
    %c0_37 = arith.constant 0 : index
    %41 = vector.load %arg5[%c1_35, %c0_36, %c0_37] : memref<3x8x15xf32, #tpu.memory_space<vmem>>, vector<1x8x15xf32>
    %42 = vector.shape_cast %41 : vector<1x8x15xf32> to vector<8x15xf32>
    %cst_38 = arith.constant dense<0.000000e+00> : vector<8x480xf32>
    %43 = tpu.matmul %42, %31, %cst_38 {dimension_numbers = #tpu.dot_dimension_numbers<[1], [0], [0], [1], [0, 0, 1, 1], [], []>} : vector<8x15xf32>, vector<15x480xf32>, vector<8x480xf32> -> vector<8x480xf32>
    %c1_39 = arith.constant 1 : index
    %c0_40 = arith.constant 0 : index
    %c0_41 = arith.constant 0 : index
    %44 = vector.load %arg4[%c1_39, %c0_40, %c0_41] : memref<3x480x512xf32, #tpu.memory_space<vmem>>, vector<1x480x512xf32>
    %45 = vector.shape_cast %44 : vector<1x480x512xf32> to vector<480x512xf32>
    %cst_42 = arith.constant dense<0.000000e+00> : vector<8x512xf32>
    %46 = tpu.matmul %43, %45, %cst_42 {dimension_numbers = #tpu.dot_dimension_numbers<[1], [0], [0], [1], [0, 0, 1, 1], [], []>} : vector<8x480xf32>, vector<480x512xf32>, vector<8x512xf32> -> vector<8x512xf32>
    %47 = arith.addf %40, %46 : vector<8x512xf32>
    %c2_43 = arith.constant 2 : index
    %c0_44 = arith.constant 0 : index
    %c0_45 = arith.constant 0 : index
    %48 = vector.load %arg5[%c2_43, %c0_44, %c0_45] : memref<3x8x15xf32, #tpu.memory_space<vmem>>, vector<1x8x15xf32>
    %49 = vector.shape_cast %48 : vector<1x8x15xf32> to vector<8x15xf32>
    %cst_46 = arith.constant dense<0.000000e+00> : vector<8x480xf32>
    %50 = tpu.matmul %49, %31, %cst_46 {dimension_numbers = #tpu.dot_dimension_numbers<[1], [0], [0], [1], [0, 0, 1, 1], [], []>} : vector<8x15xf32>, vector<15x480xf32>, vector<8x480xf32> -> vector<8x480xf32>
    %c2_47 = arith.constant 2 : index
    %c0_48 = arith.constant 0 : index
    %c0_49 = arith.constant 0 : index
    %51 = vector.load %arg4[%c2_47, %c0_48, %c0_49] : memref<3x480x512xf32, #tpu.memory_space<vmem>>, vector<1x480x512xf32>
    %52 = vector.shape_cast %51 : vector<1x480x512xf32> to vector<480x512xf32>
    %cst_50 = arith.constant dense<0.000000e+00> : vector<8x512xf32>
    %53 = tpu.matmul %50, %52, %cst_50 {dimension_numbers = #tpu.dot_dimension_numbers<[1], [0], [0], [1], [0, 0, 1, 1], [], []>} : vector<8x480xf32>, vector<480x512xf32>, vector<8x512xf32> -> vector<8x512xf32>
    %54 = arith.addf %47, %53 : vector<8x512xf32>
    %cst_51 = arith.constant 0.000000e+00 : f32
    %55 = vector.broadcast %cst_51 : f32 to vector<8x512xf32>
    %56 = arith.maximumf %54, %55 : vector<8x512xf32>
    %57 = vector.extract_strided_slice %56 {offsets = [0, 0], sizes = [8, 448], strides = [1, 1]} : vector<8x512xf32> to vector<8x448xf32>
    %58 = vector.extract_strided_slice %56 {offsets = [0, 64], sizes = [8, 448], strides = [1, 1]} : vector<8x512xf32> to vector<8x448xf32>
    %59 = arith.maximumf %57, %58 : vector<8x448xf32>
    %60 = vector.extract_strided_slice %59 {offsets = [0, 0], sizes = [7, 448], strides = [1, 1]} : vector<8x448xf32> to vector<7x448xf32>
    %61 = vector.extract_strided_slice %59 {offsets = [1, 0], sizes = [7, 448], strides = [1, 1]} : vector<8x448xf32> to vector<7x448xf32>
    %62 = arith.maximumf %60, %61 : vector<7x448xf32>
    %c0_52 = arith.constant 0 : index
    %c0_53 = arith.constant 0 : index
    %63 = vector.load %arg8[%c0_52, %c0_53] : memref<1x128xf32, #tpu.memory_space<vmem>>, vector<1x128xf32>
    %64 = vector.extract_strided_slice %62 {offsets = [0, 0], sizes = [1, 448], strides = [1, 1]} : vector<7x448xf32> to vector<1x448xf32>
    %c0_54 = arith.constant 0 : index
    %c0_55 = arith.constant 0 : index
    %c0_56 = arith.constant 0 : index
    %65 = vector.load %arg7[%c0_54, %c0_55, %c0_56] : memref<4x448x128xf32, #tpu.memory_space<vmem>>, vector<1x448x128xf32>
    %66 = vector.shape_cast %65 : vector<1x448x128xf32> to vector<448x128xf32>
    %cst_57 = arith.constant dense<0.000000e+00> : vector<1x128xf32>
    %67 = tpu.matmul %64, %66, %cst_57 {dimension_numbers = #tpu.dot_dimension_numbers<[1], [0], [0], [1], [0, 0, 1, 1], [], []>} : vector<1x448xf32>, vector<448x128xf32>, vector<1x128xf32> -> vector<1x128xf32>
    %68 = arith.addf %63, %67 : vector<1x128xf32>
    %69 = vector.extract_strided_slice %62 {offsets = [2, 0], sizes = [1, 448], strides = [1, 1]} : vector<7x448xf32> to vector<1x448xf32>
    %c1_58 = arith.constant 1 : index
    %c0_59 = arith.constant 0 : index
    %c0_60 = arith.constant 0 : index
    %70 = vector.load %arg7[%c1_58, %c0_59, %c0_60] : memref<4x448x128xf32, #tpu.memory_space<vmem>>, vector<1x448x128xf32>
    %71 = vector.shape_cast %70 : vector<1x448x128xf32> to vector<448x128xf32>
    %cst_61 = arith.constant dense<0.000000e+00> : vector<1x128xf32>
    %72 = tpu.matmul %69, %71, %cst_61 {dimension_numbers = #tpu.dot_dimension_numbers<[1], [0], [0], [1], [0, 0, 1, 1], [], []>} : vector<1x448xf32>, vector<448x128xf32>, vector<1x128xf32> -> vector<1x128xf32>
    %73 = arith.addf %68, %72 : vector<1x128xf32>
    %74 = vector.extract_strided_slice %62 {offsets = [4, 0], sizes = [1, 448], strides = [1, 1]} : vector<7x448xf32> to vector<1x448xf32>
    %c2_62 = arith.constant 2 : index
    %c0_63 = arith.constant 0 : index
    %c0_64 = arith.constant 0 : index
    %75 = vector.load %arg7[%c2_62, %c0_63, %c0_64] : memref<4x448x128xf32, #tpu.memory_space<vmem>>, vector<1x448x128xf32>
    %76 = vector.shape_cast %75 : vector<1x448x128xf32> to vector<448x128xf32>
    %cst_65 = arith.constant dense<0.000000e+00> : vector<1x128xf32>
    %77 = tpu.matmul %74, %76, %cst_65 {dimension_numbers = #tpu.dot_dimension_numbers<[1], [0], [0], [1], [0, 0, 1, 1], [], []>} : vector<1x448xf32>, vector<448x128xf32>, vector<1x128xf32> -> vector<1x128xf32>
    %78 = arith.addf %73, %77 : vector<1x128xf32>
    %79 = vector.extract_strided_slice %62 {offsets = [6, 0], sizes = [1, 448], strides = [1, 1]} : vector<7x448xf32> to vector<1x448xf32>
    %c3 = arith.constant 3 : index
    %c0_66 = arith.constant 0 : index
    %c0_67 = arith.constant 0 : index
    %80 = vector.load %arg7[%c3, %c0_66, %c0_67] : memref<4x448x128xf32, #tpu.memory_space<vmem>>, vector<1x448x128xf32>
    %81 = vector.shape_cast %80 : vector<1x448x128xf32> to vector<448x128xf32>
    %cst_68 = arith.constant dense<0.000000e+00> : vector<1x128xf32>
    %82 = tpu.matmul %79, %81, %cst_68 {dimension_numbers = #tpu.dot_dimension_numbers<[1], [0], [0], [1], [0, 0, 1, 1], [], []>} : vector<1x448xf32>, vector<448x128xf32>, vector<1x128xf32> -> vector<1x128xf32>
    %83 = arith.addf %78, %82 : vector<1x128xf32>
    %cst_69 = arith.constant 0.000000e+00 : f32
    %84 = vector.broadcast %cst_69 : f32 to vector<1x128xf32>
    %85 = arith.maximumf %83, %84 : vector<1x128xf32>
    %c0_70 = arith.constant 0 : index
    %c0_71 = arith.constant 0 : index
    %86 = vector.load %arg9[%c0_70, %c0_71] : memref<128x128xf32, #tpu.memory_space<vmem>>, vector<128x128xf32>
    %cst_72 = arith.constant dense<0.000000e+00> : vector<1x128xf32>
    %87 = tpu.matmul %85, %86, %cst_72 {dimension_numbers = #tpu.dot_dimension_numbers<[1], [0], [0], [1], [0, 0, 1, 1], [], []>} : vector<1x128xf32>, vector<128x128xf32>, vector<1x128xf32> -> vector<1x128xf32>
    %c0_73 = arith.constant 0 : index
    %c0_74 = arith.constant 0 : index
    %88 = vector.load %arg10[%c0_73, %c0_74] : memref<1x128xf32, #tpu.memory_space<vmem>>, vector<1x128xf32>
    %89 = arith.addf %87, %88 : vector<1x128xf32>
    %c0_75 = arith.constant 0 : index
    %c0_76 = arith.constant 0 : index
    %90 = vector.load %arg11[%c0_75, %c0_76] : memref<2x128xf32, #tpu.memory_space<vmem>>, vector<1x128xf32>
    tpu.vector_store %arg11[%c0_75, %c0_76], %89 {strides = array<i32>} : memref<2x128xf32, #tpu.memory_space<vmem>>, vector<1x128xf32>,
    %c16 = arith.constant 16 : index
    %c0_77 = arith.constant 0 : index
    %91 = vector.load %arg0[%c16, %c0_77] : memref<32x64xf32, #tpu.memory_space<vmem>>, vector<16x64xf32>
    %c0_78 = arith.constant 0 : index
    %c0_79 = arith.constant 0 : index
    %92 = vector.load %arg3[%c0_78, %c0_79] : memref<1x512xf32, #tpu.memory_space<vmem>>, vector<1x512xf32>
    %c0_80 = arith.constant 0 : index
    %c0_81 = arith.constant 0 : index
    %c0_82 = arith.constant 0 : index
    %93 = vector.load %arg2[%c0_80, %c0_81, %c0_82] : memref<3x16x16xf32, #tpu.memory_space<vmem>>, vector<1x16x16xf32>
    %94 = vector.shape_cast %93 : vector<1x16x16xf32> to vector<16x16xf32>
    %cst_83 = arith.constant dense<0.000000e+00> : vector<16x64xf32>
    %95 = tpu.matmul %94, %91, %cst_83 {dimension_numbers = #tpu.dot_dimension_numbers<[1], [0], [0], [1], [0, 0, 1, 1], [], []>} : vector<16x16xf32>, vector<16x64xf32>, vector<16x64xf32> -> vector<16x64xf32>
    %c0_84 = arith.constant 0 : index
    %c0_85 = arith.constant 0 : index
    %c0_86 = arith.constant 0 : index
    %96 = vector.load %arg1[%c0_84, %c0_85, %c0_86] : memref<3x64x512xf32, #tpu.memory_space<vmem>>, vector<1x64x512xf32>
    %97 = vector.shape_cast %96 : vector<1x64x512xf32> to vector<64x512xf32>
    %cst_87 = arith.constant dense<0.000000e+00> : vector<16x512xf32>
    %98 = tpu.matmul %95, %97, %cst_87 {dimension_numbers = #tpu.dot_dimension_numbers<[1], [0], [0], [1], [0, 0, 1, 1], [], []>} : vector<16x64xf32>, vector<64x512xf32>, vector<16x512xf32> -> vector<16x512xf32>
    %99 = vector.broadcast %92 : vector<1x512xf32> to vector<16x512xf32>
    %100 = arith.addf %99, %98 : vector<16x512xf32>
    %c1_88 = arith.constant 1 : index
    %c0_89 = arith.constant 0 : index
    %c0_90 = arith.constant 0 : index
    %101 = vector.load %arg2[%c1_88, %c0_89, %c0_90] : memref<3x16x16xf32, #tpu.memory_space<vmem>>, vector<1x16x16xf32>
    %102 = vector.shape_cast %101 : vector<1x16x16xf32> to vector<16x16xf32>
    %cst_91 = arith.constant dense<0.000000e+00> : vector<16x64xf32>
    %103 = tpu.matmul %102, %91, %cst_91 {dimension_numbers = #tpu.dot_dimension_numbers<[1], [0], [0], [1], [0, 0, 1, 1], [], []>} : vector<16x16xf32>, vector<16x64xf32>, vector<16x64xf32> -> vector<16x64xf32>
    %c1_92 = arith.constant 1 : index
    %c0_93 = arith.constant 0 : index
    %c0_94 = arith.constant 0 : index
    %104 = vector.load %arg1[%c1_92, %c0_93, %c0_94] : memref<3x64x512xf32, #tpu.memory_space<vmem>>, vector<1x64x512xf32>
    %105 = vector.shape_cast %104 : vector<1x64x512xf32> to vector<64x512xf32>
    %cst_95 = arith.constant dense<0.000000e+00> : vector<16x512xf32>
    %106 = tpu.matmul %103, %105, %cst_95 {dimension_numbers = #tpu.dot_dimension_numbers<[1], [0], [0], [1], [0, 0, 1, 1], [], []>} : vector<16x64xf32>, vector<64x512xf32>, vector<16x512xf32> -> vector<16x512xf32>
    %107 = arith.addf %100, %106 : vector<16x512xf32>
    %c2_96 = arith.constant 2 : index
    %c0_97 = arith.constant 0 : index
    %c0_98 = arith.constant 0 : index
    %108 = vector.load %arg2[%c2_96, %c0_97, %c0_98] : memref<3x16x16xf32, #tpu.memory_space<vmem>>, vector<1x16x16xf32>
    %109 = vector.shape_cast %108 : vector<1x16x16xf32> to vector<16x16xf32>
    %cst_99 = arith.constant dense<0.000000e+00> : vector<16x64xf32>
    %110 = tpu.matmul %109, %91, %cst_99 {dimension_numbers = #tpu.dot_dimension_numbers<[1], [0], [0], [1], [0, 0, 1, 1], [], []>} : vector<16x16xf32>, vector<16x64xf32>, vector<16x64xf32> -> vector<16x64xf32>
    %c2_100 = arith.constant 2 : index
    %c0_101 = arith.constant 0 : index
    %c0_102 = arith.constant 0 : index
    %111 = vector.load %arg1[%c2_100, %c0_101, %c0_102] : memref<3x64x512xf32, #tpu.memory_space<vmem>>, vector<1x64x512xf32>
    %112 = vector.shape_cast %111 : vector<1x64x512xf32> to vector<64x512xf32>
    %cst_103 = arith.constant dense<0.000000e+00> : vector<16x512xf32>
    %113 = tpu.matmul %110, %112, %cst_103 {dimension_numbers = #tpu.dot_dimension_numbers<[1], [0], [0], [1], [0, 0, 1, 1], [], []>} : vector<16x64xf32>, vector<64x512xf32>, vector<16x512xf32> -> vector<16x512xf32>
    %114 = arith.addf %107, %113 : vector<16x512xf32>
    %cst_104 = arith.constant 0.000000e+00 : f32
    %115 = vector.broadcast %cst_104 : f32 to vector<16x512xf32>
    %116 = arith.maximumf %114, %115 : vector<16x512xf32>
    %117 = vector.extract_strided_slice %116 {offsets = [0, 0], sizes = [16, 480], strides = [1, 1]} : vector<16x512xf32> to vector<16x480xf32>
    %118 = vector.extract_strided_slice %116 {offsets = [0, 32], sizes = [16, 480], strides = [1, 1]} : vector<16x512xf32> to vector<16x480xf32>
    %119 = arith.maximumf %117, %118 : vector<16x480xf32>
    %120 = vector.extract_strided_slice %119 {offsets = [0, 0], sizes = [15, 480], strides = [1, 1]} : vector<16x480xf32> to vector<15x480xf32>
    %121 = vector.extract_strided_slice %119 {offsets = [1, 0], sizes = [15, 480], strides = [1, 1]} : vector<16x480xf32> to vector<15x480xf32>
    %122 = arith.maximumf %120, %121 : vector<15x480xf32>
    %c0_105 = arith.constant 0 : index
    %c0_106 = arith.constant 0 : index
    %123 = vector.load %arg6[%c0_105, %c0_106] : memref<1x512xf32, #tpu.memory_space<vmem>>, vector<1x512xf32>
    %c0_107 = arith.constant 0 : index
    %c0_108 = arith.constant 0 : index
    %c0_109 = arith.constant 0 : index
    %124 = vector.load %arg5[%c0_107, %c0_108, %c0_109] : memref<3x8x15xf32, #tpu.memory_space<vmem>>, vector<1x8x15xf32>
    %125 = vector.shape_cast %124 : vector<1x8x15xf32> to vector<8x15xf32>
    %cst_110 = arith.constant dense<0.000000e+00> : vector<8x480xf32>
    %126 = tpu.matmul %125, %122, %cst_110 {dimension_numbers = #tpu.dot_dimension_numbers<[1], [0], [0], [1], [0, 0, 1, 1], [], []>} : vector<8x15xf32>, vector<15x480xf32>, vector<8x480xf32> -> vector<8x480xf32>
    %c0_111 = arith.constant 0 : index
    %c0_112 = arith.constant 0 : index
    %c0_113 = arith.constant 0 : index
    %127 = vector.load %arg4[%c0_111, %c0_112, %c0_113] : memref<3x480x512xf32, #tpu.memory_space<vmem>>, vector<1x480x512xf32>
    %128 = vector.shape_cast %127 : vector<1x480x512xf32> to vector<480x512xf32>
    %cst_114 = arith.constant dense<0.000000e+00> : vector<8x512xf32>
    %129 = tpu.matmul %126, %128, %cst_114 {dimension_numbers = #tpu.dot_dimension_numbers<[1], [0], [0], [1], [0, 0, 1, 1], [], []>} : vector<8x480xf32>, vector<480x512xf32>, vector<8x512xf32> -> vector<8x512xf32>
    %130 = vector.broadcast %123 : vector<1x512xf32> to vector<8x512xf32>
    %131 = arith.addf %130, %129 : vector<8x512xf32>
    %c1_115 = arith.constant 1 : index
    %c0_116 = arith.constant 0 : index
    %c0_117 = arith.constant 0 : index
    %132 = vector.load %arg5[%c1_115, %c0_116, %c0_117] : memref<3x8x15xf32, #tpu.memory_space<vmem>>, vector<1x8x15xf32>
    %133 = vector.shape_cast %132 : vector<1x8x15xf32> to vector<8x15xf32>
    %cst_118 = arith.constant dense<0.000000e+00> : vector<8x480xf32>
    %134 = tpu.matmul %133, %122, %cst_118 {dimension_numbers = #tpu.dot_dimension_numbers<[1], [0], [0], [1], [0, 0, 1, 1], [], []>} : vector<8x15xf32>, vector<15x480xf32>, vector<8x480xf32> -> vector<8x480xf32>
    %c1_119 = arith.constant 1 : index
    %c0_120 = arith.constant 0 : index
    %c0_121 = arith.constant 0 : index
    %135 = vector.load %arg4[%c1_119, %c0_120, %c0_121] : memref<3x480x512xf32, #tpu.memory_space<vmem>>, vector<1x480x512xf32>
    %136 = vector.shape_cast %135 : vector<1x480x512xf32> to vector<480x512xf32>
    %cst_122 = arith.constant dense<0.000000e+00> : vector<8x512xf32>
    %137 = tpu.matmul %134, %136, %cst_122 {dimension_numbers = #tpu.dot_dimension_numbers<[1], [0], [0], [1], [0, 0, 1, 1], [], []>} : vector<8x480xf32>, vector<480x512xf32>, vector<8x512xf32> -> vector<8x512xf32>
    %138 = arith.addf %131, %137 : vector<8x512xf32>
    %c2_123 = arith.constant 2 : index
    %c0_124 = arith.constant 0 : index
    %c0_125 = arith.constant 0 : index
    %139 = vector.load %arg5[%c2_123, %c0_124, %c0_125] : memref<3x8x15xf32, #tpu.memory_space<vmem>>, vector<1x8x15xf32>
    %140 = vector.shape_cast %139 : vector<1x8x15xf32> to vector<8x15xf32>
    %cst_126 = arith.constant dense<0.000000e+00> : vector<8x480xf32>
    %141 = tpu.matmul %140, %122, %cst_126 {dimension_numbers = #tpu.dot_dimension_numbers<[1], [0], [0], [1], [0, 0, 1, 1], [], []>} : vector<8x15xf32>, vector<15x480xf32>, vector<8x480xf32> -> vector<8x480xf32>
    %c2_127 = arith.constant 2 : index
    %c0_128 = arith.constant 0 : index
    %c0_129 = arith.constant 0 : index
    %142 = vector.load %arg4[%c2_127, %c0_128, %c0_129] : memref<3x480x512xf32, #tpu.memory_space<vmem>>, vector<1x480x512xf32>
    %143 = vector.shape_cast %142 : vector<1x480x512xf32> to vector<480x512xf32>
    %cst_130 = arith.constant dense<0.000000e+00> : vector<8x512xf32>
    %144 = tpu.matmul %141, %143, %cst_130 {dimension_numbers = #tpu.dot_dimension_numbers<[1], [0], [0], [1], [0, 0, 1, 1], [], []>} : vector<8x480xf32>, vector<480x512xf32>, vector<8x512xf32> -> vector<8x512xf32>
    %145 = arith.addf %138, %144 : vector<8x512xf32>
    %cst_131 = arith.constant 0.000000e+00 : f32
    %146 = vector.broadcast %cst_131 : f32 to vector<8x512xf32>
    %147 = arith.maximumf %145, %146 : vector<8x512xf32>
    %148 = vector.extract_strided_slice %147 {offsets = [0, 0], sizes = [8, 448], strides = [1, 1]} : vector<8x512xf32> to vector<8x448xf32>
    %149 = vector.extract_strided_slice %147 {offsets = [0, 64], sizes = [8, 448], strides = [1, 1]} : vector<8x512xf32> to vector<8x448xf32>
    %150 = arith.maximumf %148, %149 : vector<8x448xf32>
    %151 = vector.extract_strided_slice %150 {offsets = [0, 0], sizes = [7, 448], strides = [1, 1]} : vector<8x448xf32> to vector<7x448xf32>
    %152 = vector.extract_strided_slice %150 {offsets = [1, 0], sizes = [7, 448], strides = [1, 1]} : vector<8x448xf32> to vector<7x448xf32>
    %153 = arith.maximumf %151, %152 : vector<7x448xf32>
    %c0_132 = arith.constant 0 : index
    %c0_133 = arith.constant 0 : index
    %154 = vector.load %arg8[%c0_132, %c0_133] : memref<1x128xf32, #tpu.memory_space<vmem>>, vector<1x128xf32>
    %155 = vector.extract_strided_slice %153 {offsets = [0, 0], sizes = [1, 448], strides = [1, 1]} : vector<7x448xf32> to vector<1x448xf32>
    %c0_134 = arith.constant 0 : index
    %c0_135 = arith.constant 0 : index
    %c0_136 = arith.constant 0 : index
    %156 = vector.load %arg7[%c0_134, %c0_135, %c0_136] : memref<4x448x128xf32, #tpu.memory_space<vmem>>, vector<1x448x128xf32>
    %157 = vector.shape_cast %156 : vector<1x448x128xf32> to vector<448x128xf32>
    %cst_137 = arith.constant dense<0.000000e+00> : vector<1x128xf32>
    %158 = tpu.matmul %155, %157, %cst_137 {dimension_numbers = #tpu.dot_dimension_numbers<[1], [0], [0], [1], [0, 0, 1, 1], [], []>} : vector<1x448xf32>, vector<448x128xf32>, vector<1x128xf32> -> vector<1x128xf32>
    %159 = arith.addf %154, %158 : vector<1x128xf32>
    %160 = vector.extract_strided_slice %153 {offsets = [2, 0], sizes = [1, 448], strides = [1, 1]} : vector<7x448xf32> to vector<1x448xf32>
    %c1_138 = arith.constant 1 : index
    %c0_139 = arith.constant 0 : index
    %c0_140 = arith.constant 0 : index
    %161 = vector.load %arg7[%c1_138, %c0_139, %c0_140] : memref<4x448x128xf32, #tpu.memory_space<vmem>>, vector<1x448x128xf32>
    %162 = vector.shape_cast %161 : vector<1x448x128xf32> to vector<448x128xf32>
    %cst_141 = arith.constant dense<0.000000e+00> : vector<1x128xf32>
    %163 = tpu.matmul %160, %162, %cst_141 {dimension_numbers = #tpu.dot_dimension_numbers<[1], [0], [0], [1], [0, 0, 1, 1], [], []>} : vector<1x448xf32>, vector<448x128xf32>, vector<1x128xf32> -> vector<1x128xf32>
    %164 = arith.addf %159, %163 : vector<1x128xf32>
    %165 = vector.extract_strided_slice %153 {offsets = [4, 0], sizes = [1, 448], strides = [1, 1]} : vector<7x448xf32> to vector<1x448xf32>
    %c2_142 = arith.constant 2 : index
    %c0_143 = arith.constant 0 : index
    %c0_144 = arith.constant 0 : index
    %166 = vector.load %arg7[%c2_142, %c0_143, %c0_144] : memref<4x448x128xf32, #tpu.memory_space<vmem>>, vector<1x448x128xf32>
    %167 = vector.shape_cast %166 : vector<1x448x128xf32> to vector<448x128xf32>
    %cst_145 = arith.constant dense<0.000000e+00> : vector<1x128xf32>
    %168 = tpu.matmul %165, %167, %cst_145 {dimension_numbers = #tpu.dot_dimension_numbers<[1], [0], [0], [1], [0, 0, 1, 1], [], []>} : vector<1x448xf32>, vector<448x128xf32>, vector<1x128xf32> -> vector<1x128xf32>
    %169 = arith.addf %164, %168 : vector<1x128xf32>
    %170 = vector.extract_strided_slice %153 {offsets = [6, 0], sizes = [1, 448], strides = [1, 1]} : vector<7x448xf32> to vector<1x448xf32>
    %c3_146 = arith.constant 3 : index
    %c0_147 = arith.constant 0 : index
    %c0_148 = arith.constant 0 : index
    %171 = vector.load %arg7[%c3_146, %c0_147, %c0_148] : memref<4x448x128xf32, #tpu.memory_space<vmem>>, vector<1x448x128xf32>
    %172 = vector.shape_cast %171 : vector<1x448x128xf32> to vector<448x128xf32>
    %cst_149 = arith.constant dense<0.000000e+00> : vector<1x128xf32>
    %173 = tpu.matmul %170, %172, %cst_149 {dimension_numbers = #tpu.dot_dimension_numbers<[1], [0], [0], [1], [0, 0, 1, 1], [], []>} : vector<1x448xf32>, vector<448x128xf32>, vector<1x128xf32> -> vector<1x128xf32>
    %174 = arith.addf %169, %173 : vector<1x128xf32>
    %cst_150 = arith.constant 0.000000e+00 : f32
    %175 = vector.broadcast %cst_150 : f32 to vector<1x128xf32>
    %176 = arith.maximumf %174, %175 : vector<1x128xf32>
    %c0_151 = arith.constant 0 : index
    %c0_152 = arith.constant 0 : index
    %177 = vector.load %arg9[%c0_151, %c0_152] : memref<128x128xf32, #tpu.memory_space<vmem>>, vector<128x128xf32>
    %cst_153 = arith.constant dense<0.000000e+00> : vector<1x128xf32>
    %178 = tpu.matmul %176, %177, %cst_153 {dimension_numbers = #tpu.dot_dimension_numbers<[1], [0], [0], [1], [0, 0, 1, 1], [], []>} : vector<1x128xf32>, vector<128x128xf32>, vector<1x128xf32> -> vector<1x128xf32>
    %c0_154 = arith.constant 0 : index
    %c0_155 = arith.constant 0 : index
    %179 = vector.load %arg10[%c0_154, %c0_155] : memref<1x128xf32, #tpu.memory_space<vmem>>, vector<1x128xf32>
    %180 = arith.addf %178, %179 : vector<1x128xf32>
    %c1_156 = arith.constant 1 : index
    %c0_157 = arith.constant 0 : index
    %181 = vector.load %arg11[%c1_156, %c0_157] : memref<2x128xf32, #tpu.memory_space<vmem>>, vector<1x128xf32>
    tpu.vector_store %arg11[%c1_156, %c0_157], %180 {strides = array<i32>} : memref<2x128xf32, #tpu.memory_space<vmem>>, vector<1x128xf32>,
    return
  }
}

</mosaic_0001>

<bundles_post_ra>
// kernel: small_cnn_forward.1
= control target key start
LH: loop header
LB: loop body
LE: loop exit
PB: predicated region body
PF: predicated region fallthrough
CT: control target
= control target key end

     0   :  { %16 = vsyncpa [#allocation3], 0  ;;  %s12246_s0 = inlined_call_operand.vmem [shape: f32[32,64], index: 0, kind: input, shape index: {}]   ;;  %s12247_s1 = inlined_call_operand.hbm [shape: f32[3,64,512], index: 1, kind: input, shape index: {}]   ;;  %s12248_s2 = inlined_call_operand.hbm [shape: f32[3,16,16], index: 2, kind: input, shape index: {}]   ;;  %s12249_s3 = inlined_call_operand.hbm [shape: f32[1,512], index: 3, kind: input, shape index: {}]   ;;  %s12250_s4 = inlined_call_operand.hbm [shape: f32[3,480,512], index: 4, kind: input, shape index: {}]   ;;  %s12251_s5 = inlined_call_operand.hbm [shape: f32[3,8,15], index: 5, kind: input, shape index: {}]   ;;  %s12252_s6 = inlined_call_operand.hbm [shape: f32[1,512], index: 6, kind: input, shape index: {}]   ;;  %s12253_s7 = inlined_call_operand.hbm [shape: f32[4,448,128], index: 7, kind: input, shape index: {}]   ;;  %s12254_s8 = inlined_call_operand.hbm [shape: f32[1,128], index: 8, kind: input, shape index: {}]   ;;  %s12255_s9 = inlined_call_operand.hbm [shape: f32[128,128], index: 9, kind: input, shape index: {}]   ;;  %s12256_s10 = inlined_call_operand.hbm [shape: f32[1,128], index: 10, kind: input, shape index: {}]   ;;  %s12257_s11 = inlined_call_operand.hbm [shape: f32[2,128], index: 11, kind: output, shape index: {}]  }
   0x1   :  { %17 = vsyncpa [#allocation6], 0 }
   0x2   :  { %18 = vsyncpa [#allocation9], 0 }
   0x3   :  { %19 = vsyncpa [#allocation12], 0 }
   0x4   :  { %20 = vsyncpa [#allocation15], 0 }
   0x5   :  { %21 = vsyncpa [#allocation18], 0 }
   0x6   :  { %22 = vsyncpa [#allocation4], 0  ;;  %s11474_s17 = smov [#allocation5]   ;;  %s11218_s21 = scalar_lea.hbm %s12248_s2, 768 }
   0x7   :  { %s42_s18 = sshll.u32 %s11474_s17, 4  ;;  %p11219_p0 = scmp.ne.s32.totalorder %s12248_s2, %s11218_s21  ;;  %s43_s18 = int_to_ptr.vmem [resolvable:$true] %s42_s18 }
   0x8   :  { %p11222_p1 = scmp.lt.u32.totalorder %s11218_s21, %s12248_s2 }
   0xa   :  { %p11224_p2 = pnand %p11222_p1, %p11219_p0 }
   0xc   :  { %11227 = shalt.err (!%p11224_p2)
}
   0xd   :  { %s11228_s26 = scalar_lea.vmem %s43_s18, 768  ;;  %p11233_p4 = scmp.lt.s32.totalorder %s43_s18, %s43_s18 }
   0xe   :  { %p11229_p3 = scmp.ne.s32.totalorder %s43_s18, %s11228_s26  ;;  %p11234_p5 = scmp.lt.s32.totalorder %s11228_s26, %s11228_s26 }
  0x10   :  { %p11235_p6 = por %p11234_p5, %p11233_p4 }
  0x12   :  { %p11236_p7 = pnand %p11235_p6, %p11229_p3 }
  0x14   :  { %11239 = shalt.err (!%p11236_p7)
}
  0x15   :  { %s11475_s27 = smov 128   ;;  %s11476_s28 = smov 8  }
  0x16   :  { %48 = dma.hbm_to_vmem [thread:$0]  %s12248_s2, 768, %s43_s18, [#allocation6], %s11475_s27, %s11475_s27, %s11476_s28  }
  0x17   :  { %s11477_s12 = smov [#allocation8]   ;;  %s11478_s14 = smov [#allocation11]  }
  0x18   :  { %s64_s13 = sshll.u32 %s11477_s12, 4  ;;  %s89_s15 = sshll.u32 %s11478_s14, 4  ;;  %s65_s13 = int_to_ptr.vmem [resolvable:$true] %s64_s13  ;;  %s90_s15 = int_to_ptr.vmem [resolvable:$true] %s89_s15 }
  0x19   :  { %s11240_s19 = scalar_lea.hbm %s12250_s4, 92160 }
  0x1a   :  { %p11241_p8 = scmp.ne.s32.totalorder %s12250_s4, %s11240_s19  ;;  %p11244_p9 = scmp.lt.u32.totalorder %s11240_s19, %s12250_s4 }
  0x1c   :  { %p11246_p10 = pnand %p11244_p9, %p11241_p8 }
  0x1e   :  { %11249 = shalt.err (!%p11246_p10)
}
  0x1f   :  { %s11250_s2 = scalar_lea.vmem %s65_s13, 92160  ;;  %p11255_p12 = scmp.lt.s32.totalorder %s65_s13, %s65_s13 }
  0x20   :  { %p11251_p11 = scmp.ne.s32.totalorder %s65_s13, %s11250_s2  ;;  %p11256_p13 = scmp.lt.s32.totalorder %s11250_s2, %s11250_s2 }
  0x22   :  { %p11257_p0 = por %p11256_p13, %p11255_p12 }
  0x24   :  { %p11258_p1 = pnand %p11257_p0, %p11251_p11 }
  0x26   :  { %11261 = shalt.err (!%p11258_p1)
}
  0x27   :  { %s11479_s18 = smov 512   ;;  %s11480_s24 = smov 32  }
  0x28   :  { %70 = dma.hbm_to_vmem [thread:$0]  %s12250_s4, 92160, %s65_s13, [#allocation9], %s11479_s18, %s11479_s18, %s11480_s24  }
  0x29   :  { %s11262_s12 = scalar_lea.hbm %s12252_s6, 64 }
  0x2a   :  { %p11263_p2 = scmp.ne.s32.totalorder %s12252_s6, %s11262_s12  ;;  %p11266_p3 = scmp.lt.u32.totalorder %s11262_s12, %s12252_s6 }
  0x2c   :  { %p11268_p4 = pnand %p11266_p3, %p11263_p2 }
  0x2e   :  { %11271 = shalt.err (!%p11268_p4)
}
  0x2f   :  { %s11272_s20 = scalar_lea.vmem %s90_s15, 64  ;;  %p11277_p6 = scmp.lt.s32.totalorder %s90_s15, %s90_s15 }
  0x30   :  { %p11273_p5 = scmp.ne.s32.totalorder %s90_s15, %s11272_s20  ;;  %p11278_p7 = scmp.lt.s32.totalorder %s11272_s20, %s11272_s20 }
  0x32   :  { %p11279_p8 = por %p11278_p7, %p11277_p6 }
  0x34   :  { %p11280_p9 = pnand %p11279_p8, %p11273_p5 }
  0x36   :  { %11283 = shalt.err (!%p11280_p9)
}
  0x37   :  { %92 = dma.hbm_to_vmem [thread:$0]  %s12252_s6, 64, %s90_s15, [#allocation12]  }
  0x38   :  { %s11481_s21 = smov [#allocation14]   ;;  %s11482_s23 = smov [#allocation2]  }
  0x39   :  { %s111_s22 = sshll.u32 %s11481_s21, 4  ;;  %s30_s2 = sshll.u32 %s11482_s23, 4  ;;  %s112_s22 = int_to_ptr.vmem [resolvable:$true] %s111_s22  ;;  %s31_s2 = int_to_ptr.vmem [resolvable:$true] %s30_s2 }
  0x3a   :  { %s11284_s29 = scalar_lea.hbm %s12254_s8, 16 }
  0x3b   :  { %p11285_p10 = scmp.ne.s32.totalorder %s12254_s8, %s11284_s29  ;;  %p11288_p11 = scmp.lt.u32.totalorder %s11284_s29, %s12254_s8 }
  0x3d   :  { %p11290_p12 = pnand %p11288_p11, %p11285_p10 }
  0x3f   :  { %11293 = shalt.err (!%p11290_p12)
}
  0x40   :  { %s11294_s6 = scalar_lea.vmem %s112_s22, 16  ;;  %s11298_s15 = scalar_lea.vmem %s112_s22, 32 }
  0x41   :  { %p11295_p13 = scmp.ne.s32.totalorder %s112_s22, %s11294_s6  ;;  %p11299_p0 = scmp.lt.s32.totalorder %s112_s22, %s112_s22 }
  0x42   :  { %p11300_p1 = scmp.lt.s32.totalorder %s11298_s15, %s11294_s6 }
  0x44   :  { %p11301_p2 = por %p11300_p1, %p11299_p0 }
  0x46   :  { %p11302_p3 = pnand %p11301_p2, %p11295_p13 }
  0x48   :  { %11305 = shalt.err (!%p11302_p3)
}
  0x49   :  { %114 = dma.hbm_to_vmem [thread:$0]  %s12254_s8, 16, %s112_s22, [#allocation15]  }
  0x4a   :  { %s11306_s13 = scalar_lea.hbm %s12247_s1, 12288 }
  0x4b   :  { %p11307_p4 = scmp.ne.s32.totalorder %s12247_s1, %s11306_s13  ;;  %p11310_p5 = scmp.lt.u32.totalorder %s11306_s13, %s12247_s1 }
  0x4d   :  { %p11312_p6 = pnand %p11310_p5, %p11307_p4 }
  0x4f   :  { %11315 = shalt.err (!%p11312_p6)
}
  0x50   :  { %s11316_s29 = scalar_lea.vmem %s31_s2, 12288  ;;  %p11321_p8 = scmp.lt.s32.totalorder %s31_s2, %s31_s2 }
  0x51   :  { %p11317_p7 = scmp.ne.s32.totalorder %s31_s2, %s11316_s29  ;;  %p11322_p9 = scmp.lt.s32.totalorder %s11316_s29, %s11316_s29 }
  0x53   :  { %p11323_p10 = por %p11322_p9, %p11321_p8 }
  0x55   :  { %p11324_p11 = pnand %p11323_p10, %p11317_p7 }
  0x57   :  { %11327 = shalt.err (!%p11324_p11)
}
  0x58   :  { %36 = dma.hbm_to_vmem [thread:$0]  %s12247_s1, 12288, %s31_s2, [#allocation3], %s11479_s18, %s11479_s18, %s11480_s24  }
  0x59   :  { %s11483_s30 = smov [#allocation7]   ;;  %s11484_s14 = smov [#allocation10]  }
  0x5a   :  { %s55_s12 = sshll.u32 %s11483_s30, 4  ;;  %s76_s16 = sshll.u32 %s11484_s14, 4  ;;  %s56_s12 = int_to_ptr.vmem [resolvable:$true] %s55_s12  ;;  %s77_s16 = int_to_ptr.vmem [resolvable:$true] %s76_s16 }
  0x5b   :  { %s11328_s17 = scalar_lea.hbm %s12249_s3, 64 }
  0x5c   :  { %p11329_p12 = scmp.ne.s32.totalorder %s12249_s3, %s11328_s17  ;;  %p11332_p13 = scmp.lt.u32.totalorder %s11328_s17, %s12249_s3 }
  0x5e   :  { %p11334_p0 = pnand %p11332_p13, %p11329_p12 }
  0x60   :  { %11337 = shalt.err (!%p11334_p0)
}
  0x61   :  { %s11338_s1 = scalar_lea.vmem %s56_s12, 64  ;;  %p11343_p2 = scmp.lt.s32.totalorder %s56_s12, %s56_s12 }
  0x62   :  { %p11339_p1 = scmp.ne.s32.totalorder %s56_s12, %s11338_s1  ;;  %p11344_p3 = scmp.lt.s32.totalorder %s11338_s1, %s11338_s1 }
  0x64   :  { %p11345_p4 = por %p11344_p3, %p11343_p2 }
  0x66   :  { %p11346_p5 = pnand %p11345_p4, %p11339_p1 }
  0x68   :  { %11349 = shalt.err (!%p11346_p5)
}
  0x69   :  { %58 = dma.hbm_to_vmem [thread:$0]  %s12249_s3, 64, %s56_s12, [#allocation6]  }
  0x6a   :  { %s11350_s23 = scalar_lea.hbm %s12251_s5, 384 }
  0x6b   :  { %p11351_p6 = scmp.ne.s32.totalorder %s12251_s5, %s11350_s23  ;;  %p11354_p7 = scmp.lt.u32.totalorder %s11350_s23, %s12251_s5 }
  0x6d   :  { %p11356_p8 = pnand %p11354_p7, %p11351_p6 }
  0x6f   :  { %11359 = shalt.err (!%p11356_p8)
}
  0x70   :  { %s11360_s22 = scalar_lea.vmem %s77_s16, 384  ;;  %p11365_p10 = scmp.lt.s32.totalorder %s77_s16, %s77_s16 }
  0x71   :  { %p11361_p9 = scmp.ne.s32.totalorder %s77_s16, %s11360_s22  ;;  %p11366_p11 = scmp.lt.s32.totalorder %s11360_s22, %s11360_s22 }
  0x73   :  { %p11367_p12 = por %p11366_p11, %p11365_p10 }
  0x75   :  { %p11368_p13 = pnand %p11367_p12, %p11361_p9 }
  0x77   :  { %11371 = shalt.err (!%p11368_p13)
}
  0x78   :  { %82 = dma.hbm_to_vmem [thread:$0]  %s12251_s5, 384, %s77_s16, [#allocation9], %s11475_s27, %s11475_s27, %s11476_s28  }
  0x79   :  { %s11485_s12 = smov [#allocation13]   ;;  %s11486_s6 = smov [#allocation16]  }
  0x7a   :  { %s98_s14 = sshll.u32 %s11485_s12, 4  ;;  %s120_s15 = sshll.u32 %s11486_s6, 4  ;;  %s99_s14 = int_to_ptr.vmem [resolvable:$true] %s98_s14  ;;  %s121_s15 = int_to_ptr.vmem [resolvable:$true] %s120_s15 }
  0x7b   :  { %s11372_s20 = scalar_lea.hbm %s12253_s7, 28672 }
  0x7c   :  { %p11373_p0 = scmp.ne.s32.totalorder %s12253_s7, %s11372_s20  ;;  %p11376_p1 = scmp.lt.u32.totalorder %s11372_s20, %s12253_s7 }
  0x7e   :  { %p11378_p2 = pnand %p11376_p1, %p11373_p0 }
  0x80   :  { %11381 = shalt.err (!%p11378_p2)
}
  0x81   :  { %s11382_s5 = scalar_lea.vmem %s99_s14, 28672  ;;  %p11387_p4 = scmp.lt.s32.totalorder %s99_s14, %s99_s14 }
  0x82   :  { %p11383_p3 = scmp.ne.s32.totalorder %s99_s14, %s11382_s5  ;;  %p11388_p5 = scmp.lt.s32.totalorder %s11382_s5, %s11382_s5 }
  0x84   :  { %p11389_p6 = por %p11388_p5, %p11387_p4 }
  0x86   :  { %p11390_p7 = pnand %p11389_p6, %p11383_p3 }
  0x88   :  { %11393 = shalt.err (!%p11390_p7)
}
  0x89   :  { %104 = dma.hbm_to_vmem [thread:$0]  %s12253_s7, 28672, %s99_s14, [#allocation12], %s11475_s27, %s11475_s27, %s11476_s28  }
  0x8a   :  { %s11394_s23 = scalar_lea.hbm %s12255_s9, 2048 }
  0x8b   :  { %p11395_p8 = scmp.ne.s32.totalorder %s12255_s9, %s11394_s23  ;;  %p11398_p9 = scmp.lt.u32.totalorder %s11394_s23, %s12255_s9 }
  0x8d   :  { %p11400_p10 = pnand %p11398_p9, %p11395_p8 }
  0x8f   :  { %11403 = shalt.err (!%p11400_p10)
}
  0x90   :  { %s11404_s22 = scalar_lea.vmem %s121_s15, 2048  ;;  %p11409_p12 = scmp.lt.s32.totalorder %s121_s15, %s121_s15 }
  0x91   :  { %p11405_p11 = scmp.ne.s32.totalorder %s121_s15, %s11404_s22  ;;  %p11410_p13 = scmp.lt.s32.totalorder %s11404_s22, %s11404_s22 }
  0x93   :  { %p11411_p0 = por %p11410_p13, %p11409_p12 }
  0x95   :  { %p11412_p1 = pnand %p11411_p0, %p11405_p11 }
  0x97   :  { %11415 = shalt.err (!%p11412_p1)
}
  0x98   :  { %126 = dma.hbm_to_vmem [thread:$0]  %s12255_s9, 2048, %s121_s15, [#allocation15], %s11475_s27, %s11475_s27, %s11476_s28  }
  0x99   :  { %s11487_s30 = smov [#allocation17]   ;;  %s11416_s17 = scalar_lea.hbm %s12256_s10, 16 }
  0x9a   :  { %s133_s12 = sshll.u32 %s11487_s30, 4  ;;  %p11417_p2 = scmp.ne.s32.totalorder %s12256_s10, %s11416_s17  ;;  %s134_s12 = int_to_ptr.vmem [resolvable:$true] %s133_s12 }
  0x9b   :  { %p11420_p3 = scmp.lt.u32.totalorder %s11416_s17, %s12256_s10 }
  0x9d   :  { %p11422_p4 = pnand %p11420_p3, %p11417_p2 }
  0x9f   :  { %11425 = shalt.err (!%p11422_p4)
}
  0xa0   :  { %s11426_s1 = scalar_lea.vmem %s134_s12, 16  ;;  %s11430_s9 = scalar_lea.vmem %s134_s12, 32 }
  0xa1   :  { %p11427_p5 = scmp.ne.s32.totalorder %s134_s12, %s11426_s1  ;;  %p11431_p6 = scmp.lt.s32.totalorder %s134_s12, %s134_s12 }
  0xa2   :  { %p11432_p7 = scmp.lt.s32.totalorder %s11430_s9, %s11426_s1 }
  0xa4   :  { %p11433_p8 = por %p11432_p7, %p11431_p6 }
  0xa6   :  { %p11434_p9 = pnand %p11433_p8, %p11427_p5 }
  0xa8   :  { %11437 = shalt.err (!%p11434_p9)
}
  0xa9   :  { %136 = dma.hbm_to_vmem [thread:$0]  %s12256_s10, 16, %s134_s12, [#allocation18]  }
  0xaa   :  { %11460 = dma.done.wait [#allocation3], 12288  }
  0xab   :  { %11461 = vsyncadd [#allocation3], 4294955008 }
  0xac   :  { %11462 = dma.done.wait [#allocation6], 832  }
  0xad   :  { %11463 = vsyncadd [#allocation6], 4294966464 }
  0xae   :  { %11464 = dma.done.wait [#allocation9], 92544  }
  0xaf   :  { %11465 = vsyncadd [#allocation9], 4294874752 }
  0xb0   :  { %11466 = dma.done.wait [#allocation12], 28736  }
  0xb1   :  { %11467 = vsyncadd [#allocation12], 4294938560 }
  0xb2   :  { %11468 = dma.done.wait [#allocation15], 2064  }
  0xb3   :  { %11469 = vsyncadd [#allocation15], 4294965232 }
  0xb4   :  { %11470 = dma.done.wait [#allocation18], 16  }
  0xb5   :  { %11471 = vsyncadd [#allocation18], 4294967280  ;;  %vm172_vm0 = vcmask 130048   ;;  %v167_v0 = vld [vmem:[%s12246_s0] sm:$0xff]  ;;  %v168_v1 = vld [vmem:[%s12246_s0 + $0x8] sm:$0xff]  ;;  %v11488_v53 = vmov 0.0  }
  0xb6   :  { %v170_v2 = vld [vmem:[#allocation5] sm:$0xff]  ;;  %v11699_v3 = vpack.c.bf16 %v168_v1, %v167_v0  ;;  %v255_v4 = vld [vmem:[#allocation2 + $0x8] sm:$0xff]  ;;  %v257_v8 = vld [vmem:[#allocation2 + $0x18] sm:$0xff]  ;;  %357 = vmatprep.mubr.f32.mxu1 %v11488_v53  ;;  %vm286_vm1 = vcmask 523264   ;;  %s11489_s10 = smov 96   ;;  %vm1078_vm2 = vcmask 785408  }
  0xb7   :  { %8601 = vmatprep.mubr.msk.f32.mxu0 %vm172_vm0, %v170_v2  ;;  %v259_v5 = vld [vmem:[#allocation2 + $0x28] sm:$0xff]  ;;  %v261_v9 = vld [vmem:[#allocation2 + $0x38] sm:$0xff]  ;;  %v254_v10 = vld [vmem:[#allocation2] sm:$0xff]  ;;  %vm1109_vm3 = vcmask 1046528   ;;  %vm11490_vm4 = vmmov 1   ;;  %vm1140_vm6 = vcmask 121856  }
  0xb8   :  { %v171_v6 = vld [vmem:[#allocation5 + $0x8] sm:$0xff]  ;;  %v8713_v7 = vpack.c.bf16 %v259_v5, %v255_v4  ;;  %8710 = vmatprep.subr.bf16.mxu0 %v11699_v3  ;;  %v8729_v11 = vpack.c.bf16 %v261_v9, %v257_v8  ;;  %v258_v12 = vld [vmem:[#allocation2 + $0x20] sm:$0xff]  ;;  %v256_v13 = vld [vmem:[#allocation2 + $0x10] sm:$0xff]  ;;  %s11492_s24 = smov 64   ;;  %vm11493_vm7 = vmmov 0  }
  0xb9   :  { %v260_v14 = vld [vmem:[#allocation2 + $0x30] sm:$0xff]  ;;  %8712 = vmatpush3.bf16.msra.mxu0 %v11699_v3  ;;  %v8715_v15 = vpack.c.bf16 %v258_v12, %v254_v10  ;;  %v263_v17 = vld [vmem:[#allocation2 + $0x48] sm:$0xff]  ;;  %v265_v19 = vld [vmem:[#allocation2 + $0x58] sm:$0xff] }
  0xba   :  { %8714 = vmatprep.subr.bf16.mxu1 %v8713_v7  ;;  %v8731_v16 = vpack.c.bf16 %v260_v14, %v256_v13  ;;  %v267_v18 = vld [vmem:[#allocation2 + $0x68] sm:$0xff]  ;;  %8730 = vmatprep.subr.bf16.mxu0 %v8729_v11  ;;  %v269_v21 = vld [vmem:[#allocation2 + $0x78] sm:$0xff]  ;;  %v262_v22 = vld [vmem:[#allocation2 + $0x40] sm:$0xff] }
  0xbb   :  { %v8717_v20 = vpack.c.bf16 %v267_v18, %v263_v17  ;;  %v266_v23 = vld [vmem:[#allocation2 + $0x60] sm:$0xff]  ;;  %8716 = vmatpush1.bf16.msra.mxu1 %v8715_v15  ;;  %v8733_v24 = vpack.c.bf16 %v269_v21, %v265_v19  ;;  %v264_v26 = vld [vmem:[#allocation2 + $0x50] sm:$0xff]  ;;  %v271_v28 = vld [vmem:[#allocation2 + $0x88] sm:$0xff] }
  0xbc   :  { %v8719_v25 = vpack.c.bf16 %v266_v23, %v262_v22  ;;  %v268_v27 = vld [vmem:[#allocation2 + $0x70] sm:$0xff]  ;;  %8602 = vmatmul.mubr.msk.f32.vlgmr.msra.gmra.mrb[0].mxu0 %vm172_vm0, %v171_v6  ;;  %v275_v29 = vld [vmem:[#allocation2 + $0xa8] sm:$0xff]  ;;  %v273_v30 = vld [vmem:[#allocation2 + $0x98] sm:$0xff] }
  0xbd   :  { %8718 = vmatprep.subr.bf16.mxu1 %v8717_v20  ;;  %v277_v31 = vld [vmem:[#allocation2 + $0xb8] sm:$0xff]  ;;  %8732 = vmatpush1.bf16.msra.mxu0 %v8731_v16  ;;  %v8735_v32 = vpack.c.bf16 %v268_v27, %v264_v26  ;;  %v8721_v33 = vpack.c.bf16 %v275_v29, %v271_v28  ;;  %v270_v34 = vld [vmem:[#allocation2 + $0x80] sm:$0xff]  ;;  %v272_v36 = vld [vmem:[#allocation2 + $0x90] sm:$0xff] }
  0xbe   :  { %v274_v35 = vld [vmem:[#allocation2 + $0xa0] sm:$0xff]  ;;  %8734 = vmatprep.subr.bf16.mxu0 %v8733_v24  ;;  %v8737_v37 = vpack.c.bf16 %v277_v31, %v273_v30  ;;  %v276_v38 = vld [vmem:[#allocation2 + $0xb0] sm:$0xff]  ;;  %v279_v39 = vld [vmem:[#allocation2 + $0xc8] sm:$0xff]  ;;  %434 = vmatprep.mubr.f32.mxu0 %v11488_v53 }
  0xbf   :  { %v283_v40 = vld [vmem:[#allocation2 + $0xe8] sm:$0xff]  ;;  %8720 = vmatpush1.bf16.msra.mxu1 %v8719_v25  ;;  %v8723_v41 = vpack.c.bf16 %v274_v35, %v270_v34  ;;  %v281_v42 = vld [vmem:[#allocation2 + $0xd8] sm:$0xff]  ;;  %v278_v45 = vld [vmem:[#allocation2 + $0xc0] sm:$0xff]  ;;  %v8739_v47 = vpack.c.bf16 %v276_v38, %v272_v36 }
  0xc0   :  { %v285_v43 = vld [vmem:[#allocation2 + $0xf8] sm:$0xff]  ;;  %8722 = vmatprep.subr.bf16.mxu1 %v8721_v33  ;;  %v8725_v44 = vpack.c.bf16 %v283_v40, %v279_v39  ;;  %v282_v46 = vld [vmem:[#allocation2 + $0xe0] sm:$0xff]  ;;  %v280_v49 = vld [vmem:[#allocation2 + $0xd0] sm:$0xff] }
  0xc1   :  { %8736 = vmatpush1.bf16.msra.mxu0 %v8735_v32  ;;  %v8741_v48 = vpack.c.bf16 %v285_v43, %v281_v42  ;;  %v284_v50 = vld [vmem:[#allocation2 + $0xf0] sm:$0xff]  ;;  %v8727_v51 = vpack.c.bf16 %v282_v46, %v278_v45  ;;  %v564_v54 = vld [vmem:[#allocation2 + $0x118] sm:$0xff]  ;;  %v562_v57 = vld [vmem:[#allocation2 + $0x108] sm:$0xff] }
  0xc2   :  { %8738 = vmatprep.subr.bf16.mxu0 %v8737_v37  ;;  %v8743_v52 = vpack.c.bf16 %v284_v50, %v280_v49  ;;  %v568_v55 = vld [vmem:[#allocation2 + $0x138] sm:$0xff]  ;;  %v563_v58 = vld [vmem:[#allocation2 + $0x110] sm:$0xff]  ;;  %v566_v60 = vld [vmem:[#allocation2 + $0x128] sm:$0xff] }
  0xc3   :  { %8724 = vmatpush1.bf16.msra.mxu1 %v8723_v41  ;;  %v8765_v56 = vpack.c.bf16 %v568_v55, %v564_v54  ;;  %v567_v59 = vld [vmem:[#allocation2 + $0x130] sm:$0xff]  ;;  %v572_v61 = vld [vmem:[#allocation2 + $0x158] sm:$0xff]  ;;  %v8749_v2 = vpack.c.bf16 %v566_v60, %v562_v57  ;;  %v561_v10 = vld [vmem:[#allocation2 + $0x100] sm:$0xff] }
  0xc4   :  { %8726 = vmatprep.subr.bf16.mxu1 %v8725_v44  ;;  %v576_v62 = vld [vmem:[#allocation2 + $0x178] sm:$0xff]  ;;  %v8767_v0 = vpack.c.bf16 %v567_v59, %v563_v58  ;;  %v571_v5 = vld [vmem:[#allocation2 + $0x150] sm:$0xff]  ;;  %v565_v11 = vld [vmem:[#allocation2 + $0x120] sm:$0xff] }
  0xc5   :  { %8740 = vmatpush1.bf16.msra.mxu0 %v8739_v47  ;;  %v8769_v4 = vpack.c.bf16 %v576_v62, %v572_v61  ;;  %v575_v6 = vld [vmem:[#allocation2 + $0x170] sm:$0xff]  ;;  %v580_v7 = vld [vmem:[#allocation2 + $0x198] sm:$0xff]  ;;  %v570_v12 = vld [vmem:[#allocation2 + $0x148] sm:$0xff]  ;;  %v8751_v21 = vpack.c.bf16 %v565_v11, %v561_v10 }
  0xc6   :  { %8742 = vmatprep.subr.bf16.mxu0 %v8741_v48  ;;  %v584_v8 = vld [vmem:[#allocation2 + $0x1b8] sm:$0xff]  ;;  %v477_v9 = vld [vmem:[#allocation5 + $0x10] sm:$0xff]  ;;  %v8771_v13 = vpack.c.bf16 %v575_v6, %v571_v5  ;;  %v574_v14 = vld [vmem:[#allocation2 + $0x168] sm:$0xff] }
  0xc7   :  { %8728 = vmatpush1.bf16.msra.mxu1 %v8727_v51  ;;  %v8773_v15 = vpack.c.bf16 %v584_v8, %v580_v7  ;;  %v579_v16 = vld [vmem:[#allocation2 + $0x190] sm:$0xff]  ;;  %v588_v18 = vld [vmem:[#allocation2 + $0x1d8] sm:$0xff]  ;;  %v8753_v22 = vpack.c.bf16 %v574_v14, %v570_v12  ;;  %v569_v23 = vld [vmem:[#allocation2 + $0x140] sm:$0xff] }
  0xc8   :  { %8746 = vmatprep.subr.bf16.mxu1 %v11699_v3  ;;  %v583_v17 = vld [vmem:[#allocation2 + $0x1b0] sm:$0xff]  ;;  %v592_v19 = vld [vmem:[#allocation2 + $0x1f8] sm:$0xff]  ;;  %v573_v24 = vld [vmem:[#allocation2 + $0x160] sm:$0xff] }
  0xc9   :  { %8744 = vmatpush1.bf16.msra.mxu0 %v8743_v52  ;;  %v478_v20 = vld [vmem:[#allocation5 + $0x18] sm:$0xff]  ;;  %v578_v25 = vld [vmem:[#allocation2 + $0x188] sm:$0xff]  ;;  %v8775_v26 = vpack.c.bf16 %v583_v17, %v579_v16  ;;  %v8777_v28 = vpack.c.bf16 %v592_v19, %v588_v18  ;;  %v587_v29 = vld [vmem:[#allocation2 + $0x1d0] sm:$0xff]  ;;  %v8755_v31 = vpack.c.bf16 %v573_v24, %v569_v23 }
  0xca   :  { %8766 = vmatprep.subr.bf16.mxu0 %v8765_v56  ;;  %v582_v27 = vld [vmem:[#allocation2 + $0x1a8] sm:$0xff]  ;;  %v591_v30 = vld [vmem:[#allocation2 + $0x1f0] sm:$0xff]  ;;  %v577_v33 = vld [vmem:[#allocation2 + $0x180] sm:$0xff] }
  0xcb   :  { %v8757_v32 = vpack.c.bf16 %v582_v27, %v578_v25  ;;  %v581_v34 = vld [vmem:[#allocation2 + $0x1a0] sm:$0xff]  ;;  %v8779_v35 = vpack.c.bf16 %v591_v30, %v587_v29  ;;  %v586_v36 = vld [vmem:[#allocation2 + $0x1c8] sm:$0xff]  ;;  %v849_v46 = vld [vmem:[#allocation2 + $0x218] sm:$0xff] }
  0xcc   :  { %v590_v37 = vld [vmem:[#allocation2 + $0x1e8] sm:$0xff]  ;;  %v8759_v38 = vpack.c.bf16 %v581_v34, %v577_v33  ;;  %v585_v40 = vld [vmem:[#allocation2 + $0x1c0] sm:$0xff]  ;;  %v853_v49 = vld [vmem:[#allocation2 + $0x238] sm:$0xff]  ;;  %v448_v34 = vlaneseq }
  0xcd   :  { %v8761_v39 = vpack.c.bf16 %v590_v37, %v586_v36  ;;  %v589_v41 = vld [vmem:[#allocation2 + $0x1e0] sm:$0xff]  ;;  %v847_v43 = vld [vmem:[#allocation2 + $0x208] sm:$0xff]  ;;  %v8801_v56 = vpack.c.bf16 %v853_v49, %v849_v46  ;;  %v856_v12 = vld [vmem:[#allocation2 + $0x250] sm:$0xff] }
  0xce   :  { %v8763_v42 = vpack.c.bf16 %v589_v41, %v585_v40  ;;  %v851_v44 = vld [vmem:[#allocation2 + $0x228] sm:$0xff]  ;;  %v846_v47 = vld [vmem:[#allocation2 + $0x200] sm:$0xff]  ;;  %v865_v14 = vld [vmem:[#allocation2 + $0x298] sm:$0xff] }
  0xcf   :  { %v8785_v45 = vpack.c.bf16 %v851_v44, %v847_v43  ;;  %v850_v48 = vld [vmem:[#allocation2 + $0x220] sm:$0xff]  ;;  %v855_v50 = vld [vmem:[#allocation2 + $0x248] sm:$0xff]  ;;  %v869_v16 = vld [vmem:[#allocation2 + $0x2b8] sm:$0xff] }
  0xd0   :  { %v859_v51 = vld [vmem:[#allocation2 + $0x268] sm:$0xff]  ;;  %v8787_v54 = vpack.c.bf16 %v850_v48, %v846_v47  ;;  %v854_v58 = vld [vmem:[#allocation2 + $0x240] sm:$0xff]  ;;  %v868_v23 = vld [vmem:[#allocation2 + $0x2b0] sm:$0xff] }
  0xd1   :  { %v8789_v57 = vpack.c.bf16 %v859_v51, %v855_v50  ;;  %v858_v59 = vld [vmem:[#allocation2 + $0x260] sm:$0xff]  ;;  %v863_v60 = vld [vmem:[#allocation2 + $0x288] sm:$0xff]  ;;  %v873_v25 = vld [vmem:[#allocation2 + $0x2d8] sm:$0xff] }
  0xd2   :  { %v867_v61 = vld [vmem:[#allocation2 + $0x2a8] sm:$0xff]  ;;  %v762_v62 = vld [vmem:[#allocation5 + $0x20] sm:$0xff]  ;;  %v872_v29 = vld [vmem:[#allocation2 + $0x2d0] sm:$0xff] }
  0xd3   :  { %v8793_v5 = vpack.c.bf16 %v867_v61, %v863_v60  ;;  %v862_v6 = vld [vmem:[#allocation2 + $0x280] sm:$0xff]  ;;  %v871_v8 = vld [vmem:[#allocation2 + $0x2c8] sm:$0xff]  ;;  %v876_v30 = vld [vmem:[#allocation2 + $0x2f0] sm:$0xff] }
  0xd4   :  { %v866_v7 = vld [vmem:[#allocation2 + $0x2a0] sm:$0xff]  ;;  %v169_v37 = vld [vmem:[#allocation7] sm:$0xf]  ;;  %vm11765_vm5 = vmpackc.low %vm1109_vm3, %vm11490_vm4 }
  0xd5   :  { %v870_v18 = vld [vmem:[#allocation2 + $0x2c0] sm:$0xff] }
  0xd6   :  { %v874_v19 = vld [vmem:[#allocation2 + $0x2e0] sm:$0xff] }
  0xd7   :  { %v8799_v24 = vpack.c.bf16 %v874_v19, %v870_v18 }
 0x18f   :  { %v8603_v63 = vpop.f32.mrb[0].mxu0 }
 0x190   :  { %v245_v1 = vpop.f32.mrb[1].mxu0 }
 0x191   :  { %8169 = vmatmul.mubr.msk.f32.vlgmr.msra.gmra.mrb[0].mxu1 %vm286_vm1, %v245_v1  ;;  %8171 = vmatmul.mubr.msk.f32.vlgmr.msra.gmra.mrb[2].mxu0 %vm286_vm1, %v245_v1  ;;  %v857_v1 = vld [vmem:[#allocation2 + $0x258] sm:$0xff] }
 0x192   :  { %363 = vmatprep.mubr.f32.mxu1 %v11488_v53  ;;  %440 = vmatprep.mubr.f32.mxu0 %v11488_v53 }
 0x193   :  { %8748 = vmatpush3.bf16.msra.mxu1 %v11699_v3  ;;  %8768 = vmatpush1.bf16.msra.mxu0 %v8767_v0  ;;  %v852_v0 = vld [vmem:[#allocation2 + $0x230] sm:$0xff] }
 0x194   :  { %8750 = vmatprep.subr.bf16.mxu1 %v8749_v2  ;;  %8770 = vmatprep.subr.bf16.mxu0 %v8769_v4  ;;  %v8791_v2 = vpack.c.bf16 %v858_v59, %v854_v58  ;;  %v861_v4 = vld [vmem:[#allocation2 + $0x278] sm:$0xff] }
 0x195   :  { %8170 = vmatmul.mubr.msk.f32.gmra.mrb[2].mxu1 %vm286_vm1, %v8603_v63  ;;  %8172 = vmatmul.mubr.msk.f32.gmra.mrb[4].mxu0 %vm286_vm1, %v8603_v63  ;;  %v848_v63 = vld [vmem:[#allocation2 + $0x210] sm:$0xff]  ;;  %v8805_v11 = vpack.c.bf16 %v861_v4, %v857_v1 }
 0x196   :  { %8608 = vmatprep.mubr.msk.f32.mxu1 %vm172_vm0, %v477_v9  ;;  %740 = vmatprep.mubr.f32.mxu0 %v11488_v53  ;;  %v875_v9 = vld [vmem:[#allocation2 + $0x2e8] sm:$0xff]  ;;  %v8803_v10 = vpack.c.bf16 %v852_v0, %v848_v63 }
 0x197   :  { %8772 = vmatpush1.bf16.msra.mxu0 %v8771_v13  ;;  %v860_v13 = vld [vmem:[#allocation2 + $0x270] sm:$0xff]  ;;  %v8797_v17 = vpack.c.bf16 %v875_v9, %v871_v8 }
 0x198   :  { %8774 = vmatprep.subr.bf16.mxu0 %v8773_v15  ;;  %v8795_v15 = vpack.c.bf16 %v866_v7, %v862_v6 }
 0x199   :  { %8609 = vmatmul.mubr.msk.f32.vlgmr.msra.gmra.mrb[4].mxu1 %vm172_vm0, %v478_v20  ;;  %v8807_v20 = vpack.c.bf16 %v860_v13, %v856_v12 }
 0x19a   :  { %8752 = vmatpush1.bf16.msra.mxu1 %v8751_v21  ;;  %663 = vmatprep.mubr.f32.mxu1 %v11488_v53  ;;  %v8809_v21 = vpack.c.bf16 %v869_v16, %v865_v14 }
 0x19b   :  { %8754 = vmatprep.subr.bf16.mxu1 %v8753_v22  ;;  %8776 = vmatpush1.bf16.msra.mxu0 %v8775_v26  ;;  %v864_v22 = vld [vmem:[#allocation2 + $0x290] sm:$0xff]  ;;  %v877_v26 = vld [vmem:[#allocation2 + $0x2f8] sm:$0xff] }
 0x19c   :  { %8778 = vmatprep.subr.bf16.mxu0 %v8777_v28  ;;  %v8811_v27 = vpack.c.bf16 %v868_v23, %v864_v22  ;;  %v8813_v28 = vpack.c.bf16 %v877_v26, %v873_v25 }
 0x19e   :  { %8756 = vmatpush1.bf16.msra.mxu1 %v8755_v31  ;;  %v8815_v31 = vpack.c.bf16 %v876_v30, %v872_v29 }
 0x19f   :  { %8758 = vmatprep.subr.bf16.mxu1 %v8757_v32  ;;  %8780 = vmatpush1.bf16.msra.mxu0 %v8779_v35  ;;  %v449_v35 = vshrl.u32 %v448_v34, 7 }
 0x1a0   :  { %8782 = vmatprep.subr.bf16.mxu0 %v11699_v3 }
 0x1a1   :  { %v11739_v36 = vsub.s32 2, %v449_v35  ;;  %v11748_v43 = vsub.s32 3, %v449_v35 }
 0x1a2   :  { %8760 = vmatpush1.bf16.msra.mxu1 %v8759_v38  ;;  %v11741_v38 = vsub.s32 1, %v449_v35 }
 0x1a3   :  { %8762 = vmatprep.subr.bf16.mxu1 %v8761_v39  ;;  %v11743_v39 = vsub.s32 0, %v449_v35  ;;  %v459_v40 = vrot.slane %v169_v37, %v11739_v36 }
 0x1a4   :  { %v455_v41 = vrot.slane %v169_v37, %v11741_v38 }
 0x1a6   :  { %8764 = vmatpush1.bf16.msra.mxu1 %v8763_v42  ;;  %v451_v42 = vrot.slane %v169_v37, %v11743_v39 }
 0x1a7   :  { %8786 = vmatprep.subr.bf16.mxu1 %v8785_v45 }
 0x26c   :  { %v8610_v52 = vpop.f32.mrb[4].mxu1 }
 0x26d   :  { %v551_v55 = vpop.f32.mrb[5].mxu1 }
 0x26e   :  { %8175 = vmatmul.mubr.msk.f32.vlgmr.msra.gmra.mrb[0].mxu1 %vm286_vm1, %v551_v55  ;;  %8177 = vmatmul.mubr.msk.f32.vlgmr.msra.gmra.mrb[2].mxu0 %vm286_vm1, %v551_v55 }
 0x26f   :  { %669 = vmatprep.mubr.f32.mxu1 %v11488_v53  ;;  %746 = vmatprep.mubr.f32.mxu0 %v11488_v53 }
 0x270   :  { %8784 = vmatpush3.bf16.msra.mxu0 %v11699_v3  ;;  %8788 = vmatpush1.bf16.msra.mxu1 %v8787_v54  ;;  %v763_v3 = vld [vmem:[#allocation5 + $0x28] sm:$0xff] }
 0x271   :  { %8802 = vmatprep.subr.bf16.mxu0 %v8801_v56  ;;  %8790 = vmatprep.subr.bf16.mxu1 %v8789_v57 }
 0x272   :  { %8176 = vmatmul.mubr.msk.f32.gmra.mrb[2].mxu1 %vm286_vm1, %v8610_v52  ;;  %8178 = vmatmul.mubr.msk.f32.gmra.mrb[4].mxu0 %vm286_vm1, %v8610_v52  ;;  %v463_v52 = vrot.slane %v169_v37, %v11748_v43 }
 0x273   :  { %8615 = vmatprep.mubr.msk.f32.mxu0 %vm172_vm0, %v762_v62  ;;  %948 = vmatprep.mubr.f32.mxu1 %v11488_v53 }
 0x274   :  { %8792 = vmatpush1.bf16.msra.mxu1 %v8791_v2 }
 0x275   :  { %8794 = vmatprep.subr.bf16.mxu1 %v8793_v5 }
 0x276   :  { %8616 = vmatmul.mubr.msk.f32.vlgmr.msra.gmra.mrb[6].mxu0 %vm172_vm0, %v763_v3 }
 0x277   :  { %8804 = vmatpush1.bf16.msra.mxu0 %v8803_v10  ;;  %1025 = vmatprep.mubr.f32.mxu0 %v11488_v53 }
 0x278   :  { %8806 = vmatprep.subr.bf16.mxu0 %v8805_v11  ;;  %8796 = vmatpush1.bf16.msra.mxu1 %v8795_v15 }
 0x279   :  { %8798 = vmatprep.subr.bf16.mxu1 %v8797_v17 }
 0x27b   :  { %8808 = vmatpush1.bf16.msra.mxu0 %v8807_v20 }
 0x27c   :  { %8810 = vmatprep.subr.bf16.mxu0 %v8809_v21  ;;  %8800 = vmatpush1.bf16.msra.mxu1 %v8799_v24 }
 0x27f   :  { %8812 = vmatpush1.bf16.msra.mxu0 %v8811_v27 }
 0x280   :  { %8814 = vmatprep.subr.bf16.mxu0 %v8813_v28 }
 0x283   :  { %8816 = vmatpush1.bf16.msra.mxu0 %v8815_v31 }
 0x349   :  { %v8617_v32 = vpop.f32.mrb[6].mxu0 }
 0x34a   :  { %v836_v33 = vpop.f32.mrb[7].mxu0 }
 0x34b   :  { %8181 = vmatmul.mubr.msk.f32.vlgmr.msra.gmra.mrb[0].mxu1 %vm286_vm1, %v836_v33  ;;  %8183 = vmatmul.mubr.msk.f32.vlgmr.msra.gmra.mrb[2].mxu0 %vm286_vm1, %v836_v33 }
 0x34c   :  { %954 = vmatprep.mubr.f32.mxu1 %v11488_v53  ;;  %1031 = vmatprep.mubr.f32.mxu0 %v11488_v53 }
 0x34f   :  { %8182 = vmatmul.mubr.msk.f32.gmra.mrb[2].mxu1 %vm286_vm1, %v8617_v32  ;;  %8184 = vmatmul.mubr.msk.f32.gmra.mrb[4].mxu0 %vm286_vm1, %v8617_v32 }
 0x350   :  { %1220 = vmatprep.mubr.f32.mxu1 %v11488_v53  ;;  %1291 = vmatprep.mubr.f32.mxu0 %v11488_v53 }
 0x41e   :  { %v950_v44 = vpop.f32.mrb[0].mxu1  ;;  %v1027_v45 = vpop.f32.mrb[2].mxu0 }
 0x41f   :  { %v11033_v46 = vadd.f32 %v1027_v45, %v459_v40  ;;  %v952_v47 = vpop.f32.mrb[1].mxu1  ;;  %v1029_v48 = vpop.f32.mrb[3].mxu0  ;;  %v11029_v50 = vadd.f32 %v950_v44, %v451_v42 }
 0x420   :  { %v11030_v49 = vadd.f32 %v952_v47, %v455_v41  ;;  %v11034_v1 = vadd.f32 %v1029_v48, %v463_v52 }
 0x421   :  { %v1048_v51 = vmax.f32 %v11033_v46, 0.0  ;;  %v1046_v0 = vmax.f32 %v11029_v50, 0.0 }
 0x422   :  { %v1047_v54 = vmax.f32 %v11030_v49, 0.0  ;;  %v956_v55 = vpop.f32.mrb[2].mxu1  ;;  %v1033_v56 = vpop.f32.mrb[4].mxu0  ;;  %v1049_v9 = vmax.f32 %v11034_v1, 0.0 }
 0x423   :  { %v11031_v57 = vadd.f32 %v956_v55, %v451_v42  ;;  %v11035_v58 = vadd.f32 %v1033_v56, %v459_v40  ;;  %v958_v59 = vpop.f32.mrb[3].mxu1  ;;  %v1035_v60 = vpop.f32.mrb[5].mxu0  ;;  %v1299_v55 = vld [vmem:[#allocation8 + $0x8] sm:$0xff] }
 0x424   :  { %v11032_v61 = vadd.f32 %v958_v59, %v455_v41  ;;  %v11036_v62 = vadd.f32 %v1035_v60, %v463_v52  ;;  %v11168_v63 = vpack.i.bf16 %v1048_v51, %v1047_v54  ;;  %v1303_v56 = vld [vmem:[#allocation8 + $0x28] sm:$0xff] }
 0x425   :  { %v1050_v2 = vmax.f32 %v11031_v57, 0.0  ;;  %v1052_v4 = vmax.f32 %v11035_v58, 0.0 }
 0x426   :  { %v1051_v5 = vmax.f32 %v11032_v61, 0.0  ;;  %11169 = vrot.lane.b32.xlu0 %v11168_v63, %s11489_s10  ;;  %v1053_v6 = vmax.f32 %v11036_v62, 0.0  ;;  %v1301_v62 = vld [vmem:[#allocation8 + $0x18] sm:$0xff] }
 0x427   :  { %v11178_v7 = vpack.i.bf16 %v1050_v2, %v1046_v0  ;;  %v1305_v63 = vld [vmem:[#allocation8 + $0x38] sm:$0xff] }
 0x428   :  { %v11173_v8 = vpack.i.bf16 %v1052_v4, %v1051_v5  ;;  %v11183_v3 = vpack.i.bf16 %v1053_v6, %v1049_v9 }
 0x429   :  { %11179 = vrot.lane.b32.xlu1 %v11178_v7, %s11489_s10 }
 0x42a   :  { %11174 = vrot.lane.b32.xlu0 %v11173_v8, %s11489_s10 }
 0x42d   :  { %11184 = vrot.lane.b32.xlu1 %v11183_v3, %s11489_s10  ;;  %v1311_v3 = vld [vmem:[#allocation8 + $0x68] sm:$0xff] }
 0x498   :  { %v11170_v10 = vpop.permute.xlu0 %11169 }
 0x499   :  { %v11172_v11 = vunpack.i.h.bf16 %v11170_v10  ;;  %v11171_v12 = vunpack.i.l.bf16 %v11170_v10  ;;  %v8949_v10 = vpack.c.bf16 %v1305_v63, %v1301_v62  ;;  %v1330_v62 = vld [vmem:[#allocation8 + $0x100] sm:$0xff] }
 0x49a   :  { %v1334_v63 = vld [vmem:[#allocation8 + $0x120] sm:$0xff] }
 0x49b   :  { %v11180_v13 = vpop.permute.xlu1 %11179  ;;  %v1080_v14 = vsel %vm1078_vm2, %v11171_v12, %v11172_v11 }
 0x49c   :  { %v11182_v15 = vunpack.i.h.bf16 %v11180_v13  ;;  %v11181_v16 = vunpack.i.l.bf16 %v11180_v13  ;;  %v11175_v17 = vpop.permute.xlu0 %11174  ;;  %v1094_v21 = vmax.f32 %v1047_v54, %v1080_v14  ;;  %v1139_v14 = vld [vmem:[#allocation10] sm:$0xff] }
 0x49d   :  { %v11177_v18 = vunpack.i.h.bf16 %v11175_v17  ;;  %v11176_v19 = vunpack.i.l.bf16 %v11175_v17  ;;  %v1313_v17 = vld [vmem:[#allocation8 + $0x78] sm:$0xff] }
 0x49e   :  { %v1079_v20 = vsel %vm1078_vm2, %v11181_v16, %v11171_v12  ;;  %v1113_v35 = vrot.slane %v1094_v21, 1  ;;  %v1304_v12 = vld [vmem:[#allocation8 + $0x30] sm:$0xff]  ;;  %v1309_v16 = vld [vmem:[#allocation8 + $0x58] sm:$0xff] }
 0x49f   :  { %v1093_v22 = vmax.f32 %v1046_v0, %v1079_v20  ;;  %v1082_v23 = vsel %vm1078_vm2, %v11182_v15, %v11176_v19  ;;  %v1083_v24 = vsel %vm1078_vm2, %v11176_v19, %v11177_v18  ;;  %v11185_v25 = vpop.permute.xlu1 %11184  ;;  %v1306_v19 = vld [vmem:[#allocation8 + $0x40] sm:$0xff] }
 0x4a0   :  { %v1097_v26 = vmax.f32 %v1050_v2, %v1082_v23  ;;  %v1098_v27 = vmax.f32 %v1051_v5, %v1083_v24  ;;  %v11187_v28 = vunpack.i.h.bf16 %v11185_v25  ;;  %v11186_v29 = vunpack.i.l.bf16 %v11185_v25  ;;  %v1298_v5 = vld [vmem:[#allocation8] sm:$0xff]  ;;  %v1319_v23 = vld [vmem:[#allocation8 + $0xa8] sm:$0xff]  ;;  %v1308_v25 = vld [vmem:[#allocation8 + $0x50] sm:$0xff] }
 0x4a1   :  { %v1110_v30 = vrot.slane %v1093_v22, 1  ;;  %v1310_v20 = vld [vmem:[#allocation8 + $0x60] sm:$0xff]  ;;  %v8953_v24 = vpack.c.bf16 %v1313_v17, %v1309_v16  ;;  %v1347_v16 = vld [vmem:[#allocation8 + $0x188] sm:$0xff] }
 0x4a2   :  { %v1111_v31 = vrot.slane %v1097_v26, 1  ;;  %v1114_v32 = vrot.slane %v1098_v27, 1  ;;  %v1100_v33 = vmax.f32 %v1053_v6, %v11187_v28  ;;  %v1081_v34 = vsel %vm1078_vm2, %v11172_v11, %v11186_v29  ;;  %v1302_v6 = vld [vmem:[#allocation8 + $0x20] sm:$0xff]  ;;  %v1300_v11 = vld [vmem:[#allocation8 + $0x10] sm:$0xff]  ;;  %v1351_v17 = vld [vmem:[#allocation8 + $0x1a8] sm:$0xff] }
 0x4a3   :  { %v1084_v37 = vsel %vm1078_vm2, %v11177_v18, %v11187_v28  ;;  %v1095_v40 = vmax.f32 %v1048_v51, %v1081_v34  ;;  %v1096_v41 = vmax.f32 %v1049_v9, %v11186_v29  ;;  %v1307_v9 = vld [vmem:[#allocation8 + $0x48] sm:$0xff]  ;;  %v8831_v15 = vpack.c.bf16 %v1302_v6, %v1298_v5  ;;  %v1317_v28 = vld [vmem:[#allocation8 + $0x98] sm:$0xff]  ;;  %v1332_v6 = vld [vmem:[#allocation8 + $0x110] sm:$0xff] }
 0x4a4   :  { %v1112_v42 = vsel %vm1109_vm3, %v1110_v30, %v1111_v31  ;;  %v1134_v44 = vmax.f32 %v1097_v26, %v1111_v31  ;;  %v1135_v45 = vmax.f32 %v1098_v27, %v1114_v32  ;;  %v1120_v46 = vrot.slane %v1100_v33, 1  ;;  %v1312_v26 = vld [vmem:[#allocation8 + $0x70] sm:$0xff]  ;;  %v1321_v29 = vld [vmem:[#allocation8 + $0xb8] sm:$0xff]  ;;  %v1314_v31 = vld [vmem:[#allocation8 + $0x80] sm:$0xff] }
 0x4a5   :  { %v1130_v47 = vmax.f32 %v1093_v22, %v1112_v42  ;;  %v1099_v48 = vmax.f32 %v1052_v4, %v1084_v37  ;;  %v1116_v49 = vrot.slane %v1095_v40, 1  ;;  %v1119_v50 = vrot.slane %v1096_v41, 1  ;;  %v1315_v22 = vld [vmem:[#allocation8 + $0x88] sm:$0xff]  ;;  %v6701_v51 = vld [vmem:[#allocation8 + $0x1038] sm:$0xff] }
 0x4a6   :  { %v1137_v52 = vmax.f32 %v1100_v33, %v1120_v46  ;;  %v1115_v54 = vsel %vm1109_vm3, %v1113_v35, %v1114_v32  ;;  %v8829_v4 = vpack.c.bf16 %v1303_v56, %v1299_v55  ;;  %v8833_v18 = vpack.c.bf16 %v1311_v3, %v1307_v9  ;;  %v1318_v32 = vld [vmem:[#allocation8 + $0xa0] sm:$0xff]  ;;  %v1323_v34 = vld [vmem:[#allocation8 + $0xc8] sm:$0xff]  ;;  %v1324_v55 = vld [vmem:[#allocation8 + $0xd0] sm:$0xff] }
 0x4a7   :  { %v1117_v57 = vrot.slane %v1099_v48, 1  ;;  %v1121_v58 = vsel %vm1109_vm3, %v1119_v50, %v1120_v46  ;;  %v1131_v59 = vmax.f32 %v1094_v21, %v1115_v54  ;;  %v11769_v60 = vpack.c.bf16 %v1134_v44, %v1130_v47  ;;  %v1327_v35 = vld [vmem:[#allocation8 + $0xe8] sm:$0xff]  ;;  %v1325_v44 = vld [vmem:[#allocation8 + $0xd8] sm:$0xff]  ;;  %v1322_v47 = vld [vmem:[#allocation8 + $0xc0] sm:$0xff] }
 0x4a8   :  { %v1133_v61 = vmax.f32 %v1096_v41, %v1121_v58  ;;  %v8951_v21 = vpack.c.bf16 %v1304_v12, %v1300_v11  ;;  %v8835_v27 = vpack.c.bf16 %v1310_v20, %v1306_v19  ;;  %v8837_v30 = vpack.c.bf16 %v1319_v23, %v1315_v22  ;;  %v1320_v41 = vld [vmem:[#allocation8 + $0xb0] sm:$0xff]  ;;  %v1331_v50 = vld [vmem:[#allocation8 + $0x108] sm:$0xff]  ;;  %v1333_v58 = vld [vmem:[#allocation8 + $0x118] sm:$0xff] }
 0x4a9   :  { %v1118_v0 = vsel %vm1109_vm3, %v1116_v49, %v1117_v57  ;;  %v1136_v1 = vmax.f32 %v1099_v48, %v1117_v57  ;;  %v11772_v2 = vpack.c.bf16 %v1135_v45, %v1131_v59  ;;  %v8955_v33 = vpack.c.bf16 %v1312_v26, %v1308_v25  ;;  %v1329_v45 = vld [vmem:[#allocation8 + $0xf8] sm:$0xff]  ;;  %v1326_v48 = vld [vmem:[#allocation8 + $0xe0] sm:$0xff]  ;;  %v1328_v56 = vld [vmem:[#allocation8 + $0xf0] sm:$0xff] }
 0x4aa   :  { %v1132_v7 = vmax.f32 %v1095_v40, %v1118_v0  ;;  %v11774_v8 = vpack.c.bf16 %v1137_v52, %v1133_v61  ;;  %v8957_v37 = vpack.c.bf16 %v1321_v29, %v1317_v28  ;;  %v1316_v40 = vld [vmem:[#allocation8 + $0x90] sm:$0xff]  ;;  %v8839_v42 = vpack.c.bf16 %v1318_v32, %v1314_v31  ;;  %v1335_v52 = vld [vmem:[#allocation8 + $0x128] sm:$0xff]  ;;  %v1337_v59 = vld [vmem:[#allocation8 + $0x138] sm:$0xff] }
 0x4ab   :  { %8819 = vmatprep.subr.msk.bf16.mxu1 %vm11765_vm5, %v11772_v2  ;;  %v8841_v46 = vpack.c.bf16 %v1327_v35, %v1323_v34  ;;  %v8959_v49 = vpack.c.bf16 %v1320_v41, %v1316_v40  ;;  %v8961_v54 = vpack.c.bf16 %v1329_v45, %v1325_v44  ;;  %v8843_v57 = vpack.c.bf16 %v1326_v48, %v1322_v47  ;;  %v1341_v3 = vld [vmem:[#allocation8 + $0x158] sm:$0xff]  ;;  %v1338_v12 = vld [vmem:[#allocation8 + $0x140] sm:$0xff]  ;;  %v1340_v19 = vld [vmem:[#allocation8 + $0x150] sm:$0xff] }
 0x4ac   :  { %v11779_v13 = vpack.c.bf16 %v1136_v1, %v1132_v7  ;;  %8822 = vmatpush1.bf16.msk.msra.mxu1 %vm11765_vm5, %v11769_v60  ;;  %8825 = vmatprep.subr.msk.bf16.mxu0 %vm11765_vm5, %v11774_v8  ;;  %v8845_v61 = vpack.c.bf16 %v1335_v52, %v1331_v50  ;;  %v8963_v0 = vpack.c.bf16 %v1328_v56, %v1324_v55  ;;  %v1339_v1 = vld [vmem:[#allocation8 + $0x148] sm:$0xff]  ;;  %v1336_v7 = vld [vmem:[#allocation8 + $0x130] sm:$0xff]  ;;  %v1349_v22 = vld [vmem:[#allocation8 + $0x198] sm:$0xff] }
 0x4ad   :  { %8830 = vmatprep.subr.bf16.mxu1 %v8829_v4  ;;  %v1343_v4 = vld [vmem:[#allocation8 + $0x168] sm:$0xff]  ;;  %v8965_v5 = vpack.c.bf16 %v1337_v59, %v1333_v58  ;;  %v8847_v9 = vpack.c.bf16 %v1334_v63, %v1330_v62  ;;  %v1344_v20 = vld [vmem:[#allocation8 + $0x170] sm:$0xff]  ;;  %v1353_v23 = vld [vmem:[#allocation8 + $0x1b8] sm:$0xff] }
 0x4ae   :  { %8828 = vmatpush1.bf16.msk.msra.mxu0 %vm11765_vm5, %v11779_v13  ;;  %v8849_v11 = vpack.c.bf16 %v1343_v4, %v1339_v1  ;;  %v1346_v25 = vld [vmem:[#allocation8 + $0x180] sm:$0xff]  ;;  %v1355_v28 = vld [vmem:[#allocation8 + $0x1c8] sm:$0xff]  ;;  %v1348_v31 = vld [vmem:[#allocation8 + $0x190] sm:$0xff] }
 0x4af   :  { %8187 = vmatmul.mubr.msk.f32.vlgmr.msra.gmra.mrb[6].mxu1 %vm1140_vm6, %v1139_v14  ;;  %8950 = vmatprep.subr.bf16.mxu0 %v8949_v10  ;;  %v1345_v10 = vld [vmem:[#allocation8 + $0x178] sm:$0xff]  ;;  %v1350_v26 = vld [vmem:[#allocation8 + $0x1a0] sm:$0xff]  ;;  %v1359_v29 = vld [vmem:[#allocation8 + $0x1e8] sm:$0xff] }
 0x4b0   :  { %8832 = vmatpush1.bf16.msra.mxu1 %v8831_v15  ;;  %v8967_v15 = vpack.c.bf16 %v1336_v7, %v1332_v6  ;;  %v1352_v32 = vld [vmem:[#allocation8 + $0x1b0] sm:$0xff]  ;;  %v1357_v34 = vld [vmem:[#allocation8 + $0x1d8] sm:$0xff]  ;;  %v1354_v40 = vld [vmem:[#allocation8 + $0x1c0] sm:$0xff] }
 0x4b1   :  { %8190 = vmatmul.mubr.msk.f32.vlgmr.msra.gmra.mrb[8].mxu0 %vm1140_vm6, %v1139_v14  ;;  %8834 = vmatprep.subr.bf16.mxu1 %v8833_v18  ;;  %v1342_v14 = vld [vmem:[#allocation8 + $0x160] sm:$0xff]  ;;  %v8969_v18 = vpack.c.bf16 %v1345_v10, %v1341_v3  ;;  %v1361_v35 = vld [vmem:[#allocation8 + $0x1f8] sm:$0xff]  ;;  %v1363_v44 = vld [vmem:[#allocation8 + $0x208] sm:$0xff] }
 0x4b2   :  { %8952 = vmatpush1.bf16.msra.mxu0 %v8951_v21  ;;  %v8851_v21 = vpack.c.bf16 %v1342_v14, %v1338_v12  ;;  %v1358_v41 = vld [vmem:[#allocation8 + $0x1e0] sm:$0xff]  ;;  %v1367_v45 = vld [vmem:[#allocation8 + $0x228] sm:$0xff]  ;;  %v1356_v47 = vld [vmem:[#allocation8 + $0x1d0] sm:$0xff] }
 0x4b3   :  { %8954 = vmatprep.subr.bf16.mxu0 %v8953_v24  ;;  %v8853_v24 = vpack.c.bf16 %v1351_v17, %v1347_v16  ;;  %v1360_v48 = vld [vmem:[#allocation8 + $0x1f0] sm:$0xff]  ;;  %v1365_v50 = vld [vmem:[#allocation8 + $0x218] sm:$0xff]  ;;  %v1362_v55 = vld [vmem:[#allocation8 + $0x200] sm:$0xff] }
 0x4b4   :  { %8836 = vmatpush1.bf16.msra.mxu1 %v8835_v27  ;;  %v8971_v27 = vpack.c.bf16 %v1344_v20, %v1340_v19  ;;  %v1369_v52 = vld [vmem:[#allocation8 + $0x238] sm:$0xff]  ;;  %v1366_v56 = vld [vmem:[#allocation8 + $0x220] sm:$0xff]  ;;  %v1371_v58 = vld [vmem:[#allocation8 + $0x248] sm:$0xff] }
 0x4b5   :  { %8838 = vmatprep.subr.bf16.mxu1 %v8837_v30  ;;  %v8973_v30 = vpack.c.bf16 %v1353_v23, %v1349_v22  ;;  %v1375_v59 = vld [vmem:[#allocation8 + $0x268] sm:$0xff]  ;;  %v1364_v62 = vld [vmem:[#allocation8 + $0x210] sm:$0xff]  ;;  %v1373_v1 = vld [vmem:[#allocation8 + $0x258] sm:$0xff] }
 0x4b6   :  { %8956 = vmatpush1.bf16.msra.mxu0 %v8955_v33  ;;  %v8855_v33 = vpack.c.bf16 %v1350_v26, %v1346_v25  ;;  %v1368_v63 = vld [vmem:[#allocation8 + $0x230] sm:$0xff]  ;;  %v1377_v4 = vld [vmem:[#allocation8 + $0x278] sm:$0xff]  ;;  %v1370_v6 = vld [vmem:[#allocation8 + $0x240] sm:$0xff] }
 0x4b7   :  { %8958 = vmatprep.subr.bf16.mxu0 %v8957_v37  ;;  %v8857_v37 = vpack.c.bf16 %v1359_v29, %v1355_v28  ;;  %v1374_v7 = vld [vmem:[#allocation8 + $0x260] sm:$0xff]  ;;  %v1379_v3 = vld [vmem:[#allocation8 + $0x288] sm:$0xff]  ;;  %v1372_v12 = vld [vmem:[#allocation8 + $0x250] sm:$0xff] }
 0x4b8   :  { %8840 = vmatpush1.bf16.msra.mxu1 %v8839_v42  ;;  %v8975_v42 = vpack.c.bf16 %v1352_v32, %v1348_v31  ;;  %v1383_v10 = vld [vmem:[#allocation8 + $0x2a8] sm:$0xff]  ;;  %v1376_v14 = vld [vmem:[#allocation8 + $0x270] sm:$0xff]  ;;  %v1381_v16 = vld [vmem:[#allocation8 + $0x298] sm:$0xff] }
 0x4b9   :  { %8842 = vmatprep.subr.bf16.mxu1 %v8841_v46  ;;  %v8977_v46 = vpack.c.bf16 %v1361_v35, %v1357_v34  ;;  %v1385_v17 = vld [vmem:[#allocation8 + $0x2b8] sm:$0xff]  ;;  %v1378_v19 = vld [vmem:[#allocation8 + $0x280] sm:$0xff]  ;;  %v1387_v22 = vld [vmem:[#allocation8 + $0x2c8] sm:$0xff] }
 0x4ba   :  { %8960 = vmatpush1.bf16.msra.mxu0 %v8959_v49  ;;  %v8859_v49 = vpack.c.bf16 %v1358_v41, %v1354_v40  ;;  %v1382_v20 = vld [vmem:[#allocation8 + $0x2a0] sm:$0xff]  ;;  %v1391_v23 = vld [vmem:[#allocation8 + $0x2e8] sm:$0xff]  ;;  %v1380_v25 = vld [vmem:[#allocation8 + $0x290] sm:$0xff] }
 0x4bb   :  { %8962 = vmatprep.subr.bf16.mxu0 %v8961_v54  ;;  %v8861_v54 = vpack.c.bf16 %v1367_v45, %v1363_v44  ;;  %v1384_v26 = vld [vmem:[#allocation8 + $0x2b0] sm:$0xff]  ;;  %v1389_v28 = vld [vmem:[#allocation8 + $0x2d8] sm:$0xff]  ;;  %v1386_v31 = vld [vmem:[#allocation8 + $0x2c0] sm:$0xff] }
 0x4bc   :  { %8844 = vmatpush1.bf16.msra.mxu1 %v8843_v57  ;;  %v8979_v57 = vpack.c.bf16 %v1360_v48, %v1356_v47  ;;  %v1393_v29 = vld [vmem:[#allocation8 + $0x2f8] sm:$0xff]  ;;  %v1390_v32 = vld [vmem:[#allocation8 + $0x2e0] sm:$0xff]  ;;  %v1395_v34 = vld [vmem:[#allocation8 + $0x308] sm:$0xff] }
 0x4bd   :  { %8846 = vmatprep.subr.bf16.mxu1 %v8845_v61  ;;  %v8981_v61 = vpack.c.bf16 %v1369_v52, %v1365_v50  ;;  %v1399_v35 = vld [vmem:[#allocation8 + $0x328] sm:$0xff]  ;;  %v1388_v40 = vld [vmem:[#allocation8 + $0x2d0] sm:$0xff]  ;;  %v1397_v44 = vld [vmem:[#allocation8 + $0x318] sm:$0xff] }
 0x4be   :  { %8964 = vmatpush1.bf16.msra.mxu0 %v8963_v0  ;;  %v8863_v0 = vpack.c.bf16 %v1366_v56, %v1362_v55  ;;  %v1392_v41 = vld [vmem:[#allocation8 + $0x2f0] sm:$0xff]  ;;  %v1401_v45 = vld [vmem:[#allocation8 + $0x338] sm:$0xff]  ;;  %v1394_v47 = vld [vmem:[#allocation8 + $0x300] sm:$0xff] }
 0x4bf   :  { %8966 = vmatprep.subr.bf16.mxu0 %v8965_v5  ;;  %v8865_v5 = vpack.c.bf16 %v1375_v59, %v1371_v58  ;;  %v1398_v48 = vld [vmem:[#allocation8 + $0x320] sm:$0xff]  ;;  %v1403_v50 = vld [vmem:[#allocation8 + $0x348] sm:$0xff]  ;;  %v1396_v55 = vld [vmem:[#allocation8 + $0x310] sm:$0xff] }
 0x4c0   :  { %8848 = vmatpush1.bf16.msra.mxu1 %v8847_v9  ;;  %v8983_v9 = vpack.c.bf16 %v1368_v63, %v1364_v62  ;;  %v1407_v52 = vld [vmem:[#allocation8 + $0x368] sm:$0xff]  ;;  %v1400_v56 = vld [vmem:[#allocation8 + $0x330] sm:$0xff]  ;;  %v1405_v58 = vld [vmem:[#allocation8 + $0x358] sm:$0xff] }
 0x4c1   :  { %8850 = vmatprep.subr.bf16.mxu1 %v8849_v11  ;;  %v8985_v11 = vpack.c.bf16 %v1377_v4, %v1373_v1  ;;  %v1409_v59 = vld [vmem:[#allocation8 + $0x378] sm:$0xff]  ;;  %v1402_v62 = vld [vmem:[#allocation8 + $0x340] sm:$0xff]  ;;  %v1411_v1 = vld [vmem:[#allocation8 + $0x388] sm:$0xff] }
 0x4c2   :  { %8968 = vmatpush1.bf16.msra.mxu0 %v8967_v15  ;;  %v8867_v15 = vpack.c.bf16 %v1374_v7, %v1370_v6  ;;  %v1406_v63 = vld [vmem:[#allocation8 + $0x360] sm:$0xff]  ;;  %v1415_v4 = vld [vmem:[#allocation8 + $0x3a8] sm:$0xff]  ;;  %v1404_v6 = vld [vmem:[#allocation8 + $0x350] sm:$0xff] }
 0x4c3   :  { %8970 = vmatprep.subr.bf16.mxu0 %v8969_v18  ;;  %v8869_v18 = vpack.c.bf16 %v1383_v10, %v1379_v3  ;;  %v1408_v7 = vld [vmem:[#allocation8 + $0x370] sm:$0xff]  ;;  %v1413_v3 = vld [vmem:[#allocation8 + $0x398] sm:$0xff] }
 0x4c4   :  { %8852 = vmatpush1.bf16.msra.mxu1 %v8851_v21  ;;  %v8987_v21 = vpack.c.bf16 %v1376_v14, %v1372_v12  ;;  %v1417_v10 = vld [vmem:[#allocation8 + $0x3b8] sm:$0xff]  ;;  %v1410_v12 = vld [vmem:[#allocation8 + $0x380] sm:$0xff] }
 0x4c5   :  { %8854 = vmatprep.subr.bf16.mxu1 %v8853_v24  ;;  %v8989_v24 = vpack.c.bf16 %v1385_v17, %v1381_v16  ;;  %v1414_v14 = vld [vmem:[#allocation8 + $0x3a0] sm:$0xff]  ;;  %v1419_v16 = vld [vmem:[#allocation8 + $0x3c8] sm:$0xff] }
 0x4c6   :  { %8972 = vmatpush1.bf16.msra.mxu0 %v8971_v27  ;;  %v8871_v27 = vpack.c.bf16 %v1382_v20, %v1378_v19  ;;  %v1423_v17 = vld [vmem:[#allocation8 + $0x3e8] sm:$0xff]  ;;  %v1412_v19 = vld [vmem:[#allocation8 + $0x390] sm:$0xff] }
 0x4c7   :  { %8974 = vmatprep.subr.bf16.mxu0 %v8973_v30  ;;  %v8873_v30 = vpack.c.bf16 %v1391_v23, %v1387_v22  ;;  %v1416_v20 = vld [vmem:[#allocation8 + $0x3b0] sm:$0xff]  ;;  %v1421_v22 = vld [vmem:[#allocation8 + $0x3d8] sm:$0xff] }
 0x4c8   :  { %8856 = vmatpush1.bf16.msra.mxu1 %v8855_v33  ;;  %v8991_v33 = vpack.c.bf16 %v1384_v26, %v1380_v25  ;;  %v1425_v23 = vld [vmem:[#allocation8 + $0x3f8] sm:$0xff]  ;;  %v1418_v25 = vld [vmem:[#allocation8 + $0x3c0] sm:$0xff] }
 0x4c9   :  { %8858 = vmatprep.subr.bf16.mxu1 %v8857_v37  ;;  %v8993_v37 = vpack.c.bf16 %v1393_v29, %v1389_v28  ;;  %v1422_v26 = vld [vmem:[#allocation8 + $0x3e0] sm:$0xff]  ;;  %v9009_v28 = vpack.c.bf16 %v1425_v23, %v1421_v22  ;;  %v1420_v29 = vld [vmem:[#allocation8 + $0x3d0] sm:$0xff] }
 0x4ca   :  { %8976 = vmatpush1.bf16.msra.mxu0 %v8975_v42  ;;  %v8875_v42 = vpack.c.bf16 %v1390_v32, %v1386_v31  ;;  %v8891_v31 = vpack.c.bf16 %v1422_v26, %v1418_v25  ;;  %v1450_v23 = vld [vmem:[#allocation8 + $0x4c0] sm:$0xff] }
 0x4cb   :  { %8978 = vmatprep.subr.bf16.mxu0 %v8977_v46  ;;  %v8877_v46 = vpack.c.bf16 %v1399_v35, %v1395_v34  ;;  %v1431_v34 = vld [vmem:[#allocation8 + $0x428] sm:$0xff]  ;;  %v1429_v35 = vld [vmem:[#allocation8 + $0x418] sm:$0xff] }
 0x4cc   :  { %8860 = vmatpush1.bf16.msra.mxu1 %v8859_v49  ;;  %v8995_v49 = vpack.c.bf16 %v1392_v41, %v1388_v40  ;;  %v1433_v40 = vld [vmem:[#allocation8 + $0x438] sm:$0xff] }
 0x4cd   :  { %8862 = vmatprep.subr.bf16.mxu1 %v8861_v54  ;;  %v8997_v54 = vpack.c.bf16 %v1401_v45, %v1397_v44  ;;  %v9013_v41 = vpack.c.bf16 %v1433_v40, %v1429_v35  ;;  %v1430_v44 = vld [vmem:[#allocation8 + $0x420] sm:$0xff]  ;;  %v1428_v45 = vld [vmem:[#allocation8 + $0x410] sm:$0xff] }
 0x4ce   :  { %8980 = vmatpush1.bf16.msra.mxu0 %v8979_v57  ;;  %v8879_v57 = vpack.c.bf16 %v1398_v48, %v1394_v47  ;;  %v1435_v47 = vld [vmem:[#allocation8 + $0x448] sm:$0xff]  ;;  %v1458_v35 = vld [vmem:[#allocation8 + $0x500] sm:$0xff] }
 0x4cf   :  { %8982 = vmatprep.subr.bf16.mxu0 %v8981_v61  ;;  %v8881_v61 = vpack.c.bf16 %v1407_v52, %v1403_v50  ;;  %v1439_v48 = vld [vmem:[#allocation8 + $0x468] sm:$0xff]  ;;  %v1441_v50 = vld [vmem:[#allocation8 + $0x478] sm:$0xff] }
 0x4d0   :  { %8864 = vmatpush1.bf16.msra.mxu1 %v8863_v0  ;;  %v8999_v0 = vpack.c.bf16 %v1400_v56, %v1396_v55  ;;  %v1434_v56 = vld [vmem:[#allocation8 + $0x440] sm:$0xff] }
 0x4d1   :  { %8866 = vmatprep.subr.bf16.mxu1 %v8865_v5  ;;  %v9001_v5 = vpack.c.bf16 %v1409_v59, %v1405_v58  ;;  %v8897_v59 = vpack.c.bf16 %v1439_v48, %v1435_v47  ;;  %v1469_v47 = vld [vmem:[#allocation8 + $0x558] sm:$0xff] }
 0x4d2   :  { %8984 = vmatpush1.bf16.msra.mxu0 %v8983_v9  ;;  %v8883_v9 = vpack.c.bf16 %v1406_v63, %v1402_v62  ;;  %v1436_v62 = vld [vmem:[#allocation8 + $0x450] sm:$0xff]  ;;  %v1473_v48 = vld [vmem:[#allocation8 + $0x578] sm:$0xff] }
 0x4d3   :  { %8986 = vmatprep.subr.bf16.mxu0 %v8985_v11  ;;  %v8885_v11 = vpack.c.bf16 %v1415_v4, %v1411_v1  ;;  %v1440_v63 = vld [vmem:[#allocation8 + $0x470] sm:$0xff]  ;;  %v1447_v1 = vld [vmem:[#allocation8 + $0x4a8] sm:$0xff]  ;;  %v1445_v4 = vld [vmem:[#allocation8 + $0x498] sm:$0xff] }
 0x4d4   :  { %8868 = vmatpush1.bf16.msra.mxu1 %v8867_v15  ;;  %v9003_v15 = vpack.c.bf16 %v1408_v7, %v1404_v6 }
 0x4d5   :  { %8870 = vmatprep.subr.bf16.mxu1 %v8869_v18  ;;  %v9005_v18 = vpack.c.bf16 %v1417_v10, %v1413_v3  ;;  %v9019_v3 = vpack.c.bf16 %v1440_v63, %v1436_v62  ;;  %v1442_v10 = vld [vmem:[#allocation8 + $0x480] sm:$0xff]  ;;  %v1477_v62 = vld [vmem:[#allocation8 + $0x598] sm:$0xff] }
 0x4d6   :  { %8988 = vmatpush1.bf16.msra.mxu0 %v8987_v21  ;;  %v8887_v21 = vpack.c.bf16 %v1414_v14, %v1410_v12  ;;  %v1481_v63 = vld [vmem:[#allocation8 + $0x5b8] sm:$0xff] }
 0x4d7   :  { %8990 = vmatprep.subr.bf16.mxu0 %v8989_v24  ;;  %v8889_v24 = vpack.c.bf16 %v1423_v17, %v1419_v16  ;;  %v1448_v16 = vld [vmem:[#allocation8 + $0x4b0] sm:$0xff]  ;;  %v1451_v17 = vld [vmem:[#allocation8 + $0x4c8] sm:$0xff] }
 0x4d8   :  { %8872 = vmatpush1.bf16.msra.mxu1 %v8871_v27  ;;  %v9007_v27 = vpack.c.bf16 %v1416_v20, %v1412_v19  ;;  %v1453_v19 = vld [vmem:[#allocation8 + $0x4d8] sm:$0xff] }
 0x4d9   :  { %8874 = vmatprep.subr.bf16.mxu1 %v8873_v30  ;;  %v1424_v30 = vld [vmem:[#allocation8 + $0x3f0] sm:$0xff]  ;;  %v1457_v20 = vld [vmem:[#allocation8 + $0x4f8] sm:$0xff] }
 0x4da   :  { %8992 = vmatpush1.bf16.msra.mxu0 %v8991_v33  ;;  %v9011_v32 = vpack.c.bf16 %v1424_v30, %v1420_v29  ;;  %v1427_v33 = vld [vmem:[#allocation8 + $0x408] sm:$0xff]  ;;  %v9025_v26 = vpack.c.bf16 %v1457_v20, %v1453_v19  ;;  %v1486_v19 = vld [vmem:[#allocation8 + $0x5e0] sm:$0xff] }
 0x4db   :  { %8994 = vmatprep.subr.bf16.mxu0 %v8993_v37  ;;  %v8893_v37 = vpack.c.bf16 %v1431_v34, %v1427_v33  ;;  %v1459_v29 = vld [vmem:[#allocation8 + $0x508] sm:$0xff] }
 0x4dc   :  { %8876 = vmatpush1.bf16.msra.mxu1 %v8875_v42  ;;  %v1426_v42 = vld [vmem:[#allocation8 + $0x400] sm:$0xff]  ;;  %v1463_v30 = vld [vmem:[#allocation8 + $0x528] sm:$0xff] }
 0x4dd   :  { %8878 = vmatprep.subr.bf16.mxu1 %v8877_v46  ;;  %v1432_v46 = vld [vmem:[#allocation8 + $0x430] sm:$0xff]  ;;  %v8909_v40 = vpack.c.bf16 %v1463_v30, %v1459_v29  ;;  %v1490_v30 = vld [vmem:[#allocation8 + $0x600] sm:$0xff] }
 0x4de   :  { %8996 = vmatpush1.bf16.msra.mxu0 %v8995_v49  ;;  %v1437_v49 = vld [vmem:[#allocation8 + $0x458] sm:$0xff]  ;;  %v9015_v55 = vpack.c.bf16 %v1432_v46, %v1428_v45  ;;  %v1467_v45 = vld [vmem:[#allocation8 + $0x548] sm:$0xff] }
 0x4df   :  { %8998 = vmatprep.subr.bf16.mxu0 %v8997_v54  ;;  %v8895_v54 = vpack.c.bf16 %v1430_v44, %v1426_v42  ;;  %v1460_v42 = vld [vmem:[#allocation8 + $0x510] sm:$0xff]  ;;  %v1471_v46 = vld [vmem:[#allocation8 + $0x568] sm:$0xff] }
 0x4e0   :  { %8880 = vmatpush1.bf16.msra.mxu1 %v8879_v57  ;;  %v1438_v57 = vld [vmem:[#allocation8 + $0x460] sm:$0xff]  ;;  %v1464_v44 = vld [vmem:[#allocation8 + $0x530] sm:$0xff] }
 0x4e1   :  { %8882 = vmatprep.subr.bf16.mxu1 %v8881_v61  ;;  %v9017_v61 = vpack.c.bf16 %v1441_v50, %v1437_v49  ;;  %v9031_v50 = vpack.c.bf16 %v1464_v44, %v1460_v42  ;;  %v1505_v42 = vld [vmem:[#allocation8 + $0x678] sm:$0xff] }
 0x4e2   :  { %9000 = vmatpush1.bf16.msra.mxu0 %v8999_v0  ;;  %v1443_v0 = vld [vmem:[#allocation8 + $0x488] sm:$0xff] }
 0x4e3   :  { %9002 = vmatprep.subr.bf16.mxu0 %v9001_v5  ;;  %v1449_v5 = vld [vmem:[#allocation8 + $0x4b8] sm:$0xff]  ;;  %v8901_v12 = vpack.c.bf16 %v1447_v1, %v1443_v0 }
 0x4e4   :  { %8884 = vmatpush1.bf16.msra.mxu1 %v8883_v9  ;;  %v8899_v9 = vpack.c.bf16 %v1438_v57, %v1434_v56  ;;  %v9021_v14 = vpack.c.bf16 %v1449_v5, %v1445_v4  ;;  %v9033_v56 = vpack.c.bf16 %v1473_v48, %v1469_v47  ;;  %v1468_v57 = vld [vmem:[#allocation8 + $0x550] sm:$0xff]  ;;  %v1474_v4 = vld [vmem:[#allocation8 + $0x580] sm:$0xff] }
 0x4e5   :  { %8886 = vmatprep.subr.bf16.mxu1 %v8885_v11  ;;  %v1446_v11 = vld [vmem:[#allocation8 + $0x4a0] sm:$0xff] }
 0x4e6   :  { %9004 = vmatpush1.bf16.msra.mxu0 %v9003_v15  ;;  %v1444_v15 = vld [vmem:[#allocation8 + $0x490] sm:$0xff]  ;;  %v1478_v5 = vld [vmem:[#allocation8 + $0x5a0] sm:$0xff] }
 0x4e7   :  { %9006 = vmatprep.subr.bf16.mxu0 %v9005_v18  ;;  %v1455_v18 = vld [vmem:[#allocation8 + $0x4e8] sm:$0xff]  ;;  %v9023_v22 = vpack.c.bf16 %v1448_v16, %v1444_v15  ;;  %v1489_v15 = vld [vmem:[#allocation8 + $0x5f8] sm:$0xff]  ;;  %v8919_v16 = vpack.c.bf16 %v1478_v5, %v1474_v4  ;;  %v1502_v47 = vld [vmem:[#allocation8 + $0x660] sm:$0xff] }
 0x4e8   :  { %8888 = vmatpush1.bf16.msra.mxu1 %v8887_v21  ;;  %v8903_v21 = vpack.c.bf16 %v1446_v11, %v1442_v10  ;;  %v8905_v25 = vpack.c.bf16 %v1455_v18, %v1451_v17  ;;  %v1480_v10 = vld [vmem:[#allocation8 + $0x5b0] sm:$0xff]  ;;  %v1483_v11 = vld [vmem:[#allocation8 + $0x5c8] sm:$0xff]  ;;  %v1482_v18 = vld [vmem:[#allocation8 + $0x5c0] sm:$0xff] }
 0x4e9   :  { %8890 = vmatprep.subr.bf16.mxu1 %v8889_v24  ;;  %v1454_v24 = vld [vmem:[#allocation8 + $0x4e0] sm:$0xff]  ;;  %v1512_v4 = vld [vmem:[#allocation8 + $0x6b0] sm:$0xff]  ;;  %v1515_v5 = vld [vmem:[#allocation8 + $0x6c8] sm:$0xff] }
 0x4ea   :  { %9008 = vmatpush1.bf16.msra.mxu0 %v9007_v27  ;;  %v1452_v27 = vld [vmem:[#allocation8 + $0x4d0] sm:$0xff]  ;;  %v8907_v33 = vpack.c.bf16 %v1454_v24, %v1450_v23  ;;  %v1491_v24 = vld [vmem:[#allocation8 + $0x608] sm:$0xff] }
 0x4eb   :  { %9010 = vmatprep.subr.bf16.mxu0 %v9009_v28  ;;  %v1456_v28 = vld [vmem:[#allocation8 + $0x4f0] sm:$0xff] }
 0x4ec   :  { %8892 = vmatpush1.bf16.msra.mxu1 %v8891_v31  ;;  %v1461_v31 = vld [vmem:[#allocation8 + $0x518] sm:$0xff]  ;;  %v9027_v34 = vpack.c.bf16 %v1456_v28, %v1452_v27  ;;  %v1488_v23 = vld [vmem:[#allocation8 + $0x5f0] sm:$0xff]  ;;  %v8923_v28 = vpack.c.bf16 %v1486_v19, %v1482_v18  ;;  %v1523_v19 = vld [vmem:[#allocation8 + $0x708] sm:$0xff] }
 0x4ed   :  { %8894 = vmatprep.subr.bf16.mxu1 %v8893_v37  ;;  %v1462_v37 = vld [vmem:[#allocation8 + $0x520] sm:$0xff]  ;;  %v1497_v27 = vld [vmem:[#allocation8 + $0x638] sm:$0xff]  ;;  %v1520_v18 = vld [vmem:[#allocation8 + $0x6f0] sm:$0xff] }
 0x4ee   :  { %9012 = vmatpush1.bf16.msra.mxu0 %v9011_v32  ;;  %v1465_v32 = vld [vmem:[#allocation8 + $0x538] sm:$0xff]  ;;  %v8911_v49 = vpack.c.bf16 %v1462_v37, %v1458_v35  ;;  %v1496_v35 = vld [vmem:[#allocation8 + $0x630] sm:$0xff]  ;;  %v1499_v37 = vld [vmem:[#allocation8 + $0x648] sm:$0xff] }
 0x4ef   :  { %9014 = vmatprep.subr.bf16.mxu0 %v9013_v41  ;;  %v9029_v41 = vpack.c.bf16 %v1465_v32, %v1461_v31  ;;  %v1494_v31 = vld [vmem:[#allocation8 + $0x620] sm:$0xff] }
 0x4f0   :  { %v8927_v44 = vpack.c.bf16 %v1494_v31, %v1490_v30  ;;  %v1528_v30 = vld [vmem:[#allocation8 + $0x730] sm:$0xff]  ;;  %v1531_v31 = vld [vmem:[#allocation8 + $0x748] sm:$0xff] }
 0x582   :  { %v1222_v52 = vpop.f32.mrb[6].mxu1 }
 0x583   :  { %v1224_v58 = vpop.f32.mrb[7].mxu1 }
 0x584   :  { %1605 = vmatprep.mubr.f32.mxu1 %v1224_v58  ;;  %1747 = vmatprep.mubr.f32.mxu0 %v1224_v58  ;;  %v11792_v6 = vpop.f32.mrb[8].mxu0  ;;  %v1472_v58 = vld [vmem:[#allocation8 + $0x570] sm:$0xff] }
 0x585   :  { %1606 = vmatmul.mubr.f32.vlgmr.msra.gmra.mrb[8].mxu1 %v1222_v52  ;;  %1748 = vmatmul.mubr.f32.vlgmr.msra.gmra.mrb[10].mxu0 %v1222_v52  ;;  %v1295_v7 = vpop.f32.mrb[9].mxu0  ;;  %v1466_v52 = vld [vmem:[#allocation8 + $0x540] sm:$0xff]  ;;  %v9035_v1 = vpack.c.bf16 %v1472_v58, %v1468_v57  ;;  %v1513_v57 = vld [vmem:[#allocation8 + $0x6b8] sm:$0xff] }
 0x586   :  { %8896 = vmatpush1.bf16.msra.mxu1 %v8895_v54  ;;  %9016 = vmatpush1.bf16.msra.mxu0 %v9015_v55  ;;  %v1470_v54 = vld [vmem:[#allocation8 + $0x560] sm:$0xff]  ;;  %v8913_v55 = vpack.c.bf16 %v1471_v46, %v1467_v45 }
 0x587   :  { %8898 = vmatprep.subr.bf16.mxu1 %v8897_v59  ;;  %9018 = vmatprep.subr.bf16.mxu0 %v9017_v61  ;;  %v1475_v59 = vld [vmem:[#allocation8 + $0x588] sm:$0xff]  ;;  %v8915_v0 = vpack.c.bf16 %v1470_v54, %v1466_v52  ;;  %v1498_v46 = vld [vmem:[#allocation8 + $0x640] sm:$0xff]  ;;  %v1504_v52 = vld [vmem:[#allocation8 + $0x670] sm:$0xff] }
 0x588   :  { %8191 = vmatprep.mubr.msk.f32.mxu1 %vm1078_vm2, %v1295_v7  ;;  %8192 = vmatprep.mubr.msk.f32.mxu0 %vm1078_vm2, %v1295_v7  ;;  %v1479_v61 = vld [vmem:[#allocation8 + $0x5a8] sm:$0xff]  ;;  %v8931_v58 = vpack.c.bf16 %v1502_v47, %v1498_v46  ;;  %v1536_v46 = vld [vmem:[#allocation8 + $0x770] sm:$0xff] }
 0x589   :  { %v8917_v7 = vpack.c.bf16 %v1479_v61, %v1475_v59  ;;  %v1507_v54 = vld [vmem:[#allocation8 + $0x688] sm:$0xff]  ;;  %v1506_v61 = vld [vmem:[#allocation8 + $0x680] sm:$0xff] }
 0x58a   :  { %8900 = vmatpush1.bf16.msra.mxu1 %v8899_v9  ;;  %9020 = vmatpush1.bf16.msra.mxu0 %v9019_v3  ;;  %v9037_v9 = vpack.c.bf16 %v1481_v63, %v1477_v62  ;;  %v1476_v3 = vld [vmem:[#allocation8 + $0x590] sm:$0xff]  ;;  %v1510_v62 = vld [vmem:[#allocation8 + $0x6a0] sm:$0xff] }
 0x58b   :  { %8902 = vmatprep.subr.bf16.mxu1 %v8901_v12  ;;  %9022 = vmatprep.subr.bf16.mxu0 %v9021_v14  ;;  %v1487_v12 = vld [vmem:[#allocation8 + $0x5e8] sm:$0xff]  ;;  %v1485_v14 = vld [vmem:[#allocation8 + $0x5d8] sm:$0xff]  ;;  %v9039_v17 = vpack.c.bf16 %v1480_v10, %v1476_v3  ;;  %v8935_v10 = vpack.c.bf16 %v1510_v62, %v1506_v61 }
 0x58c   :  { %v8921_v20 = vpack.c.bf16 %v1487_v12, %v1483_v11  ;;  %v1521_v3 = vld [vmem:[#allocation8 + $0x6f8] sm:$0xff]  ;;  %v1514_v12 = vld [vmem:[#allocation8 + $0x6c0] sm:$0xff] }
 0x58e   :  { %8904 = vmatpush1.bf16.msra.mxu1 %v8903_v21  ;;  %9024 = vmatpush1.bf16.msra.mxu0 %v9023_v22  ;;  %v9041_v21 = vpack.c.bf16 %v1489_v15, %v1485_v14  ;;  %v1484_v22 = vld [vmem:[#allocation8 + $0x5d0] sm:$0xff]  ;;  %v1518_v14 = vld [vmem:[#allocation8 + $0x6e0] sm:$0xff] }
 0x58f   :  { %8906 = vmatprep.subr.bf16.mxu1 %v8905_v25  ;;  %9026 = vmatprep.subr.bf16.mxu0 %v9025_v26  ;;  %v1495_v25 = vld [vmem:[#allocation8 + $0x628] sm:$0xff]  ;;  %v1493_v26 = vld [vmem:[#allocation8 + $0x618] sm:$0xff]  ;;  %v9043_v29 = vpack.c.bf16 %v1488_v23, %v1484_v22  ;;  %v8939_v23 = vpack.c.bf16 %v1518_v14, %v1514_v12  ;;  %v2012_v12 = vld [vmem:[#allocation8 + $0x7f0] sm:$0xff] }
 0x590   :  { %v8925_v32 = vpack.c.bf16 %v1495_v25, %v1491_v24  ;;  %v1529_v22 = vld [vmem:[#allocation8 + $0x738] sm:$0xff]  ;;  %v1522_v25 = vld [vmem:[#allocation8 + $0x700] sm:$0xff]  ;;  %v2015_v14 = vld [vmem:[#allocation8 + $0x808] sm:$0xff] }
 0x592   :  { %8908 = vmatpush1.bf16.msra.mxu1 %v8907_v33  ;;  %9028 = vmatpush1.bf16.msra.mxu0 %v9027_v34  ;;  %v9045_v33 = vpack.c.bf16 %v1497_v27, %v1493_v26  ;;  %v1492_v34 = vld [vmem:[#allocation8 + $0x610] sm:$0xff]  ;;  %v1526_v26 = vld [vmem:[#allocation8 + $0x720] sm:$0xff] }
 0x593   :  { %8910 = vmatprep.subr.bf16.mxu1 %v8909_v40  ;;  %9030 = vmatprep.subr.bf16.mxu0 %v9029_v41  ;;  %v1503_v40 = vld [vmem:[#allocation8 + $0x668] sm:$0xff]  ;;  %v1501_v41 = vld [vmem:[#allocation8 + $0x658] sm:$0xff]  ;;  %v9047_v45 = vpack.c.bf16 %v1496_v35, %v1492_v34  ;;  %v8943_v35 = vpack.c.bf16 %v1526_v26, %v1522_v25  ;;  %v2020_v25 = vld [vmem:[#allocation8 + $0x830] sm:$0xff] }
 0x594   :  { %v8929_v48 = vpack.c.bf16 %v1503_v40, %v1499_v37  ;;  %v1537_v34 = vld [vmem:[#allocation8 + $0x778] sm:$0xff]  ;;  %v1530_v40 = vld [vmem:[#allocation8 + $0x740] sm:$0xff]  ;;  %v2023_v26 = vld [vmem:[#allocation8 + $0x848] sm:$0xff] }
 0x596   :  { %8912 = vmatpush1.bf16.msra.mxu1 %v8911_v49  ;;  %9032 = vmatpush1.bf16.msra.mxu0 %v9031_v50  ;;  %v9049_v49 = vpack.c.bf16 %v1505_v42, %v1501_v41  ;;  %v1500_v50 = vld [vmem:[#allocation8 + $0x650] sm:$0xff] }
 0x597   :  { %8914 = vmatprep.subr.bf16.mxu1 %v8913_v55  ;;  %9034 = vmatprep.subr.bf16.mxu0 %v9033_v56  ;;  %v1511_v55 = vld [vmem:[#allocation8 + $0x6a8] sm:$0xff]  ;;  %v1509_v56 = vld [vmem:[#allocation8 + $0x698] sm:$0xff]  ;;  %v9051_v59 = vpack.c.bf16 %v1504_v52, %v1500_v50 }
 0x598   :  { %v8933_v63 = vpack.c.bf16 %v1511_v55, %v1507_v54  ;;  %v2003_v50 = vld [vmem:[#allocation8 + $0x7a8] sm:$0xff]  ;;  %v2001_v52 = vld [vmem:[#allocation8 + $0x798] sm:$0xff]  ;;  %v1998_v55 = vld [vmem:[#allocation8 + $0x780] sm:$0xff] }
 0x599   :  { %v2005_v54 = vld [vmem:[#allocation8 + $0x7b8] sm:$0xff] }
 0x59a   :  { %8916 = vmatpush1.bf16.msra.mxu1 %v8915_v0  ;;  %9036 = vmatpush1.bf16.msra.mxu0 %v9035_v1  ;;  %v9053_v0 = vpack.c.bf16 %v1513_v57, %v1509_v56  ;;  %v1508_v1 = vld [vmem:[#allocation8 + $0x690] sm:$0xff]  ;;  %v2002_v56 = vld [vmem:[#allocation8 + $0x7a0] sm:$0xff]  ;;  %v9201_v62 = vpack.c.bf16 %v2005_v54, %v2001_v52 }
 0x59b   :  { %8918 = vmatprep.subr.bf16.mxu1 %v8917_v7  ;;  %9038 = vmatprep.subr.bf16.mxu0 %v9037_v9  ;;  %v1519_v7 = vld [vmem:[#allocation8 + $0x6e8] sm:$0xff]  ;;  %v1517_v9 = vld [vmem:[#allocation8 + $0x6d8] sm:$0xff]  ;;  %v9055_v11 = vpack.c.bf16 %v1512_v4, %v1508_v1  ;;  %v2000_v57 = vld [vmem:[#allocation8 + $0x790] sm:$0xff] }
 0x59c   :  { %v8937_v15 = vpack.c.bf16 %v1519_v7, %v1515_v5  ;;  %v2013_v1 = vld [vmem:[#allocation8 + $0x7f8] sm:$0xff]  ;;  %v1851_v4 = vld [vmem:[#allocation10 + $0x8] sm:$0xff]  ;;  %v9083_v5 = vpack.c.bf16 %v2002_v56, %v1998_v55  ;;  %v2032_v54 = vld [vmem:[#allocation8 + $0x890] sm:$0xff] }
 0x59d   :  { %v2036_v55 = vld [vmem:[#allocation8 + $0x8b0] sm:$0xff]  ;;  %v2039_v56 = vld [vmem:[#allocation8 + $0x8c8] sm:$0xff] }
 0x59e   :  { %8920 = vmatpush1.bf16.msra.mxu1 %v8919_v16  ;;  %9040 = vmatpush1.bf16.msra.mxu0 %v9039_v17  ;;  %v9057_v16 = vpack.c.bf16 %v1521_v3, %v1517_v9  ;;  %v1516_v17 = vld [vmem:[#allocation8 + $0x6d0] sm:$0xff]  ;;  %v2006_v9 = vld [vmem:[#allocation8 + $0x7c0] sm:$0xff] }
 0x59f   :  { %8922 = vmatprep.subr.bf16.mxu1 %v8921_v20  ;;  %9042 = vmatprep.subr.bf16.mxu0 %v9041_v21  ;;  %v1527_v20 = vld [vmem:[#allocation8 + $0x728] sm:$0xff]  ;;  %v1525_v21 = vld [vmem:[#allocation8 + $0x718] sm:$0xff]  ;;  %v9059_v24 = vpack.c.bf16 %v1520_v18, %v1516_v17  ;;  %v2010_v3 = vld [vmem:[#allocation8 + $0x7e0] sm:$0xff] }
 0x5a0   :  { %v8941_v27 = vpack.c.bf16 %v1527_v20, %v1523_v19  ;;  %v2021_v17 = vld [vmem:[#allocation8 + $0x838] sm:$0xff]  ;;  %v9087_v18 = vpack.c.bf16 %v2010_v3, %v2006_v9  ;;  %v2014_v20 = vld [vmem:[#allocation8 + $0x800] sm:$0xff]  ;;  %v2047_v9 = vld [vmem:[#allocation8 + $0x908] sm:$0xff] }
 0x5a1   :  { %v2051_v3 = vld [vmem:[#allocation8 + $0x928] sm:$0xff] }
 0x5a2   :  { %8924 = vmatpush1.bf16.msra.mxu1 %v8923_v28  ;;  %9044 = vmatpush1.bf16.msra.mxu0 %v9043_v29  ;;  %v9061_v28 = vpack.c.bf16 %v1529_v22, %v1525_v21  ;;  %v1524_v29 = vld [vmem:[#allocation8 + $0x710] sm:$0xff]  ;;  %v2018_v21 = vld [vmem:[#allocation8 + $0x820] sm:$0xff] }
 0x5a3   :  { %8926 = vmatprep.subr.bf16.mxu1 %v8925_v32  ;;  %9046 = vmatprep.subr.bf16.mxu0 %v9045_v33  ;;  %v1535_v32 = vld [vmem:[#allocation8 + $0x768] sm:$0xff]  ;;  %v1533_v33 = vld [vmem:[#allocation8 + $0x758] sm:$0xff]  ;;  %v9063_v37 = vpack.c.bf16 %v1528_v30, %v1524_v29  ;;  %v9091_v30 = vpack.c.bf16 %v2018_v21, %v2014_v20 }
 0x5a4   :  { %v8945_v41 = vpack.c.bf16 %v1535_v32, %v1531_v31  ;;  %v9065_v42 = vpack.c.bf16 %v1537_v34, %v1533_v33  ;;  %v2029_v29 = vld [vmem:[#allocation8 + $0x878] sm:$0xff]  ;;  %v2022_v32 = vld [vmem:[#allocation8 + $0x840] sm:$0xff]  ;;  %v2055_v20 = vld [vmem:[#allocation8 + $0x948] sm:$0xff] }
 0x5a5   :  { %v2026_v33 = vld [vmem:[#allocation8 + $0x860] sm:$0xff]  ;;  %v2059_v21 = vld [vmem:[#allocation8 + $0x968] sm:$0xff] }
 0x5a6   :  { %8928 = vmatpush1.bf16.msra.mxu1 %v8927_v44  ;;  %9048 = vmatpush1.bf16.msra.mxu0 %v9047_v45  ;;  %v1534_v44 = vld [vmem:[#allocation8 + $0x760] sm:$0xff]  ;;  %v1532_v45 = vld [vmem:[#allocation8 + $0x750] sm:$0xff] }
 0x5a7   :  { %8930 = vmatprep.subr.bf16.mxu1 %v8929_v48  ;;  %9050 = vmatprep.subr.bf16.mxu0 %v9049_v49  ;;  %v8947_v47 = vpack.c.bf16 %v1534_v44, %v1530_v40  ;;  %v9067_v48 = vpack.c.bf16 %v1536_v46, %v1532_v45  ;;  %v1999_v49 = vld [vmem:[#allocation8 + $0x788] sm:$0xff]  ;;  %v2028_v40 = vld [vmem:[#allocation8 + $0x870] sm:$0xff]  ;;  %v2033_v44 = vld [vmem:[#allocation8 + $0x898] sm:$0xff]  ;;  %v9095_v46 = vpack.c.bf16 %v2026_v33, %v2022_v32 }
 0x5a8   :  { %v9081_v61 = vpack.c.bf16 %v2003_v50, %v1999_v49  ;;  %v2037_v45 = vld [vmem:[#allocation8 + $0x8b8] sm:$0xff]  ;;  %v2034_v49 = vld [vmem:[#allocation8 + $0x8a0] sm:$0xff]  ;;  %v2063_v32 = vld [vmem:[#allocation8 + $0x988] sm:$0xff] }
 0x5a9   :  { %v9217_v52 = vpack.c.bf16 %v2037_v45, %v2033_v44  ;;  %v2067_v33 = vld [vmem:[#allocation8 + $0x9a8] sm:$0xff] }
 0x5aa   :  { %8932 = vmatpush1.bf16.msra.mxu1 %v8931_v58  ;;  %9052 = vmatpush1.bf16.msra.mxu0 %v9051_v59  ;;  %v2004_v58 = vld [vmem:[#allocation8 + $0x7b0] sm:$0xff]  ;;  %v2007_v59 = vld [vmem:[#allocation8 + $0x7c8] sm:$0xff]  ;;  %v9113_v44 = vpack.c.bf16 %v2067_v33, %v2063_v32  ;;  %v2094_v32 = vld [vmem:[#allocation8 + $0xa80] sm:$0xff] }
 0x5ab   :  { %8934 = vmatprep.subr.bf16.mxu1 %v8933_v63  ;;  %9054 = vmatprep.subr.bf16.mxu0 %v9053_v0  ;;  %v2011_v63 = vld [vmem:[#allocation8 + $0x7e8] sm:$0xff]  ;;  %v2009_v0 = vld [vmem:[#allocation8 + $0x7d8] sm:$0xff]  ;;  %v9203_v7 = vpack.c.bf16 %v2004_v58, %v2000_v57  ;;  %v2098_v33 = vld [vmem:[#allocation8 + $0xaa0] sm:$0xff] }
 0x5ac   :  { %v2043_v57 = vld [vmem:[#allocation8 + $0x8e8] sm:$0xff]  ;;  %v2041_v58 = vld [vmem:[#allocation8 + $0x8d8] sm:$0xff] }
 0x5ae   :  { %8936 = vmatpush1.bf16.msra.mxu1 %v8935_v10  ;;  %9056 = vmatpush1.bf16.msra.mxu0 %v9055_v11  ;;  %v9085_v10 = vpack.c.bf16 %v2011_v63, %v2007_v59  ;;  %v9205_v11 = vpack.c.bf16 %v2013_v1, %v2009_v0  ;;  %v2045_v59 = vld [vmem:[#allocation8 + $0x8f8] sm:$0xff]  ;;  %v2038_v63 = vld [vmem:[#allocation8 + $0x8c0] sm:$0xff]  ;;  %v9101_v1 = vpack.c.bf16 %v2043_v57, %v2039_v56 }
 0x5af   :  { %8938 = vmatprep.subr.bf16.mxu1 %v8937_v15  ;;  %9058 = vmatprep.subr.bf16.mxu0 %v9057_v16  ;;  %v2019_v15 = vld [vmem:[#allocation8 + $0x828] sm:$0xff]  ;;  %v2017_v16 = vld [vmem:[#allocation8 + $0x818] sm:$0xff]  ;;  %v2042_v0 = vld [vmem:[#allocation8 + $0x8e0] sm:$0xff] }
 0x5b0   :  { %v9089_v22 = vpack.c.bf16 %v2019_v15, %v2015_v14  ;;  %v2046_v14 = vld [vmem:[#allocation8 + $0x900] sm:$0xff] }
 0x5b1   :  { %v2050_v15 = vld [vmem:[#allocation8 + $0x920] sm:$0xff] }
 0x5b2   :  { %8940 = vmatpush1.bf16.msra.mxu1 %v8939_v23  ;;  %9060 = vmatpush1.bf16.msra.mxu0 %v9059_v24  ;;  %v9209_v23 = vpack.c.bf16 %v2021_v17, %v2017_v16  ;;  %v2016_v24 = vld [vmem:[#allocation8 + $0x810] sm:$0xff]  ;;  %v9105_v16 = vpack.c.bf16 %v2051_v3, %v2047_v9  ;;  %v2070_v56 = vld [vmem:[#allocation8 + $0x9c0] sm:$0xff] }
 0x5b3   :  { %8942 = vmatprep.subr.bf16.mxu1 %v8941_v27  ;;  %9062 = vmatprep.subr.bf16.mxu0 %v9061_v28  ;;  %v2027_v27 = vld [vmem:[#allocation8 + $0x868] sm:$0xff]  ;;  %v2025_v28 = vld [vmem:[#allocation8 + $0x858] sm:$0xff]  ;;  %v9211_v31 = vpack.c.bf16 %v2020_v25, %v2016_v24  ;;  %v9107_v24 = vpack.c.bf16 %v2050_v15, %v2046_v14  ;;  %v2074_v57 = vld [vmem:[#allocation8 + $0x9e0] sm:$0xff] }
 0x5b4   :  { %v9093_v34 = vpack.c.bf16 %v2027_v27, %v2023_v26  ;;  %v2054_v26 = vld [vmem:[#allocation8 + $0x940] sm:$0xff]  ;;  %v2087_v14 = vld [vmem:[#allocation8 + $0xa48] sm:$0xff] }
 0x5b5   :  { %v2058_v27 = vld [vmem:[#allocation8 + $0x960] sm:$0xff]  ;;  %v2091_v15 = vld [vmem:[#allocation8 + $0xa68] sm:$0xff] }
 0x5b6   :  { %8944 = vmatpush1.bf16.msra.mxu1 %v8943_v35  ;;  %9064 = vmatpush1.bf16.msra.mxu0 %v9063_v37  ;;  %v9213_v35 = vpack.c.bf16 %v2029_v29, %v2025_v28  ;;  %v2024_v37 = vld [vmem:[#allocation8 + $0x850] sm:$0xff]  ;;  %v9109_v28 = vpack.c.bf16 %v2059_v21, %v2055_v20  ;;  %v2078_v9 = vld [vmem:[#allocation8 + $0xa00] sm:$0xff] }
 0x5b7   :  { %8946 = vmatprep.subr.bf16.mxu1 %v8945_v41  ;;  %9066 = vmatprep.subr.bf16.mxu0 %v9065_v42  ;;  %v2031_v41 = vld [vmem:[#allocation8 + $0x888] sm:$0xff]  ;;  %v2082_v3 = vld [vmem:[#allocation8 + $0xa20] sm:$0xff] }
 0x5b8   :  { %v2035_v42 = vld [vmem:[#allocation8 + $0x8a8] sm:$0xff]  ;;  %v2086_v20 = vld [vmem:[#allocation8 + $0xa40] sm:$0xff] }
 0x5b9   :  { %v9097_v50 = vpack.c.bf16 %v2035_v42, %v2031_v41  ;;  %v2062_v41 = vld [vmem:[#allocation8 + $0x980] sm:$0xff] }
 0x5ba   :  { %8948 = vmatpush1.bf16.msra.mxu1 %v8947_v47  ;;  %9068 = vmatpush1.bf16.msra.mxu0 %v9067_v48  ;;  %v9215_v47 = vpack.c.bf16 %v2028_v40, %v2024_v37  ;;  %v2030_v48 = vld [vmem:[#allocation8 + $0x880] sm:$0xff]  ;;  %v9111_v37 = vpack.c.bf16 %v2058_v27, %v2054_v26  ;;  %v2095_v26 = vld [vmem:[#allocation8 + $0xa88] sm:$0xff] }
 0x5bb   :  { %9071 = vmatprep.subr.msk.bf16.mxu1 %vm11765_vm5, %v11772_v2  ;;  %9077 = vmatprep.subr.msk.bf16.mxu0 %vm11765_vm5, %v11774_v8  ;;  %v2066_v42 = vld [vmem:[#allocation8 + $0x9a0] sm:$0xff]  ;;  %v2099_v27 = vld [vmem:[#allocation8 + $0xaa8] sm:$0xff] }
 0x5bc   :  { %v2090_v21 = vld [vmem:[#allocation8 + $0xa60] sm:$0xff] }
 0x5bd   :  { %1677 = vmatmul.mubr.f32.vlgmr.msra.gmra.mrb[8].mxu1 %v11792_v6  ;;  %1819 = vmatmul.mubr.f32.vlgmr.msra.gmra.mrb[10].mxu0 %v11792_v6  ;;  %v2008_v6 = vld [vmem:[#allocation8 + $0x7d0] sm:$0xff] }
 0x5be   :  { %9074 = vmatpush1.bf16.msk.msra.mxu1 %vm11765_vm5, %v11769_v60  ;;  %9080 = vmatpush1.bf16.msk.msra.mxu0 %vm11765_vm5, %v11779_v13  ;;  %v9207_v19 = vpack.c.bf16 %v2012_v12, %v2008_v6  ;;  %v9103_v6 = vpack.c.bf16 %v2042_v0, %v2038_v63  ;;  %v2079_v63 = vld [vmem:[#allocation8 + $0xa08] sm:$0xff] }
 0x5bf   :  { %1919 = vmatprep.mubr.f32.mxu1 %v11488_v53  ;;  %1990 = vmatprep.mubr.f32.mxu0 %v11488_v53  ;;  %v2083_v0 = vld [vmem:[#allocation8 + $0xa28] sm:$0xff] }
 0x5c0   :  { %9082 = vmatprep.subr.bf16.mxu1 %v9081_v61  ;;  %9202 = vmatprep.subr.bf16.mxu0 %v9201_v62  ;;  %v9099_v61 = vpack.c.bf16 %v2034_v49, %v2030_v48  ;;  %v9219_v62 = vpack.c.bf16 %v2036_v55, %v2032_v54  ;;  %v2071_v48 = vld [vmem:[#allocation8 + $0x9c8] sm:$0xff]  ;;  %v9115_v54 = vpack.c.bf16 %v2066_v42, %v2062_v41 }
 0x5c1   :  { %8195 = vmatmul.mubr.msk.f32.vlgmr.msra.gmra.mrb[10].mxu1 %vm1140_vm6, %v1851_v4  ;;  %8198 = vmatmul.mubr.msk.f32.vlgmr.msra.gmra.mrb[12].mxu0 %vm1140_vm6, %v1851_v4  ;;  %v9221_v4 = vpack.c.bf16 %v2045_v59, %v2041_v58  ;;  %v2075_v49 = vld [vmem:[#allocation8 + $0x9e8] sm:$0xff] }
 0x5c2   :  { %9084 = vmatpush1.bf16.msra.mxu1 %v9083_v5  ;;  %9204 = vmatpush1.bf16.msra.mxu0 %v9203_v7  ;;  %v2040_v5 = vld [vmem:[#allocation8 + $0x8d0] sm:$0xff]  ;;  %v9117_v58 = vpack.c.bf16 %v2075_v49, %v2071_v48  ;;  %v2103_v41 = vld [vmem:[#allocation8 + $0xac8] sm:$0xff]  ;;  %v2102_v48 = vld [vmem:[#allocation8 + $0xac0] sm:$0xff] }
 0x5c3   :  { %9086 = vmatprep.subr.bf16.mxu1 %v9085_v10  ;;  %9206 = vmatprep.subr.bf16.mxu0 %v9205_v11  ;;  %v2044_v7 = vld [vmem:[#allocation8 + $0x8f0] sm:$0xff]  ;;  %v2049_v10 = vld [vmem:[#allocation8 + $0x918] sm:$0xff]  ;;  %v2107_v42 = vld [vmem:[#allocation8 + $0xae8] sm:$0xff] }
 0x5c4   :  { %v2053_v11 = vld [vmem:[#allocation8 + $0x938] sm:$0xff]  ;;  %v9223_v12 = vpack.c.bf16 %v2044_v7, %v2040_v5  ;;  %v9119_v5 = vpack.c.bf16 %v2074_v57, %v2070_v56  ;;  %v2106_v49 = vld [vmem:[#allocation8 + $0xae0] sm:$0xff]  ;;  %v2111_v56 = vld [vmem:[#allocation8 + $0xb08] sm:$0xff] }
 0x5c5   :  { %v9225_v17 = vpack.c.bf16 %v2053_v11, %v2049_v10  ;;  %v9121_v10 = vpack.c.bf16 %v2083_v0, %v2079_v63  ;;  %v2115_v57 = vld [vmem:[#allocation8 + $0xb28] sm:$0xff]  ;;  %v2110_v63 = vld [vmem:[#allocation8 + $0xb00] sm:$0xff] }
 0x5c6   :  { %9088 = vmatpush1.bf16.msra.mxu1 %v9087_v18  ;;  %9208 = vmatpush1.bf16.msra.mxu0 %v9207_v19  ;;  %v2048_v18 = vld [vmem:[#allocation8 + $0x910] sm:$0xff]  ;;  %v2114_v0 = vld [vmem:[#allocation8 + $0xb20] sm:$0xff] }
 0x5c7   :  { %9090 = vmatprep.subr.bf16.mxu1 %v9089_v22  ;;  %9210 = vmatprep.subr.bf16.mxu0 %v9209_v23  ;;  %v2052_v19 = vld [vmem:[#allocation8 + $0x930] sm:$0xff]  ;;  %v2057_v22 = vld [vmem:[#allocation8 + $0x958] sm:$0xff] }
 0x5c8   :  { %v2061_v23 = vld [vmem:[#allocation8 + $0x978] sm:$0xff]  ;;  %v9227_v25 = vpack.c.bf16 %v2052_v19, %v2048_v18  ;;  %v9123_v18 = vpack.c.bf16 %v2082_v3, %v2078_v9  ;;  %v2119_v9 = vld [vmem:[#allocation8 + $0xb48] sm:$0xff] }
 0x5c9   :  { %v9229_v29 = vpack.c.bf16 %v2061_v23, %v2057_v22  ;;  %v9125_v22 = vpack.c.bf16 %v2091_v15, %v2087_v14  ;;  %v2123_v3 = vld [vmem:[#allocation8 + $0xb68] sm:$0xff]  ;;  %v2118_v14 = vld [vmem:[#allocation8 + $0xb40] sm:$0xff] }
 0x5ca   :  { %9092 = vmatpush1.bf16.msra.mxu1 %v9091_v30  ;;  %9212 = vmatpush1.bf16.msra.mxu0 %v9211_v31  ;;  %v2056_v30 = vld [vmem:[#allocation8 + $0x950] sm:$0xff]  ;;  %v9141_v15 = vpack.c.bf16 %v2123_v3, %v2119_v9  ;;  %v2153_v9 = vld [vmem:[#allocation8 + $0xc58] sm:$0xff] }
 0x5cb   :  { %9094 = vmatprep.subr.bf16.mxu1 %v9093_v34  ;;  %9214 = vmatprep.subr.bf16.mxu0 %v9213_v35  ;;  %v2060_v31 = vld [vmem:[#allocation8 + $0x970] sm:$0xff]  ;;  %v2065_v34 = vld [vmem:[#allocation8 + $0x998] sm:$0xff] }
 0x5cc   :  { %v2069_v35 = vld [vmem:[#allocation8 + $0x9b8] sm:$0xff]  ;;  %v9231_v40 = vpack.c.bf16 %v2060_v31, %v2056_v30  ;;  %v9127_v30 = vpack.c.bf16 %v2090_v21, %v2086_v20 }
 0x5cd   :  { %v9233_v45 = vpack.c.bf16 %v2069_v35, %v2065_v34  ;;  %v9129_v34 = vpack.c.bf16 %v2099_v27, %v2095_v26  ;;  %v2133_v26 = vld [vmem:[#allocation8 + $0xbb8] sm:$0xff] }
 0x5ce   :  { %9096 = vmatpush1.bf16.msra.mxu1 %v9095_v46  ;;  %9216 = vmatpush1.bf16.msra.mxu0 %v9215_v47  ;;  %v2064_v46 = vld [vmem:[#allocation8 + $0x990] sm:$0xff]  ;;  %v2157_v3 = vld [vmem:[#allocation8 + $0xc78] sm:$0xff] }
 0x5cf   :  { %9098 = vmatprep.subr.bf16.mxu1 %v9097_v50  ;;  %9218 = vmatprep.subr.bf16.mxu0 %v9217_v52  ;;  %v2068_v47 = vld [vmem:[#allocation8 + $0x9b0] sm:$0xff]  ;;  %v2073_v50 = vld [vmem:[#allocation8 + $0x9d8] sm:$0xff] }
 0x5d0   :  { %v2077_v52 = vld [vmem:[#allocation8 + $0x9f8] sm:$0xff]  ;;  %v9235_v55 = vpack.c.bf16 %v2068_v47, %v2064_v46  ;;  %v9131_v46 = vpack.c.bf16 %v2098_v33, %v2094_v32  ;;  %v2135_v32 = vld [vmem:[#allocation8 + $0xbc8] sm:$0xff] }
 0x5d1   :  { %v9237_v59 = vpack.c.bf16 %v2077_v52, %v2073_v50  ;;  %v9133_v50 = vpack.c.bf16 %v2107_v42, %v2103_v41  ;;  %v2139_v33 = vld [vmem:[#allocation8 + $0xbe8] sm:$0xff]  ;;  %v2134_v42 = vld [vmem:[#allocation8 + $0xbc0] sm:$0xff] }
 0x5d2   :  { %9100 = vmatpush1.bf16.msra.mxu1 %v9099_v61  ;;  %9220 = vmatpush1.bf16.msra.mxu0 %v9219_v62  ;;  %v2072_v61 = vld [vmem:[#allocation8 + $0x9d0] sm:$0xff] }
 0x5d3   :  { %9102 = vmatprep.subr.bf16.mxu1 %v9101_v1  ;;  %9222 = vmatprep.subr.bf16.mxu0 %v9221_v4  ;;  %v2076_v62 = vld [vmem:[#allocation8 + $0x9f0] sm:$0xff]  ;;  %v2081_v1 = vld [vmem:[#allocation8 + $0xa18] sm:$0xff] }
 0x5d4   :  { %v2085_v4 = vld [vmem:[#allocation8 + $0xa38] sm:$0xff]  ;;  %v9239_v7 = vpack.c.bf16 %v2076_v62, %v2072_v61  ;;  %v9135_v61 = vpack.c.bf16 %v2106_v49, %v2102_v48  ;;  %v2136_v49 = vld [vmem:[#allocation8 + $0xbd0] sm:$0xff] }
 0x5d5   :  { %v9241_v11 = vpack.c.bf16 %v2085_v4, %v2081_v1  ;;  %v9137_v1 = vpack.c.bf16 %v2115_v57, %v2111_v56  ;;  %v2145_v56 = vld [vmem:[#allocation8 + $0xc18] sm:$0xff] }
 0x5d6   :  { %9104 = vmatpush1.bf16.msra.mxu1 %v9103_v6  ;;  %9224 = vmatpush1.bf16.msra.mxu0 %v9223_v12  ;;  %v2080_v6 = vld [vmem:[#allocation8 + $0xa10] sm:$0xff]  ;;  %v2149_v57 = vld [vmem:[#allocation8 + $0xc38] sm:$0xff] }
 0x5d7   :  { %9106 = vmatprep.subr.bf16.mxu1 %v9105_v16  ;;  %9226 = vmatprep.subr.bf16.mxu0 %v9225_v17  ;;  %v2084_v12 = vld [vmem:[#allocation8 + $0xa30] sm:$0xff]  ;;  %v2089_v16 = vld [vmem:[#allocation8 + $0xa58] sm:$0xff] }
 0x5d8   :  { %v2093_v17 = vld [vmem:[#allocation8 + $0xa78] sm:$0xff]  ;;  %v9243_v19 = vpack.c.bf16 %v2084_v12, %v2080_v6  ;;  %v9139_v6 = vpack.c.bf16 %v2114_v0, %v2110_v63  ;;  %v9273_v0 = vpack.c.bf16 %v2149_v57, %v2145_v56  ;;  %v2178_v56 = vld [vmem:[#allocation8 + $0xd20] sm:$0xff] }
 0x5d9   :  { %v9245_v23 = vpack.c.bf16 %v2093_v17, %v2089_v16  ;;  %v2122_v17 = vld [vmem:[#allocation8 + $0xb60] sm:$0xff] }
 0x5da   :  { %9108 = vmatpush1.bf16.msra.mxu1 %v9107_v24  ;;  %9228 = vmatpush1.bf16.msra.mxu0 %v9227_v25  ;;  %v2088_v24 = vld [vmem:[#allocation8 + $0xa50] sm:$0xff]  ;;  %v9143_v20 = vpack.c.bf16 %v2122_v17, %v2118_v14 }
 0x5db   :  { %9110 = vmatprep.subr.bf16.mxu1 %v9109_v28  ;;  %9230 = vmatprep.subr.bf16.mxu0 %v9229_v29  ;;  %v2092_v25 = vld [vmem:[#allocation8 + $0xa70] sm:$0xff]  ;;  %v2097_v28 = vld [vmem:[#allocation8 + $0xa98] sm:$0xff] }
 0x5dc   :  { %v2101_v29 = vld [vmem:[#allocation8 + $0xab8] sm:$0xff]  ;;  %v9247_v31 = vpack.c.bf16 %v2092_v25, %v2088_v24  ;;  %v2156_v17 = vld [vmem:[#allocation8 + $0xc70] sm:$0xff] }
 0x5dd   :  { %v9249_v35 = vpack.c.bf16 %v2101_v29, %v2097_v28  ;;  %v2129_v24 = vld [vmem:[#allocation8 + $0xb98] sm:$0xff]  ;;  %v2126_v28 = vld [vmem:[#allocation8 + $0xb80] sm:$0xff] }
 0x5de   :  { %9112 = vmatpush1.bf16.msra.mxu1 %v9111_v37  ;;  %9232 = vmatpush1.bf16.msra.mxu0 %v9231_v40  ;;  %v2096_v37 = vld [vmem:[#allocation8 + $0xa90] sm:$0xff]  ;;  %v9265_v27 = vpack.c.bf16 %v2133_v26, %v2129_v24  ;;  %v2130_v29 = vld [vmem:[#allocation8 + $0xba0] sm:$0xff] }
 0x5df   :  { %9114 = vmatprep.subr.bf16.mxu1 %v9113_v44  ;;  %9234 = vmatprep.subr.bf16.mxu0 %v9233_v45  ;;  %v2100_v40 = vld [vmem:[#allocation8 + $0xab0] sm:$0xff]  ;;  %v2105_v44 = vld [vmem:[#allocation8 + $0xad8] sm:$0xff]  ;;  %v2158_v24 = vld [vmem:[#allocation8 + $0xc80] sm:$0xff] }
 0x5e0   :  { %v2109_v45 = vld [vmem:[#allocation8 + $0xaf8] sm:$0xff]  ;;  %v9251_v47 = vpack.c.bf16 %v2100_v40, %v2096_v37  ;;  %v9147_v40 = vpack.c.bf16 %v2130_v29, %v2126_v28  ;;  %v2160_v28 = vld [vmem:[#allocation8 + $0xc90] sm:$0xff] }
 0x5e1   :  { %v9253_v52 = vpack.c.bf16 %v2109_v45, %v2105_v44  ;;  %v2138_v44 = vld [vmem:[#allocation8 + $0xbe0] sm:$0xff]  ;;  %v2164_v29 = vld [vmem:[#allocation8 + $0xcb0] sm:$0xff] }
 0x5e2   :  { %9116 = vmatpush1.bf16.msra.mxu1 %v9115_v54  ;;  %9236 = vmatpush1.bf16.msra.mxu0 %v9235_v55  ;;  %v2104_v54 = vld [vmem:[#allocation8 + $0xad0] sm:$0xff] }
 0x5e3   :  { %9118 = vmatprep.subr.bf16.mxu1 %v9117_v58  ;;  %9238 = vmatprep.subr.bf16.mxu0 %v9237_v59  ;;  %v2108_v55 = vld [vmem:[#allocation8 + $0xaf0] sm:$0xff]  ;;  %v2113_v58 = vld [vmem:[#allocation8 + $0xb18] sm:$0xff] }
 0x5e4   :  { %v2117_v59 = vld [vmem:[#allocation8 + $0xb38] sm:$0xff]  ;;  %v9255_v62 = vpack.c.bf16 %v2108_v55, %v2104_v54  ;;  %v2147_v55 = vld [vmem:[#allocation8 + $0xc28] sm:$0xff] }
 0x5e5   :  { %v9257_v4 = vpack.c.bf16 %v2117_v59, %v2113_v58  ;;  %v9151_v58 = vpack.c.bf16 %v2138_v44, %v2134_v42  ;;  %v2168_v44 = vld [vmem:[#allocation8 + $0xcd0] sm:$0xff] }
 0x5e6   :  { %9120 = vmatpush1.bf16.msra.mxu1 %v9119_v5  ;;  %9240 = vmatpush1.bf16.msra.mxu0 %v9239_v7  ;;  %v2112_v5 = vld [vmem:[#allocation8 + $0xb10] sm:$0xff] }
 0x5e7   :  { %9122 = vmatprep.subr.bf16.mxu1 %v9121_v10  ;;  %9242 = vmatprep.subr.bf16.mxu0 %v9241_v11  ;;  %v2116_v7 = vld [vmem:[#allocation8 + $0xb30] sm:$0xff]  ;;  %v2121_v10 = vld [vmem:[#allocation8 + $0xb58] sm:$0xff] }
 0x5e8   :  { %v2125_v11 = vld [vmem:[#allocation8 + $0xb78] sm:$0xff]  ;;  %v9259_v12 = vpack.c.bf16 %v2116_v7, %v2112_v5  ;;  %v2151_v5 = vld [vmem:[#allocation8 + $0xc48] sm:$0xff] }
 0x5e9   :  { %v9261_v16 = vpack.c.bf16 %v2125_v11, %v2121_v10  ;;  %v2155_v7 = vld [vmem:[#allocation8 + $0xc68] sm:$0xff] }
 0x5ea   :  { %9124 = vmatpush1.bf16.msra.mxu1 %v9123_v18  ;;  %9244 = vmatpush1.bf16.msra.mxu0 %v9243_v19  ;;  %v2120_v18 = vld [vmem:[#allocation8 + $0xb50] sm:$0xff]  ;;  %v9157_v14 = vpack.c.bf16 %v2155_v7, %v2151_v5  ;;  %v2182_v7 = vld [vmem:[#allocation8 + $0xd40] sm:$0xff] }
 0x5eb   :  { %9126 = vmatprep.subr.bf16.mxu1 %v9125_v22  ;;  %9246 = vmatprep.subr.bf16.mxu0 %v9245_v23  ;;  %v2124_v19 = vld [vmem:[#allocation8 + $0xb70] sm:$0xff]  ;;  %v2127_v22 = vld [vmem:[#allocation8 + $0xb88] sm:$0xff] }
 0x5ec   :  { %v9263_v21 = vpack.c.bf16 %v2124_v19, %v2120_v18  ;;  %v2131_v23 = vld [vmem:[#allocation8 + $0xba8] sm:$0xff] }
 0x5ed   :  { %v9145_v25 = vpack.c.bf16 %v2131_v23, %v2127_v22  ;;  %v2159_v18 = vld [vmem:[#allocation8 + $0xc88] sm:$0xff] }
 0x5ee   :  { %9128 = vmatpush1.bf16.msra.mxu1 %v9127_v30  ;;  %9248 = vmatpush1.bf16.msra.mxu0 %v9247_v31  ;;  %v2128_v30 = vld [vmem:[#allocation8 + $0xb90] sm:$0xff]  ;;  %v2163_v19 = vld [vmem:[#allocation8 + $0xca8] sm:$0xff] }
 0x5ef   :  { %9130 = vmatprep.subr.bf16.mxu1 %v9129_v34  ;;  %9250 = vmatprep.subr.bf16.mxu0 %v9249_v35  ;;  %v2132_v31 = vld [vmem:[#allocation8 + $0xbb0] sm:$0xff]  ;;  %v2137_v34 = vld [vmem:[#allocation8 + $0xbd8] sm:$0xff]  ;;  %v9161_v26 = vpack.c.bf16 %v2163_v19, %v2159_v18  ;;  %v2190_v19 = vld [vmem:[#allocation8 + $0xd80] sm:$0xff] }
 0x5f0   :  { %v2141_v35 = vld [vmem:[#allocation8 + $0xbf8] sm:$0xff]  ;;  %v9267_v41 = vpack.c.bf16 %v2132_v31, %v2128_v30  ;;  %v2167_v30 = vld [vmem:[#allocation8 + $0xcc8] sm:$0xff] }
 0x5f1   :  { %v9269_v48 = vpack.c.bf16 %v2141_v35, %v2137_v34  ;;  %v2171_v31 = vld [vmem:[#allocation8 + $0xce8] sm:$0xff]  ;;  %v9283_v35 = vpack.c.bf16 %v2164_v29, %v2160_v28  ;;  %v2205_v28 = vld [vmem:[#allocation8 + $0xdf8] sm:$0xff] }
 0x5f2   :  { %9132 = vmatpush1.bf16.msra.mxu1 %v9131_v46  ;;  %9252 = vmatpush1.bf16.msra.mxu0 %v9251_v47  ;;  %v9149_v47 = vpack.c.bf16 %v2139_v33, %v2135_v32  ;;  %v2169_v32 = vld [vmem:[#allocation8 + $0xcd8] sm:$0xff] }
 0x5f3   :  { %9134 = vmatprep.subr.bf16.mxu1 %v9133_v50  ;;  %9254 = vmatprep.subr.bf16.mxu0 %v9253_v52  ;;  %v2140_v50 = vld [vmem:[#allocation8 + $0xbf0] sm:$0xff]  ;;  %v2143_v52 = vld [vmem:[#allocation8 + $0xc08] sm:$0xff]  ;;  %v2173_v33 = vld [vmem:[#allocation8 + $0xcf8] sm:$0xff] }
 0x5f4   :  { %v9271_v59 = vpack.c.bf16 %v2140_v50, %v2136_v49  ;;  %v9153_v63 = vpack.c.bf16 %v2147_v55, %v2143_v52  ;;  %v9285_v42 = vpack.c.bf16 %v2173_v33, %v2169_v32  ;;  %v2177_v49 = vld [vmem:[#allocation8 + $0xd18] sm:$0xff]  ;;  %v2174_v55 = vld [vmem:[#allocation8 + $0xd00] sm:$0xff] }
 0x5f5   :  { %v2181_v50 = vld [vmem:[#allocation8 + $0xd38] sm:$0xff]  ;;  %v2202_v32 = vld [vmem:[#allocation8 + $0xde0] sm:$0xff] }
 0x5f6   :  { %9136 = vmatpush1.bf16.msra.mxu1 %v9135_v61  ;;  %9256 = vmatpush1.bf16.msra.mxu0 %v9255_v62  ;;  %v2142_v61 = vld [vmem:[#allocation8 + $0xc00] sm:$0xff] }
 0x5f7   :  { %9138 = vmatprep.subr.bf16.mxu1 %v9137_v1  ;;  %9258 = vmatprep.subr.bf16.mxu0 %v9257_v4  ;;  %v2146_v62 = vld [vmem:[#allocation8 + $0xc20] sm:$0xff]  ;;  %v2144_v1 = vld [vmem:[#allocation8 + $0xc10] sm:$0xff] }
 0x5f8   :  { %v2148_v4 = vld [vmem:[#allocation8 + $0xc30] sm:$0xff]  ;;  %v9155_v10 = vpack.c.bf16 %v2146_v62, %v2142_v61  ;;  %v2183_v62 = vld [vmem:[#allocation8 + $0xd48] sm:$0xff] }
 0x5f9   :  { %v9275_v11 = vpack.c.bf16 %v2148_v4, %v2144_v1  ;;  %v2180_v61 = vld [vmem:[#allocation8 + $0xd30] sm:$0xff]  ;;  %v2189_v1 = vld [vmem:[#allocation8 + $0xd78] sm:$0xff]  ;;  %v9171_v4 = vpack.c.bf16 %v2178_v56, %v2174_v55  ;;  %v2215_v56 = vld [vmem:[#allocation8 + $0xe48] sm:$0xff] }
 0x5fa   :  { %9140 = vmatpush1.bf16.msra.mxu1 %v9139_v6  ;;  %9260 = vmatpush1.bf16.msra.mxu0 %v9259_v12  ;;  %v2150_v6 = vld [vmem:[#allocation8 + $0xc40] sm:$0xff]  ;;  %v2212_v55 = vld [vmem:[#allocation8 + $0xe30] sm:$0xff] }
 0x5fb   :  { %9142 = vmatprep.subr.bf16.mxu1 %v9141_v15  ;;  %9262 = vmatprep.subr.bf16.mxu0 %v9261_v16  ;;  %v2154_v12 = vld [vmem:[#allocation8 + $0xc60] sm:$0xff]  ;;  %v9277_v15 = vpack.c.bf16 %v2157_v3, %v2153_v9  ;;  %v2152_v16 = vld [vmem:[#allocation8 + $0xc50] sm:$0xff] }
 0x5fc   :  { %v9159_v22 = vpack.c.bf16 %v2154_v12, %v2150_v6  ;;  %v9279_v23 = vpack.c.bf16 %v2156_v17, %v2152_v16  ;;  %v2186_v9 = vld [vmem:[#allocation8 + $0xd60] sm:$0xff]  ;;  %v2188_v6 = vld [vmem:[#allocation8 + $0xd70] sm:$0xff]  ;;  %v2191_v12 = vld [vmem:[#allocation8 + $0xd88] sm:$0xff] }
 0x5fd   :  { %v2197_v16 = vld [vmem:[#allocation8 + $0xdb8] sm:$0xff]  ;;  %v9175_v17 = vpack.c.bf16 %v2186_v9, %v2182_v7  ;;  %v2220_v7 = vld [vmem:[#allocation8 + $0xe70] sm:$0xff]  ;;  %v2223_v9 = vld [vmem:[#allocation8 + $0xe88] sm:$0xff] }
 0x5fe   :  { %9144 = vmatpush1.bf16.msra.mxu1 %v9143_v20  ;;  %9264 = vmatpush1.bf16.msra.mxu0 %v9263_v21  ;;  %v2161_v20 = vld [vmem:[#allocation8 + $0xc98] sm:$0xff] }
 0x5ff   :  { %9146 = vmatprep.subr.bf16.mxu1 %v9145_v25  ;;  %9266 = vmatprep.subr.bf16.mxu0 %v9265_v27  ;;  %v2165_v21 = vld [vmem:[#allocation8 + $0xcb8] sm:$0xff]  ;;  %v2162_v25 = vld [vmem:[#allocation8 + $0xca0] sm:$0xff] }
 0x600   :  { %v9281_v27 = vpack.c.bf16 %v2165_v21, %v2161_v20  ;;  %v9163_v34 = vpack.c.bf16 %v2162_v25, %v2158_v24  ;;  %v2194_v20 = vld [vmem:[#allocation8 + $0xda0] sm:$0xff]  ;;  %v2196_v24 = vld [vmem:[#allocation8 + $0xdb0] sm:$0xff]  ;;  %v2199_v25 = vld [vmem:[#allocation8 + $0xdc8] sm:$0xff] }
 0x601   :  { %v9179_v29 = vpack.c.bf16 %v2194_v20, %v2190_v19  ;;  %v2228_v19 = vld [vmem:[#allocation8 + $0xeb0] sm:$0xff]  ;;  %v2231_v20 = vld [vmem:[#allocation8 + $0xec8] sm:$0xff] }
 0x694   :  { %v1921_v37 = vpop.f32.mrb[10].mxu1  ;;  %v11814_v45 = vpop.f32.mrb[12].mxu0 }
 0x695   :  { %v1923_v46 = vpop.f32.mrb[11].mxu1  ;;  %v1994_v54 = vpop.f32.mrb[13].mxu0 }
 0x696   :  { %2305 = vmatprep.mubr.f32.mxu1 %v1923_v46  ;;  %2447 = vmatprep.mubr.f32.mxu0 %v1923_v46  ;;  %v2172_v46 = vld [vmem:[#allocation8 + $0xcf0] sm:$0xff] }
 0x697   :  { %2306 = vmatmul.mubr.f32.vlgmr.msra.gmra.mrb[8].mxu1 %v1921_v37  ;;  %2448 = vmatmul.mubr.f32.vlgmr.msra.gmra.mrb[10].mxu0 %v1921_v37  ;;  %v2166_v37 = vld [vmem:[#allocation8 + $0xcc0] sm:$0xff] }
 0x698   :  { %9148 = vmatpush1.bf16.msra.mxu1 %v9147_v40  ;;  %9268 = vmatpush1.bf16.msra.mxu0 %v9267_v41  ;;  %v2170_v40 = vld [vmem:[#allocation8 + $0xce0] sm:$0xff]  ;;  %v9165_v41 = vpack.c.bf16 %v2171_v31, %v2167_v30 }
 0x699   :  { %9150 = vmatprep.subr.bf16.mxu1 %v9149_v47  ;;  %9270 = vmatprep.subr.bf16.mxu0 %v9269_v48  ;;  %v2175_v47 = vld [vmem:[#allocation8 + $0xd08] sm:$0xff]  ;;  %v9167_v52 = vpack.c.bf16 %v2170_v40, %v2166_v37  ;;  %v2198_v31 = vld [vmem:[#allocation8 + $0xdc0] sm:$0xff]  ;;  %v2204_v37 = vld [vmem:[#allocation8 + $0xdf0] sm:$0xff] }
 0x69a   :  { %8199 = vmatprep.mubr.msk.f32.mxu1 %vm1078_vm2, %v1994_v54  ;;  %8200 = vmatprep.mubr.msk.f32.mxu0 %vm1078_vm2, %v1994_v54  ;;  %v2179_v48 = vld [vmem:[#allocation8 + $0xd28] sm:$0xff]  ;;  %v9287_v54 = vpack.c.bf16 %v2172_v46, %v2168_v44  ;;  %v2213_v44 = vld [vmem:[#allocation8 + $0xe38] sm:$0xff]  ;;  %v9183_v46 = vpack.c.bf16 %v2202_v32, %v2198_v31  ;;  %v2236_v31 = vld [vmem:[#allocation8 + $0xef0] sm:$0xff] }
 0x69b   :  { %v9169_v57 = vpack.c.bf16 %v2179_v48, %v2175_v47  ;;  %v2207_v40 = vld [vmem:[#allocation8 + $0xe08] sm:$0xff]  ;;  %v2206_v48 = vld [vmem:[#allocation8 + $0xe00] sm:$0xff] }
 0x69c   :  { %9152 = vmatpush1.bf16.msra.mxu1 %v9151_v58  ;;  %9272 = vmatpush1.bf16.msra.mxu0 %v9271_v59  ;;  %v9289_v58 = vpack.c.bf16 %v2181_v50, %v2177_v49  ;;  %v2176_v59 = vld [vmem:[#allocation8 + $0xd10] sm:$0xff]  ;;  %v2210_v49 = vld [vmem:[#allocation8 + $0xe20] sm:$0xff] }
 0x69d   :  { %9154 = vmatprep.subr.bf16.mxu1 %v9153_v63  ;;  %9274 = vmatprep.subr.bf16.mxu0 %v9273_v0  ;;  %v2187_v63 = vld [vmem:[#allocation8 + $0xd68] sm:$0xff]  ;;  %v2185_v0 = vld [vmem:[#allocation8 + $0xd58] sm:$0xff]  ;;  %v9291_v5 = vpack.c.bf16 %v2180_v61, %v2176_v59  ;;  %v9187_v61 = vpack.c.bf16 %v2210_v49, %v2206_v48 }
 0x69e   :  { %v9173_v3 = vpack.c.bf16 %v2187_v63, %v2183_v62  ;;  %v2221_v59 = vld [vmem:[#allocation8 + $0xe78] sm:$0xff]  ;;  %v2214_v63 = vld [vmem:[#allocation8 + $0xe40] sm:$0xff] }
 0x6a0   :  { %9156 = vmatpush1.bf16.msra.mxu1 %v9155_v10  ;;  %9276 = vmatpush1.bf16.msra.mxu0 %v9275_v11  ;;  %v9293_v10 = vpack.c.bf16 %v2189_v1, %v2185_v0  ;;  %v2184_v11 = vld [vmem:[#allocation8 + $0xd50] sm:$0xff]  ;;  %v2218_v0 = vld [vmem:[#allocation8 + $0xe60] sm:$0xff] }
 0x6a1   :  { %9158 = vmatprep.subr.bf16.mxu1 %v9157_v14  ;;  %9278 = vmatprep.subr.bf16.mxu0 %v9277_v15  ;;  %v2195_v14 = vld [vmem:[#allocation8 + $0xda8] sm:$0xff]  ;;  %v2193_v15 = vld [vmem:[#allocation8 + $0xd98] sm:$0xff]  ;;  %v9295_v18 = vpack.c.bf16 %v2188_v6, %v2184_v11  ;;  %v9191_v6 = vpack.c.bf16 %v2218_v0, %v2214_v63 }
 0x6a2   :  { %v9177_v21 = vpack.c.bf16 %v2195_v14, %v2191_v12  ;;  %v2229_v11 = vld [vmem:[#allocation8 + $0xeb8] sm:$0xff]  ;;  %v2222_v14 = vld [vmem:[#allocation8 + $0xe80] sm:$0xff] }
 0x6a3   :  { %v2696_v63 = vld [vmem:[#allocation8 + $0xf98] sm:$0xff] }
 0x6a4   :  { %9160 = vmatpush1.bf16.msra.mxu1 %v9159_v22  ;;  %9280 = vmatpush1.bf16.msra.mxu0 %v9279_v23  ;;  %v9297_v22 = vpack.c.bf16 %v2197_v16, %v2193_v15  ;;  %v2192_v23 = vld [vmem:[#allocation8 + $0xd90] sm:$0xff]  ;;  %v2226_v15 = vld [vmem:[#allocation8 + $0xea0] sm:$0xff]  ;;  %v2700_v0 = vld [vmem:[#allocation8 + $0xfb8] sm:$0xff] }
 0x6a5   :  { %9162 = vmatprep.subr.bf16.mxu1 %v9161_v26  ;;  %9282 = vmatprep.subr.bf16.mxu0 %v9281_v27  ;;  %v2203_v26 = vld [vmem:[#allocation8 + $0xde8] sm:$0xff]  ;;  %v2201_v27 = vld [vmem:[#allocation8 + $0xdd8] sm:$0xff]  ;;  %v9299_v30 = vpack.c.bf16 %v2196_v24, %v2192_v23  ;;  %v9195_v24 = vpack.c.bf16 %v2226_v15, %v2222_v14 }
 0x6a6   :  { %v9181_v33 = vpack.c.bf16 %v2203_v26, %v2199_v25  ;;  %v2237_v23 = vld [vmem:[#allocation8 + $0xef8] sm:$0xff]  ;;  %v2230_v26 = vld [vmem:[#allocation8 + $0xec0] sm:$0xff] }
 0x6a7   :  { %v2708_v14 = vld [vmem:[#allocation8 + $0xff8] sm:$0xff] }
 0x6a8   :  { %9164 = vmatpush1.bf16.msra.mxu1 %v9163_v34  ;;  %9284 = vmatpush1.bf16.msra.mxu0 %v9283_v35  ;;  %v9301_v34 = vpack.c.bf16 %v2205_v28, %v2201_v27  ;;  %v2200_v35 = vld [vmem:[#allocation8 + $0xdd0] sm:$0xff] }
 0x6a9   :  { %9166 = vmatprep.subr.bf16.mxu1 %v9165_v41  ;;  %9286 = vmatprep.subr.bf16.mxu0 %v9285_v42  ;;  %v2211_v41 = vld [vmem:[#allocation8 + $0xe28] sm:$0xff]  ;;  %v2209_v42 = vld [vmem:[#allocation8 + $0xe18] sm:$0xff]  ;;  %v9303_v47 = vpack.c.bf16 %v2204_v37, %v2200_v35 }
 0x6aa   :  { %v9185_v50 = vpack.c.bf16 %v2211_v41, %v2207_v40  ;;  %v2682_v35 = vld [vmem:[#allocation8 + $0xf28] sm:$0xff]  ;;  %v2680_v37 = vld [vmem:[#allocation8 + $0xf18] sm:$0xff]  ;;  %v2677_v41 = vld [vmem:[#allocation8 + $0xf00] sm:$0xff] }
 0x6ab   :  { %v2684_v40 = vld [vmem:[#allocation8 + $0xf38] sm:$0xff] }
 0x6ac   :  { %9168 = vmatpush1.bf16.msra.mxu1 %v9167_v52  ;;  %9288 = vmatpush1.bf16.msra.mxu0 %v9287_v54  ;;  %v9305_v52 = vpack.c.bf16 %v2213_v44, %v2209_v42  ;;  %v2208_v54 = vld [vmem:[#allocation8 + $0xe10] sm:$0xff]  ;;  %v2681_v42 = vld [vmem:[#allocation8 + $0xf20] sm:$0xff]  ;;  %v9453_v49 = vpack.c.bf16 %v2684_v40, %v2680_v37  ;;  %v2722_v37 = vld [vmem:[#allocation8 + $0x1068] sm:$0xff] }
 0x6ad   :  { %9170 = vmatprep.subr.bf16.mxu1 %v9169_v57  ;;  %9290 = vmatprep.subr.bf16.mxu0 %v9289_v58  ;;  %v2219_v57 = vld [vmem:[#allocation8 + $0xe68] sm:$0xff]  ;;  %v2217_v58 = vld [vmem:[#allocation8 + $0xe58] sm:$0xff]  ;;  %v9307_v62 = vpack.c.bf16 %v2212_v55, %v2208_v54  ;;  %v2679_v44 = vld [vmem:[#allocation8 + $0xf10] sm:$0xff] }
 0x6ae   :  { %v9189_v1 = vpack.c.bf16 %v2219_v57, %v2215_v56  ;;  %v2692_v54 = vld [vmem:[#allocation8 + $0xf78] sm:$0xff]  ;;  %v2685_v56 = vld [vmem:[#allocation8 + $0xf40] sm:$0xff] }
 0x6af   :  { %v2689_v57 = vld [vmem:[#allocation8 + $0xf60] sm:$0xff]  ;;  %v2720_v40 = vld [vmem:[#allocation8 + $0x1058] sm:$0xff] }
 0x6b0   :  { %9172 = vmatpush1.bf16.msra.mxu1 %v9171_v4  ;;  %9292 = vmatpush1.bf16.msra.mxu0 %v9291_v5  ;;  %v9309_v4 = vpack.c.bf16 %v2221_v59, %v2217_v58  ;;  %v2216_v5 = vld [vmem:[#allocation8 + $0xe50] sm:$0xff] }
 0x6b1   :  { %9174 = vmatprep.subr.bf16.mxu1 %v9173_v3  ;;  %9294 = vmatprep.subr.bf16.mxu0 %v9293_v10  ;;  %v2227_v3 = vld [vmem:[#allocation8 + $0xea8] sm:$0xff]  ;;  %v2225_v10 = vld [vmem:[#allocation8 + $0xe98] sm:$0xff]  ;;  %v9311_v12 = vpack.c.bf16 %v2220_v7, %v2216_v5  ;;  %v2697_v5 = vld [vmem:[#allocation8 + $0xfa0] sm:$0xff] }
 0x6b2   :  { %v9193_v16 = vpack.c.bf16 %v2227_v3, %v2223_v9  ;;  %v9461_v9 = vpack.c.bf16 %v2700_v0, %v2696_v63  ;;  %v2695_v3 = vld [vmem:[#allocation8 + $0xf90] sm:$0xff]  ;;  %v2734_v63 = vld [vmem:[#allocation8 + $0x10c8] sm:$0xff] }
 0x6b3   :  { %v2738_v0 = vld [vmem:[#allocation8 + $0x10e8] sm:$0xff] }
 0x6b4   :  { %9176 = vmatpush1.bf16.msra.mxu1 %v9175_v17  ;;  %9296 = vmatpush1.bf16.msra.mxu0 %v9295_v18  ;;  %v9313_v17 = vpack.c.bf16 %v2229_v11, %v2225_v10  ;;  %v2224_v18 = vld [vmem:[#allocation8 + $0xe90] sm:$0xff]  ;;  %v2702_v11 = vld [vmem:[#allocation8 + $0xfc8] sm:$0xff] }
 0x6b5   :  { %9178 = vmatprep.subr.bf16.mxu1 %v9177_v21  ;;  %9298 = vmatprep.subr.bf16.mxu0 %v9297_v22  ;;  %v2235_v21 = vld [vmem:[#allocation8 + $0xee8] sm:$0xff]  ;;  %v2233_v22 = vld [vmem:[#allocation8 + $0xed8] sm:$0xff]  ;;  %v9315_v25 = vpack.c.bf16 %v2228_v19, %v2224_v18  ;;  %v2699_v10 = vld [vmem:[#allocation8 + $0xfb0] sm:$0xff] }
 0x6b6   :  { %v9197_v27 = vpack.c.bf16 %v2235_v21, %v2231_v20  ;;  %v9317_v28 = vpack.c.bf16 %v2237_v23, %v2233_v22  ;;  %v2705_v18 = vld [vmem:[#allocation8 + $0xfe0] sm:$0xff]  ;;  %v2703_v21 = vld [vmem:[#allocation8 + $0xfd0] sm:$0xff]  ;;  %v2710_v23 = vld [vmem:[#allocation8 + $0x1008] sm:$0xff] }
 0x6b7   :  { %v2707_v22 = vld [vmem:[#allocation8 + $0xff0] sm:$0xff] }
 0x6b8   :  { %9180 = vmatpush1.bf16.msra.mxu1 %v9179_v29  ;;  %9300 = vmatpush1.bf16.msra.mxu0 %v9299_v30  ;;  %v2234_v29 = vld [vmem:[#allocation8 + $0xee0] sm:$0xff]  ;;  %v2232_v30 = vld [vmem:[#allocation8 + $0xed0] sm:$0xff] }
 0x6b9   :  { %9182 = vmatprep.subr.bf16.mxu1 %v9181_v33  ;;  %9302 = vmatprep.subr.bf16.mxu0 %v9301_v34  ;;  %v9199_v32 = vpack.c.bf16 %v2234_v29, %v2230_v26  ;;  %v9319_v33 = vpack.c.bf16 %v2236_v31, %v2232_v30  ;;  %v2678_v34 = vld [vmem:[#allocation8 + $0xf08] sm:$0xff]  ;;  %v2716_v26 = vld [vmem:[#allocation8 + $0x1038] sm:$0xff]  ;;  %v2709_v29 = vld [vmem:[#allocation8 + $0x1000] sm:$0xff] }
 0x6ba   :  { %v9333_v48 = vpack.c.bf16 %v2682_v35, %v2678_v34  ;;  %v2713_v30 = vld [vmem:[#allocation8 + $0x1020] sm:$0xff]  ;;  %v2715_v34 = vld [vmem:[#allocation8 + $0x1030] sm:$0xff]  ;;  %v2718_v35 = vld [vmem:[#allocation8 + $0x1048] sm:$0xff] }
 0x6bc   :  { %9184 = vmatpush1.bf16.msra.mxu1 %v9183_v46  ;;  %9304 = vmatpush1.bf16.msra.mxu0 %v9303_v47  ;;  %v2683_v46 = vld [vmem:[#allocation8 + $0xf30] sm:$0xff]  ;;  %v2686_v47 = vld [vmem:[#allocation8 + $0xf48] sm:$0xff] }
 0x6bd   :  { %9186 = vmatprep.subr.bf16.mxu1 %v9185_v50  ;;  %9306 = vmatprep.subr.bf16.mxu0 %v9305_v52  ;;  %v2690_v50 = vld [vmem:[#allocation8 + $0xf68] sm:$0xff]  ;;  %v2688_v52 = vld [vmem:[#allocation8 + $0xf58] sm:$0xff]  ;;  %v9455_v55 = vpack.c.bf16 %v2683_v46, %v2679_v44  ;;  %v2717_v46 = vld [vmem:[#allocation8 + $0x1040] sm:$0xff] }
 0x6be   :  { %v9337_v58 = vpack.c.bf16 %v2690_v50, %v2686_v47  ;;  %v9457_v59 = vpack.c.bf16 %v2692_v54, %v2688_v52  ;;  %v2721_v47 = vld [vmem:[#allocation8 + $0x1060] sm:$0xff]  ;;  %v2719_v50 = vld [vmem:[#allocation8 + $0x1050] sm:$0xff]  ;;  %v2726_v54 = vld [vmem:[#allocation8 + $0x1088] sm:$0xff] }
 0x6bf   :  { %v2723_v52 = vld [vmem:[#allocation8 + $0x1070] sm:$0xff] }
 0x6c0   :  { %9188 = vmatpush1.bf16.msra.mxu1 %v9187_v61  ;;  %9308 = vmatpush1.bf16.msra.mxu0 %v9307_v62  ;;  %v2691_v61 = vld [vmem:[#allocation8 + $0xf70] sm:$0xff]  ;;  %v2694_v62 = vld [vmem:[#allocation8 + $0xf88] sm:$0xff] }
 0x6c1   :  { %9190 = vmatprep.subr.bf16.mxu1 %v9189_v1  ;;  %9310 = vmatprep.subr.bf16.mxu0 %v9309_v4  ;;  %v2693_v4 = vld [vmem:[#allocation8 + $0xf80] sm:$0xff] }
 0x6c2   :  { %v9343_v15 = vpack.c.bf16 %v2697_v5, %v2693_v4 }
 0x6c4   :  { %9192 = vmatpush1.bf16.msra.mxu1 %v9191_v6  ;;  %9312 = vmatpush1.bf16.msra.mxu0 %v9311_v12  ;;  %v2706_v6 = vld [vmem:[#allocation8 + $0xfe8] sm:$0xff]  ;;  %v2704_v12 = vld [vmem:[#allocation8 + $0xfd8] sm:$0xff] }
 0x6c5   :  { %9194 = vmatprep.subr.bf16.mxu1 %v9193_v16  ;;  %9314 = vmatprep.subr.bf16.mxu0 %v9313_v17  ;;  %v9463_v16 = vpack.c.bf16 %v2699_v10, %v2695_v3  ;;  %v2701_v17 = vld [vmem:[#allocation8 + $0xfc0] sm:$0xff]  ;;  %v9345_v19 = vpack.c.bf16 %v2706_v6, %v2702_v11  ;;  %v9465_v20 = vpack.c.bf16 %v2708_v14, %v2704_v12  ;;  %v2735_v11 = vld [vmem:[#allocation8 + $0x10d0] sm:$0xff]  ;;  %v2742_v12 = vld [vmem:[#allocation8 + $0x1108] sm:$0xff] }
 0x6c6   :  { %v9361_v3 = vpack.c.bf16 %v2738_v0, %v2734_v63  ;;  %v2739_v6 = vld [vmem:[#allocation8 + $0x10f0] sm:$0xff]  ;;  %v2746_v14 = vld [vmem:[#allocation8 + $0x1128] sm:$0xff] }
 0x6c7   :  { %v2767_v63 = vld [vmem:[#allocation8 + $0x11d0] sm:$0xff] }
 0x6c8   :  { %9196 = vmatpush1.bf16.msra.mxu1 %v9195_v24  ;;  %9316 = vmatpush1.bf16.msra.mxu0 %v9315_v25  ;;  %v2714_v24 = vld [vmem:[#allocation8 + $0x1028] sm:$0xff]  ;;  %v2712_v25 = vld [vmem:[#allocation8 + $0x1018] sm:$0xff]  ;;  %v2771_v0 = vld [vmem:[#allocation8 + $0x11f0] sm:$0xff] }
 0x6c9   :  { %9198 = vmatprep.subr.bf16.mxu1 %v9197_v27  ;;  %9318 = vmatprep.subr.bf16.mxu0 %v9317_v28  ;;  %v9347_v27 = vpack.c.bf16 %v2705_v18, %v2701_v17  ;;  %v9467_v28 = vpack.c.bf16 %v2707_v22, %v2703_v21  ;;  %v9349_v31 = vpack.c.bf16 %v2714_v24, %v2710_v23  ;;  %v2743_v23 = vld [vmem:[#allocation8 + $0x1110] sm:$0xff] }
 0x6ca   :  { %v9483_v18 = vpack.c.bf16 %v2739_v6, %v2735_v11  ;;  %v9365_v21 = vpack.c.bf16 %v2746_v14, %v2742_v12  ;;  %v2747_v24 = vld [vmem:[#allocation8 + $0x1130] sm:$0xff] }
 0x6cb   :  { %v2775_v12 = vld [vmem:[#allocation8 + $0x1210] sm:$0xff] }
 0x6cc   :  { %9200 = vmatpush1.bf16.msra.mxu1 %v9199_v32  ;;  %9320 = vmatpush1.bf16.msra.mxu0 %v9319_v33  ;;  %v9469_v32 = vpack.c.bf16 %v2716_v26, %v2712_v25  ;;  %v2711_v33 = vld [vmem:[#allocation8 + $0x1010] sm:$0xff]  ;;  %v2750_v25 = vld [vmem:[#allocation8 + $0x1148] sm:$0xff] }
 0x6cd   :  { %9323 = vmatprep.subr.msk.bf16.mxu1 %vm11765_vm5, %v11772_v2  ;;  %9329 = vmatprep.subr.msk.bf16.mxu0 %vm11765_vm5, %v11774_v8  ;;  %v2530_v2 = vld [vmem:[#allocation10 + $0x10] sm:$0xff]  ;;  %v9335_v8 = vpack.c.bf16 %v2681_v42, %v2677_v41  ;;  %v2724_v41 = vld [vmem:[#allocation8 + $0x1078] sm:$0xff]  ;;  %v9351_v42 = vpack.c.bf16 %v2713_v30, %v2709_v29  ;;  %v9471_v44 = vpack.c.bf16 %v2715_v34, %v2711_v33  ;;  %v2754_v26 = vld [vmem:[#allocation8 + $0x1168] sm:$0xff] }
 0x6ce   :  { %v9487_v30 = vpack.c.bf16 %v2747_v24, %v2743_v23  ;;  %v9369_v33 = vpack.c.bf16 %v2754_v26, %v2750_v25  ;;  %v2779_v14 = vld [vmem:[#allocation8 + $0x1230] sm:$0xff] }
 0x6cf   :  { %2377 = vmatmul.mubr.f32.vlgmr.msra.gmra.mrb[8].mxu1 %v11814_v45  ;;  %2519 = vmatmul.mubr.f32.vlgmr.msra.gmra.mrb[10].mxu0 %v11814_v45  ;;  %v2687_v45 = vld [vmem:[#allocation8 + $0xf50] sm:$0xff] }
 0x6d0   :  { %9326 = vmatpush1.bf16.msk.msra.mxu1 %vm11765_vm5, %v11769_v60  ;;  %9332 = vmatpush1.bf16.msk.msra.mxu0 %vm11765_vm5, %v11779_v13  ;;  %v2698_v60 = vld [vmem:[#allocation8 + $0xfa8] sm:$0xff]  ;;  %v9339_v13 = vpack.c.bf16 %v2689_v57, %v2685_v56  ;;  %v9459_v1 = vpack.c.bf16 %v2691_v61, %v2687_v45  ;;  %v9355_v56 = vpack.c.bf16 %v2721_v47, %v2717_v46  ;;  %v2783_v25 = vld [vmem:[#allocation8 + $0x1250] sm:$0xff] }
 0x6d1   :  { %2598 = vmatprep.mubr.f32.mxu1 %v11488_v53  ;;  %2669 = vmatprep.mubr.f32.mxu0 %v11488_v53  ;;  %v9341_v7 = vpack.c.bf16 %v2698_v60, %v2694_v62  ;;  %v9475_v57 = vpack.c.bf16 %v2723_v52, %v2719_v50  ;;  %v2727_v62 = vld [vmem:[#allocation8 + $0x1090] sm:$0xff] }
 0x6d2   :  { %9334 = vmatprep.subr.bf16.mxu1 %v9333_v48  ;;  %9454 = vmatprep.subr.bf16.mxu0 %v9453_v49  ;;  %v9353_v48 = vpack.c.bf16 %v2722_v37, %v2718_v35  ;;  %v9473_v49 = vpack.c.bf16 %v2724_v41, %v2720_v40  ;;  %v2731_v60 = vld [vmem:[#allocation8 + $0x10b0] sm:$0xff]  ;;  %v2758_v40 = vld [vmem:[#allocation8 + $0x1188] sm:$0xff] }
 0x6d3   :  { %8203 = vmatmul.mubr.msk.f32.vlgmr.msra.gmra.mrb[12].mxu1 %vm1140_vm6, %v2530_v2  ;;  %8206 = vmatmul.mubr.msk.f32.vlgmr.msra.gmra.mrb[14].mxu0 %vm1140_vm6, %v2530_v2  ;;  %v2730_v2 = vld [vmem:[#allocation8 + $0x10a8] sm:$0xff]  ;;  %v9479_v5 = vpack.c.bf16 %v2731_v60, %v2727_v62  ;;  %v2751_v35 = vld [vmem:[#allocation8 + $0x1150] sm:$0xff] }
 0x6d4   :  { %9336 = vmatpush1.bf16.msra.mxu1 %v9335_v8  ;;  %9456 = vmatpush1.bf16.msra.mxu0 %v9455_v55  ;;  %v2728_v8 = vld [vmem:[#allocation8 + $0x1098] sm:$0xff]  ;;  %v9357_v45 = vpack.c.bf16 %v2730_v2, %v2726_v54  ;;  %v2755_v37 = vld [vmem:[#allocation8 + $0x1170] sm:$0xff]  ;;  %v2762_v41 = vld [vmem:[#allocation8 + $0x11a8] sm:$0xff] }
 0x6d5   :  { %9338 = vmatprep.subr.bf16.mxu1 %v9337_v58  ;;  %9458 = vmatprep.subr.bf16.mxu0 %v9457_v59  ;;  %v2732_v55 = vld [vmem:[#allocation8 + $0x10b8] sm:$0xff]  ;;  %v2725_v58 = vld [vmem:[#allocation8 + $0x1080] sm:$0xff]  ;;  %v9491_v47 = vpack.c.bf16 %v2755_v37, %v2751_v35  ;;  %v9373_v50 = vpack.c.bf16 %v2762_v41, %v2758_v40  ;;  %v2759_v54 = vld [vmem:[#allocation8 + $0x1190] sm:$0xff] }
 0x6d6   :  { %v2729_v59 = vld [vmem:[#allocation8 + $0x10a0] sm:$0xff]  ;;  %v9477_v61 = vpack.c.bf16 %v2732_v55, %v2728_v8  ;;  %v2763_v2 = vld [vmem:[#allocation8 + $0x11b0] sm:$0xff]  ;;  %v2766_v8 = vld [vmem:[#allocation8 + $0x11c8] sm:$0xff] }
 0x6d7   :  { %v9359_v4 = vpack.c.bf16 %v2729_v59, %v2725_v58  ;;  %v2770_v55 = vld [vmem:[#allocation8 + $0x11e8] sm:$0xff]  ;;  %v9495_v59 = vpack.c.bf16 %v2763_v2, %v2759_v54  ;;  %v2787_v26 = vld [vmem:[#allocation8 + $0x1270] sm:$0xff]  ;;  %v2801_v2 = vld [vmem:[#allocation8 + $0x12e0] sm:$0xff] }
 0x6d8   :  { %9340 = vmatpush1.bf16.msra.mxu1 %v9339_v13  ;;  %9460 = vmatpush1.bf16.msra.mxu0 %v9459_v1  ;;  %v2736_v13 = vld [vmem:[#allocation8 + $0x10d8] sm:$0xff]  ;;  %v9377_v62 = vpack.c.bf16 %v2770_v55, %v2766_v8  ;;  %v2791_v40 = vld [vmem:[#allocation8 + $0x1290] sm:$0xff] }
 0x6d9   :  { %9342 = vmatprep.subr.bf16.mxu1 %v9341_v7  ;;  %9462 = vmatprep.subr.bf16.mxu0 %v9461_v9  ;;  %v2740_v1 = vld [vmem:[#allocation8 + $0x10f8] sm:$0xff]  ;;  %v2733_v7 = vld [vmem:[#allocation8 + $0x10c0] sm:$0xff]  ;;  %v2795_v41 = vld [vmem:[#allocation8 + $0x12b0] sm:$0xff] }
 0x6da   :  { %v2737_v9 = vld [vmem:[#allocation8 + $0x10e0] sm:$0xff]  ;;  %v9481_v10 = vpack.c.bf16 %v2740_v1, %v2736_v13  ;;  %v2774_v13 = vld [vmem:[#allocation8 + $0x1208] sm:$0xff]  ;;  %v2799_v8 = vld [vmem:[#allocation8 + $0x12d0] sm:$0xff] }
 0x6db   :  { %v9363_v17 = vpack.c.bf16 %v2737_v9, %v2733_v7  ;;  %v2778_v1 = vld [vmem:[#allocation8 + $0x1228] sm:$0xff]  ;;  %v9499_v9 = vpack.c.bf16 %v2771_v0, %v2767_v63  ;;  %v2803_v55 = vld [vmem:[#allocation8 + $0x12f0] sm:$0xff]  ;;  %v2805_v63 = vld [vmem:[#allocation8 + $0x1300] sm:$0xff] }
 0x6dc   :  { %9344 = vmatpush1.bf16.msra.mxu1 %v9343_v15  ;;  %9464 = vmatpush1.bf16.msra.mxu0 %v9463_v16  ;;  %v2744_v15 = vld [vmem:[#allocation8 + $0x1118] sm:$0xff]  ;;  %v9381_v11 = vpack.c.bf16 %v2778_v1, %v2774_v13  ;;  %v2809_v0 = vld [vmem:[#allocation8 + $0x1320] sm:$0xff]  ;;  %v2807_v13 = vld [vmem:[#allocation8 + $0x1310] sm:$0xff] }
 0x6dd   :  { %9346 = vmatprep.subr.bf16.mxu1 %v9345_v19  ;;  %9466 = vmatprep.subr.bf16.mxu0 %v9465_v20  ;;  %v2748_v16 = vld [vmem:[#allocation8 + $0x1138] sm:$0xff]  ;;  %v2741_v19 = vld [vmem:[#allocation8 + $0x1100] sm:$0xff]  ;;  %v2811_v1 = vld [vmem:[#allocation8 + $0x1330] sm:$0xff] }
 0x6de   :  { %v2745_v20 = vld [vmem:[#allocation8 + $0x1120] sm:$0xff]  ;;  %v9485_v22 = vpack.c.bf16 %v2748_v16, %v2744_v15  ;;  %v2782_v15 = vld [vmem:[#allocation8 + $0x1248] sm:$0xff] }
 0x6df   :  { %v9367_v29 = vpack.c.bf16 %v2745_v20, %v2741_v19  ;;  %v2786_v16 = vld [vmem:[#allocation8 + $0x1268] sm:$0xff]  ;;  %v9503_v20 = vpack.c.bf16 %v2779_v14, %v2775_v12  ;;  %v2817_v12 = vld [vmem:[#allocation8 + $0x1360] sm:$0xff] }
 0x6e0   :  { %9348 = vmatpush1.bf16.msra.mxu1 %v9347_v27  ;;  %9468 = vmatpush1.bf16.msra.mxu0 %v9467_v28  ;;  %v2752_v27 = vld [vmem:[#allocation8 + $0x1158] sm:$0xff]  ;;  %v9385_v23 = vpack.c.bf16 %v2786_v16, %v2782_v15 }
 0x6e1   :  { %9350 = vmatprep.subr.bf16.mxu1 %v9349_v31  ;;  %9470 = vmatprep.subr.bf16.mxu0 %v9469_v32  ;;  %v2756_v28 = vld [vmem:[#allocation8 + $0x1178] sm:$0xff]  ;;  %v2749_v31 = vld [vmem:[#allocation8 + $0x1140] sm:$0xff] }
 0x6e2   :  { %v2753_v32 = vld [vmem:[#allocation8 + $0x1160] sm:$0xff]  ;;  %v9489_v34 = vpack.c.bf16 %v2756_v28, %v2752_v27  ;;  %v2790_v27 = vld [vmem:[#allocation8 + $0x1288] sm:$0xff] }
 0x6e3   :  { %v9371_v46 = vpack.c.bf16 %v2753_v32, %v2749_v31  ;;  %v2794_v28 = vld [vmem:[#allocation8 + $0x12a8] sm:$0xff]  ;;  %v9507_v32 = vpack.c.bf16 %v2787_v26, %v2783_v25 }
 0x6e4   :  { %9352 = vmatpush1.bf16.msra.mxu1 %v9351_v42  ;;  %9472 = vmatpush1.bf16.msra.mxu0 %v9471_v44  ;;  %v2760_v42 = vld [vmem:[#allocation8 + $0x1198] sm:$0xff]  ;;  %v9389_v35 = vpack.c.bf16 %v2794_v28, %v2790_v27  ;;  %v2821_v27 = vld [vmem:[#allocation8 + $0x1380] sm:$0xff] }
 0x6e5   :  { %9354 = vmatprep.subr.bf16.mxu1 %v9353_v48  ;;  %9474 = vmatprep.subr.bf16.mxu0 %v9473_v49  ;;  %v2764_v44 = vld [vmem:[#allocation8 + $0x11b8] sm:$0xff]  ;;  %v2757_v48 = vld [vmem:[#allocation8 + $0x1180] sm:$0xff] }
 0x6e6   :  { %v2761_v49 = vld [vmem:[#allocation8 + $0x11a0] sm:$0xff]  ;;  %v9493_v52 = vpack.c.bf16 %v2764_v44, %v2760_v42  ;;  %v2798_v42 = vld [vmem:[#allocation8 + $0x12c8] sm:$0xff] }
 0x6e7   :  { %v9375_v58 = vpack.c.bf16 %v2761_v49, %v2757_v48  ;;  %v2802_v44 = vld [vmem:[#allocation8 + $0x12e8] sm:$0xff]  ;;  %v9511_v49 = vpack.c.bf16 %v2795_v41, %v2791_v40  ;;  %v2825_v28 = vld [vmem:[#allocation8 + $0x13a0] sm:$0xff] }
 0x6e8   :  { %9356 = vmatpush1.bf16.msra.mxu1 %v9355_v56  ;;  %9476 = vmatpush1.bf16.msra.mxu0 %v9475_v57  ;;  %v2768_v56 = vld [vmem:[#allocation8 + $0x11d8] sm:$0xff]  ;;  %v9407_v40 = vpack.c.bf16 %v2825_v28, %v2821_v27 }
 0x6e9   :  { %9358 = vmatprep.subr.bf16.mxu1 %v9357_v45  ;;  %9478 = vmatprep.subr.bf16.mxu0 %v9477_v61  ;;  %v2772_v57 = vld [vmem:[#allocation8 + $0x11f8] sm:$0xff]  ;;  %v2765_v45 = vld [vmem:[#allocation8 + $0x11c0] sm:$0xff] }
 0x6ea   :  { %v2769_v61 = vld [vmem:[#allocation8 + $0x11e0] sm:$0xff]  ;;  %v9497_v60 = vpack.c.bf16 %v2772_v57, %v2768_v56  ;;  %v9515_v57 = vpack.c.bf16 %v2803_v55, %v2799_v8  ;;  %v2868_v27 = vld [vmem:[#allocation8 + $0x14f8] sm:$0xff] }
 0x6eb   :  { %v9379_v7 = vpack.c.bf16 %v2769_v61, %v2765_v45  ;;  %v2808_v45 = vld [vmem:[#allocation8 + $0x1318] sm:$0xff] }
 0x6ec   :  { %9360 = vmatpush1.bf16.msra.mxu1 %v9359_v4  ;;  %9480 = vmatpush1.bf16.msra.mxu0 %v9479_v5  ;;  %v2776_v4 = vld [vmem:[#allocation8 + $0x1218] sm:$0xff] }
 0x6ed   :  { %9362 = vmatprep.subr.bf16.mxu1 %v9361_v3  ;;  %9482 = vmatprep.subr.bf16.mxu0 %v9481_v10  ;;  %v2780_v5 = vld [vmem:[#allocation8 + $0x1238] sm:$0xff]  ;;  %v2773_v3 = vld [vmem:[#allocation8 + $0x1200] sm:$0xff] }
 0x6ee   :  { %v2777_v10 = vld [vmem:[#allocation8 + $0x1220] sm:$0xff]  ;;  %v9501_v6 = vpack.c.bf16 %v2780_v5, %v2776_v4  ;;  %v2814_v4 = vld [vmem:[#allocation8 + $0x1348] sm:$0xff] }
 0x6ef   :  { %v9383_v19 = vpack.c.bf16 %v2777_v10, %v2773_v3  ;;  %v2818_v5 = vld [vmem:[#allocation8 + $0x1368] sm:$0xff]  ;;  %v9399_v10 = vpack.c.bf16 %v2809_v0, %v2805_v63  ;;  %v2848_v63 = vld [vmem:[#allocation8 + $0x1458] sm:$0xff] }
 0x6f0   :  { %9364 = vmatpush1.bf16.msra.mxu1 %v9363_v17  ;;  %9484 = vmatpush1.bf16.msra.mxu0 %v9483_v18  ;;  %v2784_v17 = vld [vmem:[#allocation8 + $0x1258] sm:$0xff]  ;;  %v9401_v16 = vpack.c.bf16 %v2818_v5, %v2814_v4  ;;  %v2845_v4 = vld [vmem:[#allocation8 + $0x1440] sm:$0xff] }
 0x6f1   :  { %9366 = vmatprep.subr.bf16.mxu1 %v9365_v21  ;;  %9486 = vmatprep.subr.bf16.mxu0 %v9485_v22  ;;  %v2788_v18 = vld [vmem:[#allocation8 + $0x1278] sm:$0xff]  ;;  %v2781_v21 = vld [vmem:[#allocation8 + $0x1240] sm:$0xff] }
 0x6f2   :  { %v2785_v22 = vld [vmem:[#allocation8 + $0x1260] sm:$0xff]  ;;  %v9505_v24 = vpack.c.bf16 %v2788_v18, %v2784_v17  ;;  %v2815_v18 = vld [vmem:[#allocation8 + $0x1350] sm:$0xff]  ;;  %v2852_v0 = vld [vmem:[#allocation8 + $0x1478] sm:$0xff] }
 0x6f3   :  { %v9387_v31 = vpack.c.bf16 %v2785_v22, %v2781_v21  ;;  %v2826_v22 = vld [vmem:[#allocation8 + $0x13a8] sm:$0xff]  ;;  %v2849_v5 = vld [vmem:[#allocation8 + $0x1460] sm:$0xff] }
 0x6f4   :  { %9368 = vmatpush1.bf16.msra.mxu1 %v9367_v29  ;;  %9488 = vmatpush1.bf16.msra.mxu0 %v9487_v30  ;;  %v2792_v29 = vld [vmem:[#allocation8 + $0x1298] sm:$0xff] }
 0x6f5   :  { %9370 = vmatprep.subr.bf16.mxu1 %v9369_v33  ;;  %9490 = vmatprep.subr.bf16.mxu0 %v9489_v34  ;;  %v2796_v30 = vld [vmem:[#allocation8 + $0x12b8] sm:$0xff]  ;;  %v2789_v33 = vld [vmem:[#allocation8 + $0x1280] sm:$0xff] }
 0x6f6   :  { %v2793_v34 = vld [vmem:[#allocation8 + $0x12a0] sm:$0xff]  ;;  %v9509_v37 = vpack.c.bf16 %v2796_v30, %v2792_v29 }
 0x6f7   :  { %v9391_v48 = vpack.c.bf16 %v2793_v34, %v2789_v33  ;;  %v2830_v33 = vld [vmem:[#allocation8 + $0x13c8] sm:$0xff] }
 0x6f8   :  { %9372 = vmatpush1.bf16.msra.mxu1 %v9371_v46  ;;  %9492 = vmatpush1.bf16.msra.mxu0 %v9491_v47  ;;  %v2800_v46 = vld [vmem:[#allocation8 + $0x12d8] sm:$0xff]  ;;  %v2834_v34 = vld [vmem:[#allocation8 + $0x13e8] sm:$0xff] }
 0x6f9   :  { %9374 = vmatprep.subr.bf16.mxu1 %v9373_v50  ;;  %9494 = vmatprep.subr.bf16.mxu0 %v9493_v52  ;;  %v2804_v47 = vld [vmem:[#allocation8 + $0x12f8] sm:$0xff]  ;;  %v2797_v50 = vld [vmem:[#allocation8 + $0x12c0] sm:$0xff]  ;;  %v9393_v52 = vpack.c.bf16 %v2802_v44, %v2798_v42 }
 0x6fa   :  { %v9513_v54 = vpack.c.bf16 %v2804_v47, %v2800_v46  ;;  %v9395_v56 = vpack.c.bf16 %v2801_v2, %v2797_v50  ;;  %v2829_v42 = vld [vmem:[#allocation8 + $0x13c0] sm:$0xff]  ;;  %v9409_v46 = vpack.c.bf16 %v2834_v34, %v2830_v33  ;;  %v2838_v50 = vld [vmem:[#allocation8 + $0x1408] sm:$0xff]  ;;  %v2844_v2 = vld [vmem:[#allocation8 + $0x1438] sm:$0xff] }
 0x6fb   :  { %v2833_v44 = vld [vmem:[#allocation8 + $0x13e0] sm:$0xff]  ;;  %v2863_v34 = vld [vmem:[#allocation8 + $0x14d0] sm:$0xff] }
 0x6fc   :  { %9376 = vmatpush1.bf16.msra.mxu1 %v9375_v58  ;;  %9496 = vmatpush1.bf16.msra.mxu0 %v9495_v59  ;;  %v2806_v58 = vld [vmem:[#allocation8 + $0x1308] sm:$0xff]  ;;  %v9411_v8 = vpack.c.bf16 %v2833_v44, %v2829_v42  ;;  %v2876_v42 = vld [vmem:[#allocation8 + $0x1538] sm:$0xff] }
 0x6fd   :  { %9378 = vmatprep.subr.bf16.mxu1 %v9377_v62  ;;  %9498 = vmatprep.subr.bf16.mxu0 %v9497_v60  ;;  %v2810_v59 = vld [vmem:[#allocation8 + $0x1328] sm:$0xff]  ;;  %v2812_v62 = vld [vmem:[#allocation8 + $0x1338] sm:$0xff] }
 0x6fe   :  { %v9397_v61 = vpack.c.bf16 %v2810_v59, %v2806_v58  ;;  %v9517_v60 = vpack.c.bf16 %v2812_v62, %v2808_v45  ;;  %v2839_v45 = vld [vmem:[#allocation8 + $0x1410] sm:$0xff]  ;;  %v2846_v62 = vld [vmem:[#allocation8 + $0x1448] sm:$0xff] }
 0x700   :  { %9380 = vmatpush1.bf16.msra.mxu1 %v9379_v7  ;;  %9500 = vmatpush1.bf16.msra.mxu0 %v9499_v9  ;;  %v2816_v7 = vld [vmem:[#allocation8 + $0x1358] sm:$0xff] }
 0x701   :  { %9382 = vmatprep.subr.bf16.mxu1 %v9381_v11  ;;  %9502 = vmatprep.subr.bf16.mxu0 %v9501_v6  ;;  %v2820_v9 = vld [vmem:[#allocation8 + $0x1378] sm:$0xff]  ;;  %v9519_v11 = vpack.c.bf16 %v2811_v1, %v2807_v13  ;;  %v2813_v6 = vld [vmem:[#allocation8 + $0x1340] sm:$0xff] }
 0x702   :  { %v9521_v17 = vpack.c.bf16 %v2820_v9, %v2816_v7  ;;  %v9403_v25 = vpack.c.bf16 %v2817_v12, %v2813_v6  ;;  %v9537_v9 = vpack.c.bf16 %v2852_v0, %v2848_v63  ;;  %v2858_v6 = vld [vmem:[#allocation8 + $0x14a8] sm:$0xff]  ;;  %v2856_v12 = vld [vmem:[#allocation8 + $0x1498] sm:$0xff]  ;;  %v2883_v63 = vld [vmem:[#allocation8 + $0x1570] sm:$0xff] }
 0x703   :  { %v2886_v0 = vld [vmem:[#allocation8 + $0x1588] sm:$0xff] }
 0x704   :  { %9384 = vmatpush1.bf16.msra.mxu1 %v9383_v19  ;;  %9504 = vmatpush1.bf16.msra.mxu0 %v9503_v20  ;;  %v2819_v19 = vld [vmem:[#allocation8 + $0x1370] sm:$0xff]  ;;  %v2822_v20 = vld [vmem:[#allocation8 + $0x1388] sm:$0xff] }
 0x705   :  { %9386 = vmatprep.subr.bf16.mxu1 %v9385_v23  ;;  %9506 = vmatprep.subr.bf16.mxu0 %v9505_v24  ;;  %v2824_v23 = vld [vmem:[#allocation8 + $0x1398] sm:$0xff]  ;;  %v9523_v26 = vpack.c.bf16 %v2819_v19, %v2815_v18  ;;  %v9405_v29 = vpack.c.bf16 %v2826_v22, %v2822_v20  ;;  %v2853_v18 = vld [vmem:[#allocation8 + $0x1480] sm:$0xff]  ;;  %v2855_v22 = vld [vmem:[#allocation8 + $0x1490] sm:$0xff] }
 0x706   :  { %v2828_v24 = vld [vmem:[#allocation8 + $0x13b8] sm:$0xff]  ;;  %v2857_v19 = vld [vmem:[#allocation8 + $0x14a0] sm:$0xff] }
 0x707   :  { %v9525_v30 = vpack.c.bf16 %v2828_v24, %v2824_v23  ;;  %v2859_v23 = vld [vmem:[#allocation8 + $0x14b0] sm:$0xff]  ;;  %v2862_v24 = vld [vmem:[#allocation8 + $0x14c8] sm:$0xff]  ;;  %v9423_v28 = vpack.c.bf16 %v2857_v19, %v2853_v18  ;;  %v2900_v18 = vld [vmem:[#allocation8 + $0x15f8] sm:$0xff] }
 0x708   :  { %9388 = vmatpush1.bf16.msra.mxu1 %v9387_v31  ;;  %9508 = vmatpush1.bf16.msra.mxu0 %v9507_v32  ;;  %v2823_v31 = vld [vmem:[#allocation8 + $0x1390] sm:$0xff] }
 0x709   :  { %9390 = vmatprep.subr.bf16.mxu1 %v9389_v35  ;;  %9510 = vmatprep.subr.bf16.mxu0 %v9509_v37  ;;  %v2827_v32 = vld [vmem:[#allocation8 + $0x13b0] sm:$0xff]  ;;  %v2832_v35 = vld [vmem:[#allocation8 + $0x13d8] sm:$0xff] }
 0x70a   :  { %v2836_v37 = vld [vmem:[#allocation8 + $0x13f8] sm:$0xff]  ;;  %v9527_v41 = vpack.c.bf16 %v2827_v32, %v2823_v31  ;;  %v2865_v31 = vld [vmem:[#allocation8 + $0x14e0] sm:$0xff] }
 0x70b   :  { %v9529_v47 = vpack.c.bf16 %v2836_v37, %v2832_v35  ;;  %v2867_v35 = vld [vmem:[#allocation8 + $0x14f0] sm:$0xff]  ;;  %v2870_v37 = vld [vmem:[#allocation8 + $0x1508] sm:$0xff] }
 0x70c   :  { %9392 = vmatpush1.bf16.msra.mxu1 %v9391_v48  ;;  %9512 = vmatpush1.bf16.msra.mxu0 %v9511_v49  ;;  %v2831_v48 = vld [vmem:[#allocation8 + $0x13d0] sm:$0xff] }
 0x70d   :  { %9394 = vmatprep.subr.bf16.mxu1 %v9393_v52  ;;  %9514 = vmatprep.subr.bf16.mxu0 %v9513_v54  ;;  %v2835_v49 = vld [vmem:[#allocation8 + $0x13f0] sm:$0xff]  ;;  %v2842_v52 = vld [vmem:[#allocation8 + $0x1428] sm:$0xff]  ;;  %v2840_v54 = vld [vmem:[#allocation8 + $0x1418] sm:$0xff] }
 0x70e   :  { %v9531_v55 = vpack.c.bf16 %v2835_v49, %v2831_v48  ;;  %v9413_v58 = vpack.c.bf16 %v2842_v52, %v2838_v50  ;;  %v9533_v59 = vpack.c.bf16 %v2844_v2, %v2840_v54  ;;  %v2873_v48 = vld [vmem:[#allocation8 + $0x1520] sm:$0xff]  ;;  %v2871_v52 = vld [vmem:[#allocation8 + $0x1510] sm:$0xff]  ;;  %v2878_v2 = vld [vmem:[#allocation8 + $0x1548] sm:$0xff] }
 0x70f   :  { %v2875_v54 = vld [vmem:[#allocation8 + $0x1530] sm:$0xff] }
 0x710   :  { %9396 = vmatpush1.bf16.msra.mxu1 %v9395_v56  ;;  %9516 = vmatpush1.bf16.msra.mxu0 %v9515_v57  ;;  %v2837_v56 = vld [vmem:[#allocation8 + $0x1400] sm:$0xff] }
 0x711   :  { %9398 = vmatprep.subr.bf16.mxu1 %v9397_v61  ;;  %9518 = vmatprep.subr.bf16.mxu0 %v9517_v60  ;;  %v2841_v57 = vld [vmem:[#allocation8 + $0x1420] sm:$0xff]  ;;  %v2843_v61 = vld [vmem:[#allocation8 + $0x1430] sm:$0xff]  ;;  %v2850_v60 = vld [vmem:[#allocation8 + $0x1468] sm:$0xff] }
 0x712   :  { %v9415_v13 = vpack.c.bf16 %v2841_v57, %v2837_v56  ;;  %v9535_v1 = vpack.c.bf16 %v2843_v61, %v2839_v45  ;;  %v9417_v7 = vpack.c.bf16 %v2850_v60, %v2846_v62  ;;  %v2884_v56 = vld [vmem:[#allocation8 + $0x1578] sm:$0xff]  ;;  %v2881_v45 = vld [vmem:[#allocation8 + $0x1560] sm:$0xff]  ;;  %v2879_v60 = vld [vmem:[#allocation8 + $0x1550] sm:$0xff] }
 0x7a6   :  { %v2600_v3 = vpop.f32.mrb[12].mxu1  ;;  %v11836_v14 = vpop.f32.mrb[14].mxu0 }
 0x7a7   :  { %v2602_v15 = vpop.f32.mrb[13].mxu1  ;;  %v2673_v21 = vpop.f32.mrb[15].mxu0 }
 0x7a8   :  { %2984 = vmatprep.mubr.f32.mxu1 %v2602_v15  ;;  %3126 = vmatprep.mubr.f32.mxu0 %v2602_v15  ;;  %v2860_v15 = vld [vmem:[#allocation8 + $0x14b8] sm:$0xff] }
 0x7a9   :  { %2985 = vmatmul.mubr.f32.vlgmr.msra.gmra.mrb[8].mxu1 %v2600_v3  ;;  %3127 = vmatmul.mubr.f32.vlgmr.msra.gmra.mrb[10].mxu0 %v2600_v3  ;;  %v2847_v3 = vld [vmem:[#allocation8 + $0x1450] sm:$0xff] }
 0x7aa   :  { %9400 = vmatpush1.bf16.msra.mxu1 %v9399_v10  ;;  %9520 = vmatpush1.bf16.msra.mxu0 %v9519_v11  ;;  %v2851_v10 = vld [vmem:[#allocation8 + $0x1470] sm:$0xff]  ;;  %v2854_v11 = vld [vmem:[#allocation8 + $0x1488] sm:$0xff] }
 0x7ab   :  { %9402 = vmatprep.subr.bf16.mxu1 %v9401_v16  ;;  %9522 = vmatprep.subr.bf16.mxu0 %v9521_v17  ;;  %v9419_v16 = vpack.c.bf16 %v2849_v5, %v2845_v4  ;;  %v9539_v17 = vpack.c.bf16 %v2851_v10, %v2847_v3  ;;  %v9421_v20 = vpack.c.bf16 %v2858_v6, %v2854_v11  ;;  %v2892_v4 = vld [vmem:[#allocation8 + $0x15b8] sm:$0xff]  ;;  %v2889_v3 = vld [vmem:[#allocation8 + $0x15a0] sm:$0xff]  ;;  %v2887_v6 = vld [vmem:[#allocation8 + $0x1590] sm:$0xff] }
 0x7ac   :  { %8207 = vmatprep.mubr.msk.f32.mxu1 %vm1078_vm2, %v2673_v21  ;;  %8208 = vmatprep.mubr.msk.f32.mxu0 %vm1078_vm2, %v2673_v21  ;;  %v9541_v21 = vpack.c.bf16 %v2860_v15, %v2856_v12  ;;  %v2891_v12 = vld [vmem:[#allocation8 + $0x15b0] sm:$0xff]  ;;  %v2894_v15 = vld [vmem:[#allocation8 + $0x15c8] sm:$0xff] }
 0x7ae   :  { %9404 = vmatpush1.bf16.msra.mxu1 %v9403_v25  ;;  %9524 = vmatpush1.bf16.msra.mxu0 %v9523_v26  ;;  %v2866_v25 = vld [vmem:[#allocation8 + $0x14e8] sm:$0xff]  ;;  %v2864_v26 = vld [vmem:[#allocation8 + $0x14d8] sm:$0xff] }
 0x7af   :  { %9406 = vmatprep.subr.bf16.mxu1 %v9405_v29  ;;  %9526 = vmatprep.subr.bf16.mxu0 %v9525_v30  ;;  %v9543_v29 = vpack.c.bf16 %v2859_v23, %v2855_v22  ;;  %v2861_v30 = vld [vmem:[#allocation8 + $0x14c0] sm:$0xff]  ;;  %v9425_v32 = vpack.c.bf16 %v2866_v25, %v2862_v24  ;;  %v9545_v33 = vpack.c.bf16 %v2868_v27, %v2864_v26  ;;  %v2895_v25 = vld [vmem:[#allocation8 + $0x15d0] sm:$0xff]  ;;  %v2902_v27 = vld [vmem:[#allocation8 + $0x1608] sm:$0xff] }
 0x7b0   :  { %v9427_v44 = vpack.c.bf16 %v2865_v31, %v2861_v30  ;;  %v2897_v22 = vld [vmem:[#allocation8 + $0x15e0] sm:$0xff]  ;;  %v2899_v26 = vld [vmem:[#allocation8 + $0x15f0] sm:$0xff]  ;;  %v2908_v30 = vld [vmem:[#allocation8 + $0x1638] sm:$0xff] }
 0x7b2   :  { %9408 = vmatpush1.bf16.msra.mxu1 %v9407_v40  ;;  %9528 = vmatpush1.bf16.msra.mxu0 %v9527_v41  ;;  %v2874_v40 = vld [vmem:[#allocation8 + $0x1528] sm:$0xff]  ;;  %v2872_v41 = vld [vmem:[#allocation8 + $0x1518] sm:$0xff] }
 0x7b3   :  { %9410 = vmatprep.subr.bf16.mxu1 %v9409_v46  ;;  %9530 = vmatprep.subr.bf16.mxu0 %v9529_v47  ;;  %v9547_v46 = vpack.c.bf16 %v2867_v35, %v2863_v34  ;;  %v2869_v47 = vld [vmem:[#allocation8 + $0x1500] sm:$0xff]  ;;  %v9429_v49 = vpack.c.bf16 %v2874_v40, %v2870_v37  ;;  %v9549_v50 = vpack.c.bf16 %v2876_v42, %v2872_v41  ;;  %v2903_v40 = vld [vmem:[#allocation8 + $0x1610] sm:$0xff]  ;;  %v2910_v42 = vld [vmem:[#allocation8 + $0x1648] sm:$0xff] }
 0x7b4   :  { %v9431_v57 = vpack.c.bf16 %v2873_v48, %v2869_v47  ;;  %v2905_v34 = vld [vmem:[#allocation8 + $0x1620] sm:$0xff]  ;;  %v2907_v41 = vld [vmem:[#allocation8 + $0x1630] sm:$0xff]  ;;  %v2916_v47 = vld [vmem:[#allocation8 + $0x1678] sm:$0xff] }
 0x7b6   :  { %9412 = vmatpush1.bf16.msra.mxu1 %v9411_v8  ;;  %9532 = vmatpush1.bf16.msra.mxu0 %v9531_v55  ;;  %v2882_v8 = vld [vmem:[#allocation8 + $0x1568] sm:$0xff]  ;;  %v2880_v55 = vld [vmem:[#allocation8 + $0x1558] sm:$0xff] }
 0x7b7   :  { %9414 = vmatprep.subr.bf16.mxu1 %v9413_v58  ;;  %9534 = vmatprep.subr.bf16.mxu0 %v9533_v59  ;;  %v9551_v58 = vpack.c.bf16 %v2875_v54, %v2871_v52  ;;  %v2877_v59 = vld [vmem:[#allocation8 + $0x1540] sm:$0xff]  ;;  %v9433_v61 = vpack.c.bf16 %v2882_v8, %v2878_v2  ;;  %v9553_v62 = vpack.c.bf16 %v2884_v56, %v2880_v55  ;;  %v2911_v8 = vld [vmem:[#allocation8 + $0x1650] sm:$0xff] }
 0x7b8   :  { %v9435_v5 = vpack.c.bf16 %v2881_v45, %v2877_v59  ;;  %v2913_v2 = vld [vmem:[#allocation8 + $0x1660] sm:$0xff]  ;;  %v2915_v55 = vld [vmem:[#allocation8 + $0x1670] sm:$0xff] }
 0x7b9   :  { %v3285_v59 = vld [vmem:[#allocation13 + $0x108] sm:$0xff]  ;;  %v3286_v45 = vld [vmem:[#allocation13 + $0x110] sm:$0xff] }
 0x7ba   :  { %9416 = vmatpush1.bf16.msra.mxu1 %v9415_v13  ;;  %9536 = vmatpush1.bf16.msra.mxu0 %v9535_v1  ;;  %v2890_v13 = vld [vmem:[#allocation8 + $0x15a8] sm:$0xff]  ;;  %v2888_v1 = vld [vmem:[#allocation8 + $0x1598] sm:$0xff] }
 0x7bb   :  { %9418 = vmatprep.subr.bf16.mxu1 %v9417_v7  ;;  %9538 = vmatprep.subr.bf16.mxu0 %v9537_v9  ;;  %v9555_v7 = vpack.c.bf16 %v2883_v63, %v2879_v60  ;;  %v2885_v9 = vld [vmem:[#allocation8 + $0x1580] sm:$0xff]  ;;  %v9437_v10 = vpack.c.bf16 %v2890_v13, %v2886_v0  ;;  %v9557_v11 = vpack.c.bf16 %v2892_v4, %v2888_v1  ;;  %v3287_v60 = vld [vmem:[#allocation13 + $0x118] sm:$0xff] }
 0x7bc   :  { %v9439_v19 = vpack.c.bf16 %v2889_v3, %v2885_v9  ;;  %v9609_v63 = vpack.c.bf16 %v3287_v60, %v3286_v45  ;;  %v3288_v0 = vld [vmem:[#allocation13 + $0x120] sm:$0xff]  ;;  %v3289_v13 = vld [vmem:[#allocation13 + $0x128] sm:$0xff]  ;;  %v3270_v3 = vld [vmem:[#allocation13 + $0x90] sm:$0xff] }
 0x7bd   :  { %v3268_v1 = vld [vmem:[#allocation13 + $0x80] sm:$0xff]  ;;  %v3269_v4 = vld [vmem:[#allocation13 + $0x88] sm:$0xff] }
 0x7be   :  { %9420 = vmatpush1.bf16.msra.mxu1 %v9419_v16  ;;  %9540 = vmatpush1.bf16.msra.mxu0 %v9539_v17  ;;  %v2898_v16 = vld [vmem:[#allocation8 + $0x15e8] sm:$0xff]  ;;  %v2896_v17 = vld [vmem:[#allocation8 + $0x15d8] sm:$0xff] }
 0x7bf   :  { %9422 = vmatprep.subr.bf16.mxu1 %v9421_v20  ;;  %9542 = vmatprep.subr.bf16.mxu0 %v9541_v21  ;;  %v9559_v20 = vpack.c.bf16 %v2891_v12, %v2887_v6  ;;  %v2893_v21 = vld [vmem:[#allocation8 + $0x15c0] sm:$0xff]  ;;  %v9441_v23 = vpack.c.bf16 %v2898_v16, %v2894_v15  ;;  %v9561_v24 = vpack.c.bf16 %v2900_v18, %v2896_v17  ;;  %v3290_v12 = vld [vmem:[#allocation13 + $0x130] sm:$0xff]  ;;  %v3255_v16 = vld [vmem:[#allocation13 + $0x18] sm:$0xff] }
 0x7c0   :  { %v9443_v31 = vpack.c.bf16 %v2897_v22, %v2893_v21  ;;  %v3253_v9 = vld [vmem:[#allocation13 + $0x8] sm:$0xff]  ;;  %v9612_v6 = vpack.c.bf16 %v3289_v13, %v3288_v0  ;;  %v3291_v17 = vld [vmem:[#allocation13 + $0x138] sm:$0xff]  ;;  %v3256_v22 = vld [vmem:[#allocation13 + $0x20] sm:$0xff] }
 0x7c1   :  { %v3305_v60 = vld [vmem:[#allocation13 + $0x1a8] sm:$0xff]  ;;  %v3278_v0 = vld [vmem:[#allocation13 + $0xd0] sm:$0xff]  ;;  %v3279_v13 = vld [vmem:[#allocation13 + $0xd8] sm:$0xff] }
 0x7c2   :  { %9424 = vmatpush1.bf16.msra.mxu1 %v9423_v28  ;;  %9544 = vmatpush1.bf16.msra.mxu0 %v9543_v29  ;;  %v2906_v28 = vld [vmem:[#allocation8 + $0x1628] sm:$0xff]  ;;  %v2904_v29 = vld [vmem:[#allocation8 + $0x1618] sm:$0xff] }
 0x7c3   :  { %9426 = vmatprep.subr.bf16.mxu1 %v9425_v32  ;;  %9546 = vmatprep.subr.bf16.mxu0 %v9545_v33  ;;  %v9563_v32 = vpack.c.bf16 %v2899_v26, %v2895_v25  ;;  %v2901_v33 = vld [vmem:[#allocation8 + $0x1600] sm:$0xff]  ;;  %v9445_v35 = vpack.c.bf16 %v2906_v28, %v2902_v27  ;;  %v9565_v37 = vpack.c.bf16 %v2908_v30, %v2904_v29  ;;  %v3275_v25 = vld [vmem:[#allocation13 + $0xb8] sm:$0xff] }
 0x7c4   :  { %v9447_v48 = vpack.c.bf16 %v2905_v34, %v2901_v33  ;;  %v9615_v26 = vpack.c.bf16 %v3291_v17, %v3290_v12  ;;  %v3292_v27 = vld [vmem:[#allocation13 + $0x140] sm:$0xff]  ;;  %v3293_v28 = vld [vmem:[#allocation13 + $0x148] sm:$0xff] }
 0x7c5   :  { %v3276_v33 = vld [vmem:[#allocation13 + $0xc0] sm:$0xff]  ;;  %v3277_v34 = vld [vmem:[#allocation13 + $0xc8] sm:$0xff] }
 0x7c6   :  { %9428 = vmatpush1.bf16.msra.mxu1 %v9427_v44  ;;  %9548 = vmatpush1.bf16.msra.mxu0 %v9547_v46  ;;  %v2914_v44 = vld [vmem:[#allocation8 + $0x1668] sm:$0xff]  ;;  %v2912_v46 = vld [vmem:[#allocation8 + $0x1658] sm:$0xff] }
 0x7c7   :  { %9430 = vmatprep.subr.bf16.mxu1 %v9429_v49  ;;  %9550 = vmatprep.subr.bf16.mxu0 %v9549_v50  ;;  %v9567_v49 = vpack.c.bf16 %v2907_v41, %v2903_v40  ;;  %v2909_v50 = vld [vmem:[#allocation8 + $0x1640] sm:$0xff]  ;;  %v9449_v52 = vpack.c.bf16 %v2914_v44, %v2910_v42  ;;  %v9569_v54 = vpack.c.bf16 %v2916_v47, %v2912_v46  ;;  %v3295_v40 = vld [vmem:[#allocation13 + $0x158] sm:$0xff] }
 0x7c8   :  { %v9451_v56 = vpack.c.bf16 %v2913_v2, %v2909_v50  ;;  %v9589_v42 = vpack.c.bf16 %v3277_v34, %v3276_v33  ;;  %v3260_v44 = vld [vmem:[#allocation13 + $0x40] sm:$0xff]  ;;  %v3261_v46 = vld [vmem:[#allocation13 + $0x48] sm:$0xff]  ;;  %v3299_v2 = vld [vmem:[#allocation13 + $0x178] sm:$0xff] }
 0x7c9   :  { %v9591_v50 = vpack.c.bf16 %v3261_v46, %v3260_v44 }
 0x7ca   :  { %9432 = vmatpush1.bf16.msra.mxu1 %v9431_v57  ;;  %9552 = vmatpush1.bf16.msra.mxu0 %v9551_v58  ;;  %v9571_v57 = vpack.c.bf16 %v2915_v55, %v2911_v8  ;;  %v3284_v58 = vld [vmem:[#allocation13 + $0x100] sm:$0xff] }
 0x7cb   :  { %9434 = vmatprep.subr.bf16.mxu1 %v9433_v61  ;;  %9554 = vmatprep.subr.bf16.mxu0 %v9553_v62  ;;  %v11491_v61 = vmov 0.0|0.0   ;;  %v9606_v62 = vpack.c.bf16 %v3285_v59, %v3284_v58  ;;  %v3300_v55 = vld [vmem:[#allocation13 + $0x180] sm:$0xff]  ;;  %v3302_v58 = vld [vmem:[#allocation13 + $0x190] sm:$0xff]  ;;  %v3303_v59 = vld [vmem:[#allocation13 + $0x198] sm:$0xff] }
 0x7cc   :  { %v9633_v45 = vpack.c.bf16 %v3303_v59, %v3302_v58 }
 0x7ce   :  { %9436 = vmatpush1.bf16.msra.mxu1 %v9435_v5  ;;  %9556 = vmatpush1.bf16.msra.mxu0 %v9555_v7  ;;  %v3252_v5 = vld [vmem:[#allocation13] sm:$0xff]  ;;  %v9573_v7 = vpack.c.bf16 %v3269_v4, %v3268_v1  ;;  %v9593_v1 = vpack.c.bf16 %v3279_v13, %v3278_v0  ;;  %v3262_v4 = vld [vmem:[#allocation13 + $0x50] sm:$0xff] }
 0x7cf   :  { %9438 = vmatprep.subr.bf16.mxu1 %v9437_v10  ;;  %9558 = vmatprep.subr.bf16.mxu0 %v9557_v11  ;;  %v3271_v10 = vld [vmem:[#allocation13 + $0x98] sm:$0xff]  ;;  %v3254_v11 = vld [vmem:[#allocation13 + $0x10] sm:$0xff] }
 0x7d0   :  { %v9577_v15 = vpack.c.bf16 %v3271_v10, %v3270_v3  ;;  %v9579_v18 = vpack.c.bf16 %v3255_v16, %v3254_v11  ;;  %v1138_v3 = vld [vmem:[#allocation11] sm:$0xf]  ;;  %v3280_v11 = vld [vmem:[#allocation13 + $0xe0] sm:$0xff]  ;;  %v3265_v16 = vld [vmem:[#allocation13 + $0x68] sm:$0xff] }
 0x7d2   :  { %9440 = vmatpush1.bf16.msra.mxu1 %v9439_v19  ;;  %9560 = vmatpush1.bf16.msra.mxu0 %v9559_v20  ;;  %v3272_v19 = vld [vmem:[#allocation13 + $0xa0] sm:$0xff]  ;;  %v3273_v20 = vld [vmem:[#allocation13 + $0xa8] sm:$0xff] }
 0x7d3   :  { %9442 = vmatprep.subr.bf16.mxu1 %v9441_v23  ;;  %9562 = vmatprep.subr.bf16.mxu0 %v9561_v24  ;;  %v9581_v21 = vpack.c.bf16 %v3273_v20, %v3272_v19  ;;  %v3257_v23 = vld [vmem:[#allocation13 + $0x28] sm:$0xff]  ;;  %v3274_v24 = vld [vmem:[#allocation13 + $0xb0] sm:$0xff]  ;;  %v1837_v19 = vrot.slane %v1138_v3, %v11739_v36  ;;  %v1833_v20 = vrot.slane %v1138_v3, %v11741_v38 }
 0x7d4   :  { %v9583_v29 = vpack.c.bf16 %v3257_v23, %v3256_v22  ;;  %v9585_v30 = vpack.c.bf16 %v3275_v25, %v3274_v24  ;;  %v3282_v22 = vld [vmem:[#allocation13 + $0xf0] sm:$0xff]  ;;  %v3283_v23 = vld [vmem:[#allocation13 + $0xf8] sm:$0xff] }
 0x7d6   :  { %9444 = vmatpush1.bf16.msra.mxu1 %v9443_v31  ;;  %9564 = vmatpush1.bf16.msra.mxu0 %v9563_v32  ;;  %v3258_v31 = vld [vmem:[#allocation13 + $0x30] sm:$0xff]  ;;  %v3259_v32 = vld [vmem:[#allocation13 + $0x38] sm:$0xff] }
 0x7d7   :  { %9446 = vmatprep.subr.bf16.mxu1 %v9445_v35  ;;  %9566 = vmatprep.subr.bf16.mxu0 %v9565_v37  ;;  %v9618_v35 = vpack.c.bf16 %v3293_v28, %v3292_v27  ;;  %v3294_v37 = vld [vmem:[#allocation13 + $0x150] sm:$0xff]  ;;  %v9587_v41 = vpack.c.bf16 %v3259_v32, %v3258_v31  ;;  %v3267_v28 = vld [vmem:[#allocation13 + $0x78] sm:$0xff] }
 0x7d8   :  { %v9621_v47 = vpack.c.bf16 %v3295_v40, %v3294_v37  ;;  %v3266_v27 = vld [vmem:[#allocation13 + $0x70] sm:$0xff] }
 0x7d9   :  { %v9603_v33 = vpack.c.bf16 %v3267_v28, %v3266_v27  ;;  %v3474_v27 = vld [vmem:[#allocation13 + $0x268] sm:$0xff]  ;;  %v3491_v28 = vld [vmem:[#allocation13 + $0x2f0] sm:$0xff] }
 0x7da   :  { %9448 = vmatpush1.bf16.msra.mxu1 %v9447_v48  ;;  %9568 = vmatpush1.bf16.msra.mxu0 %v9567_v49  ;;  %v3296_v48 = vld [vmem:[#allocation13 + $0x160] sm:$0xff]  ;;  %v3297_v49 = vld [vmem:[#allocation13 + $0x168] sm:$0xff] }
 0x7db   :  { %9450 = vmatprep.subr.bf16.mxu1 %v9449_v52  ;;  %9570 = vmatprep.subr.bf16.mxu0 %v9569_v54  ;;  %v9624_v52 = vpack.c.bf16 %v3297_v49, %v3296_v48  ;;  %v3298_v54 = vld [vmem:[#allocation13 + $0x170] sm:$0xff] }
 0x7dc   :  { %v9627_v8 = vpack.c.bf16 %v3299_v2, %v3298_v54 }
 0x7de   :  { %9452 = vmatpush1.bf16.msra.mxu1 %v9451_v56  ;;  %9572 = vmatpush1.bf16.msra.mxu0 %v9571_v57  ;;  %v3301_v56 = vld [vmem:[#allocation13 + $0x188] sm:$0xff] }
 0x7df   :  { %9605 = vmatprep.subr.bf16.mxu0 %v11491_v61  ;;  %9574 = vmatprep.subr.bf16.mxu1 %v9573_v7  ;;  %v9630_v57 = vpack.c.bf16 %v3301_v56, %v3300_v55  ;;  %v3486_v55 = vld [vmem:[#allocation13 + $0x2c8] sm:$0xff] }
 0x7e1   :  { %3056 = vmatmul.mubr.f32.vlgmr.msra.gmra.mrb[8].mxu1 %v11836_v14  ;;  %3198 = vmatmul.mubr.f32.vlgmr.msra.gmra.mrb[10].mxu0 %v11836_v14  ;;  %v9575_v14 = vpack.c.bf16 %v3253_v9, %v3252_v5  ;;  %v3263_v5 = vld [vmem:[#allocation13 + $0x58] sm:$0xff]  ;;  %v3306_v9 = vld [vmem:[#allocation13 + $0x1b0] sm:$0xff] }
 0x7e2   :  { %9607 = vmatpush1.bf16.msra.mxu0 %v9606_v62  ;;  %v3304_v62 = vld [vmem:[#allocation13 + $0x1a0] sm:$0xff]  ;;  %v9595_v7 = vpack.c.bf16 %v3263_v5, %v3262_v4  ;;  %v3488_v4 = vld [vmem:[#allocation13 + $0x2d8] sm:$0xff] }
 0x7e3   :  { %9608 = vmatprep.subr.bf16.mxu0 %v11491_v61  ;;  %9576 = vmatpush3.bf16.msra.mxu1 %v9575_v14  ;;  %v3307_v14 = vld [vmem:[#allocation13 + $0x1b8] sm:$0xff] }
 0x7e4   :  { %9578 = vmatprep.subr.bf16.mxu1 %v9577_v15  ;;  %v9639_v10 = vpack.c.bf16 %v3307_v14, %v3306_v9  ;;  %v3264_v15 = vld [vmem:[#allocation13 + $0x60] sm:$0xff] }
 0x7e5   :  { %v9599_v17 = vpack.c.bf16 %v3265_v16, %v3264_v15  ;;  %v3453_v14 = vld [vmem:[#allocation13 + $0x1c0] sm:$0xff]  ;;  %v3472_v15 = vld [vmem:[#allocation13 + $0x258] sm:$0xff] }
 0x7e6   :  { %9610 = vmatpush1.bf16.msra.mxu0 %v9609_v63  ;;  %v9636_v63 = vpack.c.bf16 %v3305_v60, %v3304_v62  ;;  %v3489_v16 = vld [vmem:[#allocation13 + $0x2e0] sm:$0xff] }
 0x7e7   :  { %9611 = vmatprep.subr.bf16.mxu0 %v11491_v61  ;;  %9580 = vmatpush3.bf16.msra.mxu1 %v9579_v18  ;;  %v1829_v18 = vrot.slane %v1138_v3, %v11743_v39 }
 0x7e8   :  { %9582 = vmatprep.subr.bf16.mxu1 %v9581_v21  ;;  %v1841_v21 = vrot.slane %v1138_v3, %v11748_v43  ;;  %v3454_v3 = vld [vmem:[#allocation13 + $0x1c8] sm:$0xff] }
 0x7ea   :  { %9613 = vmatpush1.bf16.msra.mxu0 %v9612_v6  ;;  %v3281_v6 = vld [vmem:[#allocation13 + $0xe8] sm:$0xff] }
 0x7eb   :  { %9614 = vmatprep.subr.bf16.mxu0 %v11491_v61  ;;  %9584 = vmatpush3.bf16.msra.mxu1 %v9583_v29  ;;  %v9597_v12 = vpack.c.bf16 %v3281_v6, %v3280_v11 }
 0x7ec   :  { %9586 = vmatprep.subr.bf16.mxu1 %v9585_v30 }
 0x7ee   :  { %9616 = vmatpush1.bf16.msra.mxu0 %v9615_v26  ;;  %v9601_v26 = vpack.c.bf16 %v3283_v23, %v3282_v22  ;;  %v3455_v22 = vld [vmem:[#allocation13 + $0x1d0] sm:$0xff]  ;;  %v3456_v23 = vld [vmem:[#allocation13 + $0x1d8] sm:$0xff] }
 0x7ef   :  { %9617 = vmatprep.subr.bf16.mxu0 %v11491_v61  ;;  %9588 = vmatpush3.bf16.msra.mxu1 %v9587_v41  ;;  %v3469_v41 = vld [vmem:[#allocation13 + $0x240] sm:$0xff] }
 0x7f0   :  { %9590 = vmatprep.subr.bf16.mxu1 %v9589_v42  ;;  %v3470_v42 = vld [vmem:[#allocation13 + $0x248] sm:$0xff] }
 0x7f2   :  { %9619 = vmatpush1.bf16.msra.mxu0 %v9618_v35 }
 0x7f3   :  { %9620 = vmatprep.subr.bf16.mxu0 %v11491_v61  ;;  %9592 = vmatpush3.bf16.msra.mxu1 %v9591_v50 }
 0x7f4   :  { %9594 = vmatprep.subr.bf16.mxu1 %v9593_v1  ;;  %v3487_v1 = vld [vmem:[#allocation13 + $0x2d0] sm:$0xff] }
 0x7f5   :  { %v9677_v6 = vpack.c.bf16 %v3488_v4, %v3487_v1  ;;  %v3463_v1 = vld [vmem:[#allocation13 + $0x210] sm:$0xff]  ;;  %v3464_v4 = vld [vmem:[#allocation13 + $0x218] sm:$0xff] }
 0x7f6   :  { %9622 = vmatpush1.bf16.msra.mxu0 %v9621_v47  ;;  %v9641_v47 = vpack.c.bf16 %v3470_v42, %v3469_v41  ;;  %v3494_v41 = vld [vmem:[#allocation13 + $0x308] sm:$0xff] }
 0x7f7   :  { %9623 = vmatprep.subr.bf16.mxu0 %v11491_v61  ;;  %9596 = vmatpush3.bf16.msra.mxu1 %v9595_v7 }
 0x7f8   :  { %9598 = vmatprep.subr.bf16.mxu1 %v9597_v12  ;;  %v3471_v12 = vld [vmem:[#allocation13 + $0x250] sm:$0xff] }
 0x7fa   :  { %9625 = vmatpush1.bf16.msra.mxu0 %v9624_v52 }
 0x7fb   :  { %9626 = vmatprep.subr.bf16.mxu0 %v11491_v61  ;;  %9600 = vmatpush3.bf16.msra.mxu1 %v9599_v17  ;;  %v3490_v17 = vld [vmem:[#allocation13 + $0x2e8] sm:$0xff] }
 0x7fc   :  { %9602 = vmatprep.subr.bf16.mxu1 %v9601_v26  ;;  %v3473_v26 = vld [vmem:[#allocation13 + $0x260] sm:$0xff] }
 0x7fe   :  { %9628 = vmatpush1.bf16.msra.mxu0 %v9627_v8  ;;  %v3485_v8 = vld [vmem:[#allocation13 + $0x2c0] sm:$0xff] }
 0x7ff   :  { %9629 = vmatprep.subr.bf16.mxu0 %v11491_v61  ;;  %9604 = vmatpush3.bf16.msra.mxu1 %v9603_v33  ;;  %v9674_v60 = vpack.c.bf16 %v3486_v55, %v3485_v8  ;;  %v3458_v33 = vld [vmem:[#allocation13 + $0x1e8] sm:$0xff]  ;;  %v3461_v55 = vld [vmem:[#allocation13 + $0x200] sm:$0xff] }
 0x800   :  { %9642 = vmatprep.subr.bf16.mxu1 %v9641_v47  ;;  %v3460_v47 = vld [vmem:[#allocation13 + $0x1f8] sm:$0xff] }
 0x802   :  { %9631 = vmatpush1.bf16.msra.mxu0 %v9630_v57 }
 0x803   :  { %9632 = vmatprep.subr.bf16.mxu0 %v11491_v61 }
 0x806   :  { %9634 = vmatpush1.bf16.msra.mxu0 %v9633_v45 }
 0x807   :  { %9635 = vmatprep.subr.bf16.mxu0 %v11491_v61 }
 0x80a   :  { %9637 = vmatpush1.bf16.msra.mxu0 %v9636_v63 }
 0x80b   :  { %9638 = vmatprep.subr.bf16.mxu0 %v11491_v61 }
 0x80e   :  { %9640 = vmatpush1.bf16.msra.mxu0 %v9639_v10 }
 0x80f   :  { %9673 = vmatprep.subr.bf16.mxu0 %v11491_v61 }
 0x8b4   :  { %v3057_v24 = vpop.f32.mrb[8].mxu1  ;;  %v3199_v25 = vpop.f32.mrb[10].mxu0 }
 0x8b5   :  { %v11037_v29 = vadd.f32 %v3057_v24, %v1829_v18  ;;  %v11039_v30 = vadd.f32 %v3199_v25, %v1837_v19  ;;  %v3059_v31 = vpop.f32.mrb[9].mxu1  ;;  %v3201_v32 = vpop.f32.mrb[11].mxu0  ;;  %v9680_v25 = vpack.c.bf16 %v3490_v17, %v3489_v16  ;;  %v3483_v16 = vld [vmem:[#allocation13 + $0x2b0] sm:$0xff]  ;;  %v3484_v17 = vld [vmem:[#allocation13 + $0x2b8] sm:$0xff] }
 0x8b6   :  { %v11038_v34 = vadd.f32 %v3059_v31, %v1833_v20  ;;  %v11040_v35 = vadd.f32 %v3201_v32, %v1841_v21  ;;  %v9643_v20 = vpack.c.bf16 %v3454_v3, %v3453_v14  ;;  %v9645_v21 = vpack.c.bf16 %v3472_v15, %v3471_v12  ;;  %v3457_v32 = vld [vmem:[#allocation13 + $0x1e0] sm:$0xff]  ;;  %v3499_v14 = vld [vmem:[#allocation13 + $0x330] sm:$0xff]  ;;  %v3500_v3 = vld [vmem:[#allocation13 + $0x338] sm:$0xff] }
 0x8b7   :  { %v3208_v37 = vmax.f32 %v11037_v29, 0.0  ;;  %v3210_v40 = vmax.f32 %v11039_v30, 0.0  ;;  %v3492_v29 = vld [vmem:[#allocation13 + $0x2f8] sm:$0xff]  ;;  %v9647_v30 = vpack.c.bf16 %v3456_v23, %v3455_v22  ;;  %v9649_v31 = vpack.c.bf16 %v3474_v27, %v3473_v26  ;;  %v3466_v12 = vld [vmem:[#allocation13 + $0x228] sm:$0xff]  ;;  %v3679_v27 = vld [vmem:[#allocation13 + $0x400] sm:$0xff] }
 0x8b8   :  { %v3209_v44 = vmax.f32 %v11038_v34, 0.0  ;;  %v3211_v46 = vmax.f32 %v11040_v35, 0.0  ;;  %v9683_v34 = vpack.c.bf16 %v3492_v29, %v3491_v28  ;;  %v3475_v35 = vld [vmem:[#allocation13 + $0x270] sm:$0xff]  ;;  %v9651_v42 = vpack.c.bf16 %v3458_v33, %v3457_v32  ;;  %v3680_v28 = vld [vmem:[#allocation13 + $0x408] sm:$0xff]  ;;  %v3663_v33 = vld [vmem:[#allocation13 + $0x380] sm:$0xff] }
 0x8b9   :  { %3220 = vrot.lane.b32.xlu0 %v3210_v40, %s11492_s24  ;;  %v9695_v15 = vpack.c.bf16 %v3500_v3, %v3499_v14  ;;  %v9669_v23 = vpack.c.bf16 %v3484_v17, %v3483_v16  ;;  %v3503_v29 = vld [vmem:[#allocation13 + $0x350] sm:$0xff]  ;;  %v9709_v32 = vpack.c.bf16 %v3680_v28, %v3679_v27  ;;  %v3687_v3 = vld [vmem:[#allocation13 + $0x440] sm:$0xff] }
 0x8ba   :  { %v11188_v48 = vpack.i.bf16 %v3208_v37, %v3209_v44  ;;  %3222 = vrot.lane.b32.xlu1 %v3211_v46, %s11492_s24 }
 0x8bd   :  { %11189 = vrot.lane.b32.xlu0 %v11188_v48, %s11492_s24 }
 0x92b   :  { %v3221_v49 = vpop.permute.xlu0 %3220 }
 0x92c   :  { %v3223_v50 = vpop.permute.xlu1 %3222 }
 0x92d   :  { %v3226_v52 = vsel %vm286_vm1, %v3221_v49, %v3223_v50  ;;  %v3234_v54 = vmax.f32 %v3211_v46, %v3223_v50  ;;  %v3459_v46 = vld [vmem:[#allocation13 + $0x1f0] sm:$0xff]  ;;  %v3478_v50 = vld [vmem:[#allocation13 + $0x288] sm:$0xff] }
 0x92e   :  { %v3233_v2 = vmax.f32 %v3210_v40, %v3226_v52  ;;  %v3493_v40 = vld [vmem:[#allocation13 + $0x300] sm:$0xff]  ;;  %v3495_v52 = vld [vmem:[#allocation13 + $0x310] sm:$0xff] }
 0x92f   :  { %v3242_v56 = vrot.slane %v3234_v54, 1  ;;  %v11190_v57 = vpop.permute.xlu0 %11189  ;;  %v9686_v48 = vpack.c.bf16 %v3494_v41, %v3493_v40  ;;  %v3682_v40 = vld [vmem:[#allocation13 + $0x418] sm:$0xff]  ;;  %v3505_v41 = vld [vmem:[#allocation13 + $0x360] sm:$0xff] }
 0x930   :  { %v3241_v58 = vrot.slane %v3233_v2, 1  ;;  %v11192_v59 = vunpack.i.h.bf16 %v11190_v57  ;;  %v11191_v45 = vunpack.i.l.bf16 %v11190_v57 }
 0x931   :  { %v11863_v62 = vmax.f32 %v3234_v54, %v3242_v56  ;;  %v3496_v54 = vld [vmem:[#allocation13 + $0x318] sm:$0xff]  ;;  %v3462_v56 = vld [vmem:[#allocation13 + $0x208] sm:$0xff] }
 0x932   :  { %v11865_v63 = vmax.f32 %v3233_v2, %v3241_v58  ;;  %v3224_v0 = vsel %vm286_vm1, %v11192_v59, %v11191_v45  ;;  %v3225_v13 = vsel %vm286_vm1, %v11191_v45, %v3221_v49  ;;  %v3477_v49 = vld [vmem:[#allocation13 + $0x280] sm:$0xff]  ;;  %v9655_v2 = vpack.c.bf16 %v3460_v47, %v3459_v46  ;;  %v3479_v58 = vld [vmem:[#allocation13 + $0x290] sm:$0xff]  ;;  %v3480_v59 = vld [vmem:[#allocation13 + $0x298] sm:$0xff] }
 0x933   :  { %v3231_v5 = vmax.f32 %v3208_v37, %v3224_v0  ;;  %v3232_v7 = vmax.f32 %v3209_v44, %v3225_v13  ;;  %8209 = vmatprep.mubr.msk.f32.mxu0 %vm286_vm1, %v11863_v62  ;;  %v3515_v9 = vrot.slane %v11863_v62, 2  ;;  %v3476_v37 = vld [vmem:[#allocation13 + $0x278] sm:$0xff]  ;;  %v9657_v8 = vpack.c.bf16 %v3478_v50, %v3477_v49  ;;  %v3497_v45 = vld [vmem:[#allocation13 + $0x320] sm:$0xff] }
 0x934   :  { %3446 = vmatmul.mubr.f32.vlgmr.msra.gmra.mrb[16].mxu0 %v11865_v63  ;;  %v9653_v44 = vpack.c.bf16 %v3476_v37, %v3475_v35  ;;  %v9689_v57 = vpack.c.bf16 %v3496_v54, %v3495_v52  ;;  %v9659_v0 = vpack.c.bf16 %v3462_v56, %v3461_v55  ;;  %v9661_v13 = vpack.c.bf16 %v3480_v59, %v3479_v58  ;;  %v3681_v37 = vld [vmem:[#allocation13 + $0x410] sm:$0xff]  ;;  %v3666_v49 = vld [vmem:[#allocation13 + $0x398] sm:$0xff]  ;;  %v3683_v54 = vld [vmem:[#allocation13 + $0x420] sm:$0xff] }
 0x935   :  { %v3239_v10 = vrot.slane %v3231_v5, 1  ;;  %v3240_v11 = vrot.slane %v3232_v7, 1  ;;  %9675 = vmatpush1.bf16.msra.mxu0 %v9674_v60  ;;  %8210 = vmatprep.mubr.msk.f32.mxu0 %vm286_vm1, %v3515_v9  ;;  %v3498_v60 = vld [vmem:[#allocation13 + $0x328] sm:$0xff]  ;;  %v9713_v47 = vpack.c.bf16 %v3682_v40, %v3681_v37  ;;  %v3508_v55 = vld [vmem:[#allocation13 + $0x378] sm:$0xff]  ;;  %v3667_v58 = vld [vmem:[#allocation13 + $0x3a0] sm:$0xff] }
 0x936   :  { %9676 = vmatprep.subr.bf16.mxu0 %v11491_v61  ;;  %v3482_v9 = vld [vmem:[#allocation13 + $0x2a8] sm:$0xff] }
 0x937   :  { %v11875_v18 = vmax.f32 %v3232_v7, %v3240_v11  ;;  %v11877_v19 = vmax.f32 %v3231_v5, %v3239_v10  ;;  %v9692_v5 = vpack.c.bf16 %v3498_v60, %v3497_v45  ;;  %v3481_v7 = vld [vmem:[#allocation13 + $0x2a0] sm:$0xff]  ;;  %v9663_v10 = vpack.c.bf16 %v3464_v4, %v3463_v1  ;;  %v3668_v59 = vld [vmem:[#allocation13 + $0x3a8] sm:$0xff]  ;;  %v3685_v60 = vld [vmem:[#allocation13 + $0x430] sm:$0xff] }
 0x938   :  { %v9665_v11 = vpack.c.bf16 %v3482_v9, %v3481_v7  ;;  %v3696_v1 = vld [vmem:[#allocation13 + $0x488] sm:$0xff]  ;;  %v9719_v4 = vpack.c.bf16 %v3668_v59, %v3667_v58  ;;  %v3669_v7 = vld [vmem:[#allocation13 + $0x3b0] sm:$0xff]  ;;  %v3670_v9 = vld [vmem:[#allocation13 + $0x3b8] sm:$0xff] }
 0x939   :  { %9678 = vmatpush1.bf16.msra.mxu0 %v9677_v6  ;;  %3375 = vmatprep.mubr.f32.mxu1 %v11875_v18  ;;  %v3513_v24 = vrot.slane %v11875_v18, 2  ;;  %v3465_v6 = vld [vmem:[#allocation13 + $0x220] sm:$0xff]  ;;  %v3512_v46 = vrot.slane %v11877_v19, 2  ;;  %v3720_v50 = vrot.slane %v11875_v18, 4  ;;  %v9723_v16 = vpack.c.bf16 %v3670_v9, %v3669_v7  ;;  %v3706_v58 = vld [vmem:[#allocation13 + $0x4d8] sm:$0xff]  ;;  %v3708_v7 = vld [vmem:[#allocation13 + $0x4e8] sm:$0xff] }
 0x93a   :  { %3376 = vmatmul.mubr.f32.vlgmr.msra.gmra.mrb[14].mxu1 %v11877_v19  ;;  %9679 = vmatprep.subr.bf16.mxu0 %v11491_v61  ;;  %v9667_v22 = vpack.c.bf16 %v3466_v12, %v3465_v6  ;;  %v3697_v6 = vld [vmem:[#allocation13 + $0x490] sm:$0xff]  ;;  %v3698_v12 = vld [vmem:[#allocation13 + $0x498] sm:$0xff] }
 0x93b   :  { %9644 = vmatpush3.bf16.msra.mxu1 %v9643_v20  ;;  %3585 = vmatprep.mubr.f32.mxu1 %v3513_v24  ;;  %v3501_v20 = vld [vmem:[#allocation13 + $0x340] sm:$0xff]  ;;  %v3467_v24 = vld [vmem:[#allocation13 + $0x230] sm:$0xff] }
 0x93c   :  { %9646 = vmatprep.subr.bf16.mxu1 %v9645_v21  ;;  %v3502_v21 = vld [vmem:[#allocation13 + $0x348] sm:$0xff] }
 0x93d   :  { %9681 = vmatpush1.bf16.msra.mxu0 %v9680_v25  ;;  %v3468_v25 = vld [vmem:[#allocation13 + $0x238] sm:$0xff]  ;;  %v9698_v26 = vpack.c.bf16 %v3502_v21, %v3501_v20  ;;  %v3671_v20 = vld [vmem:[#allocation13 + $0x3c0] sm:$0xff]  ;;  %v3672_v21 = vld [vmem:[#allocation13 + $0x3c8] sm:$0xff] }
 0x93e   :  { %9682 = vmatprep.subr.bf16.mxu0 %v11491_v61  ;;  %v9727_v27 = vpack.c.bf16 %v3672_v21, %v3671_v20  ;;  %v3710_v20 = vld [vmem:[#allocation13 + $0x4f8] sm:$0xff] }
 0x93f   :  { %9648 = vmatpush3.bf16.msra.mxu1 %v9647_v30  ;;  %v3504_v30 = vld [vmem:[#allocation13 + $0x358] sm:$0xff] }
 0x940   :  { %9650 = vmatprep.subr.bf16.mxu1 %v9649_v31  ;;  %v9671_v31 = vpack.c.bf16 %v3468_v25, %v3467_v24  ;;  %v9701_v35 = vpack.c.bf16 %v3504_v30, %v3503_v29  ;;  %v3690_v24 = vld [vmem:[#allocation13 + $0x458] sm:$0xff]  ;;  %v3699_v25 = vld [vmem:[#allocation13 + $0x4a0] sm:$0xff]  ;;  %v3673_v29 = vld [vmem:[#allocation13 + $0x3d0] sm:$0xff] }
 0x941   :  { %9684 = vmatpush1.bf16.msra.mxu0 %v9683_v34  ;;  %v3664_v34 = vld [vmem:[#allocation13 + $0x388] sm:$0xff]  ;;  %v3674_v30 = vld [vmem:[#allocation13 + $0x3d8] sm:$0xff] }
 0x942   :  { %9685 = vmatprep.subr.bf16.mxu0 %v11491_v61  ;;  %v9731_v37 = vpack.c.bf16 %v3674_v30, %v3673_v29 }
 0x943   :  { %9652 = vmatpush3.bf16.msra.mxu1 %v9651_v42  ;;  %v3506_v42 = vld [vmem:[#allocation13 + $0x368] sm:$0xff] }
 0x944   :  { %9654 = vmatprep.subr.bf16.mxu1 %v9653_v44  ;;  %v9711_v44 = vpack.c.bf16 %v3664_v34, %v3663_v33  ;;  %v9704_v52 = vpack.c.bf16 %v3506_v42, %v3505_v41  ;;  %v3692_v33 = vld [vmem:[#allocation13 + $0x468] sm:$0xff]  ;;  %v3701_v34 = vld [vmem:[#allocation13 + $0x4b0] sm:$0xff]  ;;  %v3675_v41 = vld [vmem:[#allocation13 + $0x3e0] sm:$0xff] }
 0x945   :  { %9687 = vmatpush1.bf16.msra.mxu0 %v9686_v48  ;;  %v3665_v48 = vld [vmem:[#allocation13 + $0x390] sm:$0xff]  ;;  %v3676_v42 = vld [vmem:[#allocation13 + $0x3e8] sm:$0xff] }
 0x946   :  { %9688 = vmatprep.subr.bf16.mxu0 %v11491_v61  ;;  %v9715_v56 = vpack.c.bf16 %v3666_v49, %v3665_v48  ;;  %v3703_v48 = vld [vmem:[#allocation13 + $0x4c0] sm:$0xff]  ;;  %v3704_v49 = vld [vmem:[#allocation13 + $0x4c8] sm:$0xff] }
 0x947   :  { %9656 = vmatpush3.bf16.msra.mxu1 %v9655_v2  ;;  %v3684_v2 = vld [vmem:[#allocation13 + $0x428] sm:$0xff] }
 0x948   :  { %9658 = vmatprep.subr.bf16.mxu1 %v9657_v8  ;;  %v3507_v8 = vld [vmem:[#allocation13 + $0x370] sm:$0xff] }
 0x949   :  { %9690 = vmatpush1.bf16.msra.mxu0 %v9689_v57  ;;  %v9717_v57 = vpack.c.bf16 %v3684_v2, %v3683_v54  ;;  %v9707_v45 = vpack.c.bf16 %v3508_v55, %v3507_v8  ;;  %v3677_v54 = vld [vmem:[#allocation13 + $0x3f0] sm:$0xff]  ;;  %v3678_v2 = vld [vmem:[#allocation13 + $0x3f8] sm:$0xff]  ;;  %v9754_v8 = vpack.c.bf16 %v3704_v49, %v3703_v48  ;;  %v3886_v55 = vld [vmem:[#allocation13 + $0x5c0] sm:$0xff] }
 0x94a   :  { %9691 = vmatprep.subr.bf16.mxu0 %v11491_v61  ;;  %v9739_v59 = vpack.c.bf16 %v3678_v2, %v3677_v54  ;;  %v3896_v48 = vld [vmem:[#allocation13 + $0x610] sm:$0xff]  ;;  %v3897_v49 = vld [vmem:[#allocation13 + $0x618] sm:$0xff] }
 0x94b   :  { %9660 = vmatpush3.bf16.msra.mxu1 %v9659_v0  ;;  %v3686_v0 = vld [vmem:[#allocation13 + $0x438] sm:$0xff]  ;;  %v9797_v2 = vpack.c.bf16 %v3897_v49, %v3896_v48 }
 0x94c   :  { %9662 = vmatprep.subr.bf16.mxu1 %v9661_v13  ;;  %v3695_v13 = vld [vmem:[#allocation13 + $0x480] sm:$0xff]  ;;  %v3921_v48 = vld [vmem:[#allocation13 + $0x6d8] sm:$0xff] }
 0x94d   :  { %9693 = vmatpush1.bf16.msra.mxu0 %v9692_v5  ;;  %v9721_v5 = vpack.c.bf16 %v3686_v0, %v3685_v60  ;;  %v9742_v14 = vpack.c.bf16 %v3696_v1, %v3695_v13  ;;  %v3870_v60 = vld [vmem:[#allocation13 + $0x540] sm:$0xff]  ;;  %v3871_v0 = vld [vmem:[#allocation13 + $0x548] sm:$0xff]  ;;  %v3888_v1 = vld [vmem:[#allocation13 + $0x5d0] sm:$0xff] }
 0x94e   :  { %9694 = vmatprep.subr.bf16.mxu0 %v11491_v61  ;;  %v9779_v9 = vpack.c.bf16 %v3871_v0, %v3870_v60 }
 0x94f   :  { %9664 = vmatpush3.bf16.msra.mxu1 %v9663_v10  ;;  %v3688_v10 = vld [vmem:[#allocation13 + $0x448] sm:$0xff] }
 0x950   :  { %9666 = vmatprep.subr.bf16.mxu1 %v9665_v11  ;;  %v3514_v11 = vrot.slane %v11865_v63, 2  ;;  %v9725_v17 = vpack.c.bf16 %v3688_v10, %v3687_v3  ;;  %v3872_v10 = vld [vmem:[#allocation13 + $0x550] sm:$0xff] }
 0x951   :  { %9696 = vmatpush1.bf16.msra.mxu0 %v9695_v15  ;;  %v3722_v15 = vrot.slane %v11863_v62, 4 }
 0x952   :  { %9697 = vmatprep.subr.bf16.mxu0 %v11491_v61 }
 0x953   :  { %9668 = vmatpush3.bf16.msra.mxu1 %v9667_v22  ;;  %v9745_v22 = vpack.c.bf16 %v3698_v12, %v3697_v6  ;;  %v3927_v6 = vrot.slane %v11875_v18, 6  ;;  %v3711_v18 = vld [vmem:[#allocation13 + $0x500] sm:$0xff] }
 0x954   :  { %9670 = vmatprep.subr.bf16.mxu1 %v9669_v23  ;;  %v3689_v23 = vld [vmem:[#allocation13 + $0x450] sm:$0xff] }
 0x955   :  { %9699 = vmatpush1.bf16.msra.mxu0 %v9698_v26  ;;  %v3700_v26 = vld [vmem:[#allocation13 + $0x4a8] sm:$0xff]  ;;  %v9729_v28 = vpack.c.bf16 %v3690_v24, %v3689_v23  ;;  %v3874_v23 = vld [vmem:[#allocation13 + $0x560] sm:$0xff] }
 0x956   :  { %9700 = vmatprep.subr.bf16.mxu0 %v11491_v61  ;;  %v3875_v24 = vld [vmem:[#allocation13 + $0x568] sm:$0xff] }
 0x957   :  { %9672 = vmatpush3.bf16.msra.mxu1 %v9671_v31  ;;  %v9748_v31 = vpack.c.bf16 %v3700_v26, %v3699_v25  ;;  %v3892_v26 = vld [vmem:[#allocation13 + $0x5f0] sm:$0xff]  ;;  %v9787_v29 = vpack.c.bf16 %v3875_v24, %v3874_v23  ;;  %v3906_v23 = vld [vmem:[#allocation13 + $0x660] sm:$0xff]  ;;  %v3907_v24 = vld [vmem:[#allocation13 + $0x668] sm:$0xff] }
 0x958   :  { %9710 = vmatprep.subr.bf16.mxu1 %v9709_v32  ;;  %v3691_v32 = vld [vmem:[#allocation13 + $0x460] sm:$0xff] }
 0x959   :  { %9702 = vmatpush1.bf16.msra.mxu0 %v9701_v35  ;;  %v3702_v35 = vld [vmem:[#allocation13 + $0x4b8] sm:$0xff]  ;;  %v9733_v40 = vpack.c.bf16 %v3692_v33, %v3691_v32 }
 0x95a   :  { %3586 = vmatmul.mubr.f32.vlgmr.msra.gmra.mrb[16].mxu1 %v3512_v46  ;;  %9703 = vmatprep.subr.bf16.mxu0 %v11491_v61  ;;  %v3693_v46 = vld [vmem:[#allocation13 + $0x470] sm:$0xff]  ;;  %v3877_v32 = vld [vmem:[#allocation13 + $0x578] sm:$0xff] }
 0x95b   :  { %9712 = vmatpush3.bf16.msra.mxu1 %v9711_v44  ;;  %3792 = vmatprep.mubr.f32.mxu1 %v3720_v50  ;;  %v9751_v44 = vpack.c.bf16 %v3702_v35, %v3701_v34  ;;  %v9735_v50 = vpack.c.bf16 %v3676_v42, %v3675_v41  ;;  %v3894_v34 = vld [vmem:[#allocation13 + $0x600] sm:$0xff]  ;;  %v3895_v35 = vld [vmem:[#allocation13 + $0x608] sm:$0xff] }
 0x95c   :  { %9714 = vmatprep.subr.bf16.mxu1 %v9713_v47  ;;  %v3694_v47 = vld [vmem:[#allocation13 + $0x478] sm:$0xff]  ;;  %v9793_v42 = vpack.c.bf16 %v3895_v35, %v3894_v34  ;;  %v3915_v34 = vld [vmem:[#allocation13 + $0x6a8] sm:$0xff] }
 0x95d   :  { %9705 = vmatpush1.bf16.msra.mxu0 %v9704_v52  ;;  %v9737_v52 = vpack.c.bf16 %v3694_v47, %v3693_v46  ;;  %v3879_v46 = vld [vmem:[#allocation13 + $0x588] sm:$0xff] }
 0x95e   :  { %9706 = vmatprep.subr.bf16.mxu0 %v11491_v61 }
 0x95f   :  { %9716 = vmatpush3.bf16.msra.mxu1 %v9715_v56  ;;  %v3887_v56 = vld [vmem:[#allocation13 + $0x5c8] sm:$0xff] }
 0x960   :  { %9718 = vmatprep.subr.bf16.mxu1 %v9717_v57  ;;  %v3705_v57 = vld [vmem:[#allocation13 + $0x4d0] sm:$0xff] }
 0x961   :  { %9708 = vmatpush1.bf16.msra.mxu0 %v9707_v45  ;;  %v9777_v45 = vpack.c.bf16 %v3887_v56, %v3886_v55  ;;  %v9757_v13 = vpack.c.bf16 %v3706_v58, %v3705_v57  ;;  %v3881_v55 = vld [vmem:[#allocation13 + $0x598] sm:$0xff]  ;;  %v3898_v57 = vld [vmem:[#allocation13 + $0x620] sm:$0xff]  ;;  %v3899_v58 = vld [vmem:[#allocation13 + $0x628] sm:$0xff] }
 0x962   :  { %9741 = vmatprep.subr.bf16.mxu0 %v11491_v61  ;;  %v9801_v0 = vpack.c.bf16 %v3899_v58, %v3898_v57  ;;  %v4077_v57 = vld [vmem:[#allocation16] sm:$0xff]  ;;  %v4078_v58 = vld [vmem:[#allocation16 + $0x8] sm:$0xff] }
 0x963   :  { %9720 = vmatpush3.bf16.msra.mxu1 %v9719_v4  ;;  %v3889_v4 = vld [vmem:[#allocation13 + $0x5d8] sm:$0xff] }
 0x964   :  { %3656 = vmatmul.mubr.f32.vlgmr.msra.gmra.mrb[16].mxu0 %v3514_v11  ;;  %9722 = vmatprep.subr.bf16.mxu1 %v9721_v5  ;;  %v3707_v5 = vld [vmem:[#allocation13 + $0x4e0] sm:$0xff]  ;;  %v9781_v3 = vpack.c.bf16 %v3889_v4, %v3888_v1  ;;  %v3873_v11 = vld [vmem:[#allocation13 + $0x558] sm:$0xff]  ;;  %v3883_v1 = vld [vmem:[#allocation13 + $0x5a8] sm:$0xff] }
 0x965   :  { %9743 = vmatpush1.bf16.msra.mxu0 %v9742_v14  ;;  %8211 = vmatprep.mubr.msk.f32.mxu0 %vm286_vm1, %v3722_v15  ;;  %v3719_v14 = vrot.slane %v11877_v19, 4  ;;  %v9760_v12 = vpack.c.bf16 %v3708_v7, %v3707_v5  ;;  %v3890_v15 = vld [vmem:[#allocation13 + $0x5e0] sm:$0xff]  ;;  %v9783_v21 = vpack.c.bf16 %v3873_v11, %v3872_v10  ;;  %v3900_v5 = vld [vmem:[#allocation13 + $0x630] sm:$0xff]  ;;  %v3901_v7 = vld [vmem:[#allocation13 + $0x638] sm:$0xff] }
 0x966   :  { %9744 = vmatprep.subr.bf16.mxu0 %v11491_v61  ;;  %v9805_v10 = vpack.c.bf16 %v3901_v7, %v3900_v5  ;;  %v3884_v11 = vld [vmem:[#allocation13 + $0x5b0] sm:$0xff]  ;;  %v4084_v7 = vld [vmem:[#allocation16 + $0x38] sm:$0xff] }
 0x967   :  { %9724 = vmatpush3.bf16.msra.mxu1 %v9723_v16  ;;  %v3891_v16 = vld [vmem:[#allocation13 + $0x5e8] sm:$0xff]  ;;  %v4083_v5 = vld [vmem:[#allocation16 + $0x30] sm:$0xff] }
 0x968   :  { %9726 = vmatprep.subr.bf16.mxu1 %v9725_v17  ;;  %v3709_v17 = vld [vmem:[#allocation13 + $0x4f0] sm:$0xff] }
 0x969   :  { %9746 = vmatpush1.bf16.msra.mxu0 %v9745_v22  ;;  %v9785_v22 = vpack.c.bf16 %v3891_v16, %v3890_v15  ;;  %v9763_v25 = vpack.c.bf16 %v3710_v20, %v3709_v17  ;;  %v3721_v15 = vrot.slane %v11865_v63, 4  ;;  %v3904_v16 = vld [vmem:[#allocation13 + $0x650] sm:$0xff]  ;;  %v3905_v17 = vld [vmem:[#allocation13 + $0x658] sm:$0xff]  ;;  %v3929_v20 = vrot.slane %v11863_v62, 6 }
 0x96a   :  { %9747 = vmatprep.subr.bf16.mxu0 %v11491_v61  ;;  %v3908_v62 = vld [vmem:[#allocation13 + $0x670] sm:$0xff] }
 0x96b   :  { %9728 = vmatpush3.bf16.msra.mxu1 %v9727_v27  ;;  %v3893_v27 = vld [vmem:[#allocation13 + $0x5f8] sm:$0xff] }
 0x96c   :  { %9730 = vmatprep.subr.bf16.mxu1 %v9729_v28  ;;  %v3712_v28 = vld [vmem:[#allocation13 + $0x508] sm:$0xff]  ;;  %v9789_v30 = vpack.c.bf16 %v3893_v27, %v3892_v26  ;;  %v9816_v26 = vpack.c.bf16 %v3907_v24, %v3906_v23  ;;  %v3909_v27 = vld [vmem:[#allocation13 + $0x678] sm:$0xff] }
 0x96d   :  { %9749 = vmatpush1.bf16.msra.mxu0 %v9748_v31  ;;  %v3876_v31 = vld [vmem:[#allocation13 + $0x570] sm:$0xff]  ;;  %v9766_v33 = vpack.c.bf16 %v3712_v28, %v3711_v18  ;;  %v9819_v18 = vpack.c.bf16 %v3909_v27, %v3908_v62  ;;  %v3910_v28 = vld [vmem:[#allocation13 + $0x680] sm:$0xff] }
 0x96e   :  { %9750 = vmatprep.subr.bf16.mxu0 %v11491_v61  ;;  %v9791_v41 = vpack.c.bf16 %v3877_v32, %v3876_v31  ;;  %v3913_v31 = vld [vmem:[#allocation13 + $0x698] sm:$0xff]  ;;  %v4472_v27 = vld [vmem:[#allocation5 + $0x10] sm:$0xff] }
 0x96f   :  { %9732 = vmatpush3.bf16.msra.mxu1 %v9731_v37  ;;  %v3713_v37 = vld [vmem:[#allocation13 + $0x510] sm:$0xff]  ;;  %v4092_v23 = vld [vmem:[#allocation16 + $0x78] sm:$0xff] }
 0x970   :  { %9734 = vmatprep.subr.bf16.mxu1 %v9733_v40  ;;  %v3714_v40 = vld [vmem:[#allocation13 + $0x518] sm:$0xff] }
 0x971   :  { %9752 = vmatpush1.bf16.msra.mxu0 %v9751_v44  ;;  %v3878_v44 = vld [vmem:[#allocation13 + $0x580] sm:$0xff]  ;;  %v9769_v47 = vpack.c.bf16 %v3714_v40, %v3713_v37  ;;  %v3916_v37 = vld [vmem:[#allocation13 + $0x6b0] sm:$0xff]  ;;  %v3917_v40 = vld [vmem:[#allocation13 + $0x6b8] sm:$0xff] }
 0x972   :  { %9753 = vmatprep.subr.bf16.mxu0 %v11491_v61  ;;  %v9795_v54 = vpack.c.bf16 %v3879_v46, %v3878_v44  ;;  %v3919_v44 = vld [vmem:[#allocation13 + $0x6c8] sm:$0xff] }
 0x973   :  { %9736 = vmatpush3.bf16.msra.mxu1 %v9735_v50  ;;  %v3715_v50 = vld [vmem:[#allocation13 + $0x520] sm:$0xff] }
 0x974   :  { %9738 = vmatprep.subr.bf16.mxu1 %v9737_v52  ;;  %v3716_v52 = vld [vmem:[#allocation13 + $0x528] sm:$0xff] }
 0x975   :  { %9755 = vmatpush1.bf16.msra.mxu0 %v9754_v8  ;;  %v3880_v8 = vld [vmem:[#allocation13 + $0x590] sm:$0xff]  ;;  %v9772_v56 = vpack.c.bf16 %v3716_v52, %v3715_v50  ;;  %v3922_v50 = vld [vmem:[#allocation13 + $0x6e0] sm:$0xff]  ;;  %v3923_v52 = vld [vmem:[#allocation13 + $0x6e8] sm:$0xff] }
 0x976   :  { %9756 = vmatprep.subr.bf16.mxu0 %v11491_v61  ;;  %v9799_v60 = vpack.c.bf16 %v3881_v55, %v3880_v8  ;;  %v3925_v8 = vld [vmem:[#allocation13 + $0x6f8] sm:$0xff] }
 0x977   :  { %9740 = vmatpush3.bf16.msra.mxu1 %v9739_v59  ;;  %v3717_v59 = vld [vmem:[#allocation13 + $0x530] sm:$0xff] }
 0x978   :  { %9778 = vmatprep.subr.bf16.mxu1 %v9777_v45  ;;  %v3718_v45 = vld [vmem:[#allocation13 + $0x538] sm:$0xff] }
 0x979   :  { %9758 = vmatpush1.bf16.msra.mxu0 %v9757_v13  ;;  %v3882_v13 = vld [vmem:[#allocation13 + $0x5a0] sm:$0xff]  ;;  %v9775_v4 = vpack.c.bf16 %v3718_v45, %v3717_v59  ;;  %v4079_v59 = vld [vmem:[#allocation16 + $0x10] sm:$0xff]  ;;  %v9846_v45 = vpack.c.bf16 %v4078_v58, %v4077_v57 }
 0x97a   :  { %3793 = vmatmul.mubr.f32.vlgmr.msra.gmra.mrb[18].mxu1 %v3719_v14  ;;  %9759 = vmatprep.subr.bf16.mxu0 %v11491_v61  ;;  %v3903_v14 = vld [vmem:[#allocation13 + $0x648] sm:$0xff]  ;;  %v4255_v57 = vld [vmem:[#allocation2 + $0x20] sm:$0xff]  ;;  %v4260_v58 = vld [vmem:[#allocation2 + $0x48] sm:$0xff] }
 0x97b   :  { %9780 = vmatpush3.bf16.msra.mxu1 %v9779_v9  ;;  %3999 = vmatprep.mubr.f32.mxu1 %v3927_v6  ;;  %v3902_v9 = vld [vmem:[#allocation13 + $0x640] sm:$0xff]  ;;  %v3885_v6 = vld [vmem:[#allocation13 + $0x5b8] sm:$0xff] }
 0x97c   :  { %9782 = vmatprep.subr.bf16.mxu1 %v9781_v3  ;;  %v9803_v3 = vpack.c.bf16 %v3883_v1, %v3882_v13  ;;  %v4081_v13 = vld [vmem:[#allocation16 + $0x20] sm:$0xff]  ;;  %v4082_v1 = vld [vmem:[#allocation16 + $0x28] sm:$0xff] }
 0x97d   :  { %9761 = vmatpush1.bf16.msra.mxu0 %v9760_v12  ;;  %v9810_v12 = vpack.c.bf16 %v3903_v14, %v3902_v9  ;;  %v4085_v9 = vld [vmem:[#allocation16 + $0x40] sm:$0xff]  ;;  %v4086_v14 = vld [vmem:[#allocation16 + $0x48] sm:$0xff] }
 0x97e   :  { %9762 = vmatprep.subr.bf16.mxu0 %v11491_v61 }
 0x97f   :  { %9784 = vmatpush3.bf16.msra.mxu1 %v9783_v21  ;;  %v9807_v21 = vpack.c.bf16 %v3885_v6, %v3884_v11  ;;  %v4088_v11 = vld [vmem:[#allocation16 + $0x58] sm:$0xff] }
 0x980   :  { %9786 = vmatprep.subr.bf16.mxu1 %v9785_v22  ;;  %v9813_v22 = vpack.c.bf16 %v3905_v17, %v3904_v16 }
 0x981   :  { %9764 = vmatpush1.bf16.msra.mxu0 %v9763_v25  ;;  %v3926_v25 = vrot.slane %v11877_v19, 6  ;;  %v3912_v19 = vld [vmem:[#allocation13 + $0x690] sm:$0xff] }
 0x982   :  { %9765 = vmatprep.subr.bf16.mxu0 %v11491_v61  ;;  %v9825_v32 = vpack.c.bf16 %v3913_v31, %v3912_v19 }
 0x983   :  { %9788 = vmatpush3.bf16.msra.mxu1 %v9787_v29  ;;  %v3911_v29 = vld [vmem:[#allocation13 + $0x688] sm:$0xff] }
 0x984   :  { %9790 = vmatprep.subr.bf16.mxu1 %v9789_v30  ;;  %v9822_v30 = vpack.c.bf16 %v3911_v29, %v3910_v28  ;;  %v4755_v28 = vld [vmem:[#allocation5 + $0x20] sm:$0xff]  ;;  %v4756_v29 = vld [vmem:[#allocation5 + $0x28] sm:$0xff] }
 0x985   :  { %9767 = vmatpush1.bf16.msra.mxu0 %v9766_v33  ;;  %v3914_v33 = vld [vmem:[#allocation13 + $0x6a0] sm:$0xff] }
 0x986   :  { %9768 = vmatprep.subr.bf16.mxu0 %v11491_v61  ;;  %v9828_v35 = vpack.c.bf16 %v3915_v34, %v3914_v33 }
 0x987   :  { %9792 = vmatpush3.bf16.msra.mxu1 %v9791_v41  ;;  %v9831_v41 = vpack.c.bf16 %v3917_v40, %v3916_v37 }
 0x988   :  { %9794 = vmatprep.subr.bf16.mxu1 %v9793_v42  ;;  %v3918_v42 = vld [vmem:[#allocation13 + $0x6c0] sm:$0xff] }
 0x989   :  { %9770 = vmatpush1.bf16.msra.mxu0 %v9769_v47  ;;  %v9834_v46 = vpack.c.bf16 %v3919_v44, %v3918_v42  ;;  %v3920_v47 = vld [vmem:[#allocation13 + $0x6d0] sm:$0xff] }
 0x98a   :  { %9771 = vmatprep.subr.bf16.mxu0 %v11491_v61  ;;  %v9837_v49 = vpack.c.bf16 %v3921_v48, %v3920_v47 }
 0x98b   :  { %9796 = vmatpush3.bf16.msra.mxu1 %v9795_v54  ;;  %v9840_v54 = vpack.c.bf16 %v3923_v52, %v3922_v50  ;;  %v4256_v50 = vld [vmem:[#allocation2 + $0x28] sm:$0xff] }
 0x98c   :  { %9798 = vmatprep.subr.bf16.mxu1 %v9797_v2  ;;  %v3924_v2 = vld [vmem:[#allocation13 + $0x6f0] sm:$0xff] }
 0x98d   :  { %9773 = vmatpush1.bf16.msra.mxu0 %v9772_v56  ;;  %v9843_v55 = vpack.c.bf16 %v3925_v8, %v3924_v2  ;;  %v3928_v56 = vrot.slane %v11865_v63, 6  ;;  %v9855_v63 = vpack.c.bf16 %v4084_v7, %v4083_v5  ;;  %v4168_v8 = vld [vmem:[#allocation5] sm:$0xff]  ;;  %v4272_v5 = vld [vmem:[#allocation2 + $0xa8] sm:$0xff] }
 0x98e   :  { %9774 = vmatprep.subr.bf16.mxu0 %v11491_v61 }
 0x98f   :  { %9800 = vmatpush3.bf16.msra.mxu1 %v9799_v60  ;;  %v4080_v60 = vld [vmem:[#allocation16 + $0x18] sm:$0xff] }
 0x990   :  { %9802 = vmatprep.subr.bf16.mxu1 %v9801_v0  ;;  %v9849_v0 = vpack.c.bf16 %v4080_v60, %v4079_v59  ;;  %v4264_v59 = vld [vmem:[#allocation2 + $0x68] sm:$0xff] }
 0x991   :  { %9776 = vmatpush1.bf16.msra.mxu0 %v9775_v4  ;;  %v9852_v4 = vpack.c.bf16 %v4082_v1, %v4081_v13  ;;  %v4259_v13 = vld [vmem:[#allocation2 + $0x40] sm:$0xff] }
 0x992   :  { %9809 = vmatprep.subr.bf16.mxu0 %v11491_v61  ;;  %v4263_v1 = vld [vmem:[#allocation2 + $0x60] sm:$0xff] }
 0x993   :  { %9804 = vmatpush3.bf16.msra.mxu1 %v9803_v3  ;;  %v9858_v3 = vpack.c.bf16 %v4086_v14, %v4085_v9  ;;  %v9879_v7 = vpack.c.bf16 %v4263_v1, %v4259_v13  ;;  %v4267_v9 = vld [vmem:[#allocation2 + $0x80] sm:$0xff] }
 0x994   :  { %3863 = vmatmul.mubr.f32.vlgmr.msra.gmra.mrb[16].mxu0 %v3721_v15  ;;  %9806 = vmatprep.subr.bf16.mxu1 %v9805_v10  ;;  %v4087_v10 = vld [vmem:[#allocation16 + $0x50] sm:$0xff]  ;;  %v4090_v15 = vld [vmem:[#allocation16 + $0x68] sm:$0xff] }
 0x995   :  { %9811 = vmatpush1.bf16.msra.mxu0 %v9810_v12  ;;  %8212 = vmatprep.mubr.msk.f32.mxu0 %vm286_vm1, %v3929_v20  ;;  %v9861_v6 = vpack.c.bf16 %v4088_v11, %v4087_v10  ;;  %v4089_v12 = vld [vmem:[#allocation16 + $0x60] sm:$0xff]  ;;  %v4271_v14 = vld [vmem:[#allocation2 + $0xa0] sm:$0xff]  ;;  %v4276_v10 = vld [vmem:[#allocation2 + $0xc8] sm:$0xff] }
 0x996   :  { %9812 = vmatprep.subr.bf16.mxu0 %v11491_v61  ;;  %v9864_v16 = vpack.c.bf16 %v4090_v15, %v4089_v12  ;;  %v4280_v11 = vld [vmem:[#allocation2 + $0xe8] sm:$0xff]  ;;  %v4275_v12 = vld [vmem:[#allocation2 + $0xc0] sm:$0xff] }
 0x997   :  { %9808 = vmatpush3.bf16.msra.mxu1 %v9807_v21  ;;  %v4279_v15 = vld [vmem:[#allocation2 + $0xe0] sm:$0xff] }
 0x998   :  { %9845 = vmatprep.subr.bf16.mxu1 %v11491_v61  ;;  %v4563_v1 = vld [vmem:[#allocation2 + $0x140] sm:$0xff] }
 0x999   :  { %9814 = vmatpush1.bf16.msra.mxu0 %v9813_v22  ;;  %v4091_v22 = vld [vmem:[#allocation16 + $0x70] sm:$0xff] }
 0x99a   :  { %4000 = vmatmul.mubr.f32.vlgmr.msra.gmra.mrb[20].mxu1 %v3926_v25  ;;  %9815 = vmatprep.subr.bf16.mxu0 %v11491_v61  ;;  %v9867_v24 = vpack.c.bf16 %v4092_v23, %v4091_v22  ;;  %v4165_v25 = vld [vmem:[%s12246_s0 + $0x10] sm:$0xff] }
 0x99b   :  { %9847 = vmatpush3.bf16.msra.mxu1 %v9846_v45  ;;  %8650 = vmatprep.mubr.msk.f32.mxu1 %vm11493_vm7, %v11488_v53  ;;  %v4169_v45 = vld [vmem:[#allocation5 + $0x8] sm:$0xff] }
 0x99c   :  { %9848 = vmatprep.subr.bf16.mxu1 %v11491_v61 }
 0x99d   :  { %9817 = vmatpush1.bf16.msra.mxu0 %v9816_v26  ;;  %v4166_v26 = vld [vmem:[%s12246_s0 + $0x18] sm:$0xff]  ;;  %s11494_s0 = smov [#allocation19]  }
 0x99e   :  { %9818 = vmatprep.subr.bf16.mxu0 %v11491_v61  ;;  %v9869_v62 = vpack.c.bf16 %v4166_v26, %v4165_v25  ;;  %v4093_v26 = vld [vmem:[#allocation17] sm:$0x1]  ;;  %s8153_s26 = sshll.u32 %s11494_s0, 4  ;;  %s8154_s26 = int_to_ptr.vmem [resolvable:$true] %s8153_s26 }
 0x99f   :  { %9850 = vmatpush3.bf16.msra.mxu1 %v9849_v0  ;;  %v9877_v0 = vpack.c.bf16 %v4264_v59, %v4260_v58  ;;  %v4555_v58 = vld [vmem:[#allocation2 + $0x100] sm:$0xff]  ;;  %s11438_s29 = scalar_lea.vmem %s8154_s26, 32  ;;  %p11443_p11 = scmp.lt.s32.totalorder %s8154_s26, %s8154_s26 }
 0x9a0   :  { %9851 = vmatprep.subr.bf16.mxu1 %v11491_v61  ;;  %v4559_v59 = vld [vmem:[#allocation2 + $0x120] sm:$0xff]  ;;  %p11439_p10 = scmp.ne.s32.totalorder %s8154_s26, %s11438_s29  ;;  %p11444_p12 = scmp.lt.s32.totalorder %s11438_s29, %s11438_s29 }
 0x9a1   :  { %9820 = vmatpush1.bf16.msra.mxu0 %v9819_v18  ;;  %v4473_v18 = vld [vmem:[#allocation5 + $0x18] sm:$0xff] }
 0x9a2   :  { %9821 = vmatprep.subr.bf16.mxu0 %v11491_v61  ;;  %p11445_p13 = por %p11444_p12, %p11443_p11 }
 0x9a3   :  { %9853 = vmatpush3.bf16.msra.mxu1 %v9852_v4  ;;  %v4268_v4 = vld [vmem:[#allocation2 + $0x88] sm:$0xff] }
 0x9a4   :  { %9854 = vmatprep.subr.bf16.mxu1 %v11491_v61  ;;  %p11446_p0 = pnand %p11445_p13, %p11439_p10 }
 0x9a5   :  { %9823 = vmatpush1.bf16.msra.mxu0 %v9822_v30  ;;  %v3251_v30 = vld [vmem:[#allocation14] sm:$0x1] }
 0x9a6   :  { %9824 = vmatprep.subr.bf16.mxu0 %v11491_v61 }
 0x9a7   :  { %9856 = vmatpush3.bf16.msra.mxu1 %v9855_v63  ;;  %v9881_v63 = vpack.c.bf16 %v4272_v5, %v4268_v4  ;;  %v4567_v4 = vld [vmem:[#allocation2 + $0x160] sm:$0xff]  ;;  %v4572_v5 = vld [vmem:[#allocation2 + $0x188] sm:$0xff] }
 0x9a8   :  { %9857 = vmatprep.subr.bf16.mxu1 %v11491_v61 }
 0x9a9   :  { %9826 = vmatpush1.bf16.msra.mxu0 %v9825_v32 }
 0x9aa   :  { %9827 = vmatprep.subr.bf16.mxu0 %v11491_v61 }
 0x9ab   :  { %9859 = vmatpush3.bf16.msra.mxu1 %v9858_v3  ;;  %v9883_v3 = vpack.c.bf16 %v4271_v14, %v4267_v9  ;;  %v4571_v14 = vld [vmem:[#allocation2 + $0x180] sm:$0xff] }
 0x9ac   :  { %9860 = vmatprep.subr.bf16.mxu1 %v11491_v61 }
 0x9ad   :  { %9829 = vmatpush1.bf16.msra.mxu0 %v9828_v35 }
 0x9ae   :  { %9830 = vmatprep.subr.bf16.mxu0 %v11491_v61 }
 0x9af   :  { %9862 = vmatpush3.bf16.msra.mxu1 %v9861_v6  ;;  %v9885_v6 = vpack.c.bf16 %v4280_v11, %v4276_v10  ;;  %v4580_v10 = vld [vmem:[#allocation2 + $0x1c8] sm:$0xff] }
 0x9b0   :  { %9863 = vmatprep.subr.bf16.mxu1 %v11491_v61  ;;  %v4584_v11 = vld [vmem:[#allocation2 + $0x1e8] sm:$0xff] }
 0x9b1   :  { %9832 = vmatpush1.bf16.msra.mxu0 %v9831_v41 }
 0x9b2   :  { %9833 = vmatprep.subr.bf16.mxu0 %v11491_v61 }
 0x9b3   :  { %9865 = vmatpush3.bf16.msra.mxu1 %v9864_v16  ;;  %v9887_v16 = vpack.c.bf16 %v4279_v15, %v4275_v12  ;;  %v9921_v12 = vpack.c.bf16 %v4584_v11, %v4580_v10  ;;  %v4579_v15 = vld [vmem:[#allocation2 + $0x1c0] sm:$0xff]  ;;  %v4841_v10 = vld [vmem:[#allocation2 + $0x218] sm:$0xff] }
 0x9b4   :  { %9866 = vmatprep.subr.bf16.mxu1 %v11491_v61  ;;  %v4845_v11 = vld [vmem:[#allocation2 + $0x238] sm:$0xff] }
 0x9b5   :  { %9835 = vmatpush1.bf16.msra.mxu0 %v9834_v46 }
 0x9b6   :  { %9836 = vmatprep.subr.bf16.mxu0 %v11491_v61 }
 0x9b7   :  { %9868 = vmatpush3.bf16.msra.mxu1 %v9867_v24 }
 0x9b8   :  { %9870 = vmatprep.subr.bf16.mxu1 %v9869_v62 }
 0x9b9   :  { %9838 = vmatpush1.bf16.msra.mxu0 %v9837_v49  ;;  %v4252_v49 = vld [vmem:[#allocation2 + $0x8] sm:$0xff] }
 0x9ba   :  { %9839 = vmatprep.subr.bf16.mxu0 %v11491_v61 }
 0x9bd   :  { %9841 = vmatpush1.bf16.msra.mxu0 %v9840_v54 }
 0x9be   :  { %9842 = vmatprep.subr.bf16.mxu0 %v11491_v61 }
 0x9c1   :  { %9844 = vmatpush1.bf16.msra.mxu0 %v9843_v55  ;;  %v9873_v55 = vpack.c.bf16 %v4256_v50, %v4252_v49  ;;  %v4282_v49 = vld [vmem:[#allocation2 + $0xf8] sm:$0xff] }
 0x9c2   :  { %9906 = vmatprep.subr.bf16.mxu0 %v9869_v62 }
 0x9c4   :  { %4070 = vmatmul.mubr.f32.vlgmr.msra.gmra.mrb[16].mxu0 %v3928_v56  ;;  %v4251_v56 = vld [vmem:[#allocation2] sm:$0xff] }
 0x9c5   :  { %9908 = vmatpush3.bf16.msra.mxu0 %v9869_v62  ;;  %8664 = vmatprep.mubr.msk.f32.mxu0 %vm172_vm0, %v4472_v27  ;;  %v9875_v60 = vpack.c.bf16 %v4255_v57, %v4251_v56  ;;  %v4253_v27 = vld [vmem:[#allocation2 + $0x10] sm:$0xff] }
 0x9c6   :  { %9942 = vmatprep.subr.bf16.mxu0 %v9869_v62 }
 0x9c8   :  { %8665 = vmatmul.mubr.msk.f32.vlgmr.msra.gmra.mrb[18].mxu0 %vm172_vm0, %v4473_v18  ;;  %v4257_v18 = vld [vmem:[#allocation2 + $0x30] sm:$0xff] }
 0x9c9   :  { %9944 = vmatpush3.bf16.msra.mxu0 %v9869_v62  ;;  %8671 = vmatprep.mubr.msk.f32.mxu0 %vm172_vm0, %v4755_v28 }
 0x9cc   :  { %8672 = vmatmul.mubr.msk.f32.vlgmr.msra.gmra.mrb[20].mxu0 %vm172_vm0, %v4756_v29 }
 0x9cd   :  { %5209 = vmatprep.mubr.f32.mxu0 %v11488_v53 }
 0xa0d   :  { %v8303_v17 = vpop.f32.mrb[14].mxu1 }
 0xa0e   :  { %v8304_v20 = vpop.f32.mrb[15].mxu1 }
 0xa0f   :  { %v8305_v21 = vadd.f32 %v8304_v20, %v8303_v17  ;;  %v4254_v17 = vld [vmem:[#allocation2 + $0x18] sm:$0xff] }
 0xa10   :  { %v4258_v20 = vld [vmem:[#allocation2 + $0x38] sm:$0xff] }
 0xa11   :  { %v11041_v32 = vadd.f32 %v8305_v21, %v3251_v30  ;;  %v9889_v21 = vpack.c.bf16 %v4258_v20, %v4254_v17  ;;  %v4262_v30 = vld [vmem:[#allocation2 + $0x58] sm:$0xff] }
 0xa12   :  { %v4558_v17 = vld [vmem:[#allocation2 + $0x118] sm:$0xff] }
 0xa13   :  { %v4562_v20 = vld [vmem:[#allocation2 + $0x138] sm:$0xff] }
 0xa2d   :  { %v8338_v19 = vpop.f32.mrb[16].mxu1 }
 0xa2e   :  { %v8339_v31 = vpop.f32.mrb[17].mxu1 }
 0xa2f   :  { %v8340_v33 = vadd.f32 %v8339_v31, %v8338_v19  ;;  %v4266_v19 = vld [vmem:[#allocation2 + $0x78] sm:$0xff]  ;;  %v9891_v31 = vpack.c.bf16 %v4257_v18, %v4253_v27  ;;  %v4561_v27 = vld [vmem:[#allocation2 + $0x130] sm:$0xff] }
 0xa30   :  { %v4566_v18 = vld [vmem:[#allocation2 + $0x158] sm:$0xff] }
 0xa31   :  { %v11042_v34 = vadd.f32 %v11041_v32, %v8340_v33  ;;  %v9893_v33 = vpack.c.bf16 %v4266_v19, %v4262_v30  ;;  %v4565_v19 = vld [vmem:[#allocation2 + $0x150] sm:$0xff] }
 0xa4d   :  { %v8373_v35 = vpop.f32.mrb[18].mxu1 }
 0xa4e   :  { %v8374_v37 = vpop.f32.mrb[19].mxu1 }
 0xa4f   :  { %v8375_v40 = vadd.f32 %v8374_v37, %v8373_v35  ;;  %v4265_v35 = vld [vmem:[#allocation2 + $0x70] sm:$0xff] }
 0xa51   :  { %v11043_v41 = vadd.f32 %v11042_v34, %v8375_v40  ;;  %v4261_v34 = vld [vmem:[#allocation2 + $0x50] sm:$0xff]  ;;  %v4270_v40 = vld [vmem:[#allocation2 + $0x98] sm:$0xff] }
 0xa6d   :  { %v8408_v42 = vpop.f32.mrb[20].mxu1 }
 0xa6e   :  { %v8409_v44 = vpop.f32.mrb[21].mxu1 }
 0xa6f   :  { %v8410_v46 = vadd.f32 %v8409_v44, %v8408_v42  ;;  %v9895_v42 = vpack.c.bf16 %v4265_v35, %v4261_v34 }
 0xa71   :  { %v11044_v47 = vadd.f32 %v11043_v41, %v8410_v46  ;;  %v4274_v41 = vld [vmem:[#allocation2 + $0xb8] sm:$0xff]  ;;  %v4269_v46 = vld [vmem:[#allocation2 + $0x90] sm:$0xff] }
 0xa72   :  { %v9897_v44 = vpack.c.bf16 %v4274_v41, %v4270_v40  ;;  %v4577_v40 = vld [vmem:[#allocation2 + $0x1b0] sm:$0xff]  ;;  %v4582_v41 = vld [vmem:[#allocation2 + $0x1d8] sm:$0xff] }
 0xa97   :  { %v4071_v48 = vpop.f32.mrb[16].mxu0 }
 0xa98   :  { %v11045_v52 = vadd.f32 %v11044_v47, %v4071_v48  ;;  %v4073_v54 = vpop.f32.mrb[17].mxu0  ;;  %v4273_v47 = vld [vmem:[#allocation2 + $0xb0] sm:$0xff]  ;;  %v4278_v48 = vld [vmem:[#allocation2 + $0xd8] sm:$0xff] }
 0xa99   :  { %v9899_v50 = vpack.c.bf16 %v4273_v47, %v4269_v46  ;;  %v4277_v54 = vld [vmem:[#allocation2 + $0xd0] sm:$0xff] }
 0xa9a   :  { %v4076_v2 = vmax.f32 %v11045_v52, 0.0  ;;  %v9901_v52 = vpack.c.bf16 %v4282_v49, %v4278_v48  ;;  %v4581_v47 = vld [vmem:[#allocation2 + $0x1d0] sm:$0xff]  ;;  %v4839_v49 = vld [vmem:[#allocation2 + $0x208] sm:$0xff] }
 0xa9b   :  { %v11952_v22 = vpop.f32.mrb[18].mxu0  ;;  %v4585_v48 = vld [vmem:[#allocation2 + $0x1f0] sm:$0xff] }
 0xa9c   :  { %8651 = vmatmul.mubr.f32.vlgmr.msra.gmra.mrb[22].mxu1 %v4076_v2  ;;  %v11954_v23 = vpop.f32.mrb[19].mxu0  ;;  %v4281_v2 = vld [vmem:[#allocation2 + $0xf0] sm:$0xff] }
 0xa9d   :  { %9872 = vmatpush3.bf16.msra.mxu1 %v9869_v62  ;;  %8657 = vmatprep.mubr.msk.f32.mxu1 %vm172_vm0, %v4168_v8  ;;  %v4556_v8 = vld [vmem:[#allocation2 + $0x108] sm:$0xff]  ;;  %v9903_v56 = vpack.c.bf16 %v4281_v2, %v4277_v54  ;;  %v4838_v2 = vld [vmem:[#allocation2 + $0x200] sm:$0xff] }
 0xa9e   :  { %9874 = vmatprep.subr.bf16.mxu1 %v9873_v55  ;;  %v4560_v55 = vld [vmem:[#allocation2 + $0x128] sm:$0xff] }
 0xa9f   :  { %v11956_v24 = vpop.f32.mrb[20].mxu0  ;;  %v9909_v57 = vpack.c.bf16 %v4560_v55, %v4556_v8  ;;  %v4842_v8 = vld [vmem:[#allocation2 + $0x220] sm:$0xff]  ;;  %v4847_v55 = vld [vmem:[#allocation2 + $0x248] sm:$0xff] }
 0xaa0   :  { %8658 = vmatmul.mubr.msk.f32.vlgmr.msra.gmra.mrb[24].mxu1 %vm172_vm0, %v4169_v45  ;;  %v11958_v25 = vpop.f32.mrb[21].mxu0  ;;  %v4564_v45 = vld [vmem:[#allocation2 + $0x148] sm:$0xff] }
 0xaa1   :  { %9876 = vmatpush1.bf16.msra.mxu1 %v9875_v60  ;;  %4353 = vmatprep.mubr.f32.mxu1 %v11488_v53  ;;  %v4568_v60 = vld [vmem:[#allocation2 + $0x168] sm:$0xff] }
 0xaa2   :  { %9878 = vmatprep.subr.bf16.mxu1 %v9877_v0  ;;  %v9911_v0 = vpack.c.bf16 %v4559_v59, %v4555_v58  ;;  %v9913_v13 = vpack.c.bf16 %v4568_v60, %v4564_v45  ;;  %v4846_v59 = vld [vmem:[#allocation2 + $0x240] sm:$0xff]  ;;  %v4855_v60 = vld [vmem:[#allocation2 + $0x288] sm:$0xff] }
 0xaa3   :  { %v4850_v45 = vld [vmem:[#allocation2 + $0x260] sm:$0xff] }
 0xaa5   :  { %9880 = vmatpush1.bf16.msra.mxu1 %v9879_v7  ;;  %v4576_v7 = vld [vmem:[#allocation2 + $0x1a8] sm:$0xff] }
 0xaa6   :  { %9882 = vmatprep.subr.bf16.mxu1 %v9881_v63  ;;  %v9915_v63 = vpack.c.bf16 %v4567_v4, %v4563_v1  ;;  %v9917_v9 = vpack.c.bf16 %v4576_v7, %v4572_v5  ;;  %v4854_v4 = vld [vmem:[#allocation2 + $0x280] sm:$0xff]  ;;  %v4863_v7 = vld [vmem:[#allocation2 + $0x2c8] sm:$0xff] }
 0xaa7   :  { %v4858_v5 = vld [vmem:[#allocation2 + $0x2a0] sm:$0xff] }
 0xaa9   :  { %9884 = vmatpush1.bf16.msra.mxu1 %v9883_v3  ;;  %v4575_v3 = vld [vmem:[#allocation2 + $0x1a0] sm:$0xff] }
 0xaaa   :  { %9886 = vmatprep.subr.bf16.mxu1 %v9885_v6  ;;  %v9919_v6 = vpack.c.bf16 %v4575_v3, %v4571_v14  ;;  %v4866_v3 = vld [vmem:[#allocation2 + $0x2e0] sm:$0xff] }
 0xaad   :  { %9888 = vmatpush1.bf16.msra.mxu1 %v9887_v16  ;;  %v4583_v16 = vld [vmem:[#allocation2 + $0x1e0] sm:$0xff] }
 0xaae   :  { %9890 = vmatprep.subr.bf16.mxu1 %v9889_v21  ;;  %v9923_v21 = vpack.c.bf16 %v4583_v16, %v4579_v15  ;;  %v4840_v15 = vld [vmem:[#allocation2 + $0x210] sm:$0xff] }
 0xaaf   :  { %v4844_v16 = vld [vmem:[#allocation2 + $0x230] sm:$0xff] }
 0xb6f   :  { %v4160_v62 = vpop.f32.mrb[22].mxu1 }
 0xb70   :  { %v4161_v28 = vadd.f32 %v4160_v62, %v4093_v26  ;;  %v8652_v29 = vpop.f32.mrb[23].mxu1  ;;  %v9925_v26 = vpack.c.bf16 %v4562_v20, %v4558_v17  ;;  %v4557_v62 = vld [vmem:[#allocation2 + $0x110] sm:$0xff]  ;;  %v4849_v17 = vld [vmem:[#allocation2 + $0x258] sm:$0xff] }
 0xb71   :  { %v9927_v29 = vpack.c.bf16 %v4561_v27, %v4557_v62  ;;  %v4853_v20 = vld [vmem:[#allocation2 + $0x278] sm:$0xff]  ;;  %v4852_v62 = vld [vmem:[#allocation2 + $0x270] sm:$0xff] }
 0xb72   :  { %4164 = vst [vmem:[#allocation19] sm:$0x1] %v4161_v28  ;;  %v4570_v28 = vld [vmem:[#allocation2 + $0x178] sm:$0xff] }
 0xb73   :  { %v8659_v32 = vpop.f32.mrb[24].mxu1  ;;  %v9929_v30 = vpack.c.bf16 %v4570_v28, %v4566_v18  ;;  %v4857_v27 = vld [vmem:[#allocation2 + $0x298] sm:$0xff] }
 0xb74   :  { %v4242_v37 = vpop.f32.mrb[25].mxu1  ;;  %v4861_v18 = vld [vmem:[#allocation2 + $0x2b8] sm:$0xff] }
 0xb75   :  { %8215 = vmatmul.mubr.msk.f32.vlgmr.msra.gmra.mrb[26].mxu1 %vm286_vm1, %v4242_v37 }
 0xb76   :  { %9892 = vmatpush1.bf16.msra.mxu1 %v9891_v31  ;;  %4359 = vmatprep.mubr.f32.mxu1 %v11488_v53  ;;  %v4569_v31 = vld [vmem:[#allocation2 + $0x170] sm:$0xff] }
 0xb77   :  { %9894 = vmatprep.subr.bf16.mxu1 %v9893_v33  ;;  %v4578_v33 = vld [vmem:[#allocation2 + $0x1b8] sm:$0xff]  ;;  %v9931_v34 = vpack.c.bf16 %v4569_v31, %v4565_v19  ;;  %v4860_v19 = vld [vmem:[#allocation2 + $0x2b0] sm:$0xff] }
 0xb78   :  { %v4865_v31 = vld [vmem:[#allocation2 + $0x2d8] sm:$0xff] }
 0xb79   :  { %8216 = vmatmul.mubr.msk.f32.gmra.mrb[28].mxu1 %vm286_vm1, %v8659_v32 }
 0xb7a   :  { %9896 = vmatpush1.bf16.msra.mxu1 %v9895_v42  ;;  %4430 = vmatprep.mubr.f32.mxu1 %v11488_v53  ;;  %v4586_v42 = vld [vmem:[#allocation2 + $0x1f8] sm:$0xff] }
 0xb7b   :  { %9898 = vmatprep.subr.bf16.mxu1 %v9897_v44  ;;  %v9937_v46 = vpack.c.bf16 %v4586_v42, %v4582_v41 }
 0xb7e   :  { %9900 = vmatpush1.bf16.msra.mxu1 %v9899_v50  ;;  %v4843_v50 = vld [vmem:[#allocation2 + $0x228] sm:$0xff] }
 0xb7f   :  { %9902 = vmatprep.subr.bf16.mxu1 %v9901_v52  ;;  %v9939_v52 = vpack.c.bf16 %v4585_v48, %v4581_v47  ;;  %v9945_v54 = vpack.c.bf16 %v4843_v50, %v4839_v49  ;;  %v4167_v47 = vld [vmem:[#allocation7] sm:$0xf] }
 0xb80   :  { %v4451_v48 = vrot.slane %v4167_v47, %v11741_v38  ;;  %v4455_v49 = vrot.slane %v4167_v47, %v11739_v36  ;;  %v4447_v50 = vrot.slane %v4167_v47, %v11743_v39 }
 0xb82   :  { %9904 = vmatpush1.bf16.msra.mxu1 %v9903_v56  ;;  %v4851_v56 = vld [vmem:[#allocation2 + $0x268] sm:$0xff] }
 0xb83   :  { %9910 = vmatprep.subr.bf16.mxu1 %v9909_v57  ;;  %v9947_v57 = vpack.c.bf16 %v4842_v8, %v4838_v2  ;;  %v9949_v58 = vpack.c.bf16 %v4851_v56, %v4847_v55 }
 0xb85   :  { %8217 = vmatmul.mubr.msk.f32.vlgmr.msra.gmra.mrb[30].mxu1 %vm286_vm1, %v4242_v37  ;;  %v4573_v37 = vld [vmem:[#allocation2 + $0x190] sm:$0xff] }
 0xb86   :  { %9912 = vmatpush1.bf16.msra.mxu1 %v9911_v0  ;;  %4436 = vmatprep.mubr.f32.mxu1 %v11488_v53  ;;  %v9935_v44 = vpack.c.bf16 %v4577_v40, %v4573_v37  ;;  %v4859_v0 = vld [vmem:[#allocation2 + $0x2a8] sm:$0xff]  ;;  %v4868_v37 = vld [vmem:[#allocation2 + $0x2f0] sm:$0xff] }
 0xb87   :  { %9914 = vmatprep.subr.bf16.mxu1 %v9913_v13  ;;  %v9951_v13 = vpack.c.bf16 %v4850_v45, %v4846_v59  ;;  %v9953_v1 = vpack.c.bf16 %v4859_v0, %v4855_v60 }
 0xb89   :  { %8218 = vmatmul.mubr.msk.f32.gmra.mrb[32].mxu1 %vm286_vm1, %v8659_v32  ;;  %v4574_v32 = vld [vmem:[#allocation2 + $0x198] sm:$0xff] }
 0xb8a   :  { %9916 = vmatpush1.bf16.msra.mxu1 %v9915_v63  ;;  %4657 = vmatprep.mubr.f32.mxu1 %v11488_v53  ;;  %v9933_v35 = vpack.c.bf16 %v4578_v33, %v4574_v32  ;;  %v4867_v63 = vld [vmem:[#allocation2 + $0x2e8] sm:$0xff]  ;;  %v4869_v32 = vld [vmem:[#allocation2 + $0x2f8] sm:$0xff] }
 0xb8b   :  { %9918 = vmatprep.subr.bf16.mxu1 %v9917_v9  ;;  %v9955_v9 = vpack.c.bf16 %v4858_v5, %v4854_v4  ;;  %v9957_v14 = vpack.c.bf16 %v4867_v63, %v4863_v7 }
 0xb8e   :  { %9920 = vmatpush1.bf16.msra.mxu1 %v9919_v6 }
 0xb8f   :  { %9922 = vmatprep.subr.bf16.mxu1 %v9921_v12  ;;  %v9961_v12 = vpack.c.bf16 %v4845_v11, %v4841_v10  ;;  %v5290_v11 = vld [vmem:[#allocation8 + $0x18] sm:$0xff] }
 0xb92   :  { %9924 = vmatpush1.bf16.msra.mxu1 %v9923_v21  ;;  %v9965_v21 = vpack.c.bf16 %v4853_v20, %v4849_v17  ;;  %v5298_v20 = vld [vmem:[#allocation8 + $0x58] sm:$0xff] }
 0xb93   :  { %9926 = vmatprep.subr.bf16.mxu1 %v9925_v26  ;;  %v4848_v26 = vld [vmem:[#allocation2 + $0x250] sm:$0xff] }
 0xb94   :  { %v9967_v28 = vpack.c.bf16 %v4852_v62, %v4848_v26  ;;  %v5301_v62 = vld [vmem:[#allocation8 + $0x70] sm:$0xff] }
 0xb95   :  { %8221 = vmatmul.mubr.msk.f32.vlgmr.msra.gmra.mrb[26].mxu1 %vm286_vm1, %v11954_v23 }
 0xb96   :  { %9928 = vmatpush1.bf16.msra.mxu1 %v9927_v29  ;;  %4663 = vmatprep.mubr.f32.mxu1 %v11488_v53  ;;  %v9969_v29 = vpack.c.bf16 %v4861_v18, %v4857_v27  ;;  %v5306_v18 = vld [vmem:[#allocation8 + $0x98] sm:$0xff] }
 0xb97   :  { %9930 = vmatprep.subr.bf16.mxu1 %v9929_v30  ;;  %v4856_v30 = vld [vmem:[#allocation2 + $0x290] sm:$0xff] }
 0xb98   :  { %v9971_v33 = vpack.c.bf16 %v4860_v19, %v4856_v30  ;;  %v5309_v19 = vld [vmem:[#allocation8 + $0xb0] sm:$0xff] }
 0xb99   :  { %8222 = vmatmul.mubr.msk.f32.gmra.mrb[28].mxu1 %vm286_vm1, %v11952_v22 }
 0xb9a   :  { %9932 = vmatpush1.bf16.msra.mxu1 %v9931_v34  ;;  %4734 = vmatprep.mubr.f32.mxu1 %v11488_v53  ;;  %v9973_v34 = vpack.c.bf16 %v4869_v32, %v4865_v31  ;;  %v5314_v32 = vld [vmem:[#allocation8 + $0xd8] sm:$0xff] }
 0xb9b   :  { %9934 = vmatprep.subr.bf16.mxu1 %v9933_v35  ;;  %v4864_v35 = vld [vmem:[#allocation2 + $0x2d0] sm:$0xff] }
 0xb9c   :  { %v9975_v40 = vpack.c.bf16 %v4868_v37, %v4864_v35  ;;  %v5317_v37 = vld [vmem:[#allocation8 + $0xf0] sm:$0xff] }
 0xb9e   :  { %9936 = vmatpush1.bf16.msra.mxu1 %v9935_v44 }
 0xb9f   :  { %9938 = vmatprep.subr.bf16.mxu1 %v9937_v46 }
 0xba2   :  { %9940 = vmatpush1.bf16.msra.mxu1 %v9939_v52 }
 0xba3   :  { %9946 = vmatprep.subr.bf16.mxu1 %v9945_v54 }
 0xba5   :  { %8223 = vmatmul.mubr.msk.f32.vlgmr.msra.gmra.mrb[30].mxu1 %vm286_vm1, %v11954_v23  ;;  %v4862_v23 = vld [vmem:[#allocation2 + $0x2c0] sm:$0xff] }
 0xba6   :  { %9948 = vmatpush1.bf16.msra.mxu1 %v9947_v57  ;;  %4740 = vmatprep.mubr.f32.mxu1 %v11488_v53  ;;  %v9959_v6 = vpack.c.bf16 %v4866_v3, %v4862_v23 }
 0xba7   :  { %9950 = vmatprep.subr.bf16.mxu1 %v9949_v58 }
 0xba9   :  { %8224 = vmatmul.mubr.msk.f32.gmra.mrb[32].mxu1 %vm286_vm1, %v11952_v22  ;;  %v9963_v22 = vpack.c.bf16 %v4844_v16, %v4840_v15  ;;  %v5289_v15 = vld [vmem:[#allocation8 + $0x10] sm:$0xff] }
 0xbaa   :  { %9952 = vmatpush1.bf16.msra.mxu1 %v9951_v13  ;;  %4940 = vmatprep.mubr.f32.mxu1 %v11488_v53  ;;  %v5293_v16 = vld [vmem:[#allocation8 + $0x30] sm:$0xff] }
 0xbab   :  { %9954 = vmatprep.subr.bf16.mxu1 %v9953_v1  ;;  %v10111_v17 = vpack.c.bf16 %v5293_v16, %v5289_v15  ;;  %v5345_v15 = vld [vmem:[#allocation8 + $0x1d0] sm:$0xff] }
 0xbae   :  { %9956 = vmatpush1.bf16.msra.mxu1 %v9955_v9 }
 0xbaf   :  { %9958 = vmatprep.subr.bf16.mxu1 %v9957_v14 }
 0xbb2   :  { %9960 = vmatpush1.bf16.msra.mxu1 %v9959_v6  ;;  %v5294_v6 = vld [vmem:[#allocation8 + $0x38] sm:$0xff] }
 0xbb3   :  { %9962 = vmatprep.subr.bf16.mxu1 %v9961_v12  ;;  %v10109_v12 = vpack.c.bf16 %v5294_v6, %v5290_v11  ;;  %v5346_v6 = vld [vmem:[#allocation8 + $0x1d8] sm:$0xff] }
 0xbb5   :  { %8227 = vmatmul.mubr.msk.f32.vlgmr.msra.gmra.mrb[26].mxu1 %vm286_vm1, %v11958_v25 }
 0xbb6   :  { %9964 = vmatpush1.bf16.msra.mxu1 %v9963_v22  ;;  %4946 = vmatprep.mubr.f32.mxu1 %v11488_v53  ;;  %v5302_v22 = vld [vmem:[#allocation8 + $0x78] sm:$0xff] }
 0xbb7   :  { %9966 = vmatprep.subr.bf16.mxu1 %v9965_v21  ;;  %v5297_v21 = vld [vmem:[#allocation8 + $0x50] sm:$0xff]  ;;  %v10113_v26 = vpack.c.bf16 %v5302_v22, %v5298_v20  ;;  %v5354_v22 = vld [vmem:[#allocation8 + $0x218] sm:$0xff] }
 0xbb8   :  { %v10115_v27 = vpack.c.bf16 %v5301_v62, %v5297_v21  ;;  %v5358_v21 = vld [vmem:[#allocation8 + $0x238] sm:$0xff] }
 0xbb9   :  { %8228 = vmatmul.mubr.msk.f32.gmra.mrb[28].mxu1 %vm286_vm1, %v11956_v24  ;;  %v10141_v62 = vpack.c.bf16 %v5358_v21, %v5354_v22 }
 0xbba   :  { %9968 = vmatpush1.bf16.msra.mxu1 %v9967_v28  ;;  %5017 = vmatprep.mubr.f32.mxu1 %v11488_v53  ;;  %v5310_v28 = vld [vmem:[#allocation8 + $0xb8] sm:$0xff] }
 0xbbb   :  { %9970 = vmatprep.subr.bf16.mxu1 %v9969_v29  ;;  %v5305_v29 = vld [vmem:[#allocation8 + $0x90] sm:$0xff]  ;;  %v10117_v30 = vpack.c.bf16 %v5310_v28, %v5306_v18  ;;  %v5362_v28 = vld [vmem:[#allocation8 + $0x258] sm:$0xff] }
 0xbbc   :  { %v10119_v31 = vpack.c.bf16 %v5309_v19, %v5305_v29  ;;  %v5366_v29 = vld [vmem:[#allocation8 + $0x278] sm:$0xff] }
 0xbbd   :  { %v10145_v19 = vpack.c.bf16 %v5366_v29, %v5362_v28 }
 0xbbe   :  { %9972 = vmatpush1.bf16.msra.mxu1 %v9971_v33  ;;  %v5318_v33 = vld [vmem:[#allocation8 + $0xf8] sm:$0xff] }
 0xbbf   :  { %9974 = vmatprep.subr.bf16.mxu1 %v9973_v34  ;;  %v5313_v34 = vld [vmem:[#allocation8 + $0xd0] sm:$0xff]  ;;  %v10121_v35 = vpack.c.bf16 %v5318_v33, %v5314_v32  ;;  %v5370_v33 = vld [vmem:[#allocation8 + $0x298] sm:$0xff] }
 0xbc2   :  { %9976 = vmatpush1.bf16.msra.mxu1 %v9975_v40  ;;  %v10123_v40 = vpack.c.bf16 %v5317_v37, %v5313_v34  ;;  %v5374_v34 = vld [vmem:[#allocation8 + $0x2b8] sm:$0xff] }
 0xbc3   :  { %10110 = vmatprep.subr.bf16.mxu1 %v10109_v12  ;;  %v5350_v12 = vld [vmem:[#allocation8 + $0x1f8] sm:$0xff]  ;;  %v10149_v37 = vpack.c.bf16 %v5374_v34, %v5370_v33 }
 0xbc4   :  { %v10137_v16 = vpack.c.bf16 %v5350_v12, %v5346_v6  ;;  %v5402_v12 = vld [vmem:[#allocation8 + $0x398] sm:$0xff] }
 0xbc5   :  { %8229 = vmatmul.mubr.msk.f32.vlgmr.msra.gmra.mrb[30].mxu1 %vm286_vm1, %v11958_v25 }
 0xbc6   :  { %5023 = vmatprep.mubr.f32.mxu1 %v11488_v53  ;;  %10112 = vmatpush1.bf16.msra.mxu1 %v10111_v17  ;;  %v5349_v17 = vld [vmem:[#allocation8 + $0x1f0] sm:$0xff] }
 0xbc7   :  { %10114 = vmatprep.subr.bf16.mxu1 %v10113_v26  ;;  %v10139_v20 = vpack.c.bf16 %v5349_v17, %v5345_v15  ;;  %v5353_v26 = vld [vmem:[#allocation8 + $0x210] sm:$0xff]  ;;  %v5406_v15 = vld [vmem:[#allocation8 + $0x3b8] sm:$0xff] }
 0xbc8   :  { %v10165_v17 = vpack.c.bf16 %v5406_v15, %v5402_v12  ;;  %v5129_v15 = vld [vmem:[#allocation10] sm:$0xff] }
 0xbc9   :  { %8230 = vmatmul.mubr.msk.f32.gmra.mrb[32].mxu1 %vm286_vm1, %v11956_v24  ;;  %v4459_v24 = vrot.slane %v4167_v47, %v11748_v43  ;;  %v5325_v47 = vld [vmem:[#allocation8 + $0x130] sm:$0xff] }
 0xbca   :  { %10116 = vmatpush1.bf16.msra.mxu1 %v10115_v27  ;;  %v5357_v27 = vld [vmem:[#allocation8 + $0x230] sm:$0xff] }
 0xbcb   :  { %10118 = vmatprep.subr.bf16.mxu1 %v10117_v30  ;;  %v10143_v18 = vpack.c.bf16 %v5357_v27, %v5353_v26  ;;  %v5361_v30 = vld [vmem:[#allocation8 + $0x250] sm:$0xff] }
 0xbce   :  { %10120 = vmatpush1.bf16.msra.mxu1 %v10119_v31  ;;  %v5365_v31 = vld [vmem:[#allocation8 + $0x270] sm:$0xff] }
 0xbcf   :  { %10122 = vmatprep.subr.bf16.mxu1 %v10121_v35  ;;  %v10147_v32 = vpack.c.bf16 %v5365_v31, %v5361_v30  ;;  %v5369_v35 = vld [vmem:[#allocation8 + $0x290] sm:$0xff] }
 0xbd2   :  { %10124 = vmatpush1.bf16.msra.mxu1 %v10123_v40  ;;  %v5373_v40 = vld [vmem:[#allocation8 + $0x2b0] sm:$0xff] }
 0xc88   :  { %v4942_v41 = vpop.f32.mrb[26].mxu1 }
 0xc89   :  { %v4944_v42 = vpop.f32.mrb[27].mxu1  ;;  %v12001_v55 = vadd.f32 %v4942_v41, %v4447_v50  ;;  %v5322_v41 = vld [vmem:[#allocation8 + $0x118] sm:$0xff] }
 0xc8a   :  { %v11994_v52 = vadd.f32 %v4944_v42, %v4451_v48  ;;  %v5326_v42 = vld [vmem:[#allocation8 + $0x138] sm:$0xff] }
 0xc8b   :  { %v5038_v4 = vmax.f32 %v12001_v55, 0.0 }
 0xc8c   :  { %v4948_v44 = vpop.f32.mrb[28].mxu1  ;;  %v5039_v56 = vmax.f32 %v11994_v52, 0.0 }
 0xc8d   :  { %v4950_v46 = vpop.f32.mrb[29].mxu1  ;;  %v11996_v25 = vadd.f32 %v4948_v44, %v4447_v50  ;;  %v5321_v44 = vld [vmem:[#allocation8 + $0x110] sm:$0xff]  ;;  %v5334_v50 = vld [vmem:[#allocation8 + $0x178] sm:$0xff] }
 0xc8e   :  { %v12004_v57 = vadd.f32 %v4950_v46, %v4451_v48  ;;  %v10125_v46 = vpack.c.bf16 %v5326_v42, %v5322_v41  ;;  %v10127_v48 = vpack.c.bf16 %v5325_v47, %v5321_v44  ;;  %v10151_v41 = vpack.c.bf16 %v5373_v40, %v5369_v35  ;;  %v5378_v42 = vld [vmem:[#allocation8 + $0x2d8] sm:$0xff] }
 0xc8f   :  { %v5042_v45 = vmax.f32 %v11996_v25, 0.0  ;;  %v5382_v44 = vld [vmem:[#allocation8 + $0x2f8] sm:$0xff] }
 0xc90   :  { %v5043_v5 = vmax.f32 %v12004_v57, 0.0  ;;  %10126 = vmatprep.subr.bf16.mxu1 %v10125_v46  ;;  %v5377_v46 = vld [vmem:[#allocation8 + $0x2d0] sm:$0xff]  ;;  %v10153_v47 = vpack.c.bf16 %v5382_v44, %v5378_v42 }
 0xc91   :  { %v11203_v9 = vpack.i.bf16 %v5042_v45, %v5038_v4  ;;  %10128 = vmatpush1.bf16.msra.mxu1 %v10127_v48  ;;  %v5381_v48 = vld [vmem:[#allocation8 + $0x2f0] sm:$0xff] }
 0xc98   :  { %v5019_v54 = vpop.f32.mrb[30].mxu1 }
 0xc99   :  { %v11998_v2 = vadd.f32 %v5019_v54, %v4455_v49  ;;  %v5021_v8 = vpop.f32.mrb[31].mxu1  ;;  %v5329_v54 = vld [vmem:[#allocation8 + $0x150] sm:$0xff] }
 0xc9a   :  { %v12018_v7 = vadd.f32 %v5021_v8, %v4459_v24 }
 0xc9b   :  { %v5040_v58 = vmax.f32 %v11998_v2, 0.0 }
 0xc9c   :  { %v5025_v59 = vpop.f32.mrb[32].mxu1  ;;  %v5041_v3 = vmax.f32 %v12018_v7, 0.0 }
 0xc9d   :  { %v11193_v60 = vpack.i.bf16 %v5040_v58, %v5039_v56  ;;  %v12012_v0 = vadd.f32 %v5025_v59, %v4455_v49  ;;  %v5027_v13 = vpop.f32.mrb[33].mxu1  ;;  %v5330_v49 = vld [vmem:[#allocation8 + $0x158] sm:$0xff] }
 0xc9e   :  { %v12014_v1 = vadd.f32 %v5027_v13, %v4459_v24  ;;  %v10129_v8 = vpack.c.bf16 %v5334_v50, %v5330_v49  ;;  %v5333_v24 = vld [vmem:[#allocation8 + $0x170] sm:$0xff]  ;;  %v5342_v13 = vld [vmem:[#allocation8 + $0x1b8] sm:$0xff]  ;;  %v10155_v49 = vpack.c.bf16 %v5381_v48, %v5377_v46 }
 0xc9f   :  { %v5044_v63 = vmax.f32 %v12012_v0, 0.0  ;;  %11194 = vrot.lane.b32.xlu1 %v11193_v60, %s11489_s10  ;;  %v10131_v59 = vpack.c.bf16 %v5333_v24, %v5329_v54  ;;  %v5338_v60 = vld [vmem:[#allocation8 + $0x198] sm:$0xff] }
 0xca0   :  { %v5045_v23 = vmax.f32 %v12014_v1, 0.0  ;;  %10130 = vmatprep.subr.bf16.mxu1 %v10129_v8  ;;  %v5386_v50 = vld [vmem:[#allocation8 + $0x318] sm:$0xff]  ;;  %v5385_v8 = vld [vmem:[#allocation8 + $0x310] sm:$0xff] }
 0xca1   :  { %v11198_v14 = vpack.i.bf16 %v5044_v63, %v5043_v5  ;;  %10132 = vmatpush1.bf16.msra.mxu1 %v10131_v59  ;;  %v5390_v54 = vld [vmem:[#allocation8 + $0x338] sm:$0xff]  ;;  %v5389_v59 = vld [vmem:[#allocation8 + $0x330] sm:$0xff] }
 0xca2   :  { %v11208_v10 = vpack.i.bf16 %v5045_v23, %v5041_v3  ;;  %v10157_v24 = vpack.c.bf16 %v5390_v54, %v5386_v50 }
 0xca3   :  { %11204 = vrot.lane.b32.xlu1 %v11203_v9, %s11489_s10  ;;  %11199 = vrot.lane.b32.xlu0 %v11198_v14, %s11489_s10  ;;  %v5337_v9 = vld [vmem:[#allocation8 + $0x190] sm:$0xff]  ;;  %v10133_v14 = vpack.c.bf16 %v5342_v13, %v5338_v60  ;;  %v10159_v60 = vpack.c.bf16 %v5389_v59, %v5385_v8  ;;  %v5394_v13 = vld [vmem:[#allocation8 + $0x358] sm:$0xff] }
 0xca5   :  { %10134 = vmatprep.subr.bf16.mxu1 %v10133_v14  ;;  %v5393_v14 = vld [vmem:[#allocation8 + $0x350] sm:$0xff] }
 0xca7   :  { %11209 = vrot.lane.b32.xlu0 %v11208_v10, %s11489_s10  ;;  %v5341_v10 = vld [vmem:[#allocation8 + $0x1b0] sm:$0xff] }
 0xca8   :  { %v10135_v11 = vpack.c.bf16 %v5341_v10, %v5337_v9  ;;  %v5398_v9 = vld [vmem:[#allocation8 + $0x378] sm:$0xff] }
 0xca9   :  { %v10161_v10 = vpack.c.bf16 %v5398_v9, %v5394_v13 }
 0xcaa   :  { %10136 = vmatpush1.bf16.msra.mxu1 %v10135_v11  ;;  %v5397_v11 = vld [vmem:[#allocation8 + $0x370] sm:$0xff] }
 0xcab   :  { %10138 = vmatprep.subr.bf16.mxu1 %v10137_v16  ;;  %v10163_v6 = vpack.c.bf16 %v5397_v11, %v5393_v14  ;;  %v5401_v16 = vld [vmem:[#allocation8 + $0x390] sm:$0xff] }
 0xcae   :  { %10140 = vmatpush1.bf16.msra.mxu1 %v10139_v20  ;;  %v5405_v20 = vld [vmem:[#allocation8 + $0x3b0] sm:$0xff] }
 0xcaf   :  { %10142 = vmatprep.subr.bf16.mxu1 %v10141_v62  ;;  %v10167_v22 = vpack.c.bf16 %v5405_v20, %v5401_v16  ;;  %v5291_v20 = vld [vmem:[#allocation8 + $0x20] sm:$0xff] }
 0xcb2   :  { %10144 = vmatpush1.bf16.msra.mxu1 %v10143_v18 }
 0xcb3   :  { %10146 = vmatprep.subr.bf16.mxu1 %v10145_v19 }
 0xcb6   :  { %10148 = vmatpush1.bf16.msra.mxu1 %v10147_v32 }
 0xcb7   :  { %10150 = vmatprep.subr.bf16.mxu1 %v10149_v37 }
 0xcba   :  { %10152 = vmatpush1.bf16.msra.mxu1 %v10151_v41 }
 0xcbb   :  { %10154 = vmatprep.subr.bf16.mxu1 %v10153_v47 }
 0xcbe   :  { %10156 = vmatpush1.bf16.msra.mxu1 %v10155_v49 }
 0xcbf   :  { %10158 = vmatprep.subr.bf16.mxu1 %v10157_v24 }
 0xcc2   :  { %10160 = vmatpush1.bf16.msra.mxu1 %v10159_v60 }
 0xcc3   :  { %10162 = vmatprep.subr.bf16.mxu1 %v10161_v10 }
 0xcc6   :  { %10164 = vmatpush1.bf16.msra.mxu1 %v10163_v6  ;;  %v5292_v6 = vld [vmem:[#allocation8 + $0x28] sm:$0xff] }
 0xcc7   :  { %10166 = vmatprep.subr.bf16.mxu1 %v10165_v17  ;;  %v5287_v17 = vld [vmem:[#allocation8] sm:$0xff] }
 0xcca   :  { %10168 = vmatpush1.bf16.msra.mxu1 %v10167_v22  ;;  %v5296_v22 = vld [vmem:[#allocation8 + $0x48] sm:$0xff] }
 0xd11   :  { %v11195_v21 = vpop.permute.xlu1 %11194 }
 0xd12   :  { %v11197_v26 = vunpack.i.h.bf16 %v11195_v21  ;;  %v11196_v62 = vunpack.i.l.bf16 %v11195_v21  ;;  %v5300_v21 = vld [vmem:[#allocation8 + $0x68] sm:$0xff] }
 0xd14   :  { %v5071_v27 = vsel %vm1078_vm2, %v11196_v62, %v11197_v26 }
 0xd15   :  { %v11205_v18 = vpop.permute.xlu1 %11204  ;;  %v11200_v28 = vpop.permute.xlu0 %11199  ;;  %v5085_v35 = vmax.f32 %v5039_v56, %v5071_v27  ;;  %v5295_v27 = vld [vmem:[#allocation8 + $0x40] sm:$0xff] }
 0xd16   :  { %v11207_v29 = vunpack.i.h.bf16 %v11205_v18  ;;  %v11206_v30 = vunpack.i.l.bf16 %v11205_v18  ;;  %v11202_v19 = vunpack.i.h.bf16 %v11200_v28  ;;  %v11201_v31 = vunpack.i.l.bf16 %v11200_v28  ;;  %v5299_v18 = vld [vmem:[#allocation8 + $0x60] sm:$0xff]  ;;  %v5304_v28 = vld [vmem:[#allocation8 + $0x88] sm:$0xff] }
 0xd17   :  { %v5103_v56 = vrot.slane %v5085_v35, 1 }
 0xd18   :  { %v5070_v32 = vsel %vm1078_vm2, %v11206_v30, %v11196_v62  ;;  %v5073_v33 = vsel %vm1078_vm2, %v11207_v29, %v11201_v31  ;;  %v5074_v34 = vsel %vm1078_vm2, %v11201_v31, %v11202_v19  ;;  %v9993_v62 = vpack.c.bf16 %v5300_v21, %v5296_v22  ;;  %v5308_v29 = vld [vmem:[#allocation8 + $0xa8] sm:$0xff]  ;;  %v5303_v31 = vld [vmem:[#allocation8 + $0x80] sm:$0xff] }
 0xd19   :  { %v5084_v37 = vmax.f32 %v5038_v4, %v5070_v32  ;;  %v5088_v40 = vmax.f32 %v5042_v45, %v5073_v33  ;;  %v5089_v41 = vmax.f32 %v5043_v5, %v5074_v34  ;;  %v11210_v42 = vpop.permute.xlu0 %11209  ;;  %v9995_v30 = vpack.c.bf16 %v5299_v18, %v5295_v27  ;;  %v5307_v32 = vld [vmem:[#allocation8 + $0xa0] sm:$0xff]  ;;  %v5312_v33 = vld [vmem:[#allocation8 + $0xc8] sm:$0xff] }
 0xd1a   :  { %v11212_v44 = vunpack.i.h.bf16 %v11210_v42  ;;  %v11211_v46 = vunpack.i.l.bf16 %v11210_v42  ;;  %v5316_v34 = vld [vmem:[#allocation8 + $0xe8] sm:$0xff]  ;;  %v5363_v22 = vld [vmem:[#allocation8 + $0x260] sm:$0xff] }
 0xd1b   :  { %v5100_v47 = vrot.slane %v5084_v37, 1  ;;  %v5101_v48 = vrot.slane %v5088_v40, 1  ;;  %v5104_v49 = vrot.slane %v5089_v41, 1  ;;  %v5320_v42 = vld [vmem:[#allocation8 + $0x108] sm:$0xff]  ;;  %v5367_v18 = vld [vmem:[#allocation8 + $0x280] sm:$0xff] }
 0xd1c   :  { %v5075_v50 = vsel %vm1078_vm2, %v11202_v19, %v11212_v44  ;;  %v5091_v52 = vmax.f32 %v5045_v23, %v11212_v44  ;;  %v5072_v55 = vsel %vm1078_vm2, %v11197_v26, %v11211_v46  ;;  %v5087_v25 = vmax.f32 %v5041_v3, %v11211_v46  ;;  %v5324_v44 = vld [vmem:[#allocation8 + $0x128] sm:$0xff] }
 0xd1d   :  { %v5102_v57 = vsel %vm1109_vm3, %v5100_v47, %v5101_v48  ;;  %v5124_v45 = vmax.f32 %v5088_v40, %v5101_v48  ;;  %v5090_v4 = vmax.f32 %v5044_v63, %v5075_v50  ;;  %v5086_v8 = vmax.f32 %v5040_v58, %v5072_v55  ;;  %v5288_v58 = vld [vmem:[#allocation8 + $0x8] sm:$0xff]  ;;  %v5311_v40 = vld [vmem:[#allocation8 + $0xc0] sm:$0xff] }
 0xd1e   :  { %v5120_v5 = vmax.f32 %v5084_v37, %v5102_v57  ;;  %v5110_v54 = vrot.slane %v5091_v52, 1  ;;  %v5109_v24 = vrot.slane %v5087_v25, 1  ;;  %v5125_v1 = vmax.f32 %v5089_v41, %v5104_v49  ;;  %v5315_v41 = vld [vmem:[#allocation8 + $0xe0] sm:$0xff]  ;;  %v5328_v50 = vld [vmem:[#allocation8 + $0x148] sm:$0xff] }
 0xd1f   :  { %v5107_v23 = vrot.slane %v5090_v4, 1  ;;  %v5105_v59 = vsel %vm1109_vm3, %v5103_v56, %v5104_v49  ;;  %v5106_v7 = vrot.slane %v5086_v8, 1  ;;  %v9989_v16 = vpack.c.bf16 %v5292_v6, %v5288_v58  ;;  %v5319_v48 = vld [vmem:[#allocation8 + $0x100] sm:$0xff]  ;;  %v5360_v6 = vld [vmem:[#allocation8 + $0x248] sm:$0xff] }
 0xd20   :  { %v5127_v60 = vmax.f32 %v5091_v52, %v5110_v54  ;;  %v5111_v3 = vsel %vm1109_vm3, %v5109_v24, %v5110_v54  ;;  %v5121_v9 = vmax.f32 %v5085_v35, %v5105_v59  ;;  %v12064_v14 = vpack.c.bf16 %v5124_v45, %v5120_v5  ;;  %v5323_v49 = vld [vmem:[#allocation8 + $0x120] sm:$0xff]  ;;  %v5332_v52 = vld [vmem:[#allocation8 + $0x168] sm:$0xff] }
 0xd21   :  { %v5123_v13 = vmax.f32 %v5087_v25, %v5111_v3  ;;  %v5126_v0 = vmax.f32 %v5090_v4, %v5107_v23  ;;  %v5108_v63 = vsel %vm1109_vm3, %v5106_v7, %v5107_v23  ;;  %v9991_v26 = vpack.c.bf16 %v5291_v20, %v5287_v17  ;;  %v5327_v56 = vld [vmem:[#allocation8 + $0x140] sm:$0xff]  ;;  %v5336_v45 = vld [vmem:[#allocation8 + $0x188] sm:$0xff] }
 0xd22   :  { %v5122_v10 = vmax.f32 %v5086_v8, %v5108_v63  ;;  %v12067_v11 = vpack.c.bf16 %v5125_v1, %v5121_v9  ;;  %v9997_v19 = vpack.c.bf16 %v5308_v29, %v5304_v28  ;;  %v9999_v35 = vpack.c.bf16 %v5307_v32, %v5303_v31  ;;  %v5331_v57 = vld [vmem:[#allocation8 + $0x160] sm:$0xff]  ;;  %v5340_v4 = vld [vmem:[#allocation8 + $0x1a8] sm:$0xff] }
 0xd23   :  { %v12069_v2 = vpack.c.bf16 %v5127_v60, %v5123_v13  ;;  %v10001_v37 = vpack.c.bf16 %v5316_v34, %v5312_v33  ;;  %v10003_v46 = vpack.c.bf16 %v5315_v41, %v5311_v40  ;;  %v10005_v47 = vpack.c.bf16 %v5324_v44, %v5320_v42  ;;  %v5335_v8 = vld [vmem:[#allocation8 + $0x180] sm:$0xff]  ;;  %v5344_v1 = vld [vmem:[#allocation8 + $0x1c8] sm:$0xff] }
 0xd24   :  { %9979 = vmatprep.subr.msk.bf16.mxu0 %vm11765_vm5, %v12067_v11  ;;  %v12074_v12 = vpack.c.bf16 %v5126_v0, %v5122_v10  ;;  %v10007_v55 = vpack.c.bf16 %v5323_v49, %v5319_v48  ;;  %v10009_v25 = vpack.c.bf16 %v5332_v52, %v5328_v50  ;;  %v10011_v5 = vpack.c.bf16 %v5331_v57, %v5327_v56  ;;  %v5339_v24 = vld [vmem:[#allocation8 + $0x1a0] sm:$0xff]  ;;  %v5348_v23 = vld [vmem:[#allocation8 + $0x1e8] sm:$0xff] }
 0xd25   :  { %9982 = vmatpush1.bf16.msk.msra.mxu0 %vm11765_vm5, %v12064_v14  ;;  %v10013_v54 = vpack.c.bf16 %v5340_v4, %v5336_v45  ;;  %v10015_v59 = vpack.c.bf16 %v5339_v24, %v5335_v8  ;;  %v10017_v60 = vpack.c.bf16 %v5348_v23, %v5344_v1  ;;  %v5343_v7 = vld [vmem:[#allocation8 + $0x1c0] sm:$0xff]  ;;  %v5352_v13 = vld [vmem:[#allocation8 + $0x208] sm:$0xff] }
 0xd26   :  { %9985 = vmatprep.subr.msk.bf16.mxu0 %vm11765_vm5, %v12069_v2  ;;  %v5347_v3 = vld [vmem:[#allocation8 + $0x1e0] sm:$0xff]  ;;  %v5356_v9 = vld [vmem:[#allocation8 + $0x228] sm:$0xff] }
 0xd27   :  { %v10019_v0 = vpack.c.bf16 %v5347_v3, %v5343_v7  ;;  %v10021_v63 = vpack.c.bf16 %v5356_v9, %v5352_v13  ;;  %v5351_v10 = vld [vmem:[#allocation8 + $0x200] sm:$0xff]  ;;  %v5368_v21 = vld [vmem:[#allocation8 + $0x288] sm:$0xff]  ;;  %v5409_v3 = vld [vmem:[#allocation8 + $0x3d0] sm:$0xff] }
 0xd28   :  { %8233 = vmatmul.mubr.msk.f32.vlgmr.msra.gmra.mrb[22].mxu0 %vm1140_vm6, %v5129_v15  ;;  %v5355_v58 = vld [vmem:[#allocation8 + $0x220] sm:$0xff]  ;;  %v5376_v29 = vld [vmem:[#allocation8 + $0x2c8] sm:$0xff]  ;;  %v5413_v13 = vld [vmem:[#allocation8 + $0x3f0] sm:$0xff] }
 0xd29   :  { %9988 = vmatpush1.bf16.msk.msra.mxu0 %vm11765_vm5, %v12074_v12  ;;  %5280 = vmatprep.mubr.f32.mxu0 %v11488_v53  ;;  %v5359_v20 = vld [vmem:[#allocation8 + $0x240] sm:$0xff]  ;;  %v5384_v34 = vld [vmem:[#allocation8 + $0x308] sm:$0xff]  ;;  %v10171_v9 = vpack.c.bf16 %v5413_v13, %v5409_v3 }
 0xd2a   :  { %9990 = vmatprep.subr.bf16.mxu0 %v9989_v16  ;;  %v10023_v16 = vpack.c.bf16 %v5355_v58, %v5351_v10  ;;  %v5371_v28 = vld [vmem:[#allocation8 + $0x2a0] sm:$0xff]  ;;  %v5392_v44 = vld [vmem:[#allocation8 + $0x348] sm:$0xff]  ;;  %v5418_v58 = vld [vmem:[#allocation8 + $0x418] sm:$0xff] }
 0xd2b   :  { %v5375_v32 = vld [vmem:[#allocation8 + $0x2c0] sm:$0xff]  ;;  %v5400_v52 = vld [vmem:[#allocation8 + $0x388] sm:$0xff] }
 0xd2c   :  { %8236 = vmatmul.mubr.msk.f32.vlgmr.msra.gmra.mrb[24].mxu0 %vm1140_vm6, %v5129_v15  ;;  %v5364_v15 = vld [vmem:[#allocation8 + $0x268] sm:$0xff]  ;;  %v5379_v33 = vld [vmem:[#allocation8 + $0x2e0] sm:$0xff] }
 0xd2d   :  { %9992 = vmatpush1.bf16.msra.mxu0 %v9991_v26  ;;  %v10025_v17 = vpack.c.bf16 %v5364_v15, %v5360_v6  ;;  %v5372_v26 = vld [vmem:[#allocation8 + $0x2a8] sm:$0xff]  ;;  %v5383_v41 = vld [vmem:[#allocation8 + $0x300] sm:$0xff]  ;;  %v5422_v6 = vld [vmem:[#allocation8 + $0x438] sm:$0xff] }
 0xd2e   :  { %9994 = vmatprep.subr.bf16.mxu0 %v9993_v62  ;;  %v10027_v62 = vpack.c.bf16 %v5363_v22, %v5359_v20  ;;  %v10029_v27 = vpack.c.bf16 %v5372_v26, %v5368_v21  ;;  %v5387_v42 = vld [vmem:[#allocation8 + $0x320] sm:$0xff]  ;;  %v5408_v4 = vld [vmem:[#allocation8 + $0x3c8] sm:$0xff]  ;;  %v10173_v15 = vpack.c.bf16 %v5422_v6, %v5418_v58  ;;  %v5417_v20 = vld [vmem:[#allocation8 + $0x410] sm:$0xff] }
 0xd2f   :  { %v5391_v49 = vld [vmem:[#allocation8 + $0x340] sm:$0xff]  ;;  %v5421_v22 = vld [vmem:[#allocation8 + $0x430] sm:$0xff]  ;;  %v5424_v21 = vld [vmem:[#allocation8 + $0x448] sm:$0xff] }
 0xd30   :  { %v5395_v50 = vld [vmem:[#allocation8 + $0x360] sm:$0xff]  ;;  %v5428_v26 = vld [vmem:[#allocation8 + $0x468] sm:$0xff] }
 0xd31   :  { %9996 = vmatpush1.bf16.msra.mxu0 %v9995_v30  ;;  %v5380_v30 = vld [vmem:[#allocation8 + $0x2e8] sm:$0xff]  ;;  %v5399_v57 = vld [vmem:[#allocation8 + $0x380] sm:$0xff] }
 0xd32   :  { %9998 = vmatprep.subr.bf16.mxu0 %v9997_v19  ;;  %v10031_v19 = vpack.c.bf16 %v5371_v28, %v5367_v18  ;;  %v10033_v31 = vpack.c.bf16 %v5380_v30, %v5376_v29  ;;  %v5403_v45 = vld [vmem:[#allocation8 + $0x3a0] sm:$0xff]  ;;  %v10175_v29 = vpack.c.bf16 %v5421_v22, %v5417_v20  ;;  %v5448_v3 = vld [vmem:[#allocation8 + $0x508] sm:$0xff]  ;;  %v5453_v20 = vld [vmem:[#allocation8 + $0x530] sm:$0xff] }
 0xd33   :  { %v5407_v24 = vld [vmem:[#allocation8 + $0x3c0] sm:$0xff]  ;;  %v5452_v13 = vld [vmem:[#allocation8 + $0x528] sm:$0xff] }
 0xd34   :  { %v5411_v1 = vld [vmem:[#allocation8 + $0x3e0] sm:$0xff]  ;;  %v5456_v22 = vld [vmem:[#allocation8 + $0x548] sm:$0xff] }
 0xd35   :  { %10000 = vmatpush1.bf16.msra.mxu0 %v9999_v35  ;;  %v5388_v35 = vld [vmem:[#allocation8 + $0x328] sm:$0xff]  ;;  %v10051_v23 = vpack.c.bf16 %v5411_v1, %v5407_v24  ;;  %v5423_v30 = vld [vmem:[#allocation8 + $0x440] sm:$0xff] }
 0xd36   :  { %10002 = vmatprep.subr.bf16.mxu0 %v10001_v37  ;;  %v10035_v37 = vpack.c.bf16 %v5379_v33, %v5375_v32  ;;  %v10037_v40 = vpack.c.bf16 %v5388_v35, %v5384_v34  ;;  %v10057_v32 = vpack.c.bf16 %v5428_v26, %v5424_v21  ;;  %v5425_v34 = vld [vmem:[#allocation8 + $0x450] sm:$0xff]  ;;  %v5439_v24 = vld [vmem:[#allocation8 + $0x4c0] sm:$0xff]  ;;  %v5460_v21 = vld [vmem:[#allocation8 + $0x568] sm:$0xff] }
 0xd37   :  { %v5429_v35 = vld [vmem:[#allocation8 + $0x470] sm:$0xff]  ;;  %v5443_v1 = vld [vmem:[#allocation8 + $0x4e0] sm:$0xff]  ;;  %v5458_v26 = vld [vmem:[#allocation8 + $0x558] sm:$0xff] }
 0xd38   :  { %v5447_v58 = vld [vmem:[#allocation8 + $0x500] sm:$0xff] }
 0xd39   :  { %10004 = vmatpush1.bf16.msra.mxu0 %v10003_v46  ;;  %v5396_v46 = vld [vmem:[#allocation8 + $0x368] sm:$0xff]  ;;  %v5451_v6 = vld [vmem:[#allocation8 + $0x520] sm:$0xff] }
 0xd3a   :  { %10006 = vmatprep.subr.bf16.mxu0 %v10005_v47  ;;  %v10039_v47 = vpack.c.bf16 %v5387_v42, %v5383_v41  ;;  %v10041_v48 = vpack.c.bf16 %v5396_v46, %v5392_v44  ;;  %v5434_v41 = vld [vmem:[#allocation8 + $0x498] sm:$0xff]  ;;  %v10179_v46 = vpack.c.bf16 %v5429_v35, %v5425_v34  ;;  %v5468_v34 = vld [vmem:[#allocation8 + $0x5a8] sm:$0xff] }
 0xd3b   :  { %v5438_v42 = vld [vmem:[#allocation8 + $0x4b8] sm:$0xff] }
 0xd3c   :  { %v5466_v35 = vld [vmem:[#allocation8 + $0x598] sm:$0xff] }
 0xd3d   :  { %10008 = vmatpush1.bf16.msra.mxu0 %v10007_v55  ;;  %v5404_v55 = vld [vmem:[#allocation8 + $0x3a8] sm:$0xff] }
 0xd3e   :  { %10010 = vmatprep.subr.bf16.mxu0 %v10009_v25  ;;  %v10043_v25 = vpack.c.bf16 %v5395_v50, %v5391_v49  ;;  %v10045_v56 = vpack.c.bf16 %v5404_v55, %v5400_v52  ;;  %v10181_v52 = vpack.c.bf16 %v5438_v42, %v5434_v41  ;;  %v5433_v55 = vld [vmem:[#allocation8 + $0x490] sm:$0xff]  ;;  %v5463_v42 = vld [vmem:[#allocation8 + $0x580] sm:$0xff] }
 0xd41   :  { %10012 = vmatpush1.bf16.msra.mxu0 %v10011_v5  ;;  %v5412_v5 = vld [vmem:[#allocation8 + $0x3e8] sm:$0xff] }
 0xd42   :  { %10014 = vmatprep.subr.bf16.mxu0 %v10013_v54  ;;  %v10047_v54 = vpack.c.bf16 %v5403_v45, %v5399_v57  ;;  %v10049_v8 = vpack.c.bf16 %v5412_v5, %v5408_v4  ;;  %v5444_v45 = vld [vmem:[#allocation8 + $0x4e8] sm:$0xff]  ;;  %v5442_v4 = vld [vmem:[#allocation8 + $0x4d8] sm:$0xff] }
 0xd43   :  { %v5446_v5 = vld [vmem:[#allocation8 + $0x4f8] sm:$0xff] }
 0xd45   :  { %10016 = vmatpush1.bf16.msra.mxu0 %v10015_v59  ;;  %v5410_v59 = vld [vmem:[#allocation8 + $0x3d8] sm:$0xff] }
 0xd46   :  { %10018 = vmatprep.subr.bf16.mxu0 %v10017_v60  ;;  %v5414_v60 = vld [vmem:[#allocation8 + $0x3f8] sm:$0xff] }
 0xd47   :  { %v10169_v7 = vpack.c.bf16 %v5414_v60, %v5410_v59  ;;  %v10185_v59 = vpack.c.bf16 %v5446_v5, %v5442_v4  ;;  %v5441_v60 = vld [vmem:[#allocation8 + $0x4d0] sm:$0xff]  ;;  %v5471_v4 = vld [vmem:[#allocation8 + $0x5c0] sm:$0xff] }
 0xd48   :  { %v5475_v5 = vld [vmem:[#allocation8 + $0x5e0] sm:$0xff] }
 0xd49   :  { %10020 = vmatpush1.bf16.msra.mxu0 %v10019_v0  ;;  %10170 = vmatprep.subr.bf16.mxu1 %v10169_v7  ;;  %v5416_v0 = vld [vmem:[#allocation8 + $0x408] sm:$0xff]  ;;  %v5445_v7 = vld [vmem:[#allocation8 + $0x4f0] sm:$0xff] }
 0xd4a   :  { %10022 = vmatprep.subr.bf16.mxu0 %v10021_v63  ;;  %10172 = vmatpush1.bf16.msra.mxu1 %v10171_v9  ;;  %v5420_v63 = vld [vmem:[#allocation8 + $0x428] sm:$0xff]  ;;  %v5450_v9 = vld [vmem:[#allocation8 + $0x518] sm:$0xff] }
 0xd4b   :  { %v10053_v10 = vpack.c.bf16 %v5420_v63, %v5416_v0  ;;  %10174 = vmatprep.subr.bf16.mxu1 %v10173_v15  ;;  %v5454_v0 = vld [vmem:[#allocation8 + $0x538] sm:$0xff]  ;;  %v10067_v63 = vpack.c.bf16 %v5443_v1, %v5439_v24  ;;  %v10069_v15 = vpack.c.bf16 %v5452_v13, %v5448_v3  ;;  %v5473_v24 = vld [vmem:[#allocation8 + $0x5d0] sm:$0xff]  ;;  %v10083_v3 = vpack.c.bf16 %v5475_v5, %v5471_v4 }
 0xd4c   :  { %v5477_v1 = vld [vmem:[#allocation8 + $0x5f0] sm:$0xff] }
 0xd4d   :  { %10024 = vmatpush1.bf16.msra.mxu0 %v10023_v16  ;;  %v5415_v16 = vld [vmem:[#allocation8 + $0x400] sm:$0xff]  ;;  %v10203_v13 = vpack.c.bf16 %v5477_v1, %v5473_v24  ;;  %v5505_v4 = vld [vmem:[#allocation8 + $0x6d0] sm:$0xff]  ;;  %v5514_v24 = vld [vmem:[#allocation8 + $0x718] sm:$0xff] }
 0xd4e   :  { %10026 = vmatprep.subr.bf16.mxu0 %v10025_v17  ;;  %v5419_v17 = vld [vmem:[#allocation8 + $0x420] sm:$0xff]  ;;  %v5509_v5 = vld [vmem:[#allocation8 + $0x6f0] sm:$0xff]  ;;  %v5518_v1 = vld [vmem:[#allocation8 + $0x738] sm:$0xff] }
 0xd4f   :  { %v10055_v28 = vpack.c.bf16 %v5419_v17, %v5415_v16  ;;  %v10189_v16 = vpack.c.bf16 %v5454_v0, %v5450_v9  ;;  %v5449_v17 = vld [vmem:[#allocation8 + $0x510] sm:$0xff]  ;;  %v5479_v9 = vld [vmem:[#allocation8 + $0x600] sm:$0xff] }
 0xd50   :  { %v5483_v0 = vld [vmem:[#allocation8 + $0x620] sm:$0xff] }
 0xd51   :  { %10028 = vmatpush1.bf16.msra.mxu0 %v10027_v62  ;;  %v5426_v62 = vld [vmem:[#allocation8 + $0x458] sm:$0xff] }
 0xd52   :  { %10030 = vmatprep.subr.bf16.mxu0 %v10029_v27  ;;  %v5430_v27 = vld [vmem:[#allocation8 + $0x478] sm:$0xff] }
 0xd53   :  { %v10177_v33 = vpack.c.bf16 %v5430_v27, %v5426_v62  ;;  %v5462_v62 = vld [vmem:[#allocation8 + $0x578] sm:$0xff]  ;;  %v10071_v27 = vpack.c.bf16 %v5451_v6, %v5447_v58  ;;  %v5481_v58 = vld [vmem:[#allocation8 + $0x610] sm:$0xff] }
 0xd54   :  { %v5485_v6 = vld [vmem:[#allocation8 + $0x630] sm:$0xff] }
 0xd55   :  { %10032 = vmatpush1.bf16.msra.mxu0 %v10031_v19  ;;  %v5427_v19 = vld [vmem:[#allocation8 + $0x460] sm:$0xff] }
 0xd56   :  { %10034 = vmatprep.subr.bf16.mxu0 %v10033_v31  ;;  %v10059_v44 = vpack.c.bf16 %v5427_v19, %v5423_v30  ;;  %v10073_v30 = vpack.c.bf16 %v5460_v21, %v5456_v22  ;;  %v10193_v19 = vpack.c.bf16 %v5462_v62, %v5458_v26  ;;  %v10087_v22 = vpack.c.bf16 %v5483_v0, %v5479_v9  ;;  %v5487_v26 = vld [vmem:[#allocation8 + $0x640] sm:$0xff]  ;;  %v5513_v9 = vld [vmem:[#allocation8 + $0x710] sm:$0xff] }
 0xd57   :  { %v10207_v21 = vpack.c.bf16 %v5485_v6, %v5481_v58  ;;  %v5491_v62 = vld [vmem:[#allocation8 + $0x660] sm:$0xff]  ;;  %v5517_v0 = vld [vmem:[#allocation8 + $0x730] sm:$0xff]  ;;  %v5522_v58 = vld [vmem:[#allocation8 + $0x758] sm:$0xff] }
 0xd58   :  { %v5526_v6 = vld [vmem:[#allocation8 + $0x778] sm:$0xff] }
 0xd59   :  { %10036 = vmatpush1.bf16.msra.mxu0 %v10035_v37  ;;  %v5432_v37 = vld [vmem:[#allocation8 + $0x488] sm:$0xff] }
 0xd5a   :  { %10038 = vmatprep.subr.bf16.mxu0 %v10037_v40  ;;  %v5436_v40 = vld [vmem:[#allocation8 + $0x4a8] sm:$0xff] }
 0xd5b   :  { %v10061_v50 = vpack.c.bf16 %v5436_v40, %v5432_v37  ;;  %v5470_v37 = vld [vmem:[#allocation8 + $0x5b8] sm:$0xff] }
 0xd5d   :  { %10040 = vmatpush1.bf16.msra.mxu0 %v10039_v47  ;;  %v5431_v47 = vld [vmem:[#allocation8 + $0x480] sm:$0xff] }
 0xd5e   :  { %10042 = vmatprep.subr.bf16.mxu0 %v10041_v48  ;;  %v5435_v48 = vld [vmem:[#allocation8 + $0x4a0] sm:$0xff] }
 0xd61   :  { %10044 = vmatpush1.bf16.msra.mxu0 %v10043_v25  ;;  %v5437_v25 = vld [vmem:[#allocation8 + $0x4b0] sm:$0xff] }
 0xd62   :  { %10046 = vmatprep.subr.bf16.mxu0 %v10045_v56  ;;  %v5440_v56 = vld [vmem:[#allocation8 + $0x4c8] sm:$0xff] }
 0xd65   :  { %10048 = vmatpush1.bf16.msra.mxu0 %v10047_v54  ;;  %v10063_v54 = vpack.c.bf16 %v5435_v48, %v5431_v47  ;;  %v10197_v47 = vpack.c.bf16 %v5470_v37, %v5466_v35  ;;  %v5465_v48 = vld [vmem:[#allocation8 + $0x590] sm:$0xff]  ;;  %v5495_v35 = vld [vmem:[#allocation8 + $0x680] sm:$0xff] }
 0xd66   :  { %10050 = vmatprep.subr.bf16.mxu0 %v10049_v8  ;;  %v10183_v8 = vpack.c.bf16 %v5437_v25, %v5433_v55  ;;  %v5476_v55 = vld [vmem:[#allocation8 + $0x5e8] sm:$0xff]  ;;  %v5474_v25 = vld [vmem:[#allocation8 + $0x5d8] sm:$0xff]  ;;  %v5499_v37 = vld [vmem:[#allocation8 + $0x6a0] sm:$0xff] }
 0xd69   :  { %10052 = vmatpush1.bf16.msra.mxu0 %v10051_v23  ;;  %v10065_v23 = vpack.c.bf16 %v5444_v45, %v5440_v56  ;;  %v5478_v56 = vld [vmem:[#allocation8 + $0x5f8] sm:$0xff] }
 0xd6a   :  { %10054 = vmatprep.subr.bf16.mxu0 %v10053_v10  ;;  %v10187_v10 = vpack.c.bf16 %v5445_v7, %v5441_v60  ;;  %v5482_v60 = vld [vmem:[#allocation8 + $0x618] sm:$0xff] }
 0xd6b   :  { %v5486_v7 = vld [vmem:[#allocation8 + $0x638] sm:$0xff] }
 0xdfb   :  { %v5211_v18 = vpop.f32.mrb[22].mxu0 }
 0xdfc   :  { %v5213_v31 = vpop.f32.mrb[23].mxu0 }
 0xdfd   :  { %5594 = vmatprep.mubr.f32.mxu0 %v5213_v31  ;;  %5736 = vmatprep.mubr.f32.mxu1 %v5213_v31  ;;  %v5457_v31 = vld [vmem:[#allocation8 + $0x550] sm:$0xff] }
 0xdfe   :  { %5595 = vmatmul.mubr.f32.vlgmr.msra.gmra.mrb[26].mxu0 %v5211_v18  ;;  %5737 = vmatmul.mubr.f32.vlgmr.msra.gmra.mrb[34].mxu1 %v5211_v18  ;;  %v10191_v18 = vpack.c.bf16 %v5453_v20, %v5449_v17  ;;  %v5490_v17 = vld [vmem:[#allocation8 + $0x658] sm:$0xff] }
 0xdff   :  { %10056 = vmatpush1.bf16.msra.mxu0 %v10055_v28  ;;  %10176 = vmatpush1.bf16.msra.mxu1 %v10175_v29  ;;  %v12088_v49 = vpop.f32.mrb[24].mxu0  ;;  %v5455_v28 = vld [vmem:[#allocation8 + $0x540] sm:$0xff]  ;;  %v5494_v20 = vld [vmem:[#allocation8 + $0x678] sm:$0xff] }
 0xe00   :  { %10058 = vmatprep.subr.bf16.mxu0 %v10057_v32  ;;  %10178 = vmatprep.subr.bf16.mxu1 %v10177_v33  ;;  %v5284_v57 = vpop.f32.mrb[25].mxu0  ;;  %v5459_v29 = vld [vmem:[#allocation8 + $0x560] sm:$0xff]  ;;  %v5461_v32 = vld [vmem:[#allocation8 + $0x570] sm:$0xff]  ;;  %v5464_v33 = vld [vmem:[#allocation8 + $0x588] sm:$0xff] }
 0xe01   :  { %8237 = vmatprep.mubr.msk.f32.mxu0 %vm1078_vm2, %v5284_v57  ;;  %8238 = vmatprep.mubr.msk.f32.mxu1 %vm1078_vm2, %v5284_v57  ;;  %v10075_v40 = vpack.c.bf16 %v5459_v29, %v5455_v28  ;;  %v10195_v41 = vpack.c.bf16 %v5461_v32, %v5457_v31  ;;  %v5489_v28 = vld [vmem:[#allocation8 + $0x650] sm:$0xff]  ;;  %v5498_v31 = vld [vmem:[#allocation8 + $0x698] sm:$0xff] }
 0xe02   :  { %v5493_v29 = vld [vmem:[#allocation8 + $0x670] sm:$0xff]  ;;  %v5502_v32 = vld [vmem:[#allocation8 + $0x6b8] sm:$0xff] }
 0xe03   :  { %10060 = vmatpush1.bf16.msra.mxu0 %v10059_v44  ;;  %10180 = vmatpush1.bf16.msra.mxu1 %v10179_v46  ;;  %v5467_v44 = vld [vmem:[#allocation8 + $0x5a0] sm:$0xff]  ;;  %v10077_v46 = vpack.c.bf16 %v5468_v34, %v5464_v33  ;;  %v10091_v33 = vpack.c.bf16 %v5491_v62, %v5487_v26  ;;  %v10211_v34 = vpack.c.bf16 %v5493_v29, %v5489_v28  ;;  %v5521_v26 = vld [vmem:[#allocation8 + $0x750] sm:$0xff] }
 0xe04   :  { %10062 = vmatprep.subr.bf16.mxu0 %v10061_v50  ;;  %10182 = vmatprep.subr.bf16.mxu1 %v10181_v52  ;;  %v5469_v50 = vld [vmem:[#allocation8 + $0x5b0] sm:$0xff]  ;;  %v5472_v52 = vld [vmem:[#allocation8 + $0x5c8] sm:$0xff]  ;;  %v10079_v57 = vpack.c.bf16 %v5467_v44, %v5463_v42 }
 0xe05   :  { %v10199_v45 = vpack.c.bf16 %v5469_v50, %v5465_v48  ;;  %v5497_v42 = vld [vmem:[#allocation8 + $0x690] sm:$0xff]  ;;  %v5506_v48 = vld [vmem:[#allocation8 + $0x6d8] sm:$0xff] }
 0xe06   :  { %v5501_v44 = vld [vmem:[#allocation8 + $0x6b0] sm:$0xff]  ;;  %v5510_v50 = vld [vmem:[#allocation8 + $0x6f8] sm:$0xff] }
 0xe07   :  { %10064 = vmatpush1.bf16.msra.mxu0 %v10063_v54  ;;  %10184 = vmatpush1.bf16.msra.mxu1 %v10183_v8  ;;  %v10081_v54 = vpack.c.bf16 %v5476_v55, %v5472_v52  ;;  %v10201_v8 = vpack.c.bf16 %v5478_v56, %v5474_v25  ;;  %v10095_v52 = vpack.c.bf16 %v5499_v37, %v5495_v35  ;;  %v5503_v25 = vld [vmem:[#allocation8 + $0x6c0] sm:$0xff]  ;;  %v5525_v62 = vld [vmem:[#allocation8 + $0x770] sm:$0xff]  ;;  %v5990_v37 = vld [vmem:[#allocation8 + $0x7a8] sm:$0xff] }
 0xe08   :  { %10066 = vmatprep.subr.bf16.mxu0 %v10065_v23  ;;  %10186 = vmatprep.subr.bf16.mxu1 %v10185_v59  ;;  %v5480_v23 = vld [vmem:[#allocation8 + $0x608] sm:$0xff]  ;;  %v10215_v55 = vpack.c.bf16 %v5501_v44, %v5497_v42  ;;  %v5507_v56 = vld [vmem:[#allocation8 + $0x6e0] sm:$0xff]  ;;  %v10227_v29 = vpack.c.bf16 %v5525_v62, %v5521_v26  ;;  %v5999_v42 = vld [vmem:[#allocation8 + $0x7f0] sm:$0xff] }
 0xe09   :  { %v5484_v59 = vld [vmem:[#allocation8 + $0x628] sm:$0xff]  ;;  %v6004_v44 = vld [vmem:[#allocation8 + $0x818] sm:$0xff] }
 0xe0a   :  { %v6028_v26 = vld [vmem:[#allocation8 + $0x8d8] sm:$0xff] }
 0xe0b   :  { %10068 = vmatpush1.bf16.msra.mxu0 %v10067_v63  ;;  %10188 = vmatpush1.bf16.msra.mxu1 %v10187_v10  ;;  %v10085_v63 = vpack.c.bf16 %v5484_v59, %v5480_v23  ;;  %v10205_v10 = vpack.c.bf16 %v5486_v7, %v5482_v60  ;;  %v10099_v23 = vpack.c.bf16 %v5507_v56, %v5503_v25  ;;  %v5511_v60 = vld [vmem:[#allocation8 + $0x700] sm:$0xff]  ;;  %v6032_v62 = vld [vmem:[#allocation8 + $0x8f8] sm:$0xff] }
 0xe0c   :  { %10070 = vmatprep.subr.bf16.mxu0 %v10069_v15  ;;  %10190 = vmatprep.subr.bf16.mxu1 %v10189_v16  ;;  %v5488_v15 = vld [vmem:[#allocation8 + $0x648] sm:$0xff]  ;;  %v10219_v59 = vpack.c.bf16 %v5509_v5, %v5505_v4  ;;  %v5515_v7 = vld [vmem:[#allocation8 + $0x720] sm:$0xff]  ;;  %v6012_v4 = vld [vmem:[#allocation8 + $0x858] sm:$0xff] }
 0xe0d   :  { %v5492_v16 = vld [vmem:[#allocation8 + $0x668] sm:$0xff]  ;;  %v6016_v5 = vld [vmem:[#allocation8 + $0x878] sm:$0xff] }
 0xe0f   :  { %10072 = vmatpush1.bf16.msra.mxu0 %v10071_v27  ;;  %10192 = vmatpush1.bf16.msra.mxu1 %v10191_v18  ;;  %v10089_v27 = vpack.c.bf16 %v5492_v16, %v5488_v15  ;;  %v10209_v18 = vpack.c.bf16 %v5494_v20, %v5490_v17  ;;  %v10103_v15 = vpack.c.bf16 %v5515_v7, %v5511_v60  ;;  %v5519_v17 = vld [vmem:[#allocation8 + $0x740] sm:$0xff]  ;;  %v6006_v60 = vld [vmem:[#allocation8 + $0x828] sm:$0xff] }
 0xe10   :  { %10074 = vmatprep.subr.bf16.mxu0 %v10073_v30  ;;  %10194 = vmatprep.subr.bf16.mxu1 %v10193_v19  ;;  %v5496_v30 = vld [vmem:[#allocation8 + $0x688] sm:$0xff]  ;;  %v10223_v16 = vpack.c.bf16 %v5517_v0, %v5513_v9  ;;  %v10373_v7 = vpack.c.bf16 %v6016_v5, %v6012_v4  ;;  %v6020_v9 = vld [vmem:[#allocation8 + $0x898] sm:$0xff]  ;;  %v6029_v4 = vld [vmem:[#allocation8 + $0x8e0] sm:$0xff] }
 0xe11   :  { %v5500_v19 = vld [vmem:[#allocation8 + $0x6a8] sm:$0xff]  ;;  %v6024_v0 = vld [vmem:[#allocation8 + $0x8b8] sm:$0xff] }
 0xe12   :  { %v6034_v5 = vld [vmem:[#allocation8 + $0x908] sm:$0xff] }
 0xe13   :  { %10076 = vmatpush1.bf16.msra.mxu0 %v10075_v40  ;;  %10196 = vmatpush1.bf16.msra.mxu1 %v10195_v41  ;;  %v10093_v40 = vpack.c.bf16 %v5500_v19, %v5496_v30  ;;  %v10213_v41 = vpack.c.bf16 %v5502_v32, %v5498_v31  ;;  %v5987_v19 = vld [vmem:[#allocation8 + $0x790] sm:$0xff]  ;;  %v5996_v32 = vld [vmem:[#allocation8 + $0x7d8] sm:$0xff] }
 0xe14   :  { %10078 = vmatprep.subr.bf16.mxu0 %v10077_v46  ;;  %10198 = vmatprep.subr.bf16.mxu1 %v10197_v47  ;;  %v5504_v46 = vld [vmem:[#allocation8 + $0x6c8] sm:$0xff]  ;;  %v5991_v31 = vld [vmem:[#allocation8 + $0x7b0] sm:$0xff] }
 0xe15   :  { %v5508_v47 = vld [vmem:[#allocation8 + $0x6e8] sm:$0xff]  ;;  %v10363_v35 = vpack.c.bf16 %v5991_v31, %v5987_v19 }
 0xe16   :  { %v6022_v31 = vld [vmem:[#allocation8 + $0x8a8] sm:$0xff] }
 0xe17   :  { %10080 = vmatpush1.bf16.msra.mxu0 %v10079_v57  ;;  %10200 = vmatpush1.bf16.msra.mxu1 %v10199_v45  ;;  %v10097_v57 = vpack.c.bf16 %v5508_v47, %v5504_v46  ;;  %v10217_v45 = vpack.c.bf16 %v5510_v50, %v5506_v48  ;;  %v6008_v46 = vld [vmem:[#allocation8 + $0x838] sm:$0xff]  ;;  %v5839_v47 = vld [vmem:[#allocation10 + $0x8] sm:$0xff]  ;;  %v5985_v50 = vld [vmem:[#allocation8 + $0x780] sm:$0xff] }
 0xe18   :  { %10082 = vmatprep.subr.bf16.mxu0 %v10081_v54  ;;  %10202 = vmatprep.subr.bf16.mxu1 %v10201_v8  ;;  %v5512_v54 = vld [vmem:[#allocation8 + $0x708] sm:$0xff]  ;;  %v10369_v56 = vpack.c.bf16 %v6008_v46, %v6004_v44  ;;  %v6021_v44 = vld [vmem:[#allocation8 + $0x8a0] sm:$0xff] }
 0xe19   :  { %v5516_v8 = vld [vmem:[#allocation8 + $0x728] sm:$0xff] }
 0xe1a   :  { %v6026_v46 = vld [vmem:[#allocation8 + $0x8c8] sm:$0xff] }
 0xe1b   :  { %10084 = vmatpush1.bf16.msra.mxu0 %v10083_v3  ;;  %10204 = vmatpush1.bf16.msra.mxu1 %v10203_v13  ;;  %v10101_v3 = vpack.c.bf16 %v5516_v8, %v5512_v54  ;;  %v10221_v13 = vpack.c.bf16 %v5518_v1, %v5514_v24  ;;  %v5993_v24 = vld [vmem:[#allocation8 + $0x7c0] sm:$0xff] }
 0xe1c   :  { %10086 = vmatprep.subr.bf16.mxu0 %v10085_v63  ;;  %10206 = vmatprep.subr.bf16.mxu1 %v10205_v10  ;;  %v5520_v63 = vld [vmem:[#allocation8 + $0x748] sm:$0xff]  ;;  %v5997_v1 = vld [vmem:[#allocation8 + $0x7e0] sm:$0xff] }
 0xe1d   :  { %v5524_v10 = vld [vmem:[#allocation8 + $0x768] sm:$0xff] }
 0xe1e   :  { %v10105_v20 = vpack.c.bf16 %v5524_v10, %v5520_v63  ;;  %v10247_v63 = vpack.c.bf16 %v5997_v1, %v5993_v24  ;;  %v6043_v1 = vld [vmem:[#allocation8 + $0x950] sm:$0xff] }
 0xe1f   :  { %10088 = vmatpush1.bf16.msra.mxu0 %v10087_v22  ;;  %10208 = vmatpush1.bf16.msra.mxu1 %v10207_v21  ;;  %v5523_v22 = vld [vmem:[#allocation8 + $0x760] sm:$0xff]  ;;  %v10225_v21 = vpack.c.bf16 %v5526_v6, %v5522_v58 }
 0xe20   :  { %10090 = vmatprep.subr.bf16.mxu0 %v10089_v27  ;;  %10210 = vmatprep.subr.bf16.mxu1 %v10209_v18  ;;  %v5988_v27 = vld [vmem:[#allocation8 + $0x798] sm:$0xff]  ;;  %v10107_v28 = vpack.c.bf16 %v5523_v22, %v5519_v17  ;;  %v6001_v58 = vld [vmem:[#allocation8 + $0x800] sm:$0xff]  ;;  %v6014_v17 = vld [vmem:[#allocation8 + $0x868] sm:$0xff] }
 0xe21   :  { %v5992_v18 = vld [vmem:[#allocation8 + $0x7b8] sm:$0xff]  ;;  %v6005_v6 = vld [vmem:[#allocation8 + $0x820] sm:$0xff]  ;;  %v6019_v22 = vld [vmem:[#allocation8 + $0x890] sm:$0xff] }
 0xe22   :  { %v10361_v30 = vpack.c.bf16 %v5992_v18, %v5988_v27  ;;  %v10251_v27 = vpack.c.bf16 %v6005_v6, %v6001_v58  ;;  %v6051_v6 = vld [vmem:[#allocation8 + $0x990] sm:$0xff] }
 0xe23   :  { %10092 = vmatpush1.bf16.msra.mxu0 %v10091_v33  ;;  %10212 = vmatpush1.bf16.msra.mxu1 %v10211_v34  ;;  %v6000_v33 = vld [vmem:[#allocation8 + $0x7f8] sm:$0xff]  ;;  %v5986_v34 = vld [vmem:[#allocation8 + $0x788] sm:$0xff] }
 0xe24   :  { %10094 = vmatprep.subr.bf16.mxu0 %v10093_v40  ;;  %10214 = vmatprep.subr.bf16.mxu1 %v10213_v41  ;;  %v10365_v40 = vpack.c.bf16 %v6000_v33, %v5996_v32  ;;  %v5995_v41 = vld [vmem:[#allocation8 + $0x7d0] sm:$0xff]  ;;  %v10241_v48 = vpack.c.bf16 %v5990_v37, %v5986_v34  ;;  %v10381_v32 = vpack.c.bf16 %v6032_v62, %v6028_v26  ;;  %v6040_v37 = vld [vmem:[#allocation8 + $0x938] sm:$0xff]  ;;  %v6045_v26 = vld [vmem:[#allocation8 + $0x960] sm:$0xff] }
 0xe25   :  { %v10367_v25 = vpack.c.bf16 %v5999_v42, %v5995_v41  ;;  %v6027_v33 = vld [vmem:[#allocation8 + $0x8d0] sm:$0xff]  ;;  %v6017_v42 = vld [vmem:[#allocation8 + $0x880] sm:$0xff]  ;;  %v6050_v62 = vld [vmem:[#allocation8 + $0x988] sm:$0xff] }
 0xe26   :  { %v6031_v34 = vld [vmem:[#allocation8 + $0x8f0] sm:$0xff] }
 0xe27   :  { %10096 = vmatpush1.bf16.msra.mxu0 %v10095_v52  ;;  %10216 = vmatpush1.bf16.msra.mxu1 %v10215_v55  ;;  %v5989_v52 = vld [vmem:[#allocation8 + $0x7a0] sm:$0xff]  ;;  %v5994_v55 = vld [vmem:[#allocation8 + $0x7c8] sm:$0xff] }
 0xe28   :  { %10098 = vmatprep.subr.bf16.mxu0 %v10097_v57  ;;  %10218 = vmatprep.subr.bf16.mxu1 %v10217_v45  ;;  %v6003_v57 = vld [vmem:[#allocation8 + $0x810] sm:$0xff]  ;;  %v10243_v54 = vpack.c.bf16 %v5989_v52, %v5985_v50 }
 0xe29   :  { %v6007_v45 = vld [vmem:[#allocation8 + $0x830] sm:$0xff] }
 0xe2a   :  { %v6035_v52 = vld [vmem:[#allocation8 + $0x910] sm:$0xff] }
 0xe2b   :  { %10100 = vmatpush1.bf16.msra.mxu0 %v10099_v23  ;;  %10220 = vmatpush1.bf16.msra.mxu1 %v10219_v59  ;;  %v6002_v23 = vld [vmem:[#allocation8 + $0x808] sm:$0xff]  ;;  %v10371_v59 = vpack.c.bf16 %v6007_v45, %v6003_v57  ;;  %v6025_v45 = vld [vmem:[#allocation8 + $0x8c0] sm:$0xff] }
 0xe2c   :  { %10102 = vmatprep.subr.bf16.mxu0 %v10101_v3  ;;  %10222 = vmatprep.subr.bf16.mxu1 %v10221_v13  ;;  %v6011_v3 = vld [vmem:[#allocation8 + $0x850] sm:$0xff]  ;;  %v10249_v10 = vpack.c.bf16 %v6006_v60, %v6002_v23  ;;  %v6056_v60 = vld [vmem:[#allocation8 + $0x9b8] sm:$0xff] }
 0xe2d   :  { %v6015_v13 = vld [vmem:[#allocation8 + $0x870] sm:$0xff] }
 0xe2e   :  { %v6047_v23 = vld [vmem:[#allocation8 + $0x970] sm:$0xff] }
 0xe2f   :  { %10104 = vmatpush1.bf16.msra.mxu0 %v10103_v15  ;;  %10224 = vmatpush1.bf16.msra.mxu1 %v10223_v16  ;;  %v6010_v15 = vld [vmem:[#allocation8 + $0x848] sm:$0xff]  ;;  %v10375_v16 = vpack.c.bf16 %v6015_v13, %v6011_v3  ;;  %v6033_v13 = vld [vmem:[#allocation8 + $0x900] sm:$0xff] }
 0xe30   :  { %10106 = vmatprep.subr.bf16.mxu0 %v10105_v20  ;;  %10226 = vmatprep.subr.bf16.mxu1 %v10225_v21  ;;  %v10377_v20 = vpack.c.bf16 %v6024_v0, %v6020_v9  ;;  %v6023_v21 = vld [vmem:[#allocation8 + $0x8b0] sm:$0xff]  ;;  %v10253_v18 = vpack.c.bf16 %v6014_v17, %v6010_v15  ;;  %v6037_v9 = vld [vmem:[#allocation8 + $0x920] sm:$0xff]  ;;  %v6042_v0 = vld [vmem:[#allocation8 + $0x948] sm:$0xff] }
 0xe31   :  { %v10379_v19 = vpack.c.bf16 %v6023_v21, %v6019_v22  ;;  %v6055_v15 = vld [vmem:[#allocation8 + $0x9b0] sm:$0xff]  ;;  %v6064_v17 = vld [vmem:[#allocation8 + $0x9f8] sm:$0xff]  ;;  %v6041_v21 = vld [vmem:[#allocation8 + $0x940] sm:$0xff] }
 0xe33   :  { %10108 = vmatpush1.bf16.msra.mxu0 %v10107_v28  ;;  %10228 = vmatpush1.bf16.msra.mxu1 %v10227_v29  ;;  %v6009_v28 = vld [vmem:[#allocation8 + $0x840] sm:$0xff] }
 0xe34   :  { %10231 = vmatprep.subr.msk.bf16.mxu0 %vm11765_vm5, %v12067_v11  ;;  %10362 = vmatprep.subr.bf16.mxu1 %v10361_v30  ;;  %v6013_v29 = vld [vmem:[#allocation8 + $0x860] sm:$0xff]  ;;  %v6018_v30 = vld [vmem:[#allocation8 + $0x888] sm:$0xff] }
 0xe35   :  { %v10257_v41 = vpack.c.bf16 %v6022_v31, %v6018_v30  ;;  %v6063_v30 = vld [vmem:[#allocation8 + $0x9f0] sm:$0xff]  ;;  %v6072_v31 = vld [vmem:[#allocation8 + $0xa38] sm:$0xff] }
 0xe36   :  { %5666 = vmatmul.mubr.f32.vlgmr.msra.gmra.mrb[26].mxu0 %v12088_v49  ;;  %5808 = vmatmul.mubr.f32.vlgmr.msra.gmra.mrb[34].mxu1 %v12088_v49  ;;  %v5998_v49 = vld [vmem:[#allocation8 + $0x7e8] sm:$0xff] }
 0xe37   :  { %10234 = vmatpush1.bf16.msk.msra.mxu0 %vm11765_vm5, %v12064_v14  ;;  %5907 = vmatprep.mubr.f32.mxu0 %v11488_v53  ;;  %v10245_v8 = vpack.c.bf16 %v5998_v49, %v5994_v55  ;;  %v6039_v55 = vld [vmem:[#allocation8 + $0x930] sm:$0xff]  ;;  %v6048_v49 = vld [vmem:[#allocation8 + $0x978] sm:$0xff] }
 0xe38   :  { %10237 = vmatprep.subr.msk.bf16.mxu0 %vm11765_vm5, %v12069_v2  ;;  %10364 = vmatpush1.bf16.msra.mxu1 %v10363_v35  ;;  %v6036_v35 = vld [vmem:[#allocation8 + $0x918] sm:$0xff] }
 0xe39   :  { %10366 = vmatprep.subr.bf16.mxu1 %v10365_v40  ;;  %v10255_v40 = vpack.c.bf16 %v6013_v29, %v6009_v28  ;;  %v10385_v50 = vpack.c.bf16 %v6040_v37, %v6036_v35  ;;  %v6059_v29 = vld [vmem:[#allocation8 + $0x9d0] sm:$0xff]  ;;  %v6053_v35 = vld [vmem:[#allocation8 + $0x9a0] sm:$0xff]  ;;  %v6058_v37 = vld [vmem:[#allocation8 + $0x9c8] sm:$0xff] }
 0xe3a   :  { %8241 = vmatmul.mubr.msk.f32.vlgmr.msra.gmra.mrb[28].mxu0 %vm1140_vm6, %v5839_v47 }
 0xe3b   :  { %10240 = vmatpush1.bf16.msk.msra.mxu0 %vm11765_vm5, %v12074_v12  ;;  %5978 = vmatprep.mubr.f32.mxu0 %v11488_v53 }
 0xe3c   :  { %10242 = vmatprep.subr.bf16.mxu0 %v10241_v48  ;;  %10368 = vmatpush1.bf16.msra.mxu1 %v10367_v25  ;;  %v6030_v48 = vld [vmem:[#allocation8 + $0x8e8] sm:$0xff]  ;;  %v6044_v25 = vld [vmem:[#allocation8 + $0x958] sm:$0xff] }
 0xe3d   :  { %10370 = vmatprep.subr.bf16.mxu1 %v10369_v56  ;;  %v10259_v56 = vpack.c.bf16 %v6021_v44, %v6017_v42  ;;  %v10261_v57 = vpack.c.bf16 %v6030_v48, %v6026_v46  ;;  %v10389_v24 = vpack.c.bf16 %v6048_v49, %v6044_v25  ;;  %v6067_v44 = vld [vmem:[#allocation8 + $0xa10] sm:$0xff]  ;;  %v6080_v48 = vld [vmem:[#allocation8 + $0xa78] sm:$0xff]  ;;  %v6061_v25 = vld [vmem:[#allocation8 + $0x9e0] sm:$0xff] }
 0xe3e   :  { %8244 = vmatmul.mubr.msk.f32.vlgmr.msra.gmra.mrb[30].mxu0 %vm1140_vm6, %v5839_v47  ;;  %v10383_v47 = vpack.c.bf16 %v6031_v34, %v6027_v33  ;;  %v6049_v34 = vld [vmem:[#allocation8 + $0x980] sm:$0xff]  ;;  %v6071_v46 = vld [vmem:[#allocation8 + $0xa30] sm:$0xff]  ;;  %v6066_v49 = vld [vmem:[#allocation8 + $0xa08] sm:$0xff] }
 0xe3f   :  { %10244 = vmatpush1.bf16.msra.mxu0 %v10243_v54  ;;  %v10387_v54 = vpack.c.bf16 %v6039_v55, %v6035_v52  ;;  %v6057_v55 = vld [vmem:[#allocation8 + $0x9c0] sm:$0xff] }
 0xe40   :  { %10246 = vmatprep.subr.bf16.mxu0 %v10245_v8  ;;  %10372 = vmatpush1.bf16.msra.mxu1 %v10371_v59  ;;  %v6038_v8 = vld [vmem:[#allocation8 + $0x928] sm:$0xff]  ;;  %v6052_v59 = vld [vmem:[#allocation8 + $0x998] sm:$0xff] }
 0xe41   :  { %10374 = vmatprep.subr.bf16.mxu1 %v10373_v7  ;;  %v10263_v7 = vpack.c.bf16 %v6029_v4, %v6025_v45  ;;  %v10265_v3 = vpack.c.bf16 %v6038_v8, %v6034_v5  ;;  %v10393_v58 = vpack.c.bf16 %v6056_v60, %v6052_v59  ;;  %v6075_v4 = vld [vmem:[#allocation8 + $0xa50] sm:$0xff]  ;;  %v6088_v8 = vld [vmem:[#allocation8 + $0xab8] sm:$0xff]  ;;  %v6069_v59 = vld [vmem:[#allocation8 + $0xa20] sm:$0xff] }
 0xe42   :  { %v6079_v5 = vld [vmem:[#allocation8 + $0xa70] sm:$0xff]  ;;  %v6074_v60 = vld [vmem:[#allocation8 + $0xa48] sm:$0xff] }
 0xe43   :  { %10248 = vmatpush1.bf16.msra.mxu0 %v10247_v63  ;;  %v10391_v63 = vpack.c.bf16 %v6047_v23, %v6043_v1  ;;  %v6065_v23 = vld [vmem:[#allocation8 + $0xa00] sm:$0xff] }
 0xe44   :  { %10250 = vmatprep.subr.bf16.mxu0 %v10249_v10  ;;  %10376 = vmatpush1.bf16.msra.mxu1 %v10375_v16  ;;  %v6046_v10 = vld [vmem:[#allocation8 + $0x968] sm:$0xff]  ;;  %v6060_v16 = vld [vmem:[#allocation8 + $0x9d8] sm:$0xff] }
 0xe45   :  { %10378 = vmatprep.subr.bf16.mxu1 %v10377_v20  ;;  %v10267_v20 = vpack.c.bf16 %v6037_v9, %v6033_v13  ;;  %v10269_v22 = vpack.c.bf16 %v6046_v10, %v6042_v0  ;;  %v10397_v28 = vpack.c.bf16 %v6064_v17, %v6060_v16  ;;  %v6083_v9 = vld [vmem:[#allocation8 + $0xa90] sm:$0xff]  ;;  %v6096_v10 = vld [vmem:[#allocation8 + $0xaf8] sm:$0xff]  ;;  %v6077_v16 = vld [vmem:[#allocation8 + $0xa60] sm:$0xff] }
 0xe46   :  { %v6087_v0 = vld [vmem:[#allocation8 + $0xab0] sm:$0xff]  ;;  %v6082_v17 = vld [vmem:[#allocation8 + $0xa88] sm:$0xff] }
 0xe47   :  { %10252 = vmatpush1.bf16.msra.mxu0 %v10251_v27  ;;  %v10395_v27 = vpack.c.bf16 %v6055_v15, %v6051_v6  ;;  %v6073_v15 = vld [vmem:[#allocation8 + $0xa40] sm:$0xff] }
 0xe48   :  { %10254 = vmatprep.subr.bf16.mxu0 %v10253_v18  ;;  %10380 = vmatpush1.bf16.msra.mxu1 %v10379_v19  ;;  %v6054_v18 = vld [vmem:[#allocation8 + $0x9a8] sm:$0xff]  ;;  %v6068_v19 = vld [vmem:[#allocation8 + $0xa18] sm:$0xff] }
 0xe49   :  { %10382 = vmatprep.subr.bf16.mxu1 %v10381_v32  ;;  %v10271_v32 = vpack.c.bf16 %v6045_v26, %v6041_v21  ;;  %v10273_v33 = vpack.c.bf16 %v6054_v18, %v6050_v62  ;;  %v10401_v42 = vpack.c.bf16 %v6072_v31, %v6068_v19  ;;  %v6091_v26 = vld [vmem:[#allocation8 + $0xad0] sm:$0xff]  ;;  %v6104_v18 = vld [vmem:[#allocation8 + $0xb38] sm:$0xff]  ;;  %v6085_v19 = vld [vmem:[#allocation8 + $0xaa0] sm:$0xff] }
 0xe4a   :  { %v6095_v62 = vld [vmem:[#allocation8 + $0xaf0] sm:$0xff]  ;;  %v6090_v31 = vld [vmem:[#allocation8 + $0xac8] sm:$0xff] }
 0xe4b   :  { %10256 = vmatpush1.bf16.msra.mxu0 %v10255_v40  ;;  %v10399_v40 = vpack.c.bf16 %v6063_v30, %v6059_v29  ;;  %v6081_v30 = vld [vmem:[#allocation8 + $0xa80] sm:$0xff] }
 0xe4c   :  { %10258 = vmatprep.subr.bf16.mxu0 %v10257_v41  ;;  %10384 = vmatpush1.bf16.msra.mxu1 %v10383_v47  ;;  %v6062_v41 = vld [vmem:[#allocation8 + $0x9e8] sm:$0xff]  ;;  %v6076_v47 = vld [vmem:[#allocation8 + $0xa58] sm:$0xff] }
 0xe4d   :  { %10386 = vmatprep.subr.bf16.mxu1 %v10385_v50  ;;  %v10275_v50 = vpack.c.bf16 %v6053_v35, %v6049_v34  ;;  %v10277_v52 = vpack.c.bf16 %v6062_v41, %v6058_v37  ;;  %v10405_v45 = vpack.c.bf16 %v6080_v48, %v6076_v47  ;;  %v6099_v35 = vld [vmem:[#allocation8 + $0xb10] sm:$0xff]  ;;  %v6098_v47 = vld [vmem:[#allocation8 + $0xb08] sm:$0xff] }
 0xe4e   :  { %v6103_v37 = vld [vmem:[#allocation8 + $0xb30] sm:$0xff]  ;;  %v6102_v48 = vld [vmem:[#allocation8 + $0xb28] sm:$0xff] }
 0xe4f   :  { %10260 = vmatpush1.bf16.msra.mxu0 %v10259_v56  ;;  %v10403_v56 = vpack.c.bf16 %v6071_v46, %v6067_v44  ;;  %v6093_v44 = vld [vmem:[#allocation8 + $0xae0] sm:$0xff]  ;;  %v10419_v46 = vpack.c.bf16 %v6103_v37, %v6099_v35  ;;  %v6136_v35 = vld [vmem:[#allocation8 + $0xc38] sm:$0xff] }
 0xe50   :  { %10262 = vmatprep.subr.bf16.mxu0 %v10261_v57  ;;  %10388 = vmatpush1.bf16.msra.mxu1 %v10387_v54  ;;  %v6070_v57 = vld [vmem:[#allocation8 + $0xa28] sm:$0xff]  ;;  %v6084_v54 = vld [vmem:[#allocation8 + $0xa98] sm:$0xff] }
 0xe51   :  { %10390 = vmatprep.subr.bf16.mxu1 %v10389_v24  ;;  %v10279_v24 = vpack.c.bf16 %v6061_v25, %v6057_v55  ;;  %v10281_v1 = vpack.c.bf16 %v6070_v57, %v6066_v49  ;;  %v10409_v13 = vpack.c.bf16 %v6088_v8, %v6084_v54  ;;  %v6097_v55 = vld [vmem:[#allocation8 + $0xb00] sm:$0xff]  ;;  %v6106_v49 = vld [vmem:[#allocation8 + $0xb48] sm:$0xff]  ;;  %v6108_v8 = vld [vmem:[#allocation8 + $0xb58] sm:$0xff] }
 0xe52   :  { %v6101_v25 = vld [vmem:[#allocation8 + $0xb20] sm:$0xff] }
 0xe53   :  { %10264 = vmatpush1.bf16.msra.mxu0 %v10263_v7  ;;  %v10407_v7 = vpack.c.bf16 %v6079_v5, %v6075_v4  ;;  %v10299_v57 = vpack.c.bf16 %v6101_v25, %v6097_v55  ;;  %v6105_v4 = vld [vmem:[#allocation8 + $0xb40] sm:$0xff]  ;;  %v6142_v25 = vld [vmem:[#allocation8 + $0xc68] sm:$0xff] }
 0xe54   :  { %10266 = vmatprep.subr.bf16.mxu0 %v10265_v3  ;;  %10392 = vmatpush1.bf16.msra.mxu1 %v10391_v63  ;;  %v6078_v3 = vld [vmem:[#allocation8 + $0xa68] sm:$0xff]  ;;  %v6092_v63 = vld [vmem:[#allocation8 + $0xad8] sm:$0xff]  ;;  %v6109_v5 = vld [vmem:[#allocation8 + $0xb60] sm:$0xff] }
 0xe55   :  { %10394 = vmatprep.subr.bf16.mxu1 %v10393_v58  ;;  %v10283_v58 = vpack.c.bf16 %v6069_v59, %v6065_v23  ;;  %v10285_v6 = vpack.c.bf16 %v6078_v3, %v6074_v60  ;;  %v10413_v21 = vpack.c.bf16 %v6096_v10, %v6092_v63  ;;  %v10303_v54 = vpack.c.bf16 %v6109_v5, %v6105_v4  ;;  %v6107_v23 = vld [vmem:[#allocation8 + $0xb50] sm:$0xff]  ;;  %v6118_v3 = vld [vmem:[#allocation8 + $0xba8] sm:$0xff]  ;;  %v6113_v10 = vld [vmem:[#allocation8 + $0xb80] sm:$0xff] }
 0xe56   :  { %v6111_v59 = vld [vmem:[#allocation8 + $0xb70] sm:$0xff]  ;;  %v6137_v4 = vld [vmem:[#allocation8 + $0xc40] sm:$0xff] }
 0xe57   :  { %10268 = vmatpush1.bf16.msra.mxu0 %v10267_v20  ;;  %v10411_v20 = vpack.c.bf16 %v6087_v0, %v6083_v9  ;;  %v10423_v60 = vpack.c.bf16 %v6111_v59, %v6107_v23  ;;  %v6116_v9 = vld [vmem:[#allocation8 + $0xb98] sm:$0xff]  ;;  %v6141_v5 = vld [vmem:[#allocation8 + $0xc60] sm:$0xff]  ;;  %v6143_v23 = vld [vmem:[#allocation8 + $0xc70] sm:$0xff] }
 0xe58   :  { %10270 = vmatprep.subr.bf16.mxu0 %v10269_v22  ;;  %10396 = vmatpush1.bf16.msra.mxu1 %v10395_v27  ;;  %v6086_v22 = vld [vmem:[#allocation8 + $0xaa8] sm:$0xff]  ;;  %v6100_v27 = vld [vmem:[#allocation8 + $0xb18] sm:$0xff] }
 0xe59   :  { %10398 = vmatprep.subr.bf16.mxu1 %v10397_v28  ;;  %v10287_v28 = vpack.c.bf16 %v6077_v16, %v6073_v15  ;;  %v10289_v29 = vpack.c.bf16 %v6086_v22, %v6082_v17  ;;  %v10417_v34 = vpack.c.bf16 %v6104_v18, %v6100_v27  ;;  %v6120_v0 = vld [vmem:[#allocation8 + $0xbb8] sm:$0xff]  ;;  %v6115_v15 = vld [vmem:[#allocation8 + $0xb90] sm:$0xff]  ;;  %v6126_v17 = vld [vmem:[#allocation8 + $0xbe8] sm:$0xff] }
 0xe5a   :  { %v10425_v63 = vpack.c.bf16 %v6120_v0, %v6116_v9  ;;  %v6119_v16 = vld [vmem:[#allocation8 + $0xbb0] sm:$0xff]  ;;  %v6128_v22 = vld [vmem:[#allocation8 + $0xbf8] sm:$0xff]  ;;  %v6121_v27 = vld [vmem:[#allocation8 + $0xbc0] sm:$0xff] }
 0xe5b   :  { %10272 = vmatpush1.bf16.msra.mxu0 %v10271_v32  ;;  %v10415_v32 = vpack.c.bf16 %v6095_v62, %v6091_v26  ;;  %v10427_v62 = vpack.c.bf16 %v6119_v16, %v6115_v15  ;;  %v6125_v18 = vld [vmem:[#allocation8 + $0xbe0] sm:$0xff]  ;;  %v6150_v59 = vld [vmem:[#allocation8 + $0xca8] sm:$0xff]  ;;  %v6151_v15 = vld [vmem:[#allocation8 + $0xcb0] sm:$0xff] }
 0xe5c   :  { %10274 = vmatprep.subr.bf16.mxu0 %v10273_v33  ;;  %10400 = vmatpush1.bf16.msra.mxu1 %v10399_v40  ;;  %v6094_v33 = vld [vmem:[#allocation8 + $0xae8] sm:$0xff]  ;;  %v10291_v40 = vpack.c.bf16 %v6085_v19, %v6081_v30  ;;  %v10311_v37 = vpack.c.bf16 %v6125_v18, %v6121_v27  ;;  %v6145_v9 = vld [vmem:[#allocation8 + $0xc80] sm:$0xff] }
 0xe5d   :  { %10402 = vmatprep.subr.bf16.mxu1 %v10401_v42  ;;  %v10293_v41 = vpack.c.bf16 %v6094_v33, %v6090_v31  ;;  %v6089_v42 = vld [vmem:[#allocation8 + $0xac0] sm:$0xff]  ;;  %v6130_v19 = vld [vmem:[#allocation8 + $0xc08] sm:$0xff]  ;;  %v6123_v31 = vld [vmem:[#allocation8 + $0xbd0] sm:$0xff] }
 0xe5e   :  { %v6134_v33 = vld [vmem:[#allocation8 + $0xc28] sm:$0xff]  ;;  %v6149_v0 = vld [vmem:[#allocation8 + $0xca0] sm:$0xff] }
 0xe5f   :  { %10276 = vmatpush1.bf16.msra.mxu0 %v10275_v50  ;;  %v10295_v50 = vpack.c.bf16 %v6093_v44, %v6089_v42  ;;  %v6133_v42 = vld [vmem:[#allocation8 + $0xc20] sm:$0xff]  ;;  %v6158_v16 = vld [vmem:[#allocation8 + $0xce8] sm:$0xff] }
 0xe60   :  { %10278 = vmatprep.subr.bf16.mxu0 %v10277_v52  ;;  %10404 = vmatpush1.bf16.msra.mxu1 %v10403_v56  ;;  %v10297_v52 = vpack.c.bf16 %v6102_v48, %v6098_v47  ;;  %v6110_v56 = vld [vmem:[#allocation8 + $0xb68] sm:$0xff] }
 0xe61   :  { %10406 = vmatprep.subr.bf16.mxu1 %v10405_v45  ;;  %v10301_v45 = vpack.c.bf16 %v6110_v56, %v6106_v49  ;;  %v6138_v48 = vld [vmem:[#allocation8 + $0xc48] sm:$0xff]  ;;  %v6140_v49 = vld [vmem:[#allocation8 + $0xc58] sm:$0xff] }
 0xe62   :  { %v6144_v56 = vld [vmem:[#allocation8 + $0xc78] sm:$0xff] }
 0xe63   :  { %10280 = vmatpush1.bf16.msra.mxu0 %v10279_v24  ;;  %v6112_v24 = vld [vmem:[#allocation8 + $0xb78] sm:$0xff] }
 0xe64   :  { %10282 = vmatprep.subr.bf16.mxu0 %v10281_v1  ;;  %10408 = vmatpush1.bf16.msra.mxu1 %v10407_v7  ;;  %v10421_v1 = vpack.c.bf16 %v6112_v24, %v6108_v8  ;;  %v6114_v7 = vld [vmem:[#allocation8 + $0xb88] sm:$0xff]  ;;  %v10437_v8 = vpack.c.bf16 %v6144_v56, %v6140_v49  ;;  %v6169_v49 = vld [vmem:[#allocation8 + $0xd40] sm:$0xff] }
 0xe65   :  { %10410 = vmatprep.subr.bf16.mxu1 %v10409_v13  ;;  %v10305_v13 = vpack.c.bf16 %v6118_v3, %v6114_v7  ;;  %v6146_v24 = vld [vmem:[#allocation8 + $0xc88] sm:$0xff]  ;;  %v6152_v7 = vld [vmem:[#allocation8 + $0xcb8] sm:$0xff]  ;;  %v10319_v3 = vpack.c.bf16 %v6141_v5, %v6137_v4  ;;  %v6173_v56 = vld [vmem:[#allocation8 + $0xd60] sm:$0xff] }
 0xe66   :  { %v6178_v4 = vld [vmem:[#allocation8 + $0xd88] sm:$0xff]  ;;  %v6171_v5 = vld [vmem:[#allocation8 + $0xd50] sm:$0xff] }
 0xe67   :  { %10284 = vmatpush1.bf16.msra.mxu0 %v10283_v58  ;;  %v6117_v58 = vld [vmem:[#allocation8 + $0xba0] sm:$0xff] }
 0xe68   :  { %10286 = vmatprep.subr.bf16.mxu0 %v10285_v6  ;;  %10412 = vmatpush1.bf16.msra.mxu1 %v10411_v20  ;;  %v6122_v6 = vld [vmem:[#allocation8 + $0xbc8] sm:$0xff]  ;;  %v6124_v20 = vld [vmem:[#allocation8 + $0xbd8] sm:$0xff]  ;;  %v10307_v26 = vpack.c.bf16 %v6117_v58, %v6113_v10 }
 0xe69   :  { %10414 = vmatprep.subr.bf16.mxu1 %v10413_v21  ;;  %v10429_v30 = vpack.c.bf16 %v6128_v22, %v6124_v20  ;;  %v6154_v58 = vld [vmem:[#allocation8 + $0xcc8] sm:$0xff]  ;;  %v6160_v20 = vld [vmem:[#allocation8 + $0xcf8] sm:$0xff]  ;;  %v10323_v22 = vpack.c.bf16 %v6149_v0, %v6145_v9  ;;  %v6179_v0 = vld [vmem:[#allocation8 + $0xd90] sm:$0xff] }
 0xe6a   :  { %v10325_v27 = vpack.c.bf16 %v6158_v16, %v6154_v58  ;;  %v6186_v9 = vld [vmem:[#allocation8 + $0xdc8] sm:$0xff]  ;;  %v6188_v58 = vld [vmem:[#allocation8 + $0xdd8] sm:$0xff] }
 0xe6b   :  { %10288 = vmatpush1.bf16.msra.mxu0 %v10287_v28 }
 0xe6c   :  { %10290 = vmatprep.subr.bf16.mxu0 %v10289_v29  ;;  %10416 = vmatpush1.bf16.msra.mxu1 %v10415_v32  ;;  %v10309_v29 = vpack.c.bf16 %v6126_v17, %v6122_v6  ;;  %v6127_v32 = vld [vmem:[#allocation8 + $0xbf0] sm:$0xff]  ;;  %v6156_v17 = vld [vmem:[#allocation8 + $0xcd8] sm:$0xff] }
 0xe6d   :  { %10418 = vmatprep.subr.bf16.mxu1 %v10417_v34  ;;  %v6132_v34 = vld [vmem:[#allocation8 + $0xc18] sm:$0xff]  ;;  %v6147_v6 = vld [vmem:[#allocation8 + $0xc90] sm:$0xff]  ;;  %v10445_v18 = vpack.c.bf16 %v6160_v20, %v6156_v17  ;;  %v6185_v17 = vld [vmem:[#allocation8 + $0xdc0] sm:$0xff] }
 0xe6e   :  { %v10433_v47 = vpack.c.bf16 %v6136_v35, %v6132_v34  ;;  %v6161_v35 = vld [vmem:[#allocation8 + $0xd00] sm:$0xff] }
 0xe6f   :  { %10292 = vmatpush1.bf16.msra.mxu0 %v10291_v40  ;;  %v10431_v40 = vpack.c.bf16 %v6127_v32, %v6123_v31  ;;  %v6164_v31 = vld [vmem:[#allocation8 + $0xd18] sm:$0xff]  ;;  %v6189_v20 = vld [vmem:[#allocation8 + $0xde0] sm:$0xff] }
 0xe70   :  { %10294 = vmatprep.subr.bf16.mxu0 %v10293_v41  ;;  %10420 = vmatpush1.bf16.msra.mxu1 %v10419_v46  ;;  %v6129_v41 = vld [vmem:[#allocation8 + $0xc00] sm:$0xff]  ;;  %v10313_v46 = vpack.c.bf16 %v6134_v33, %v6130_v19  ;;  %v6166_v19 = vld [vmem:[#allocation8 + $0xd28] sm:$0xff]  ;;  %v6168_v32 = vld [vmem:[#allocation8 + $0xd38] sm:$0xff] }
 0xe71   :  { %10422 = vmatprep.subr.bf16.mxu1 %v10421_v1  ;;  %v6139_v1 = vld [vmem:[#allocation8 + $0xc50] sm:$0xff] }
 0xe73   :  { %10296 = vmatpush1.bf16.msra.mxu0 %v10295_v50  ;;  %v6131_v50 = vld [vmem:[#allocation8 + $0xc10] sm:$0xff] }
 0xe74   :  { %10298 = vmatprep.subr.bf16.mxu0 %v10297_v52  ;;  %10424 = vmatpush1.bf16.msra.mxu1 %v10423_v60  ;;  %v6135_v52 = vld [vmem:[#allocation8 + $0xc30] sm:$0xff]  ;;  %v6148_v60 = vld [vmem:[#allocation8 + $0xc98] sm:$0xff] }
 0xe75   :  { %10426 = vmatprep.subr.bf16.mxu1 %v10425_v63  ;;  %v10321_v63 = vpack.c.bf16 %v6150_v59, %v6146_v24  ;;  %v10441_v10 = vpack.c.bf16 %v6152_v7, %v6148_v60  ;;  %v6180_v24 = vld [vmem:[#allocation8 + $0xd98] sm:$0xff]  ;;  %v6177_v60 = vld [vmem:[#allocation8 + $0xd80] sm:$0xff] }
 0xe76   :  { %v6181_v7 = vld [vmem:[#allocation8 + $0xda0] sm:$0xff] }
 0xe77   :  { %10300 = vmatpush1.bf16.msra.mxu0 %v10299_v57  ;;  %v10315_v57 = vpack.c.bf16 %v6133_v42, %v6129_v41  ;;  %v10449_v41 = vpack.c.bf16 %v6168_v32, %v6164_v31  ;;  %v6170_v42 = vld [vmem:[#allocation8 + $0xd48] sm:$0xff]  ;;  %v6193_v31 = vld [vmem:[#allocation8 + $0xe00] sm:$0xff] }
 0xe78   :  { %10302 = vmatprep.subr.bf16.mxu0 %v10301_v45  ;;  %v10435_v45 = vpack.c.bf16 %v6135_v52, %v6131_v50  ;;  %v6172_v50 = vld [vmem:[#allocation8 + $0xd58] sm:$0xff]  ;;  %v6197_v32 = vld [vmem:[#allocation8 + $0xe20] sm:$0xff] }
 0xe79   :  { %v6176_v52 = vld [vmem:[#allocation8 + $0xd78] sm:$0xff] }
 0xe7b   :  { %10304 = vmatpush1.bf16.msra.mxu0 %v10303_v54  ;;  %v10317_v54 = vpack.c.bf16 %v6142_v25, %v6138_v48  ;;  %v6174_v48 = vld [vmem:[#allocation8 + $0xd68] sm:$0xff] }
 0xe7c   :  { %10306 = vmatprep.subr.bf16.mxu0 %v10305_v13  ;;  %v10439_v13 = vpack.c.bf16 %v6143_v23, %v6139_v1  ;;  %v6184_v1 = vld [vmem:[#allocation8 + $0xdb8] sm:$0xff]  ;;  %v10335_v23 = vpack.c.bf16 %v6173_v56, %v6169_v49  ;;  %v6210_v49 = vld [vmem:[#allocation8 + $0xe88] sm:$0xff]  ;;  %v6203_v56 = vld [vmem:[#allocation8 + $0xe50] sm:$0xff] }
 0xf0d   :  { %v5909_v21 = vpop.f32.mrb[28].mxu0 }
 0xf0e   :  { %v5911_v28 = vpop.f32.mrb[29].mxu0 }
 0xf0f   :  { %6292 = vmatprep.mubr.f32.mxu0 %v5911_v28  ;;  %6434 = vmatprep.mubr.f32.mxu1 %v5911_v28  ;;  %v6162_v28 = vld [vmem:[#allocation8 + $0xd08] sm:$0xff] }
 0xf10   :  { %6293 = vmatmul.mubr.f32.vlgmr.msra.gmra.mrb[26].mxu0 %v5909_v21  ;;  %6435 = vmatmul.mubr.f32.vlgmr.msra.gmra.mrb[34].mxu1 %v5909_v21  ;;  %v10443_v21 = vpack.c.bf16 %v6151_v15, %v6147_v6  ;;  %v6192_v6 = vld [vmem:[#allocation8 + $0xdf8] sm:$0xff]  ;;  %v10339_v15 = vpack.c.bf16 %v6181_v7, %v6177_v60  ;;  %v6218_v60 = vld [vmem:[#allocation8 + $0xec8] sm:$0xff]  ;;  %v6211_v7 = vld [vmem:[#allocation8 + $0xe90] sm:$0xff] }
 0xf11   :  { %10308 = vmatpush1.bf16.msra.mxu0 %v10307_v26  ;;  %10428 = vmatpush1.bf16.msra.mxu1 %v10427_v62  ;;  %v12110_v44 = vpop.f32.mrb[30].mxu0  ;;  %v6153_v26 = vld [vmem:[#allocation8 + $0xcc0] sm:$0xff] }
 0xf12   :  { %10310 = vmatprep.subr.bf16.mxu0 %v10309_v29  ;;  %10430 = vmatprep.subr.bf16.mxu1 %v10429_v30  ;;  %v5982_v55 = vpop.f32.mrb[31].mxu0  ;;  %v6157_v62 = vld [vmem:[#allocation8 + $0xce0] sm:$0xff]  ;;  %v6155_v29 = vld [vmem:[#allocation8 + $0xcd0] sm:$0xff] }
 0xf13   :  { %8245 = vmatprep.mubr.msk.f32.mxu0 %vm1078_vm2, %v5982_v55  ;;  %8246 = vmatprep.mubr.msk.f32.mxu1 %vm1078_vm2, %v5982_v55  ;;  %v6159_v30 = vld [vmem:[#allocation8 + $0xcf0] sm:$0xff]  ;;  %v10327_v33 = vpack.c.bf16 %v6157_v62, %v6153_v26  ;;  %v6194_v26 = vld [vmem:[#allocation8 + $0xe08] sm:$0xff] }
 0xf14   :  { %v10447_v34 = vpack.c.bf16 %v6159_v30, %v6155_v29  ;;  %v6187_v62 = vld [vmem:[#allocation8 + $0xdd0] sm:$0xff]  ;;  %v6200_v29 = vld [vmem:[#allocation8 + $0xe38] sm:$0xff]  ;;  %v10343_v30 = vpack.c.bf16 %v6189_v20, %v6185_v17 }
 0xf15   :  { %10312 = vmatpush1.bf16.msra.mxu0 %v10311_v37  ;;  %10432 = vmatpush1.bf16.msra.mxu1 %v10431_v40  ;;  %v6165_v37 = vld [vmem:[#allocation8 + $0xd20] sm:$0xff]  ;;  %v10329_v40 = vpack.c.bf16 %v6166_v19, %v6162_v28  ;;  %v6196_v28 = vld [vmem:[#allocation8 + $0xe18] sm:$0xff]  ;;  %v6219_v17 = vld [vmem:[#allocation8 + $0xed0] sm:$0xff] }
 0xf16   :  { %10314 = vmatprep.subr.bf16.mxu0 %v10313_v46  ;;  %10434 = vmatprep.subr.bf16.mxu1 %v10433_v47  ;;  %v6163_v46 = vld [vmem:[#allocation8 + $0xd10] sm:$0xff]  ;;  %v10331_v55 = vpack.c.bf16 %v6165_v37, %v6161_v35  ;;  %v6202_v35 = vld [vmem:[#allocation8 + $0xe48] sm:$0xff] }
 0xf17   :  { %v6167_v47 = vld [vmem:[#allocation8 + $0xd30] sm:$0xff] }
 0xf18   :  { %v10451_v25 = vpack.c.bf16 %v6167_v47, %v6163_v46  ;;  %v6195_v37 = vld [vmem:[#allocation8 + $0xe10] sm:$0xff]  ;;  %v6208_v46 = vld [vmem:[#allocation8 + $0xe78] sm:$0xff]  ;;  %v10347_v47 = vpack.c.bf16 %v6197_v32, %v6193_v31  ;;  %v6667_v32 = vld [vmem:[#allocation8 + $0xf28] sm:$0xff] }
 0xf19   :  { %10316 = vmatpush1.bf16.msra.mxu0 %v10315_v57  ;;  %10436 = vmatpush1.bf16.msra.mxu1 %v10435_v45  ;;  %v10333_v57 = vpack.c.bf16 %v6174_v48, %v6170_v42  ;;  %v10453_v45 = vpack.c.bf16 %v6176_v52, %v6172_v50  ;;  %v6204_v42 = vld [vmem:[#allocation8 + $0xe58] sm:$0xff]  ;;  %v6201_v50 = vld [vmem:[#allocation8 + $0xe40] sm:$0xff]  ;;  %v6223_v20 = vld [vmem:[#allocation8 + $0xef0] sm:$0xff] }
 0xf1a   :  { %10318 = vmatprep.subr.bf16.mxu0 %v10317_v54  ;;  %10438 = vmatprep.subr.bf16.mxu1 %v10437_v8  ;;  %v6175_v54 = vld [vmem:[#allocation8 + $0xd70] sm:$0xff]  ;;  %v6182_v8 = vld [vmem:[#allocation8 + $0xda8] sm:$0xff]  ;;  %v6205_v52 = vld [vmem:[#allocation8 + $0xe60] sm:$0xff] }
 0xf1b   :  { %v10455_v59 = vpack.c.bf16 %v6175_v54, %v6171_v5  ;;  %v6216_v5 = vld [vmem:[#allocation8 + $0xeb8] sm:$0xff]  ;;  %v10351_v54 = vpack.c.bf16 %v6205_v52, %v6201_v50  ;;  %v6680_v52 = vld [vmem:[#allocation8 + $0xf90] sm:$0xff] }
 0xf1d   :  { %10320 = vmatpush1.bf16.msra.mxu0 %v10319_v3  ;;  %10440 = vmatpush1.bf16.msra.mxu1 %v10439_v13  ;;  %v10337_v3 = vpack.c.bf16 %v6182_v8, %v6178_v4  ;;  %v10457_v13 = vpack.c.bf16 %v6184_v1, %v6180_v24  ;;  %v6212_v4 = vld [vmem:[#allocation8 + $0xe98] sm:$0xff]  ;;  %v6209_v24 = vld [vmem:[#allocation8 + $0xe80] sm:$0xff] }
 0xf1e   :  { %10322 = vmatprep.subr.bf16.mxu0 %v10321_v63  ;;  %10442 = vmatprep.subr.bf16.mxu1 %v10441_v10  ;;  %v6183_v63 = vld [vmem:[#allocation8 + $0xdb0] sm:$0xff]  ;;  %v6190_v10 = vld [vmem:[#allocation8 + $0xde8] sm:$0xff]  ;;  %v6213_v1 = vld [vmem:[#allocation8 + $0xea0] sm:$0xff] }
 0xf1f   :  { %v10459_v16 = vpack.c.bf16 %v6183_v63, %v6179_v0  ;;  %v6224_v0 = vld [vmem:[#allocation8 + $0xef8] sm:$0xff]  ;;  %v10355_v63 = vpack.c.bf16 %v6213_v1, %v6209_v24  ;;  %v6692_v24 = vld [vmem:[#allocation8 + $0xff0] sm:$0xff] }
 0xf20   :  { %v6697_v1 = vld [vmem:[#allocation8 + $0x1018] sm:$0xff] }
 0xf21   :  { %10324 = vmatpush1.bf16.msra.mxu0 %v10323_v22  ;;  %10444 = vmatpush1.bf16.msra.mxu1 %v10443_v21  ;;  %v10341_v22 = vpack.c.bf16 %v6190_v10, %v6186_v9  ;;  %v10461_v21 = vpack.c.bf16 %v6192_v6, %v6188_v58  ;;  %v6220_v9 = vld [vmem:[#allocation8 + $0xed8] sm:$0xff]  ;;  %v6217_v58 = vld [vmem:[#allocation8 + $0xec0] sm:$0xff] }
 0xf22   :  { %10326 = vmatprep.subr.bf16.mxu0 %v10325_v27  ;;  %10446 = vmatprep.subr.bf16.mxu1 %v10445_v18  ;;  %v6191_v27 = vld [vmem:[#allocation8 + $0xdf0] sm:$0xff]  ;;  %v6198_v18 = vld [vmem:[#allocation8 + $0xe28] sm:$0xff] }
 0xf23   :  { %v10463_v19 = vpack.c.bf16 %v6191_v27, %v6187_v62  ;;  %v10479_v62 = vpack.c.bf16 %v6223_v20, %v6219_v17  ;;  %v6690_v17 = vld [vmem:[#allocation8 + $0xfe0] sm:$0xff]  ;;  %v6695_v20 = vld [vmem:[#allocation8 + $0x1008] sm:$0xff] }
 0xf25   :  { %10328 = vmatpush1.bf16.msra.mxu0 %v10327_v33  ;;  %10448 = vmatpush1.bf16.msra.mxu1 %v10447_v34  ;;  %v10345_v33 = vpack.c.bf16 %v6198_v18, %v6194_v26  ;;  %v10465_v34 = vpack.c.bf16 %v6200_v29, %v6196_v28  ;;  %v6664_v18 = vld [vmem:[#allocation8 + $0xf10] sm:$0xff]  ;;  %v6673_v29 = vld [vmem:[#allocation8 + $0xf58] sm:$0xff] }
 0xf26   :  { %10330 = vmatprep.subr.bf16.mxu0 %v10329_v40  ;;  %10450 = vmatprep.subr.bf16.mxu1 %v10449_v41  ;;  %v6199_v40 = vld [vmem:[#allocation8 + $0xe30] sm:$0xff]  ;;  %v6206_v41 = vld [vmem:[#allocation8 + $0xe68] sm:$0xff] }
 0xf27   :  { %v10467_v48 = vpack.c.bf16 %v6199_v40, %v6195_v37  ;;  %v6668_v28 = vld [vmem:[#allocation8 + $0xf30] sm:$0xff]  ;;  %v6681_v37 = vld [vmem:[#allocation8 + $0xf98] sm:$0xff] }
 0xf28   :  { %v10615_v31 = vpack.c.bf16 %v6668_v28, %v6664_v18  ;;  %v6685_v40 = vld [vmem:[#allocation8 + $0xfb8] sm:$0xff] }
 0xf29   :  { %10332 = vmatpush1.bf16.msra.mxu0 %v10331_v55  ;;  %10452 = vmatpush1.bf16.msra.mxu1 %v10451_v25  ;;  %v10349_v55 = vpack.c.bf16 %v6206_v41, %v6202_v35  ;;  %v10469_v25 = vpack.c.bf16 %v6208_v46, %v6204_v42  ;;  %v6676_v35 = vld [vmem:[#allocation8 + $0xf70] sm:$0xff]  ;;  %v6662_v42 = vld [vmem:[#allocation8 + $0xf00] sm:$0xff]  ;;  %v10621_v50 = vpack.c.bf16 %v6685_v40, %v6681_v37  ;;  %v6713_v18 = vld [vmem:[#allocation8 + $0x1098] sm:$0xff] }
 0xf2a   :  { %10334 = vmatprep.subr.bf16.mxu0 %v10333_v57  ;;  %10454 = vmatprep.subr.bf16.mxu1 %v10453_v45  ;;  %v6207_v57 = vld [vmem:[#allocation8 + $0xe70] sm:$0xff]  ;;  %v6214_v45 = vld [vmem:[#allocation8 + $0xea8] sm:$0xff]  ;;  %v6666_v46 = vld [vmem:[#allocation8 + $0xf20] sm:$0xff] }
 0xf2b   :  { %v10471_v8 = vpack.c.bf16 %v6207_v57, %v6203_v56  ;;  %v6670_v56 = vld [vmem:[#allocation8 + $0xf40] sm:$0xff]  ;;  %v6717_v28 = vld [vmem:[#allocation8 + $0x10b8] sm:$0xff]  ;;  %v6712_v37 = vld [vmem:[#allocation8 + $0x1090] sm:$0xff] }
 0xf2c   :  { %v6674_v57 = vld [vmem:[#allocation8 + $0xf60] sm:$0xff]  ;;  %v6716_v40 = vld [vmem:[#allocation8 + $0x10b0] sm:$0xff] }
 0xf2d   :  { %10336 = vmatpush1.bf16.msra.mxu0 %v10335_v23  ;;  %10456 = vmatpush1.bf16.msra.mxu1 %v10455_v59  ;;  %v10353_v23 = vpack.c.bf16 %v6214_v45, %v6210_v49  ;;  %v10473_v59 = vpack.c.bf16 %v6216_v5, %v6212_v4  ;;  %v6679_v45 = vld [vmem:[#allocation8 + $0xf88] sm:$0xff] }
 0xf2e   :  { %10338 = vmatprep.subr.bf16.mxu0 %v10337_v3  ;;  %10458 = vmatprep.subr.bf16.mxu1 %v10457_v13  ;;  %v6215_v3 = vld [vmem:[#allocation8 + $0xeb0] sm:$0xff]  ;;  %v6222_v13 = vld [vmem:[#allocation8 + $0xee8] sm:$0xff] }
 0xf2f   :  { %v10475_v10 = vpack.c.bf16 %v6215_v3, %v6211_v7  ;;  %v10357_v6 = vpack.c.bf16 %v6222_v13, %v6218_v60  ;;  %v6683_v5 = vld [vmem:[#allocation8 + $0xfa8] sm:$0xff]  ;;  %v6682_v60 = vld [vmem:[#allocation8 + $0xfa0] sm:$0xff] }
 0xf30   :  { %v6687_v7 = vld [vmem:[#allocation8 + $0xfc8] sm:$0xff] }
 0xf31   :  { %10340 = vmatpush1.bf16.msra.mxu0 %v10339_v15  ;;  %10460 = vmatpush1.bf16.msra.mxu1 %v10459_v16  ;;  %v6221_v15 = vld [vmem:[#allocation8 + $0xee0] sm:$0xff]  ;;  %v10477_v16 = vpack.c.bf16 %v6224_v0, %v6220_v9  ;;  %v6691_v13 = vld [vmem:[#allocation8 + $0xfe8] sm:$0xff]  ;;  %v10629_v9 = vpack.c.bf16 %v6701_v51, %v6697_v1  ;;  %v6696_v0 = vld [vmem:[#allocation8 + $0x1010] sm:$0xff] }
 0xf32   :  { %10342 = vmatprep.subr.bf16.mxu0 %v10341_v22  ;;  %10462 = vmatprep.subr.bf16.mxu1 %v10461_v21  ;;  %v6665_v22 = vld [vmem:[#allocation8 + $0xf18] sm:$0xff]  ;;  %v10359_v26 = vpack.c.bf16 %v6221_v15, %v6217_v58  ;;  %v10505_v15 = vpack.c.bf16 %v6691_v13, %v6687_v7  ;;  %v6728_v1 = vld [vmem:[#allocation8 + $0x1110] sm:$0xff]  ;;  %v6718_v7 = vld [vmem:[#allocation8 + $0x10c0] sm:$0xff] }
 0xf33   :  { %v6669_v21 = vld [vmem:[#allocation8 + $0xf38] sm:$0xff]  ;;  %v6732_v51 = vld [vmem:[#allocation8 + $0x1130] sm:$0xff]  ;;  %v6727_v13 = vld [vmem:[#allocation8 + $0x1108] sm:$0xff] }
 0xf34   :  { %v10613_v27 = vpack.c.bf16 %v6669_v21, %v6665_v22  ;;  %v6709_v58 = vld [vmem:[#allocation8 + $0x1078] sm:$0xff]  ;;  %v6699_v21 = vld [vmem:[#allocation8 + $0x1028] sm:$0xff] }
 0xf35   :  { %10344 = vmatpush1.bf16.msra.mxu0 %v10343_v30  ;;  %10464 = vmatpush1.bf16.msra.mxu1 %v10463_v19  ;;  %v6677_v30 = vld [vmem:[#allocation8 + $0xf78] sm:$0xff]  ;;  %v6663_v19 = vld [vmem:[#allocation8 + $0xf08] sm:$0xff] }
 0xf36   :  { %10346 = vmatprep.subr.bf16.mxu0 %v10345_v33  ;;  %10466 = vmatprep.subr.bf16.mxu1 %v10465_v34  ;;  %v10617_v33 = vpack.c.bf16 %v6677_v30, %v6673_v29  ;;  %v6672_v34 = vld [vmem:[#allocation8 + $0xf50] sm:$0xff]  ;;  %v10493_v41 = vpack.c.bf16 %v6667_v32, %v6663_v19  ;;  %v10509_v30 = vpack.c.bf16 %v6699_v21, %v6695_v20  ;;  %v6694_v19 = vld [vmem:[#allocation8 + $0x1000] sm:$0xff]  ;;  %v6703_v32 = vld [vmem:[#allocation8 + $0x1048] sm:$0xff] }
 0xf37   :  { %v6726_v20 = vld [vmem:[#allocation8 + $0x1100] sm:$0xff]  ;;  %v6735_v21 = vld [vmem:[#allocation8 + $0x1148] sm:$0xff] }
 0xf39   :  { %10348 = vmatpush1.bf16.msra.mxu0 %v10347_v47  ;;  %10468 = vmatpush1.bf16.msra.mxu1 %v10467_v48  ;;  %v6671_v47 = vld [vmem:[#allocation8 + $0xf48] sm:$0xff]  ;;  %v10619_v48 = vpack.c.bf16 %v6676_v35, %v6672_v34  ;;  %v10637_v35 = vpack.c.bf16 %v6717_v28, %v6713_v18  ;;  %v6744_v18 = vld [vmem:[#allocation8 + $0x1190] sm:$0xff] }
 0xf3a   :  { %10350 = vmatprep.subr.bf16.mxu0 %v10349_v55  ;;  %10470 = vmatprep.subr.bf16.mxu1 %v10469_v25  ;;  %v6684_v55 = vld [vmem:[#allocation8 + $0xfb0] sm:$0xff]  ;;  %v6693_v25 = vld [vmem:[#allocation8 + $0xff8] sm:$0xff]  ;;  %v6707_v34 = vld [vmem:[#allocation8 + $0x1068] sm:$0xff] }
 0xf3b   :  { %v10623_v4 = vpack.c.bf16 %v6684_v55, %v6680_v52  ;;  %v6715_v52 = vld [vmem:[#allocation8 + $0x10a8] sm:$0xff]  ;;  %v6748_v28 = vld [vmem:[#allocation8 + $0x11b0] sm:$0xff] }
 0xf3d   :  { %10352 = vmatpush1.bf16.msra.mxu0 %v10351_v54  ;;  %10472 = vmatpush1.bf16.msra.mxu1 %v10471_v8  ;;  %v6688_v8 = vld [vmem:[#allocation8 + $0xfd0] sm:$0xff] }
 0xf3e   :  { %10354 = vmatprep.subr.bf16.mxu0 %v10353_v23  ;;  %10474 = vmatprep.subr.bf16.mxu1 %v10473_v59  ;;  %v10501_v23 = vpack.c.bf16 %v6683_v5, %v6679_v45  ;;  %v6678_v59 = vld [vmem:[#allocation8 + $0xf80] sm:$0xff]  ;;  %v10627_v3 = vpack.c.bf16 %v6692_v24, %v6688_v8  ;;  %v6719_v5 = vld [vmem:[#allocation8 + $0x10c8] sm:$0xff] }
 0xf3f   :  { %v6710_v45 = vld [vmem:[#allocation8 + $0x1080] sm:$0xff]  ;;  %v6723_v8 = vld [vmem:[#allocation8 + $0x10e8] sm:$0xff] }
 0xf41   :  { %10356 = vmatpush1.bf16.msra.mxu0 %v10355_v63  ;;  %10476 = vmatpush1.bf16.msra.mxu1 %v10475_v10  ;;  %v6700_v63 = vld [vmem:[#allocation8 + $0x1030] sm:$0xff]  ;;  %v6705_v10 = vld [vmem:[#allocation8 + $0x1058] sm:$0xff] }
 0xf42   :  { %10358 = vmatprep.subr.bf16.mxu0 %v10357_v6  ;;  %10478 = vmatprep.subr.bf16.mxu1 %v10477_v16  ;;  %v10503_v6 = vpack.c.bf16 %v6682_v60, %v6678_v59  ;;  %v6686_v16 = vld [vmem:[#allocation8 + $0xfc0] sm:$0xff]  ;;  %v10631_v22 = vpack.c.bf16 %v6700_v63, %v6696_v0  ;;  %v10521_v60 = vpack.c.bf16 %v6723_v8, %v6719_v5  ;;  %v6731_v0 = vld [vmem:[#allocation8 + $0x1128] sm:$0xff] }
 0xf43   :  { %v10507_v29 = vpack.c.bf16 %v6690_v17, %v6686_v16  ;;  %v10525_v17 = vpack.c.bf16 %v6731_v0, %v6727_v13  ;;  %v6750_v5 = vld [vmem:[#allocation8 + $0x11c0] sm:$0xff]  ;;  %v6759_v8 = vld [vmem:[#allocation8 + $0x1208] sm:$0xff] }
 0xf44   :  { %v6758_v13 = vld [vmem:[#allocation8 + $0x1200] sm:$0xff]  ;;  %v6767_v0 = vld [vmem:[#allocation8 + $0x1248] sm:$0xff] }
 0xf45   :  { %10360 = vmatpush1.bf16.msra.mxu0 %v10359_v26  ;;  %10480 = vmatpush1.bf16.msra.mxu1 %v10479_v62  ;;  %v10633_v26 = vpack.c.bf16 %v6709_v58, %v6705_v10  ;;  %v6704_v62 = vld [vmem:[#allocation8 + $0x1050] sm:$0xff] }
 0xf46   :  { %10483 = vmatprep.subr.msk.bf16.mxu0 %vm11765_vm5, %v12067_v11  ;;  %10614 = vmatprep.subr.bf16.mxu1 %v10613_v27  ;;  %v6516_v11 = vld [vmem:[#allocation10 + $0x10] sm:$0xff] }
 0xf47   :  { %v6708_v27 = vld [vmem:[#allocation8 + $0x1070] sm:$0xff] }
 0xf48   :  { %6364 = vmatmul.mubr.f32.vlgmr.msra.gmra.mrb[26].mxu0 %v12110_v44  ;;  %6506 = vmatmul.mubr.f32.vlgmr.msra.gmra.mrb[34].mxu1 %v12110_v44  ;;  %v6675_v44 = vld [vmem:[#allocation8 + $0xf68] sm:$0xff]  ;;  %v6736_v10 = vld [vmem:[#allocation8 + $0x1150] sm:$0xff] }
 0xf49   :  { %10486 = vmatpush1.bf16.msk.msra.mxu0 %vm11765_vm5, %v12064_v14  ;;  %6584 = vmatprep.mubr.f32.mxu0 %v11488_v53  ;;  %v6689_v14 = vld [vmem:[#allocation8 + $0xfd8] sm:$0xff]  ;;  %v10497_v49 = vpack.c.bf16 %v6675_v44, %v6671_v47  ;;  %v6702_v47 = vld [vmem:[#allocation8 + $0x1040] sm:$0xff]  ;;  %v6711_v44 = vld [vmem:[#allocation8 + $0x1088] sm:$0xff] }
 0xf4a   :  { %10489 = vmatprep.subr.msk.bf16.mxu0 %vm11765_vm5, %v12069_v2  ;;  %10616 = vmatpush1.bf16.msra.mxu1 %v10615_v31  ;;  %v10495_v2 = vpack.c.bf16 %v6666_v46, %v6662_v42  ;;  %v10625_v54 = vpack.c.bf16 %v6693_v25, %v6689_v14  ;;  %v6698_v31 = vld [vmem:[#allocation8 + $0x1020] sm:$0xff]  ;;  %v10513_v46 = vpack.c.bf16 %v6707_v34, %v6703_v32  ;;  %v6720_v14 = vld [vmem:[#allocation8 + $0x10d0] sm:$0xff]  ;;  %v6743_v34 = vld [vmem:[#allocation8 + $0x1188] sm:$0xff] }
 0xf4b   :  { %10618 = vmatprep.subr.bf16.mxu1 %v10617_v33  ;;  %v10635_v33 = vpack.c.bf16 %v6708_v27, %v6704_v62  ;;  %v10511_v42 = vpack.c.bf16 %v6698_v31, %v6694_v19  ;;  %v6724_v25 = vld [vmem:[#allocation8 + $0x10f0] sm:$0xff]  ;;  %v6739_v62 = vld [vmem:[#allocation8 + $0x1168] sm:$0xff]  ;;  %v6734_v32 = vld [vmem:[#allocation8 + $0x1140] sm:$0xff] }
 0xf4c   :  { %8249 = vmatmul.mubr.msk.f32.vlgmr.msra.gmra.mrb[32].mxu0 %vm1140_vm6, %v6516_v11  ;;  %v6740_v58 = vld [vmem:[#allocation8 + $0x1170] sm:$0xff]  ;;  %v10529_v31 = vpack.c.bf16 %v6739_v62, %v6735_v21  ;;  %v6766_v21 = vld [vmem:[#allocation8 + $0x1240] sm:$0xff]  ;;  %v6775_v62 = vld [vmem:[#allocation8 + $0x1288] sm:$0xff] }
 0xf4d   :  { %10492 = vmatpush1.bf16.msk.msra.mxu0 %vm11765_vm5, %v12074_v12  ;;  %6655 = vmatprep.mubr.f32.mxu0 %v11488_v53  ;;  %v10499_v12 = vpack.c.bf16 %v6674_v57, %v6670_v56  ;;  %v10517_v57 = vpack.c.bf16 %v6715_v52, %v6711_v44  ;;  %v6742_v44 = vld [vmem:[#allocation8 + $0x1180] sm:$0xff]  ;;  %v6751_v52 = vld [vmem:[#allocation8 + $0x11c8] sm:$0xff] }
 0xf4e   :  { %10494 = vmatprep.subr.bf16.mxu0 %v10493_v41  ;;  %10620 = vmatpush1.bf16.msra.mxu1 %v10619_v48  ;;  %v6725_v41 = vld [vmem:[#allocation8 + $0x10f8] sm:$0xff]  ;;  %v6706_v48 = vld [vmem:[#allocation8 + $0x1060] sm:$0xff] }
 0xf4f   :  { %10622 = vmatprep.subr.bf16.mxu1 %v10621_v50  ;;  %v10639_v50 = vpack.c.bf16 %v6716_v40, %v6712_v37  ;;  %v10515_v56 = vpack.c.bf16 %v6706_v48, %v6702_v47  ;;  %v6747_v37 = vld [vmem:[#allocation8 + $0x11a8] sm:$0xff] }
 0xf50   :  { %8252 = vmatmul.mubr.msk.f32.vlgmr.msra.gmra.mrb[34].mxu0 %vm1140_vm6, %v6516_v11  ;;  %v6721_v11 = vld [vmem:[#allocation8 + $0x10d8] sm:$0xff]  ;;  %v10533_v48 = vpack.c.bf16 %v6747_v37, %v6743_v34  ;;  %v6787_v37 = vld [vmem:[#allocation8 + $0x12e8] sm:$0xff] }
 0xf51   :  { %10496 = vmatpush1.bf16.msra.mxu0 %v10495_v2  ;;  %v10641_v55 = vpack.c.bf16 %v6725_v41, %v6721_v11  ;;  %v6729_v2 = vld [vmem:[#allocation8 + $0x1118] sm:$0xff]  ;;  %v6752_v11 = vld [vmem:[#allocation8 + $0x11d0] sm:$0xff] }
 0xf52   :  { %10498 = vmatprep.subr.bf16.mxu0 %v10497_v49  ;;  %10624 = vmatpush1.bf16.msra.mxu1 %v10623_v4  ;;  %v6733_v49 = vld [vmem:[#allocation8 + $0x1138] sm:$0xff]  ;;  %v6714_v4 = vld [vmem:[#allocation8 + $0x10a0] sm:$0xff]  ;;  %v6756_v41 = vld [vmem:[#allocation8 + $0x11f0] sm:$0xff] }
 0xf53   :  { %10626 = vmatprep.subr.bf16.mxu1 %v10625_v54  ;;  %v10643_v54 = vpack.c.bf16 %v6724_v25, %v6720_v14  ;;  %v10645_v24 = vpack.c.bf16 %v6733_v49, %v6729_v2  ;;  %v10519_v59 = vpack.c.bf16 %v6714_v4, %v6710_v45  ;;  %v6755_v14 = vld [vmem:[#allocation8 + $0x11e8] sm:$0xff]  ;;  %v6760_v2 = vld [vmem:[#allocation8 + $0x1210] sm:$0xff] }
 0xf54   :  { %v6764_v49 = vld [vmem:[#allocation8 + $0x1230] sm:$0xff]  ;;  %v10537_v4 = vpack.c.bf16 %v6755_v14, %v6751_v52  ;;  %v6797_v52 = vld [vmem:[#allocation8 + $0x1338] sm:$0xff]  ;;  %v6790_v14 = vld [vmem:[#allocation8 + $0x1300] sm:$0xff] }
 0xf55   :  { %10500 = vmatpush1.bf16.msra.mxu0 %v10499_v12  ;;  %v6737_v12 = vld [vmem:[#allocation8 + $0x1158] sm:$0xff] }
 0xf56   :  { %10502 = vmatprep.subr.bf16.mxu0 %v10501_v23  ;;  %10628 = vmatpush1.bf16.msra.mxu1 %v10627_v3  ;;  %v6741_v23 = vld [vmem:[#allocation8 + $0x1178] sm:$0xff]  ;;  %v6722_v3 = vld [vmem:[#allocation8 + $0x10e0] sm:$0xff] }
 0xf57   :  { %10630 = vmatprep.subr.bf16.mxu1 %v10629_v9  ;;  %v10647_v9 = vpack.c.bf16 %v6732_v51, %v6728_v1  ;;  %v10649_v63 = vpack.c.bf16 %v6741_v23, %v6737_v12  ;;  %v10523_v16 = vpack.c.bf16 %v6722_v3, %v6718_v7  ;;  %v6763_v1 = vld [vmem:[#allocation8 + $0x1228] sm:$0xff]  ;;  %v6768_v12 = vld [vmem:[#allocation8 + $0x1250] sm:$0xff] }
 0xf58   :  { %v6772_v23 = vld [vmem:[#allocation8 + $0x1270] sm:$0xff]  ;;  %v10541_v3 = vpack.c.bf16 %v6763_v1, %v6759_v8  ;;  %v6802_v1 = vld [vmem:[#allocation8 + $0x1360] sm:$0xff] }
 0xf59   :  { %10504 = vmatpush1.bf16.msra.mxu0 %v10503_v6  ;;  %v6745_v6 = vld [vmem:[#allocation8 + $0x1198] sm:$0xff] }
 0xf5a   :  { %10506 = vmatprep.subr.bf16.mxu0 %v10505_v15  ;;  %10632 = vmatpush1.bf16.msra.mxu1 %v10631_v22  ;;  %v6749_v15 = vld [vmem:[#allocation8 + $0x11b8] sm:$0xff]  ;;  %v6730_v22 = vld [vmem:[#allocation8 + $0x1120] sm:$0xff] }
 0xf5b   :  { %10634 = vmatprep.subr.bf16.mxu1 %v10633_v26  ;;  %v10651_v26 = vpack.c.bf16 %v6740_v58, %v6736_v10  ;;  %v10653_v27 = vpack.c.bf16 %v6749_v15, %v6745_v6  ;;  %v10527_v19 = vpack.c.bf16 %v6730_v22, %v6726_v20  ;;  %v6771_v10 = vld [vmem:[#allocation8 + $0x1268] sm:$0xff]  ;;  %v6776_v6 = vld [vmem:[#allocation8 + $0x1290] sm:$0xff] }
 0xf5c   :  { %v6780_v15 = vld [vmem:[#allocation8 + $0x12b0] sm:$0xff]  ;;  %v10545_v22 = vpack.c.bf16 %v6771_v10, %v6767_v0  ;;  %v6806_v10 = vld [vmem:[#allocation8 + $0x1380] sm:$0xff] }
 0xf5d   :  { %10508 = vmatpush1.bf16.msra.mxu0 %v10507_v29  ;;  %v6753_v29 = vld [vmem:[#allocation8 + $0x11d8] sm:$0xff] }
 0xf5e   :  { %10510 = vmatprep.subr.bf16.mxu0 %v10509_v30  ;;  %10636 = vmatpush1.bf16.msra.mxu1 %v10635_v33  ;;  %v6757_v30 = vld [vmem:[#allocation8 + $0x11f8] sm:$0xff]  ;;  %v6738_v33 = vld [vmem:[#allocation8 + $0x1160] sm:$0xff] }
 0xf5f   :  { %10638 = vmatprep.subr.bf16.mxu1 %v10637_v35  ;;  %v10655_v35 = vpack.c.bf16 %v6748_v28, %v6744_v18  ;;  %v10657_v40 = vpack.c.bf16 %v6757_v30, %v6753_v29  ;;  %v10531_v47 = vpack.c.bf16 %v6738_v33, %v6734_v32  ;;  %v6779_v18 = vld [vmem:[#allocation8 + $0x12a8] sm:$0xff]  ;;  %v6784_v29 = vld [vmem:[#allocation8 + $0x12d0] sm:$0xff]  ;;  %v6774_v32 = vld [vmem:[#allocation8 + $0x1280] sm:$0xff] }
 0xf60   :  { %v6788_v30 = vld [vmem:[#allocation8 + $0x12f0] sm:$0xff]  ;;  %v6778_v33 = vld [vmem:[#allocation8 + $0x12a0] sm:$0xff] }
 0xf61   :  { %10512 = vmatpush1.bf16.msra.mxu0 %v10511_v42  ;;  %v6761_v42 = vld [vmem:[#allocation8 + $0x1218] sm:$0xff]  ;;  %v10675_v34 = vpack.c.bf16 %v6788_v30, %v6784_v29  ;;  %v6814_v29 = vld [vmem:[#allocation8 + $0x13c0] sm:$0xff] }
 0xf62   :  { %10514 = vmatprep.subr.bf16.mxu0 %v10513_v46  ;;  %10640 = vmatpush1.bf16.msra.mxu1 %v10639_v50  ;;  %v6765_v46 = vld [vmem:[#allocation8 + $0x1238] sm:$0xff]  ;;  %v6746_v50 = vld [vmem:[#allocation8 + $0x11a0] sm:$0xff] }
 0xf63   :  { %10642 = vmatprep.subr.bf16.mxu1 %v10641_v55  ;;  %v10659_v55 = vpack.c.bf16 %v6756_v41, %v6752_v11  ;;  %v10661_v25 = vpack.c.bf16 %v6765_v46, %v6761_v42  ;;  %v10535_v45 = vpack.c.bf16 %v6746_v50, %v6742_v44  ;;  %v6782_v41 = vld [vmem:[#allocation8 + $0x12c0] sm:$0xff]  ;;  %v6793_v44 = vld [vmem:[#allocation8 + $0x1318] sm:$0xff] }
 0xf64   :  { %v6786_v42 = vld [vmem:[#allocation8 + $0x12e0] sm:$0xff] }
 0xf65   :  { %10516 = vmatpush1.bf16.msra.mxu0 %v10515_v56  ;;  %v6769_v56 = vld [vmem:[#allocation8 + $0x1258] sm:$0xff]  ;;  %v10555_v46 = vpack.c.bf16 %v6786_v42, %v6782_v41  ;;  %v6818_v30 = vld [vmem:[#allocation8 + $0x13e0] sm:$0xff] }
 0xf66   :  { %10518 = vmatprep.subr.bf16.mxu0 %v10517_v57  ;;  %10644 = vmatpush1.bf16.msra.mxu1 %v10643_v54  ;;  %v6773_v57 = vld [vmem:[#allocation8 + $0x1278] sm:$0xff]  ;;  %v6754_v54 = vld [vmem:[#allocation8 + $0x11e0] sm:$0xff] }
 0xf67   :  { %10646 = vmatprep.subr.bf16.mxu1 %v10645_v24  ;;  %v10663_v24 = vpack.c.bf16 %v6764_v49, %v6760_v2  ;;  %v10665_v51 = vpack.c.bf16 %v6773_v57, %v6769_v56  ;;  %v10539_v7 = vpack.c.bf16 %v6754_v54, %v6750_v5  ;;  %v6792_v2 = vld [vmem:[#allocation8 + $0x1310] sm:$0xff]  ;;  %v6799_v56 = vld [vmem:[#allocation8 + $0x1348] sm:$0xff]  ;;  %v6822_v42 = vld [vmem:[#allocation8 + $0x1400] sm:$0xff] }
 0xf68   :  { %v6796_v49 = vld [vmem:[#allocation8 + $0x1330] sm:$0xff]  ;;  %v6803_v57 = vld [vmem:[#allocation8 + $0x1368] sm:$0xff] }
 0xf69   :  { %10520 = vmatpush1.bf16.msra.mxu0 %v10519_v59  ;;  %v6777_v59 = vld [vmem:[#allocation8 + $0x1298] sm:$0xff]  ;;  %v10679_v8 = vpack.c.bf16 %v6796_v49, %v6792_v2 }
 0xf6a   :  { %10522 = vmatprep.subr.bf16.mxu0 %v10521_v60  ;;  %10648 = vmatpush1.bf16.msra.mxu1 %v10647_v9  ;;  %v6781_v60 = vld [vmem:[#allocation8 + $0x12b8] sm:$0xff]  ;;  %v6762_v9 = vld [vmem:[#allocation8 + $0x1220] sm:$0xff] }
 0xf6b   :  { %10650 = vmatprep.subr.bf16.mxu1 %v10649_v63  ;;  %v10667_v63 = vpack.c.bf16 %v6772_v23, %v6768_v12  ;;  %v10669_v58 = vpack.c.bf16 %v6781_v60, %v6777_v59  ;;  %v10543_v20 = vpack.c.bf16 %v6762_v9, %v6758_v13  ;;  %v10561_v12 = vpack.c.bf16 %v6803_v57, %v6799_v56  ;;  %v6800_v59 = vld [vmem:[#allocation8 + $0x1350] sm:$0xff]  ;;  %v6809_v13 = vld [vmem:[#allocation8 + $0x1398] sm:$0xff]  ;;  %v6830_v56 = vld [vmem:[#allocation8 + $0x1440] sm:$0xff] }
 0xf6c   :  { %v6804_v60 = vld [vmem:[#allocation8 + $0x1370] sm:$0xff]  ;;  %v6813_v9 = vld [vmem:[#allocation8 + $0x13b8] sm:$0xff]  ;;  %v6834_v57 = vld [vmem:[#allocation8 + $0x1460] sm:$0xff] }
 0xf6d   :  { %10524 = vmatpush1.bf16.msra.mxu0 %v10523_v16  ;;  %v6785_v16 = vld [vmem:[#allocation8 + $0x12d8] sm:$0xff] }
 0xf6e   :  { %10526 = vmatprep.subr.bf16.mxu0 %v10525_v17  ;;  %10652 = vmatpush1.bf16.msra.mxu1 %v10651_v26  ;;  %v6789_v17 = vld [vmem:[#allocation8 + $0x12f8] sm:$0xff]  ;;  %v6770_v26 = vld [vmem:[#allocation8 + $0x1260] sm:$0xff] }
 0xf6f   :  { %10654 = vmatprep.subr.bf16.mxu1 %v10653_v27  ;;  %v10671_v27 = vpack.c.bf16 %v6780_v15, %v6776_v6  ;;  %v10673_v28 = vpack.c.bf16 %v6789_v17, %v6785_v16  ;;  %v10685_v16 = vpack.c.bf16 %v6813_v9, %v6809_v13  ;;  %v6808_v17 = vld [vmem:[#allocation8 + $0x1390] sm:$0xff] }
 0xf70   :  { %v6840_v13 = vld [vmem:[#allocation8 + $0x1490] sm:$0xff] }
 0xf71   :  { %10528 = vmatpush1.bf16.msra.mxu0 %v10527_v19  ;;  %v10547_v19 = vpack.c.bf16 %v6770_v26, %v6766_v21  ;;  %v6819_v26 = vld [vmem:[#allocation8 + $0x13e8] sm:$0xff]  ;;  %v6844_v9 = vld [vmem:[#allocation8 + $0x14b0] sm:$0xff] }
 0xf72   :  { %10530 = vmatprep.subr.bf16.mxu0 %v10529_v31  ;;  %10656 = vmatpush1.bf16.msra.mxu1 %v10655_v35  ;;  %v10549_v31 = vpack.c.bf16 %v6779_v18, %v6775_v62  ;;  %v6783_v35 = vld [vmem:[#allocation8 + $0x12c8] sm:$0xff]  ;;  %v6817_v62 = vld [vmem:[#allocation8 + $0x13d8] sm:$0xff] }
 0xf73   :  { %10658 = vmatprep.subr.bf16.mxu1 %v10657_v40  ;;  %v10551_v40 = vpack.c.bf16 %v6778_v33, %v6774_v32  ;;  %v10553_v11 = vpack.c.bf16 %v6787_v37, %v6783_v35  ;;  %v6816_v32 = vld [vmem:[#allocation8 + $0x13d0] sm:$0xff]  ;;  %v6827_v35 = vld [vmem:[#allocation8 + $0x1428] sm:$0xff]  ;;  %v6825_v37 = vld [vmem:[#allocation8 + $0x1418] sm:$0xff] }
 0xf74   :  { %v6820_v33 = vld [vmem:[#allocation8 + $0x13f0] sm:$0xff] }
 0xf75   :  { %10532 = vmatpush1.bf16.msra.mxu0 %v10531_v47  ;;  %v6791_v47 = vld [vmem:[#allocation8 + $0x1308] sm:$0xff]  ;;  %v10691_v41 = vpack.c.bf16 %v6820_v33, %v6816_v32  ;;  %v6858_v32 = vld [vmem:[#allocation8 + $0x1520] sm:$0xff] }
 0xf76   :  { %10534 = vmatprep.subr.bf16.mxu0 %v10533_v48  ;;  %10660 = vmatpush1.bf16.msra.mxu1 %v10659_v55  ;;  %v6795_v48 = vld [vmem:[#allocation8 + $0x1328] sm:$0xff]  ;;  %v10677_v55 = vpack.c.bf16 %v6797_v52, %v6793_v44  ;;  %v6824_v44 = vld [vmem:[#allocation8 + $0x1410] sm:$0xff] }
 0xf77   :  { %10662 = vmatprep.subr.bf16.mxu1 %v10661_v25  ;;  %v10557_v50 = vpack.c.bf16 %v6795_v48, %v6791_v47  ;;  %v6794_v25 = vld [vmem:[#allocation8 + $0x1320] sm:$0xff]  ;;  %v6831_v52 = vld [vmem:[#allocation8 + $0x1448] sm:$0xff] }
 0xf78   :  { %v10559_v54 = vpack.c.bf16 %v6794_v25, %v6790_v14  ;;  %v6833_v14 = vld [vmem:[#allocation8 + $0x1458] sm:$0xff] }
 0xf79   :  { %10536 = vmatpush1.bf16.msra.mxu0 %v10535_v45  ;;  %v6801_v45 = vld [vmem:[#allocation8 + $0x1358] sm:$0xff] }
 0xf7a   :  { %10538 = vmatprep.subr.bf16.mxu0 %v10537_v4  ;;  %10664 = vmatpush1.bf16.msra.mxu1 %v10663_v24  ;;  %v6805_v4 = vld [vmem:[#allocation8 + $0x1378] sm:$0xff]  ;;  %v6798_v24 = vld [vmem:[#allocation8 + $0x1340] sm:$0xff] }
 0xf7b   :  { %10666 = vmatprep.subr.bf16.mxu1 %v10665_v51  ;;  %v10681_v23 = vpack.c.bf16 %v6805_v4, %v6801_v45  ;;  %v10563_v0 = vpack.c.bf16 %v6802_v1, %v6798_v24  ;;  %v6837_v25 = vld [vmem:[#allocation8 + $0x1478] sm:$0xff]  ;;  %v6843_v24 = vld [vmem:[#allocation8 + $0x14a8] sm:$0xff] }
 0xf7c   :  { %v10697_v4 = vpack.c.bf16 %v6837_v25, %v6833_v14  ;;  %v6841_v1 = vld [vmem:[#allocation8 + $0x1498] sm:$0xff]  ;;  %v6868_v14 = vld [vmem:[#allocation8 + $0x1570] sm:$0xff]  ;;  %v6871_v25 = vld [vmem:[#allocation8 + $0x1588] sm:$0xff] }
 0xf7d   :  { %10540 = vmatpush1.bf16.msra.mxu0 %v10539_v7  ;;  %v6807_v7 = vld [vmem:[#allocation8 + $0x1388] sm:$0xff] }
 0xf7e   :  { %10542 = vmatprep.subr.bf16.mxu0 %v10541_v3  ;;  %10668 = vmatpush1.bf16.msra.mxu1 %v10667_v63  ;;  %v6811_v3 = vld [vmem:[#allocation8 + $0x13a8] sm:$0xff]  ;;  %v10683_v63 = vpack.c.bf16 %v6804_v60, %v6800_v59  ;;  %v6838_v59 = vld [vmem:[#allocation8 + $0x1480] sm:$0xff] }
 0xf7f   :  { %10670 = vmatprep.subr.bf16.mxu1 %v10669_v58  ;;  %v6810_v58 = vld [vmem:[#allocation8 + $0x13a0] sm:$0xff]  ;;  %v10565_v15 = vpack.c.bf16 %v6811_v3, %v6807_v7 }
 0xf80   :  { %v10567_v18 = vpack.c.bf16 %v6810_v58, %v6806_v10  ;;  %v6842_v60 = vld [vmem:[#allocation8 + $0x14a0] sm:$0xff]  ;;  %v6849_v10 = vld [vmem:[#allocation8 + $0x14d8] sm:$0xff] }
 0xf81   :  { %10544 = vmatpush1.bf16.msra.mxu0 %v10543_v20  ;;  %v6812_v20 = vld [vmem:[#allocation8 + $0x13b0] sm:$0xff]  ;;  %v6853_v58 = vld [vmem:[#allocation8 + $0x14f8] sm:$0xff] }
 0xf82   :  { %10546 = vmatprep.subr.bf16.mxu0 %v10545_v22  ;;  %10672 = vmatpush1.bf16.msra.mxu1 %v10671_v27  ;;  %v6815_v22 = vld [vmem:[#allocation8 + $0x13c8] sm:$0xff]  ;;  %v6821_v27 = vld [vmem:[#allocation8 + $0x13f8] sm:$0xff] }
 0xf83   :  { %10674 = vmatprep.subr.bf16.mxu1 %v10673_v28  ;;  %v10687_v28 = vpack.c.bf16 %v6812_v20, %v6808_v17  ;;  %v6846_v17 = vld [vmem:[#allocation8 + $0x14c0] sm:$0xff] }
 0xf84   :  { %v6850_v20 = vld [vmem:[#allocation8 + $0x14e0] sm:$0xff] }
 0xf85   :  { %10548 = vmatpush1.bf16.msra.mxu0 %v10547_v19  ;;  %v10569_v19 = vpack.c.bf16 %v6819_v26, %v6815_v22  ;;  %v6848_v26 = vld [vmem:[#allocation8 + $0x14d0] sm:$0xff] }
 0xf86   :  { %10550 = vmatprep.subr.bf16.mxu0 %v10549_v31  ;;  %10676 = vmatpush1.bf16.msra.mxu1 %v10675_v34  ;;  %v10689_v31 = vpack.c.bf16 %v6821_v27, %v6817_v62  ;;  %v6823_v34 = vld [vmem:[#allocation8 + $0x1408] sm:$0xff]  ;;  %v6852_v62 = vld [vmem:[#allocation8 + $0x14f0] sm:$0xff] }
 0xf87   :  { %10678 = vmatprep.subr.bf16.mxu1 %v10677_v55  ;;  %v10573_v47 = vpack.c.bf16 %v6827_v35, %v6823_v34  ;;  %v6835_v55 = vld [vmem:[#allocation8 + $0x1468] sm:$0xff]  ;;  %v6856_v35 = vld [vmem:[#allocation8 + $0x1510] sm:$0xff] }
 0xf88   :  { %v10577_v45 = vpack.c.bf16 %v6835_v55, %v6831_v52  ;;  %v6855_v27 = vld [vmem:[#allocation8 + $0x1508] sm:$0xff]  ;;  %v6864_v55 = vld [vmem:[#allocation8 + $0x1550] sm:$0xff] }
 0xf89   :  { %10552 = vmatpush1.bf16.msra.mxu0 %v10551_v40  ;;  %v6829_v40 = vld [vmem:[#allocation8 + $0x1438] sm:$0xff] }
 0xf8a   :  { %10554 = vmatprep.subr.bf16.mxu0 %v10553_v11  ;;  %v10571_v11 = vpack.c.bf16 %v6818_v30, %v6814_v29  ;;  %v10693_v48 = vpack.c.bf16 %v6829_v40, %v6825_v37  ;;  %v6861_v29 = vld [vmem:[#allocation8 + $0x1538] sm:$0xff]  ;;  %v10587_v30 = vpack.c.bf16 %v6850_v20, %v6846_v17  ;;  %v6860_v37 = vld [vmem:[#allocation8 + $0x1530] sm:$0xff]  ;;  %v6863_v40 = vld [vmem:[#allocation8 + $0x1548] sm:$0xff] }
 0xf8b   :  { %v6893_v17 = vld [vmem:[#allocation8 + $0x1638] sm:$0xff] }
 0xf8d   :  { %10556 = vmatpush1.bf16.msra.mxu0 %v10555_v46  ;;  %v6826_v46 = vld [vmem:[#allocation8 + $0x1420] sm:$0xff] }
 0xf8e   :  { %10558 = vmatprep.subr.bf16.mxu0 %v10557_v50  ;;  %v6828_v50 = vld [vmem:[#allocation8 + $0x1430] sm:$0xff]  ;;  %v10575_v2 = vpack.c.bf16 %v6826_v46, %v6822_v42  ;;  %v6869_v42 = vld [vmem:[#allocation8 + $0x1578] sm:$0xff] }
 0xf8f   :  { %v10695_v49 = vpack.c.bf16 %v6828_v50, %v6824_v44  ;;  %v6866_v44 = vld [vmem:[#allocation8 + $0x1560] sm:$0xff] }
0x101f   :  { %v6586_v5 = vpop.f32.mrb[32].mxu0 }
0x1020   :  { %v6588_v51 = vpop.f32.mrb[33].mxu0 }
0x1021   :  { %6969 = vmatprep.mubr.f32.mxu0 %v6588_v51  ;;  %7111 = vmatprep.mubr.f32.mxu1 %v6588_v51  ;;  %v6845_v51 = vld [vmem:[#allocation8 + $0x14b8] sm:$0xff] }
0x1022   :  { %6970 = vmatmul.mubr.f32.vlgmr.msra.gmra.mrb[26].mxu0 %v6586_v5  ;;  %7112 = vmatmul.mubr.f32.vlgmr.msra.gmra.mrb[34].mxu1 %v6586_v5  ;;  %v6832_v5 = vld [vmem:[#allocation8 + $0x1450] sm:$0xff]  ;;  %v10701_v3 = vpack.c.bf16 %v6845_v51, %v6841_v1  ;;  %v6879_v51 = vld [vmem:[#allocation8 + $0x15c8] sm:$0xff] }
0x1023   :  { %10560 = vmatpush1.bf16.msra.mxu0 %v10559_v54  ;;  %10680 = vmatpush1.bf16.msra.mxu1 %v10679_v8  ;;  %v12132_v6 = vpop.f32.mrb[34].mxu0  ;;  %v6836_v54 = vld [vmem:[#allocation8 + $0x1470] sm:$0xff]  ;;  %v6839_v8 = vld [vmem:[#allocation8 + $0x1488] sm:$0xff] }
0x1024   :  { %10562 = vmatprep.subr.bf16.mxu0 %v10561_v12  ;;  %10682 = vmatprep.subr.bf16.mxu1 %v10681_v23  ;;  %v6659_v21 = vpop.f32.mrb[35].mxu0  ;;  %v10579_v12 = vpack.c.bf16 %v6834_v57, %v6830_v56  ;;  %v10699_v23 = vpack.c.bf16 %v6836_v54, %v6832_v5  ;;  %v10581_v7 = vpack.c.bf16 %v6843_v24, %v6839_v8  ;;  %v6877_v56 = vld [vmem:[#allocation8 + $0x15b8] sm:$0xff]  ;;  %v6874_v5 = vld [vmem:[#allocation8 + $0x15a0] sm:$0xff]  ;;  %v6872_v24 = vld [vmem:[#allocation8 + $0x1590] sm:$0xff] }
0x1025   :  { %8253 = vmatprep.mubr.msk.f32.mxu0 %vm1078_vm2, %v6659_v21  ;;  %8254 = vmatprep.mubr.msk.f32.mxu1 %vm1078_vm2, %v6659_v21  ;;  %v10705_v21 = vpack.c.bf16 %v6853_v58, %v6849_v10  ;;  %v6876_v1 = vld [vmem:[#allocation8 + $0x15b0] sm:$0xff]  ;;  %v6887_v58 = vld [vmem:[#allocation8 + $0x1608] sm:$0xff] }
0x1026   :  { %v6884_v10 = vld [vmem:[#allocation8 + $0x15f0] sm:$0xff] }
0x1027   :  { %10564 = vmatpush1.bf16.msra.mxu0 %v10563_v0  ;;  %10684 = vmatpush1.bf16.msra.mxu1 %v10683_v63  ;;  %v6847_v0 = vld [vmem:[#allocation8 + $0x14c8] sm:$0xff] }
0x1028   :  { %10566 = vmatprep.subr.bf16.mxu0 %v10565_v15  ;;  %10686 = vmatprep.subr.bf16.mxu1 %v10685_v16  ;;  %v6851_v63 = vld [vmem:[#allocation8 + $0x14e8] sm:$0xff]  ;;  %v10583_v15 = vpack.c.bf16 %v6842_v60, %v6838_v59  ;;  %v10703_v16 = vpack.c.bf16 %v6844_v9, %v6840_v13  ;;  %v6885_v59 = vld [vmem:[#allocation8 + $0x15f8] sm:$0xff]  ;;  %v6882_v13 = vld [vmem:[#allocation8 + $0x15e0] sm:$0xff] }
0x1029   :  { %v10585_v22 = vpack.c.bf16 %v6851_v63, %v6847_v0  ;;  %v6880_v63 = vld [vmem:[#allocation8 + $0x15d0] sm:$0xff] }
0x102b   :  { %10568 = vmatpush1.bf16.msra.mxu0 %v10567_v18  ;;  %10688 = vmatpush1.bf16.msra.mxu1 %v10687_v28  ;;  %v6859_v18 = vld [vmem:[#allocation8 + $0x1528] sm:$0xff]  ;;  %v6857_v28 = vld [vmem:[#allocation8 + $0x1518] sm:$0xff] }
0x102c   :  { %10570 = vmatprep.subr.bf16.mxu0 %v10569_v19  ;;  %10690 = vmatprep.subr.bf16.mxu1 %v10689_v31  ;;  %v10707_v19 = vpack.c.bf16 %v6852_v62, %v6848_v26  ;;  %v6854_v31 = vld [vmem:[#allocation8 + $0x1500] sm:$0xff]  ;;  %v10589_v33 = vpack.c.bf16 %v6859_v18, %v6855_v27  ;;  %v10709_v34 = vpack.c.bf16 %v6861_v29, %v6857_v28  ;;  %v6888_v18 = vld [vmem:[#allocation8 + $0x1610] sm:$0xff]  ;;  %v6895_v29 = vld [vmem:[#allocation8 + $0x1648] sm:$0xff] }
0x102d   :  { %v10591_v46 = vpack.c.bf16 %v6858_v32, %v6854_v31  ;;  %v6890_v26 = vld [vmem:[#allocation8 + $0x1620] sm:$0xff]  ;;  %v6892_v28 = vld [vmem:[#allocation8 + $0x1630] sm:$0xff]  ;;  %v6901_v31 = vld [vmem:[#allocation8 + $0x1678] sm:$0xff] }
0x102f   :  { %10572 = vmatpush1.bf16.msra.mxu0 %v10571_v11  ;;  %10692 = vmatpush1.bf16.msra.mxu1 %v10691_v41  ;;  %v6867_v11 = vld [vmem:[#allocation8 + $0x1568] sm:$0xff]  ;;  %v6865_v41 = vld [vmem:[#allocation8 + $0x1558] sm:$0xff] }
0x1030   :  { %10574 = vmatprep.subr.bf16.mxu0 %v10573_v47  ;;  %10694 = vmatprep.subr.bf16.mxu1 %v10693_v48  ;;  %v10711_v47 = vpack.c.bf16 %v6860_v37, %v6856_v35  ;;  %v6862_v48 = vld [vmem:[#allocation8 + $0x1540] sm:$0xff]  ;;  %v10593_v50 = vpack.c.bf16 %v6867_v11, %v6863_v40  ;;  %v10713_v52 = vpack.c.bf16 %v6869_v42, %v6865_v41  ;;  %v6896_v11 = vld [vmem:[#allocation8 + $0x1650] sm:$0xff] }
0x1031   :  { %v10595_v57 = vpack.c.bf16 %v6866_v44, %v6862_v48  ;;  %v6898_v40 = vld [vmem:[#allocation8 + $0x1660] sm:$0xff]  ;;  %v6900_v41 = vld [vmem:[#allocation8 + $0x1670] sm:$0xff] }
0x1032   :  { %v7270_v48 = vld [vmem:[#allocation13 + $0x108] sm:$0xff]  ;;  %v7271_v44 = vld [vmem:[#allocation13 + $0x110] sm:$0xff] }
0x1033   :  { %10576 = vmatpush1.bf16.msra.mxu0 %v10575_v2  ;;  %10696 = vmatpush1.bf16.msra.mxu1 %v10695_v49  ;;  %v6875_v2 = vld [vmem:[#allocation8 + $0x15a8] sm:$0xff]  ;;  %v6873_v49 = vld [vmem:[#allocation8 + $0x1598] sm:$0xff] }
0x1034   :  { %10578 = vmatprep.subr.bf16.mxu0 %v10577_v45  ;;  %10698 = vmatprep.subr.bf16.mxu1 %v10697_v4  ;;  %v10715_v45 = vpack.c.bf16 %v6868_v14, %v6864_v55  ;;  %v6870_v4 = vld [vmem:[#allocation8 + $0x1580] sm:$0xff]  ;;  %v10597_v54 = vpack.c.bf16 %v6875_v2, %v6871_v25  ;;  %v10717_v8 = vpack.c.bf16 %v6877_v56, %v6873_v49 }
0x1035   :  { %v10599_v60 = vpack.c.bf16 %v6874_v5, %v6870_v4  ;;  %v7273_v14 = vld [vmem:[#allocation13 + $0x120] sm:$0xff]  ;;  %v7274_v25 = vld [vmem:[#allocation13 + $0x128] sm:$0xff]  ;;  %v7255_v5 = vld [vmem:[#allocation13 + $0x90] sm:$0xff] }
0x1036   :  { %v7253_v2 = vld [vmem:[#allocation13 + $0x80] sm:$0xff]  ;;  %v7254_v49 = vld [vmem:[#allocation13 + $0x88] sm:$0xff] }
0x1037   :  { %10580 = vmatpush1.bf16.msra.mxu0 %v10579_v12  ;;  %10700 = vmatpush1.bf16.msra.mxu1 %v10699_v23  ;;  %v6883_v12 = vld [vmem:[#allocation8 + $0x15e8] sm:$0xff]  ;;  %v6881_v23 = vld [vmem:[#allocation8 + $0x15d8] sm:$0xff] }
0x1038   :  { %10582 = vmatprep.subr.bf16.mxu0 %v10581_v7  ;;  %10702 = vmatprep.subr.bf16.mxu1 %v10701_v3  ;;  %v10719_v7 = vpack.c.bf16 %v6876_v1, %v6872_v24  ;;  %v6878_v3 = vld [vmem:[#allocation8 + $0x15c0] sm:$0xff]  ;;  %v10601_v9 = vpack.c.bf16 %v6883_v12, %v6879_v51  ;;  %v10721_v0 = vpack.c.bf16 %v6885_v59, %v6881_v23  ;;  %v7275_v24 = vld [vmem:[#allocation13 + $0x130] sm:$0xff]  ;;  %v7240_v51 = vld [vmem:[#allocation13 + $0x18] sm:$0xff] }
0x1039   :  { %v10603_v20 = vpack.c.bf16 %v6882_v13, %v6878_v3  ;;  %v7237_v56 = vld [vmem:[#allocation13] sm:$0xff]  ;;  %v7276_v12 = vld [vmem:[#allocation13 + $0x138] sm:$0xff]  ;;  %v7242_v13 = vld [vmem:[#allocation13 + $0x28] sm:$0xff] }
0x103a   :  { %v7257_v59 = vld [vmem:[#allocation13 + $0xa0] sm:$0xff] }
0x103b   :  { %10584 = vmatpush1.bf16.msra.mxu0 %v10583_v15  ;;  %10704 = vmatpush1.bf16.msra.mxu1 %v10703_v16  ;;  %v6891_v15 = vld [vmem:[#allocation8 + $0x1628] sm:$0xff]  ;;  %v6889_v16 = vld [vmem:[#allocation8 + $0x1618] sm:$0xff] }
0x103c   :  { %10586 = vmatprep.subr.bf16.mxu0 %v10585_v22  ;;  %10706 = vmatprep.subr.bf16.mxu1 %v10705_v21  ;;  %v10723_v22 = vpack.c.bf16 %v6884_v10, %v6880_v63  ;;  %v6886_v21 = vld [vmem:[#allocation8 + $0x1600] sm:$0xff]  ;;  %v10605_v62 = vpack.c.bf16 %v6891_v15, %v6887_v58  ;;  %v10725_v27 = vpack.c.bf16 %v6893_v17, %v6889_v16  ;;  %v7243_v17 = vld [vmem:[#allocation13 + $0x30] sm:$0xff] }
0x103d   :  { %v10607_v32 = vpack.c.bf16 %v6890_v26, %v6886_v21  ;;  %v7241_v3 = vld [vmem:[#allocation13 + $0x20] sm:$0xff]  ;;  %v10775_v63 = vpack.c.bf16 %v7276_v12, %v7275_v24  ;;  %v7278_v58 = vld [vmem:[#allocation13 + $0x148] sm:$0xff] }
0x103e   :  { %v7277_v10 = vld [vmem:[#allocation13 + $0x140] sm:$0xff]  ;;  %v10743_v15 = vpack.c.bf16 %v7242_v13, %v7241_v3  ;;  %v7262_v21 = vld [vmem:[#allocation13 + $0xc8] sm:$0xff]  ;;  %v7268_v3 = vld [vmem:[#allocation13 + $0xf8] sm:$0xff] }
0x103f   :  { %10588 = vmatpush1.bf16.msra.mxu0 %v10587_v30  ;;  %10708 = vmatpush1.bf16.msra.mxu1 %v10707_v19  ;;  %v6899_v30 = vld [vmem:[#allocation8 + $0x1668] sm:$0xff]  ;;  %v6897_v19 = vld [vmem:[#allocation8 + $0x1658] sm:$0xff]  ;;  %v10778_v26 = vpack.c.bf16 %v7278_v58, %v7277_v10 }
0x1040   :  { %10590 = vmatprep.subr.bf16.mxu0 %v10589_v33  ;;  %10710 = vmatprep.subr.bf16.mxu1 %v10709_v34  ;;  %v10727_v33 = vpack.c.bf16 %v6892_v28, %v6888_v18  ;;  %v6894_v34 = vld [vmem:[#allocation8 + $0x1640] sm:$0xff]  ;;  %v10609_v35 = vpack.c.bf16 %v6899_v30, %v6895_v29  ;;  %v10729_v37 = vpack.c.bf16 %v6901_v31, %v6897_v19  ;;  %v7252_v10 = vld [vmem:[#allocation13 + $0x78] sm:$0xff] }
0x1041   :  { %v10611_v42 = vpack.c.bf16 %v6898_v40, %v6894_v34  ;;  %v7245_v29 = vld [vmem:[#allocation13 + $0x40] sm:$0xff]  ;;  %v7246_v30 = vld [vmem:[#allocation13 + $0x48] sm:$0xff] }
0x1042   :  { %v7281_v31 = vld [vmem:[#allocation13 + $0x160] sm:$0xff] }
0x1043   :  { %10592 = vmatpush1.bf16.msra.mxu0 %v10591_v46  ;;  %10712 = vmatpush1.bf16.msra.mxu1 %v10711_v47  ;;  %v10731_v46 = vpack.c.bf16 %v6900_v41, %v6896_v11  ;;  %v7269_v47 = vld [vmem:[#allocation13 + $0x100] sm:$0xff]  ;;  %v7286_v41 = vld [vmem:[#allocation13 + $0x188] sm:$0xff] }
0x1044   :  { %10594 = vmatprep.subr.bf16.mxu0 %v10593_v50  ;;  %10714 = vmatprep.subr.bf16.mxu1 %v10713_v52  ;;  %v10766_v50 = vpack.c.bf16 %v7270_v48, %v7269_v47  ;;  %v7272_v52 = vld [vmem:[#allocation13 + $0x118] sm:$0xff]  ;;  %v7285_v11 = vld [vmem:[#allocation13 + $0x180] sm:$0xff] }
0x1045   :  { %v10769_v55 = vpack.c.bf16 %v7272_v52, %v7271_v44  ;;  %v7288_v47 = vld [vmem:[#allocation13 + $0x198] sm:$0xff]  ;;  %v7289_v44 = vld [vmem:[#allocation13 + $0x1a0] sm:$0xff] }
0x1046   :  { %v7249_v24 = vld [vmem:[#allocation13 + $0x60] sm:$0xff] }
0x1047   :  { %10596 = vmatpush1.bf16.msra.mxu0 %v10595_v57  ;;  %10716 = vmatpush1.bf16.msra.mxu1 %v10715_v45  ;;  %v10733_v57 = vpack.c.bf16 %v7254_v49, %v7253_v2  ;;  %v7238_v45 = vld [vmem:[#allocation13 + $0x8] sm:$0xff]  ;;  %v7247_v2 = vld [vmem:[#allocation13 + $0x50] sm:$0xff]  ;;  %v7248_v49 = vld [vmem:[#allocation13 + $0x58] sm:$0xff] }
0x1048   :  { %10598 = vmatprep.subr.bf16.mxu0 %v10597_v54  ;;  %10718 = vmatprep.subr.bf16.mxu1 %v10717_v8  ;;  %v10735_v4 = vpack.c.bf16 %v7238_v45, %v7237_v56  ;;  %v7256_v54 = vld [vmem:[#allocation13 + $0x98] sm:$0xff]  ;;  %v10772_v8 = vpack.c.bf16 %v7274_v25, %v7273_v14  ;;  %v10755_v56 = vpack.c.bf16 %v7248_v49, %v7247_v2  ;;  %v7438_v2 = vld [vmem:[#allocation13 + $0x1c8] sm:$0xff] }
0x1049   :  { %v10737_v1 = vpack.c.bf16 %v7256_v54, %v7255_v5  ;;  %v7264_v14 = vld [vmem:[#allocation13 + $0xd8] sm:$0xff]  ;;  %v7265_v54 = vld [vmem:[#allocation13 + $0xe0] sm:$0xff] }
0x104a   :  { %v7292_v45 = vld [vmem:[#allocation13 + $0x1b8] sm:$0xff] }
0x104b   :  { %10600 = vmatpush1.bf16.msra.mxu0 %v10599_v60  ;;  %10720 = vmatpush1.bf16.msra.mxu1 %v10719_v7  ;;  %v7258_v60 = vld [vmem:[#allocation13 + $0xa8] sm:$0xff] }
0x104c   :  { %10602 = vmatprep.subr.bf16.mxu0 %v10601_v9  ;;  %10722 = vmatprep.subr.bf16.mxu1 %v10721_v0  ;;  %v10741_v7 = vpack.c.bf16 %v7258_v60, %v7257_v59  ;;  %v7259_v9 = vld [vmem:[#allocation13 + $0xb0] sm:$0xff]  ;;  %v7260_v0 = vld [vmem:[#allocation13 + $0xb8] sm:$0xff] }
0x104d   :  { %v10745_v16 = vpack.c.bf16 %v7260_v0, %v7259_v9 }
0x104f   :  { %10604 = vmatpush1.bf16.msra.mxu0 %v10603_v20  ;;  %10724 = vmatpush1.bf16.msra.mxu1 %v10723_v22  ;;  %v7244_v20 = vld [vmem:[#allocation13 + $0x38] sm:$0xff]  ;;  %v7261_v22 = vld [vmem:[#allocation13 + $0xc0] sm:$0xff] }
0x1050   :  { %10606 = vmatprep.subr.bf16.mxu0 %v10605_v62  ;;  %10726 = vmatprep.subr.bf16.mxu1 %v10725_v27  ;;  %v7279_v62 = vld [vmem:[#allocation13 + $0x150] sm:$0xff]  ;;  %v7280_v27 = vld [vmem:[#allocation13 + $0x158] sm:$0xff]  ;;  %v10747_v18 = vpack.c.bf16 %v7244_v20, %v7243_v17  ;;  %v10749_v28 = vpack.c.bf16 %v7262_v21, %v7261_v22  ;;  %v7454_v21 = vld [vmem:[#allocation13 + $0x248] sm:$0xff] }
0x1051   :  { %v10781_v19 = vpack.c.bf16 %v7280_v27, %v7279_v62 }
0x1053   :  { %10608 = vmatpush1.bf16.msra.mxu0 %v10607_v32  ;;  %10728 = vmatpush1.bf16.msra.mxu1 %v10727_v33  ;;  %v7282_v32 = vld [vmem:[#allocation13 + $0x168] sm:$0xff]  ;;  %v10751_v33 = vpack.c.bf16 %v7246_v30, %v7245_v29 }
0x1054   :  { %10610 = vmatprep.subr.bf16.mxu0 %v10609_v35  ;;  %10730 = vmatprep.subr.bf16.mxu1 %v10729_v37  ;;  %v10784_v34 = vpack.c.bf16 %v7282_v32, %v7281_v31  ;;  %v7283_v35 = vld [vmem:[#allocation13 + $0x170] sm:$0xff]  ;;  %v7284_v37 = vld [vmem:[#allocation13 + $0x178] sm:$0xff]  ;;  %v7469_v32 = vld [vmem:[#allocation13 + $0x2c0] sm:$0xff] }
0x1055   :  { %v10787_v40 = vpack.c.bf16 %v7284_v37, %v7283_v35 }
0x1057   :  { %10612 = vmatpush1.bf16.msra.mxu0 %v10611_v42  ;;  %10732 = vmatpush1.bf16.msra.mxu1 %v10731_v46  ;;  %v10790_v42 = vpack.c.bf16 %v7286_v41, %v7285_v11  ;;  %v7287_v46 = vld [vmem:[#allocation13 + $0x190] sm:$0xff] }
0x1058   :  { %10765 = vmatprep.subr.bf16.mxu0 %v11491_v61  ;;  %10734 = vmatprep.subr.bf16.mxu1 %v10733_v57  ;;  %v10793_v48 = vpack.c.bf16 %v7288_v47, %v7287_v46  ;;  %v7291_v57 = vld [vmem:[#allocation13 + $0x1b0] sm:$0xff] }
0x1059   :  { %v10799_v5 = vpack.c.bf16 %v7292_v45, %v7291_v57  ;;  %v7455_v45 = vld [vmem:[#allocation13 + $0x250] sm:$0xff] }
0x105a   :  { %7041 = vmatmul.mubr.f32.vlgmr.msra.gmra.mrb[26].mxu0 %v12132_v6  ;;  %7183 = vmatmul.mubr.f32.vlgmr.msra.gmra.mrb[34].mxu1 %v12132_v6  ;;  %v7239_v6 = vld [vmem:[#allocation13 + $0x10] sm:$0xff] }
0x105b   :  { %10767 = vmatpush1.bf16.msra.mxu0 %v10766_v50  ;;  %10736 = vmatpush3.bf16.msra.mxu1 %v10735_v4  ;;  %v10739_v23 = vpack.c.bf16 %v7240_v51, %v7239_v6  ;;  %v7290_v50 = vld [vmem:[#allocation13 + $0x1a8] sm:$0xff]  ;;  %v5128_v4 = vld [vmem:[#allocation11] sm:$0xf] }
0x105c   :  { %10768 = vmatprep.subr.bf16.mxu0 %v11491_v61  ;;  %10738 = vmatprep.subr.bf16.mxu1 %v10737_v1  ;;  %v10796_v52 = vpack.c.bf16 %v7290_v50, %v7289_v44  ;;  %v7266_v6 = vld [vmem:[#allocation13 + $0xe8] sm:$0xff]  ;;  %v5818_v12 = vrot.slane %v5128_v4, %v11743_v39  ;;  %v5822_v59 = vrot.slane %v5128_v4, %v11741_v38  ;;  %v7471_v44 = vld [vmem:[#allocation13 + $0x2d0] sm:$0xff]  ;;  %v7472_v50 = vld [vmem:[#allocation13 + $0x2d8] sm:$0xff] }
0x105d   :  { %v7250_v1 = vld [vmem:[#allocation13 + $0x68] sm:$0xff]  ;;  %v5830_v60 = vrot.slane %v5128_v4, %v11748_v43  ;;  %v7453_v43 = vld [vmem:[#allocation13 + $0x240] sm:$0xff]  ;;  %v10837_v57 = vpack.c.bf16 %v7472_v50, %v7471_v44  ;;  %v7483_v44 = vld [vmem:[#allocation13 + $0x330] sm:$0xff] }
0x105e   :  { %v10759_v51 = vpack.c.bf16 %v7250_v1, %v7249_v24  ;;  %v10801_v27 = vpack.c.bf16 %v7454_v21, %v7453_v43  ;;  %v7461_v21 = vld [vmem:[#allocation13 + $0x280] sm:$0xff]  ;;  %v7484_v50 = vld [vmem:[#allocation13 + $0x338] sm:$0xff] }
0x105f   :  { %10770 = vmatpush1.bf16.msra.mxu0 %v10769_v55  ;;  %10740 = vmatpush3.bf16.msra.mxu1 %v10739_v23  ;;  %v7263_v55 = vld [vmem:[#allocation13 + $0xd0] sm:$0xff]  ;;  %v5826_v23 = vrot.slane %v5128_v4, %v11739_v36  ;;  %v7456_v4 = vld [vmem:[#allocation13 + $0x258] sm:$0xff] }
0x1060   :  { %10771 = vmatprep.subr.bf16.mxu0 %v11491_v61  ;;  %10742 = vmatprep.subr.bf16.mxu1 %v10741_v7  ;;  %v10753_v25 = vpack.c.bf16 %v7264_v14, %v7263_v55  ;;  %v7267_v7 = vld [vmem:[#allocation13 + $0xf0] sm:$0xff]  ;;  %v10805_v1 = vpack.c.bf16 %v7456_v4, %v7455_v45  ;;  %v7486_v45 = vld [vmem:[#allocation13 + $0x348] sm:$0xff] }
0x1061   :  { %v10761_v0 = vpack.c.bf16 %v7268_v3, %v7267_v7  ;;  %v7458_v7 = vld [vmem:[#allocation13 + $0x268] sm:$0xff]  ;;  %v7475_v3 = vld [vmem:[#allocation13 + $0x2f0] sm:$0xff] }
0x1063   :  { %10773 = vmatpush1.bf16.msra.mxu0 %v10772_v8  ;;  %10744 = vmatpush3.bf16.msra.mxu1 %v10743_v15  ;;  %v10757_v8 = vpack.c.bf16 %v7266_v6, %v7265_v54  ;;  %v7474_v54 = vld [vmem:[#allocation13 + $0x2e8] sm:$0xff] }
0x1064   :  { %10774 = vmatprep.subr.bf16.mxu0 %v11491_v61  ;;  %10746 = vmatprep.subr.bf16.mxu1 %v10745_v16 }
0x1067   :  { %10776 = vmatpush1.bf16.msra.mxu0 %v10775_v63  ;;  %10748 = vmatpush3.bf16.msra.mxu1 %v10747_v18  ;;  %v7251_v63 = vld [vmem:[#allocation13 + $0x70] sm:$0xff] }
0x1068   :  { %10777 = vmatprep.subr.bf16.mxu0 %v11491_v61  ;;  %10750 = vmatprep.subr.bf16.mxu1 %v10749_v28  ;;  %v10763_v36 = vpack.c.bf16 %v7252_v10, %v7251_v63  ;;  %v7441_v63 = vld [vmem:[#allocation13 + $0x1e0] sm:$0xff]  ;;  %v7442_v10 = vld [vmem:[#allocation13 + $0x1e8] sm:$0xff] }
0x106b   :  { %10779 = vmatpush1.bf16.msra.mxu0 %v10778_v26  ;;  %10752 = vmatpush3.bf16.msra.mxu1 %v10751_v33  ;;  %v7470_v33 = vld [vmem:[#allocation13 + $0x2c8] sm:$0xff] }
0x106c   :  { %10780 = vmatprep.subr.bf16.mxu0 %v11491_v61  ;;  %10754 = vmatprep.subr.bf16.mxu1 %v10753_v25  ;;  %v7437_v25 = vld [vmem:[#allocation13 + $0x1c0] sm:$0xff] }
0x106d   :  { %v10803_v24 = vpack.c.bf16 %v7438_v2, %v7437_v25  ;;  %v7450_v25 = vld [vmem:[#allocation13 + $0x228] sm:$0xff]  ;;  %v10855_v2 = vpack.c.bf16 %v7484_v50, %v7483_v44  ;;  %v7681_v44 = vld [vmem:[#allocation13 + $0x498] sm:$0xff] }
0x106f   :  { %10782 = vmatpush1.bf16.msra.mxu0 %v10781_v19  ;;  %10756 = vmatpush3.bf16.msra.mxu1 %v10755_v56 }
0x1070   :  { %10783 = vmatprep.subr.bf16.mxu0 %v11491_v61  ;;  %10758 = vmatprep.subr.bf16.mxu1 %v10757_v8 }
0x1073   :  { %10785 = vmatpush1.bf16.msra.mxu0 %v10784_v34  ;;  %10760 = vmatpush3.bf16.msra.mxu1 %v10759_v51  ;;  %v7439_v51 = vld [vmem:[#allocation13 + $0x1d0] sm:$0xff] }
0x1074   :  { %10786 = vmatprep.subr.bf16.mxu0 %v11491_v61  ;;  %10762 = vmatprep.subr.bf16.mxu1 %v10761_v0 }
0x1077   :  { %10788 = vmatpush1.bf16.msra.mxu0 %v10787_v40  ;;  %10764 = vmatpush3.bf16.msra.mxu1 %v10763_v36  ;;  %v7478_v36 = vld [vmem:[#allocation13 + $0x308] sm:$0xff] }
0x1078   :  { %10789 = vmatprep.subr.bf16.mxu0 %v11491_v61  ;;  %10802 = vmatprep.subr.bf16.mxu1 %v10801_v27  ;;  %v7480_v27 = vld [vmem:[#allocation13 + $0x318] sm:$0xff] }
0x107b   :  { %10791 = vmatpush1.bf16.msra.mxu0 %v10790_v42  ;;  %v10834_v42 = vpack.c.bf16 %v7470_v33, %v7469_v32  ;;  %v7464_v32 = vld [vmem:[#allocation13 + $0x298] sm:$0xff]  ;;  %v7481_v33 = vld [vmem:[#allocation13 + $0x320] sm:$0xff] }
0x107c   :  { %10792 = vmatprep.subr.bf16.mxu0 %v11491_v61 }
0x107f   :  { %10794 = vmatpush1.bf16.msra.mxu0 %v10793_v48 }
0x1080   :  { %10795 = vmatprep.subr.bf16.mxu0 %v11491_v61 }
0x1083   :  { %10797 = vmatpush1.bf16.msra.mxu0 %v10796_v52 }
0x1084   :  { %10798 = vmatprep.subr.bf16.mxu0 %v11491_v61 }
0x1087   :  { %10800 = vmatpush1.bf16.msra.mxu0 %v10799_v5  ;;  %v7473_v5 = vld [vmem:[#allocation13 + $0x2e0] sm:$0xff] }
0x1088   :  { %10833 = vmatprep.subr.bf16.mxu0 %v11491_v61 }
0x112d   :  { %v7042_v13 = vpop.f32.mrb[26].mxu0  ;;  %v7184_v9 = vpop.f32.mrb[34].mxu1 }
0x112e   :  { %v11054_v58 = vadd.f32 %v7042_v13, %v5818_v12  ;;  %v11056_v15 = vadd.f32 %v7184_v9, %v5826_v23  ;;  %v7044_v39 = vpop.f32.mrb[27].mxu0  ;;  %v7186_v16 = vpop.f32.mrb[35].mxu1  ;;  %v7440_v12 = vld [vmem:[#allocation13 + $0x1d8] sm:$0xff] }
0x112f   :  { %v11055_v17 = vadd.f32 %v7044_v39, %v5822_v59  ;;  %v11057_v20 = vadd.f32 %v7186_v16, %v5830_v60  ;;  %v10840_v59 = vpack.c.bf16 %v7474_v54, %v7473_v5  ;;  %v7457_v60 = vld [vmem:[#allocation13 + $0x260] sm:$0xff]  ;;  %v7476_v13 = vld [vmem:[#allocation13 + $0x2f8] sm:$0xff]  ;;  %v10807_v9 = vpack.c.bf16 %v7440_v12, %v7439_v51  ;;  %v7451_v54 = vld [vmem:[#allocation13 + $0x230] sm:$0xff] }
0x1130   :  { %v7193_v22 = vmax.f32 %v11054_v58, 0.0  ;;  %v7195_v38 = vmax.f32 %v11056_v15, 0.0  ;;  %v10809_v0 = vpack.c.bf16 %v7458_v7, %v7457_v60  ;;  %v10843_v58 = vpack.c.bf16 %v7476_v13, %v7475_v3  ;;  %v7459_v15 = vld [vmem:[#allocation13 + $0x270] sm:$0xff]  ;;  %v7460_v39 = vld [vmem:[#allocation13 + $0x278] sm:$0xff]  ;;  %v7477_v16 = vld [vmem:[#allocation13 + $0x300] sm:$0xff] }
0x1131   :  { %v7194_v26 = vmax.f32 %v11055_v17, 0.0  ;;  %v7196_v62 = vmax.f32 %v11057_v20, 0.0  ;;  %v10811_v17 = vpack.c.bf16 %v7442_v10, %v7441_v63  ;;  %v10813_v20 = vpack.c.bf16 %v7460_v39, %v7459_v15  ;;  %v7662_v51 = vld [vmem:[#allocation13 + $0x400] sm:$0xff]  ;;  %v7663_v12 = vld [vmem:[#allocation13 + $0x408] sm:$0xff]  ;;  %v7665_v63 = vld [vmem:[#allocation13 + $0x418] sm:$0xff] }
0x1132   :  { %7205 = vrot.lane.b32.xlu1 %v7195_v38, %s11492_s24  ;;  %v10846_v43 = vpack.c.bf16 %v7478_v36, %v7477_v16  ;;  %v10869_v7 = vpack.c.bf16 %v7663_v12, %v7662_v51  ;;  %v7646_v3 = vld [vmem:[#allocation13 + $0x380] sm:$0xff]  ;;  %v7647_v13 = vld [vmem:[#allocation13 + $0x388] sm:$0xff]  ;;  %v7648_v36 = vld [vmem:[#allocation13 + $0x390] sm:$0xff] }
0x1133   :  { %v11213_v18 = vpack.i.bf16 %v7193_v22, %v7194_v26  ;;  %7207 = vrot.lane.b32.xlu0 %v7196_v62, %s11492_s24  ;;  %v7489_v10 = vld [vmem:[#allocation13 + $0x360] sm:$0xff]  ;;  %v10871_v15 = vpack.c.bf16 %v7647_v13, %v7646_v3  ;;  %v7675_v12 = vld [vmem:[#allocation13 + $0x468] sm:$0xff] }
0x1134   :  { %v7674_v51 = vld [vmem:[#allocation13 + $0x460] sm:$0xff]  ;;  %v7659_v13 = vld [vmem:[#allocation13 + $0x3e8] sm:$0xff] }
0x1135   :  { %v7658_v3 = vld [vmem:[#allocation13 + $0x3e0] sm:$0xff] }
0x1136   :  { %11214 = vrot.lane.b32.xlu1 %v11213_v18, %s11492_s24 }
0x11a4   :  { %v7206_v28 = vpop.permute.xlu1 %7205 }
0x11a5   :  { %v7208_v29 = vpop.permute.xlu0 %7207 }
0x11a6   :  { %v7211_v30 = vsel %vm286_vm1, %v7206_v28, %v7208_v29  ;;  %v7219_v19 = vmax.f32 %v7196_v62, %v7208_v29  ;;  %v7479_v62 = vld [vmem:[#allocation13 + $0x310] sm:$0xff]  ;;  %v7445_v29 = vld [vmem:[#allocation13 + $0x200] sm:$0xff] }
0x11a7   :  { %v7218_v31 = vmax.f32 %v7195_v38, %v7211_v30  ;;  %v7444_v38 = vld [vmem:[#allocation13 + $0x1f8] sm:$0xff]  ;;  %v7446_v30 = vld [vmem:[#allocation13 + $0x208] sm:$0xff] }
0x11a8   :  { %v7227_v34 = vrot.slane %v7219_v19, 1  ;;  %v11215_v35 = vpop.permute.xlu1 %11214 }
0x11a9   :  { %v7226_v37 = vrot.slane %v7218_v31, 1  ;;  %v11217_v40 = vunpack.i.h.bf16 %v11215_v35  ;;  %v11216_v11 = vunpack.i.l.bf16 %v11215_v35  ;;  %v10819_v35 = vpack.c.bf16 %v7446_v30, %v7445_v29  ;;  %v7668_v30 = vld [vmem:[#allocation13 + $0x430] sm:$0xff] }
0x11aa   :  { %v12159_v41 = vmax.f32 %v7219_v19, %v7227_v34  ;;  %v10849_v19 = vpack.c.bf16 %v7480_v27, %v7479_v62  ;;  %v7482_v34 = vld [vmem:[#allocation13 + $0x328] sm:$0xff] }
0x11ab   :  { %v12161_v46 = vmax.f32 %v7218_v31, %v7226_v37  ;;  %v7209_v47 = vsel %vm286_vm1, %v11217_v40, %v11216_v11  ;;  %v7210_v48 = vsel %vm286_vm1, %v11216_v11, %v7206_v28  ;;  %v7463_v31 = vld [vmem:[#allocation13 + $0x290] sm:$0xff]  ;;  %v7448_v11 = vld [vmem:[#allocation13 + $0x218] sm:$0xff] }
0x11ac   :  { %v7216_v52 = vmax.f32 %v7193_v22, %v7209_v47  ;;  %v7217_v55 = vmax.f32 %v7194_v26, %v7210_v48  ;;  %8255 = vmatprep.mubr.msk.f32.mxu0 %vm286_vm1, %v12159_v41  ;;  %v7499_v14 = vrot.slane %v12159_v41, 2  ;;  %v7443_v22 = vld [vmem:[#allocation13 + $0x1f0] sm:$0xff]  ;;  %v7462_v26 = vld [vmem:[#allocation13 + $0x288] sm:$0xff]  ;;  %v10821_v37 = vpack.c.bf16 %v7464_v32, %v7463_v31  ;;  %v7465_v47 = vld [vmem:[#allocation13 + $0x2a0] sm:$0xff] }
0x11ad   :  { %7431 = vmatmul.mubr.f32.vlgmr.msra.gmra.mrb[36].mxu0 %v12161_v46  ;;  %v10815_v18 = vpack.c.bf16 %v7444_v38, %v7443_v22  ;;  %v10817_v28 = vpack.c.bf16 %v7462_v26, %v7461_v21  ;;  %v7447_v40 = vld [vmem:[#allocation13 + $0x210] sm:$0xff]  ;;  %v7466_v48 = vld [vmem:[#allocation13 + $0x2a8] sm:$0xff]  ;;  %v7666_v38 = vld [vmem:[#allocation13 + $0x420] sm:$0xff]  ;;  %v7705_v50 = vrot.slane %v12159_v41, 4 }
0x11ae   :  { %v7224_v49 = vrot.slane %v7216_v52, 1  ;;  %v7225_v56 = vrot.slane %v7217_v55, 1  ;;  %10835 = vmatpush1.bf16.msra.mxu0 %v10834_v42  ;;  %8256 = vmatprep.mubr.msk.f32.mxu0 %vm286_vm1, %v7499_v14  ;;  %v10852_v42 = vpack.c.bf16 %v7482_v34, %v7481_v33  ;;  %v7449_v14 = vld [vmem:[#allocation13 + $0x220] sm:$0xff]  ;;  %v7491_v21 = vld [vmem:[#allocation13 + $0x370] sm:$0xff]  ;;  %v7492_v26 = vld [vmem:[#allocation13 + $0x378] sm:$0xff] }
0x11af   :  { %10836 = vmatprep.subr.bf16.mxu0 %v11491_v61  ;;  %v10827_v4 = vpack.c.bf16 %v7450_v25, %v7449_v14  ;;  %v10867_v29 = vpack.c.bf16 %v7492_v26, %v7491_v21  ;;  %v7678_v31 = vld [vmem:[#allocation13 + $0x480] sm:$0xff]  ;;  %v7679_v32 = vld [vmem:[#allocation13 + $0x488] sm:$0xff] }
0x11b0   :  { %v12171_v6 = vmax.f32 %v7217_v55, %v7225_v56  ;;  %v12173_v8 = vmax.f32 %v7216_v52, %v7224_v49  ;;  %v10823_v52 = vpack.c.bf16 %v7448_v11, %v7447_v40  ;;  %v10825_v55 = vpack.c.bf16 %v7466_v48, %v7465_v47  ;;  %v7467_v49 = vld [vmem:[#allocation13 + $0x2b0] sm:$0xff]  ;;  %v7468_v56 = vld [vmem:[#allocation13 + $0x2b8] sm:$0xff]  ;;  %v7670_v11 = vld [vmem:[#allocation13 + $0x440] sm:$0xff] }
0x11b1   :  { %v10829_v5 = vpack.c.bf16 %v7468_v56, %v7467_v49  ;;  %v10902_v40 = vpack.c.bf16 %v7679_v32, %v7678_v31  ;;  %v7498_v47 = vrot.slane %v12161_v46, 2  ;;  %v7680_v48 = vld [vmem:[#allocation13 + $0x490] sm:$0xff]  ;;  %v7654_v14 = vld [vmem:[#allocation13 + $0x3c0] sm:$0xff]  ;;  %v7655_v25 = vld [vmem:[#allocation13 + $0x3c8] sm:$0xff] }
0x11b2   :  { %10838 = vmatpush1.bf16.msra.mxu0 %v10837_v57  ;;  %7360 = vmatprep.mubr.f32.mxu1 %v12171_v6  ;;  %v7497_v23 = vrot.slane %v12171_v6, 2  ;;  %v7485_v57 = vld [vmem:[#allocation13 + $0x340] sm:$0xff]  ;;  %v7496_v39 = vrot.slane %v12173_v8, 2  ;;  %v7672_v49 = vld [vmem:[#allocation13 + $0x450] sm:$0xff]  ;;  %v7673_v56 = vld [vmem:[#allocation13 + $0x458] sm:$0xff]  ;;  %v7702_v32 = vrot.slane %v12173_v8, 4 }
0x11b3   :  { %7361 = vmatmul.mubr.f32.vlgmr.msra.gmra.mrb[36].mxu1 %v12173_v8  ;;  %10839 = vmatprep.subr.bf16.mxu0 %v11491_v61 }
0x11b4   :  { %10804 = vmatpush3.bf16.msra.mxu1 %v10803_v24  ;;  %7569 = vmatprep.mubr.f32.mxu1 %v7497_v23  ;;  %v7452_v24 = vld [vmem:[#allocation13 + $0x238] sm:$0xff]  ;;  %v7487_v23 = vld [vmem:[#allocation13 + $0x350] sm:$0xff] }
0x11b5   :  { %10806 = vmatprep.subr.bf16.mxu1 %v10805_v1  ;;  %v10858_v1 = vpack.c.bf16 %v7486_v45, %v7485_v57  ;;  %v10831_v60 = vpack.c.bf16 %v7452_v24, %v7451_v54  ;;  %v7682_v57 = vld [vmem:[#allocation13 + $0x4a0] sm:$0xff]  ;;  %v7683_v45 = vld [vmem:[#allocation13 + $0x4a8] sm:$0xff]  ;;  %v7656_v54 = vld [vmem:[#allocation13 + $0x3d0] sm:$0xff] }
0x11b6   :  { %10841 = vmatpush1.bf16.msra.mxu0 %v10840_v59  ;;  %v7488_v59 = vld [vmem:[#allocation13 + $0x358] sm:$0xff] }
0x11b7   :  { %10842 = vmatprep.subr.bf16.mxu0 %v11491_v61  ;;  %v7657_v24 = vld [vmem:[#allocation13 + $0x3d8] sm:$0xff] }
0x11b8   :  { %10808 = vmatpush3.bf16.msra.mxu1 %v10807_v9  ;;  %v10861_v9 = vpack.c.bf16 %v7488_v59, %v7487_v23  ;;  %v7684_v23 = vld [vmem:[#allocation13 + $0x4b0] sm:$0xff]  ;;  %v7685_v59 = vld [vmem:[#allocation13 + $0x4b8] sm:$0xff] }
0x11b9   :  { %10810 = vmatprep.subr.bf16.mxu1 %v10809_v0  ;;  %v7664_v0 = vld [vmem:[#allocation13 + $0x410] sm:$0xff] }
0x11ba   :  { %10844 = vmatpush1.bf16.msra.mxu0 %v10843_v58  ;;  %v7490_v58 = vld [vmem:[#allocation13 + $0x368] sm:$0xff]  ;;  %v10873_v16 = vpack.c.bf16 %v7665_v63, %v7664_v0  ;;  %v7676_v0 = vld [vmem:[#allocation13 + $0x470] sm:$0xff]  ;;  %v7677_v63 = vld [vmem:[#allocation13 + $0x478] sm:$0xff] }
0x11bb   :  { %10845 = vmatprep.subr.bf16.mxu0 %v11491_v61  ;;  %v10864_v22 = vpack.c.bf16 %v7490_v58, %v7489_v10  ;;  %v7686_v10 = vld [vmem:[#allocation13 + $0x4c0] sm:$0xff]  ;;  %v7687_v58 = vld [vmem:[#allocation13 + $0x4c8] sm:$0xff] }
0x11bc   :  { %10812 = vmatpush3.bf16.msra.mxu1 %v10811_v17  ;;  %v7649_v17 = vld [vmem:[#allocation13 + $0x398] sm:$0xff] }
0x11bd   :  { %10814 = vmatprep.subr.bf16.mxu1 %v10813_v20  ;;  %v7703_v20 = vrot.slane %v12171_v6, 4  ;;  %v10875_v62 = vpack.c.bf16 %v7649_v17, %v7648_v36  ;;  %v7661_v36 = vld [vmem:[#allocation13 + $0x3f8] sm:$0xff]  ;;  %v10914_v17 = vpack.c.bf16 %v7687_v58, %v7686_v10  ;;  %v7862_v58 = vld [vmem:[#allocation13 + $0x590] sm:$0xff] }
0x11be   :  { %10847 = vmatpush1.bf16.msra.mxu0 %v10846_v43  ;;  %v7667_v43 = vld [vmem:[#allocation13 + $0x428] sm:$0xff] }
0x11bf   :  { %10848 = vmatprep.subr.bf16.mxu0 %v11491_v61  ;;  %v10877_v27 = vpack.c.bf16 %v7667_v43, %v7666_v38  ;;  %v7688_v38 = vld [vmem:[#allocation13 + $0x4d0] sm:$0xff]  ;;  %v7689_v43 = vld [vmem:[#allocation13 + $0x4d8] sm:$0xff] }
0x11c0   :  { %10816 = vmatpush3.bf16.msra.mxu1 %v10815_v18  ;;  %v7650_v18 = vld [vmem:[#allocation13 + $0x3a0] sm:$0xff] }
0x11c1   :  { %10818 = vmatprep.subr.bf16.mxu1 %v10817_v28  ;;  %v7651_v28 = vld [vmem:[#allocation13 + $0x3a8] sm:$0xff] }
0x11c2   :  { %10850 = vmatpush1.bf16.msra.mxu0 %v10849_v19  ;;  %v7669_v19 = vld [vmem:[#allocation13 + $0x438] sm:$0xff]  ;;  %v10879_v33 = vpack.c.bf16 %v7651_v28, %v7650_v18  ;;  %v10917_v18 = vpack.c.bf16 %v7689_v43, %v7688_v38  ;;  %v7870_v28 = vld [vmem:[#allocation13 + $0x5d0] sm:$0xff]  ;;  %v7864_v43 = vld [vmem:[#allocation13 + $0x5a0] sm:$0xff] }
0x11c3   :  { %10851 = vmatprep.subr.bf16.mxu0 %v11491_v61  ;;  %v10881_v34 = vpack.c.bf16 %v7669_v19, %v7668_v30  ;;  %v7690_v30 = vld [vmem:[#allocation13 + $0x4e0] sm:$0xff]  ;;  %v7691_v19 = vld [vmem:[#allocation13 + $0x4e8] sm:$0xff] }
0x11c4   :  { %10820 = vmatpush3.bf16.msra.mxu1 %v10819_v35  ;;  %v7652_v35 = vld [vmem:[#allocation13 + $0x3b0] sm:$0xff] }
0x11c5   :  { %10822 = vmatprep.subr.bf16.mxu1 %v10821_v37  ;;  %v7653_v37 = vld [vmem:[#allocation13 + $0x3b8] sm:$0xff] }
0x11c6   :  { %10853 = vmatpush1.bf16.msra.mxu0 %v10852_v42  ;;  %v7671_v42 = vld [vmem:[#allocation13 + $0x448] sm:$0xff] }
0x11c7   :  { %10854 = vmatprep.subr.bf16.mxu0 %v11491_v61 }
0x11c8   :  { %10824 = vmatpush3.bf16.msra.mxu1 %v10823_v52  ;;  %v10883_v52 = vpack.c.bf16 %v7653_v37, %v7652_v35  ;;  %v7855_v35 = vld [vmem:[#allocation13 + $0x558] sm:$0xff]  ;;  %v7909_v37 = vrot.slane %v12171_v6, 6  ;;  %v7694_v6 = vld [vmem:[#allocation13 + $0x500] sm:$0xff] }
0x11c9   :  { %10826 = vmatprep.subr.bf16.mxu1 %v10825_v55  ;;  %v10885_v55 = vpack.c.bf16 %v7671_v42, %v7670_v11  ;;  %v7872_v11 = vld [vmem:[#allocation13 + $0x5e0] sm:$0xff]  ;;  %v7873_v42 = vld [vmem:[#allocation13 + $0x5e8] sm:$0xff] }
0x11ca   :  { %10856 = vmatpush1.bf16.msra.mxu0 %v10855_v2  ;;  %v10905_v2 = vpack.c.bf16 %v7681_v44, %v7680_v48  ;;  %v7693_v48 = vld [vmem:[#allocation13 + $0x4f8] sm:$0xff] }
0x11cb   :  { %10857 = vmatprep.subr.bf16.mxu0 %v11491_v61 }
0x11cc   :  { %10828 = vmatpush3.bf16.msra.mxu1 %v10827_v4  ;;  %v10887_v4 = vpack.c.bf16 %v7655_v25, %v7654_v14  ;;  %v7874_v25 = vld [vmem:[#allocation13 + $0x5f0] sm:$0xff] }
0x11cd   :  { %10830 = vmatprep.subr.bf16.mxu1 %v10829_v5  ;;  %v10889_v5 = vpack.c.bf16 %v7673_v56, %v7672_v49  ;;  %v7695_v49 = vld [vmem:[#allocation13 + $0x508] sm:$0xff] }
0x11ce   :  { %10859 = vmatpush1.bf16.msra.mxu0 %v10858_v1  ;;  %v10908_v1 = vpack.c.bf16 %v7683_v45, %v7682_v57  ;;  %v7858_v45 = vld [vmem:[#allocation13 + $0x570] sm:$0xff] }
0x11cf   :  { %10860 = vmatprep.subr.bf16.mxu0 %v11491_v61 }
0x11d0   :  { %10832 = vmatpush3.bf16.msra.mxu1 %v10831_v60  ;;  %v10891_v60 = vpack.c.bf16 %v7657_v24, %v7656_v54  ;;  %v7876_v54 = vld [vmem:[#allocation13 + $0x600] sm:$0xff]  ;;  %v7877_v24 = vld [vmem:[#allocation13 + $0x608] sm:$0xff] }
0x11d1   :  { %10870 = vmatprep.subr.bf16.mxu1 %v10869_v7  ;;  %v10893_v7 = vpack.c.bf16 %v7675_v12, %v7674_v51  ;;  %v7697_v51 = vld [vmem:[#allocation13 + $0x518] sm:$0xff] }
0x11d2   :  { %10862 = vmatpush1.bf16.msra.mxu0 %v10861_v9  ;;  %v10911_v9 = vpack.c.bf16 %v7685_v59, %v7684_v23  ;;  %v10953_v23 = vpack.c.bf16 %v7877_v24, %v7876_v54  ;;  %v7860_v59 = vld [vmem:[#allocation13 + $0x580] sm:$0xff]  ;;  %v7901_v54 = vld [vmem:[#allocation13 + $0x6c8] sm:$0xff] }
0x11d3   :  { %7570 = vmatmul.mubr.f32.vlgmr.msra.gmra.mrb[38].mxu1 %v7496_v39  ;;  %10863 = vmatprep.subr.bf16.mxu0 %v11491_v61  ;;  %v10897_v39 = vpack.c.bf16 %v7677_v63, %v7676_v0  ;;  %v7699_v0 = vld [vmem:[#allocation13 + $0x528] sm:$0xff] }
0x11d4   :  { %10872 = vmatpush3.bf16.msra.mxu1 %v10871_v15  ;;  %7775 = vmatprep.mubr.f32.mxu1 %v7703_v20  ;;  %v10895_v15 = vpack.c.bf16 %v7659_v13, %v7658_v3  ;;  %v7868_v20 = vld [vmem:[#allocation13 + $0x5c0] sm:$0xff]  ;;  %v7878_v3 = vld [vmem:[#allocation13 + $0x610] sm:$0xff]  ;;  %v7879_v13 = vld [vmem:[#allocation13 + $0x618] sm:$0xff] }
0x11d5   :  { %10874 = vmatprep.subr.bf16.mxu1 %v10873_v16  ;;  %v7660_v16 = vld [vmem:[#allocation13 + $0x3f0] sm:$0xff]  ;;  %v10957_v10 = vpack.c.bf16 %v7879_v13, %v7878_v3  ;;  %v7907_v3 = vld [vmem:[#allocation13 + $0x6f8] sm:$0xff] }
0x11d6   :  { %10865 = vmatpush1.bf16.msra.mxu0 %v10864_v22  ;;  %v7869_v22 = vld [vmem:[#allocation13 + $0x5c8] sm:$0xff]  ;;  %v10899_v21 = vpack.c.bf16 %v7661_v36, %v7660_v16  ;;  %v7880_v16 = vld [vmem:[#allocation13 + $0x620] sm:$0xff] }
0x11d7   :  { %10866 = vmatprep.subr.bf16.mxu0 %v11491_v61  ;;  %v10937_v26 = vpack.c.bf16 %v7869_v22, %v7868_v20  ;;  %v7881_v36 = vld [vmem:[#allocation13 + $0x628] sm:$0xff]  ;;  %v7701_v20 = vld [vmem:[#allocation13 + $0x538] sm:$0xff] }
0x11d8   :  { %10876 = vmatpush3.bf16.msra.mxu1 %v10875_v62  ;;  %v7852_v62 = vld [vmem:[#allocation13 + $0x540] sm:$0xff]  ;;  %v10961_v38 = vpack.c.bf16 %v7881_v36, %v7880_v16  ;;  %v8064_v36 = vld [vmem:[#allocation16 + $0x28] sm:$0xff] }
0x11d9   :  { %10878 = vmatprep.subr.bf16.mxu1 %v10877_v27  ;;  %v7853_v27 = vld [vmem:[#allocation13 + $0x548] sm:$0xff] }
0x11da   :  { %10868 = vmatpush1.bf16.msra.mxu0 %v10867_v29  ;;  %v7871_v29 = vld [vmem:[#allocation13 + $0x5d8] sm:$0xff]  ;;  %v10939_v31 = vpack.c.bf16 %v7853_v27, %v7852_v62  ;;  %v7882_v62 = vld [vmem:[#allocation13 + $0x630] sm:$0xff]  ;;  %v8063_v16 = vld [vmem:[#allocation16 + $0x20] sm:$0xff] }
0x11db   :  { %10901 = vmatprep.subr.bf16.mxu0 %v11491_v61  ;;  %v7883_v27 = vld [vmem:[#allocation13 + $0x638] sm:$0xff] }
0x11dc   :  { %10880 = vmatpush3.bf16.msra.mxu1 %v10879_v33  ;;  %v10941_v33 = vpack.c.bf16 %v7871_v29, %v7870_v28  ;;  %v7885_v28 = vld [vmem:[#allocation13 + $0x648] sm:$0xff] }
0x11dd   :  { %7640 = vmatmul.mubr.f32.vlgmr.msra.gmra.mrb[36].mxu0 %v7498_v47  ;;  %10882 = vmatprep.subr.bf16.mxu1 %v10881_v34  ;;  %v7854_v34 = vld [vmem:[#allocation13 + $0x550] sm:$0xff] }
0x11de   :  { %10903 = vmatpush1.bf16.msra.mxu0 %v10902_v40  ;;  %8257 = vmatprep.mubr.msk.f32.mxu0 %vm286_vm1, %v7705_v50  ;;  %v10920_v40 = vpack.c.bf16 %v7691_v19, %v7690_v30  ;;  %v7692_v47 = vld [vmem:[#allocation13 + $0x4f0] sm:$0xff]  ;;  %v10943_v44 = vpack.c.bf16 %v7855_v35, %v7854_v34  ;;  %v10945_v50 = vpack.c.bf16 %v7873_v42, %v7872_v11  ;;  %v7887_v35 = vld [vmem:[#allocation13 + $0x658] sm:$0xff]  ;;  %v7888_v42 = vld [vmem:[#allocation13 + $0x660] sm:$0xff] }
0x11df   :  { %10904 = vmatprep.subr.bf16.mxu0 %v11491_v61  ;;  %v10923_v14 = vpack.c.bf16 %v7693_v48, %v7692_v47  ;;  %v10965_v30 = vpack.c.bf16 %v7883_v27, %v7882_v62  ;;  %v7866_v19 = vld [vmem:[#allocation13 + $0x5b0] sm:$0xff]  ;;  %v7889_v47 = vld [vmem:[#allocation13 + $0x668] sm:$0xff]  ;;  %v7908_v48 = vrot.slane %v12173_v8, 6  ;;  %v8070_v62 = vld [vmem:[#allocation16 + $0x58] sm:$0xff] }
0x11e0   :  { %10884 = vmatpush3.bf16.msra.mxu1 %v10883_v52  ;;  %v7856_v52 = vld [vmem:[#allocation13 + $0x560] sm:$0xff]  ;;  %v7886_v34 = vld [vmem:[#allocation13 + $0x650] sm:$0xff] }
0x11e1   :  { %10886 = vmatprep.subr.bf16.mxu1 %v10885_v55  ;;  %v7857_v55 = vld [vmem:[#allocation13 + $0x568] sm:$0xff]  ;;  %v10973_v11 = vpack.c.bf16 %v7887_v35, %v7886_v34  ;;  %v7236_v35 = vld [vmem:[#allocation14] sm:$0x1] }
0x11e2   :  { %10906 = vmatpush1.bf16.msra.mxu0 %v10905_v2  ;;  %v7875_v2 = vld [vmem:[#allocation13 + $0x5f8] sm:$0xff]  ;;  %v10947_v56 = vpack.c.bf16 %v7857_v55, %v7856_v52  ;;  %v7892_v55 = vld [vmem:[#allocation13 + $0x680] sm:$0xff] }
0x11e3   :  { %10907 = vmatprep.subr.bf16.mxu0 %v11491_v61  ;;  %v10949_v57 = vpack.c.bf16 %v7875_v2, %v7874_v25  ;;  %v7894_v25 = vld [vmem:[#allocation13 + $0x690] sm:$0xff]  ;;  %v7895_v2 = vld [vmem:[#allocation13 + $0x698] sm:$0xff] }
0x11e4   :  { %10888 = vmatpush3.bf16.msra.mxu1 %v10887_v4  ;;  %v7859_v4 = vld [vmem:[#allocation13 + $0x578] sm:$0xff] }
0x11e5   :  { %10890 = vmatprep.subr.bf16.mxu1 %v10889_v5  ;;  %v10926_v5 = vpack.c.bf16 %v7695_v49, %v7694_v6  ;;  %v10951_v12 = vpack.c.bf16 %v7859_v4, %v7858_v45  ;;  %v10985_v6 = vpack.c.bf16 %v7895_v2, %v7894_v25  ;;  %v7896_v49 = vld [vmem:[#allocation13 + $0x6a0] sm:$0xff]  ;;  %v7899_v45 = vld [vmem:[#allocation13 + $0x6b8] sm:$0xff] }
0x11e6   :  { %10909 = vmatpush1.bf16.msra.mxu0 %v10908_v1  ;;  %v7696_v1 = vld [vmem:[#allocation13 + $0x510] sm:$0xff] }
0x11e7   :  { %10910 = vmatprep.subr.bf16.mxu0 %v11491_v61 }
0x11e8   :  { %10892 = vmatpush3.bf16.msra.mxu1 %v10891_v60  ;;  %v7861_v60 = vld [vmem:[#allocation13 + $0x588] sm:$0xff] }
0x11e9   :  { %10894 = vmatprep.subr.bf16.mxu1 %v10893_v7  ;;  %v10929_v7 = vpack.c.bf16 %v7697_v51, %v7696_v1  ;;  %v10955_v63 = vpack.c.bf16 %v7861_v60, %v7860_v59  ;;  %v7902_v1 = vld [vmem:[#allocation13 + $0x6d0] sm:$0xff]  ;;  %v7903_v51 = vld [vmem:[#allocation13 + $0x6d8] sm:$0xff]  ;;  %v7905_v59 = vld [vmem:[#allocation13 + $0x6e8] sm:$0xff] }
0x11ea   :  { %10912 = vmatpush1.bf16.msra.mxu0 %v10911_v9  ;;  %v7698_v9 = vld [vmem:[#allocation13 + $0x520] sm:$0xff] }
0x11eb   :  { %10913 = vmatprep.subr.bf16.mxu0 %v11491_v61 }
0x11ec   :  { %10896 = vmatpush3.bf16.msra.mxu1 %v10895_v15  ;;  %v7863_v15 = vld [vmem:[#allocation13 + $0x598] sm:$0xff] }
0x11ed   :  { %10898 = vmatprep.subr.bf16.mxu1 %v10897_v39  ;;  %v10932_v39 = vpack.c.bf16 %v7699_v0, %v7698_v9  ;;  %v10959_v22 = vpack.c.bf16 %v7863_v15, %v7862_v58  ;;  %v7910_v9 = vrot.slane %v12161_v46, 6  ;;  %v8059_v0 = vld [vmem:[#allocation16] sm:$0xff]  ;;  %v8062_v15 = vld [vmem:[#allocation16 + $0x18] sm:$0xff] }
0x11ee   :  { %10915 = vmatpush1.bf16.msra.mxu0 %v10914_v17  ;;  %v7700_v17 = vld [vmem:[#allocation13 + $0x530] sm:$0xff] }
0x11ef   :  { %10916 = vmatprep.subr.bf16.mxu0 %v11491_v61 }
0x11f0   :  { %10900 = vmatpush3.bf16.msra.mxu1 %v10899_v21  ;;  %v7865_v21 = vld [vmem:[#allocation13 + $0x5a8] sm:$0xff] }
0x11f1   :  { %10938 = vmatprep.subr.bf16.mxu1 %v10937_v26  ;;  %v10935_v26 = vpack.c.bf16 %v7701_v20, %v7700_v17  ;;  %v10963_v29 = vpack.c.bf16 %v7865_v21, %v7864_v43  ;;  %v11012_v17 = vpack.c.bf16 %v8064_v36, %v8063_v16  ;;  %v8065_v20 = vld [vmem:[#allocation16 + $0x30] sm:$0xff]  ;;  %v8068_v43 = vld [vmem:[#allocation16 + $0x48] sm:$0xff] }
0x11f2   :  { %10918 = vmatpush1.bf16.msra.mxu0 %v10917_v18  ;;  %v7884_v18 = vld [vmem:[#allocation13 + $0x640] sm:$0xff] }
0x11f3   :  { %7776 = vmatmul.mubr.f32.vlgmr.msra.gmra.mrb[40].mxu1 %v7702_v32  ;;  %10919 = vmatprep.subr.bf16.mxu0 %v11491_v61  ;;  %v10970_v32 = vpack.c.bf16 %v7885_v28, %v7884_v18  ;;  %v8071_v18 = vld [vmem:[#allocation16 + $0x60] sm:$0xff]  ;;  %v8072_v28 = vld [vmem:[#allocation16 + $0x68] sm:$0xff] }
0x11f4   :  { %10940 = vmatpush3.bf16.msra.mxu1 %v10939_v31  ;;  %7981 = vmatprep.mubr.f32.mxu1 %v7909_v37  ;;  %v7867_v31 = vld [vmem:[#allocation13 + $0x5b8] sm:$0xff]  ;;  %v7911_v37 = vrot.slane %v12159_v41, 6  ;;  %v7890_v41 = vld [vmem:[#allocation13 + $0x670] sm:$0xff] }
0x11f5   :  { %10942 = vmatprep.subr.bf16.mxu1 %v10941_v33  ;;  %v7704_v33 = vrot.slane %v12161_v46, 4 }
0x11f6   :  { %10921 = vmatpush1.bf16.msra.mxu0 %v10920_v40  ;;  %v10967_v40 = vpack.c.bf16 %v7867_v31, %v7866_v19 }
0x11f7   :  { %10922 = vmatprep.subr.bf16.mxu0 %v11491_v61 }
0x11f8   :  { %10944 = vmatpush3.bf16.msra.mxu1 %v10943_v44  ;;  %v10976_v44 = vpack.c.bf16 %v7889_v47, %v7888_v42 }
0x11f9   :  { %10946 = vmatprep.subr.bf16.mxu1 %v10945_v50  ;;  %v7891_v50 = vld [vmem:[#allocation13 + $0x678] sm:$0xff] }
0x11fa   :  { %10924 = vmatpush1.bf16.msra.mxu0 %v10923_v14  ;;  %v10979_v52 = vpack.c.bf16 %v7891_v50, %v7890_v41  ;;  %v7893_v14 = vld [vmem:[#allocation13 + $0x688] sm:$0xff] }
0x11fb   :  { %10925 = vmatprep.subr.bf16.mxu0 %v11491_v61  ;;  %v10982_v8 = vpack.c.bf16 %v7893_v14, %v7892_v55 }
0x11fc   :  { %10948 = vmatpush3.bf16.msra.mxu1 %v10947_v56  ;;  %v7897_v56 = vld [vmem:[#allocation13 + $0x6a8] sm:$0xff] }
0x11fd   :  { %10950 = vmatprep.subr.bf16.mxu1 %v10949_v57  ;;  %v7898_v57 = vld [vmem:[#allocation13 + $0x6b0] sm:$0xff] }
0x11fe   :  { %10927 = vmatpush1.bf16.msra.mxu0 %v10926_v5  ;;  %v10991_v4 = vpack.c.bf16 %v7899_v45, %v7898_v57  ;;  %v7900_v5 = vld [vmem:[#allocation13 + $0x6c0] sm:$0xff] }
0x11ff   :  { %10928 = vmatprep.subr.bf16.mxu0 %v11491_v61  ;;  %v10994_v24 = vpack.c.bf16 %v7901_v54, %v7900_v5 }
0x1200   :  { %10952 = vmatpush3.bf16.msra.mxu1 %v10951_v12  ;;  %v10997_v12 = vpack.c.bf16 %v7903_v51, %v7902_v1 }
0x1201   :  { %10954 = vmatprep.subr.bf16.mxu1 %v10953_v23  ;;  %v7904_v23 = vld [vmem:[#allocation13 + $0x6e0] sm:$0xff] }
0x1202   :  { %10930 = vmatpush1.bf16.msra.mxu0 %v10929_v7  ;;  %v11000_v60 = vpack.c.bf16 %v7905_v59, %v7904_v23  ;;  %v7906_v7 = vld [vmem:[#allocation13 + $0x6f0] sm:$0xff] }
0x1203   :  { %10931 = vmatprep.subr.bf16.mxu0 %v11491_v61  ;;  %v11003_v13 = vpack.c.bf16 %v7907_v3, %v7906_v7 }
0x1204   :  { %10956 = vmatpush3.bf16.msra.mxu1 %v10955_v63  ;;  %v8060_v63 = vld [vmem:[#allocation16 + $0x8] sm:$0xff] }
0x1205   :  { %10958 = vmatprep.subr.bf16.mxu1 %v10957_v10  ;;  %v8061_v10 = vld [vmem:[#allocation16 + $0x10] sm:$0xff]  ;;  %v11006_v58 = vpack.c.bf16 %v8060_v63, %v8059_v0 }
0x1206   :  { %10933 = vmatpush1.bf16.msra.mxu0 %v10932_v39  ;;  %v11009_v39 = vpack.c.bf16 %v8062_v15, %v8061_v10 }
0x1207   :  { %10934 = vmatprep.subr.bf16.mxu0 %v11491_v61 }
0x1208   :  { %10960 = vmatpush3.bf16.msra.mxu1 %v10959_v22  ;;  %v8066_v22 = vld [vmem:[#allocation16 + $0x38] sm:$0xff] }
0x1209   :  { %10962 = vmatprep.subr.bf16.mxu1 %v10961_v38  ;;  %v11015_v46 = vpack.c.bf16 %v8066_v22, %v8065_v20  ;;  %v8067_v38 = vld [vmem:[#allocation16 + $0x40] sm:$0xff] }
0x120a   :  { %10936 = vmatpush1.bf16.msra.mxu0 %v10935_v26  ;;  %v11018_v21 = vpack.c.bf16 %v8068_v43, %v8067_v38  ;;  %v8069_v26 = vld [vmem:[#allocation16 + $0x50] sm:$0xff] }
0x120b   :  { %10969 = vmatprep.subr.bf16.mxu0 %v11491_v61  ;;  %v11021_v27 = vpack.c.bf16 %v8070_v62, %v8069_v26 }
0x120c   :  { %10964 = vmatpush3.bf16.msra.mxu1 %v10963_v29  ;;  %v11024_v29 = vpack.c.bf16 %v8072_v28, %v8071_v18 }
0x120d   :  { %7846 = vmatmul.mubr.f32.vlgmr.msra.gmra.mrb[36].mxu0 %v7704_v33  ;;  %10966 = vmatprep.subr.bf16.mxu1 %v10965_v30  ;;  %v8074_v33 = vld [vmem:[#allocation16 + $0x78] sm:$0xff] }
0x120e   :  { %10971 = vmatpush1.bf16.msra.mxu0 %v10970_v32  ;;  %8258 = vmatprep.mubr.msk.f32.mxu0 %vm286_vm1, %v7911_v37  ;;  %v8073_v32 = vld [vmem:[#allocation16 + $0x70] sm:$0xff] }
0x120f   :  { %10972 = vmatprep.subr.bf16.mxu0 %v11491_v61  ;;  %v11027_v34 = vpack.c.bf16 %v8074_v33, %v8073_v32 }
0x1210   :  { %10968 = vmatpush3.bf16.msra.mxu1 %v10967_v40 }
0x1211   :  { %11005 = vmatprep.subr.bf16.mxu1 %v11491_v61 }
0x1212   :  { %10974 = vmatpush1.bf16.msra.mxu0 %v10973_v11 }
0x1213   :  { %7982 = vmatmul.mubr.f32.vlgmr.msra.gmra.mrb[42].mxu1 %v7908_v48  ;;  %10975 = vmatprep.subr.bf16.mxu0 %v11491_v61 }
0x1214   :  { %8706 = vmatprep.mubr.msk.f32.mxu1 %vm11493_vm7, %v11488_v53  ;;  %v10988_v53 = vpack.c.bf16 %v7897_v56, %v7896_v49  ;;  %11007 = vmatpush3.bf16.msra.mxu1 %v11006_v58  ;;  %v8075_v49 = vld [vmem:[#allocation17] sm:$0x1] }
0x1215   :  { %11008 = vmatprep.subr.bf16.mxu1 %v11491_v61 }
0x1216   :  { %10977 = vmatpush1.bf16.msra.mxu0 %v10976_v44 }
0x1217   :  { %10978 = vmatprep.subr.bf16.mxu0 %v11491_v61 }
0x1218   :  { %11010 = vmatpush3.bf16.msra.mxu1 %v11009_v39 }
0x1219   :  { %11011 = vmatprep.subr.bf16.mxu1 %v11491_v61 }
0x121a   :  { %10980 = vmatpush1.bf16.msra.mxu0 %v10979_v52 }
0x121b   :  { %10981 = vmatprep.subr.bf16.mxu0 %v11491_v61 }
0x121c   :  { %11013 = vmatpush3.bf16.msra.mxu1 %v11012_v17 }
0x121d   :  { %11014 = vmatprep.subr.bf16.mxu1 %v11491_v61 }
0x121e   :  { %10983 = vmatpush1.bf16.msra.mxu0 %v10982_v8 }
0x121f   :  { %10984 = vmatprep.subr.bf16.mxu0 %v11491_v61 }
0x1220   :  { %11016 = vmatpush3.bf16.msra.mxu1 %v11015_v46 }
0x1221   :  { %11017 = vmatprep.subr.bf16.mxu1 %v11491_v61 }
0x1222   :  { %10986 = vmatpush1.bf16.msra.mxu0 %v10985_v6 }
0x1223   :  { %10987 = vmatprep.subr.bf16.mxu0 %v11491_v61 }
0x1224   :  { %11019 = vmatpush3.bf16.msra.mxu1 %v11018_v21 }
0x1225   :  { %11020 = vmatprep.subr.bf16.mxu1 %v11491_v61 }
0x1226   :  { %10989 = vmatpush1.bf16.msra.mxu0 %v10988_v53 }
0x1227   :  { %10990 = vmatprep.subr.bf16.mxu0 %v11491_v61 }
0x1228   :  { %11022 = vmatpush3.bf16.msra.mxu1 %v11021_v27 }
0x1229   :  { %11023 = vmatprep.subr.bf16.mxu1 %v11491_v61 }
0x122a   :  { %10992 = vmatpush1.bf16.msra.mxu0 %v10991_v4 }
0x122b   :  { %10993 = vmatprep.subr.bf16.mxu0 %v11491_v61 }
0x122c   :  { %11025 = vmatpush3.bf16.msra.mxu1 %v11024_v29 }
0x122d   :  { %11026 = vmatprep.subr.bf16.mxu1 %v11491_v61 }
0x122e   :  { %10995 = vmatpush1.bf16.msra.mxu0 %v10994_v24 }
0x122f   :  { %10996 = vmatprep.subr.bf16.mxu0 %v11491_v61 }
0x1230   :  { %11028 = vmatpush3.bf16.msra.mxu1 %v11027_v34 }
0x1232   :  { %10998 = vmatpush1.bf16.msra.mxu0 %v10997_v12 }
0x1233   :  { %10999 = vmatprep.subr.bf16.mxu0 %v11491_v61 }
0x1236   :  { %11001 = vmatpush1.bf16.msra.mxu0 %v11000_v60 }
0x1237   :  { %11002 = vmatprep.subr.bf16.mxu0 %v11491_v61 }
0x123a   :  { %11004 = vmatpush1.bf16.msra.mxu0 %v11003_v13 }
0x123d   :  { %8052 = vmatmul.mubr.f32.vlgmr.msra.gmra.mrb[36].mxu0 %v7910_v9 }
0x1286   :  { %v8472_v30 = vpop.f32.mrb[36].mxu1 }
0x1287   :  { %v8473_v19 = vpop.f32.mrb[37].mxu1 }
0x1288   :  { %v8474_v31 = vadd.f32 %v8473_v19, %v8472_v30 }
0x128a   :  { %v11058_v11 = vadd.f32 %v8474_v31, %v7236_v35 }
0x12a6   :  { %v8507_v37 = vpop.f32.mrb[38].mxu1 }
0x12a7   :  { %v8508_v40 = vpop.f32.mrb[39].mxu1 }
0x12a8   :  { %v8509_v42 = vadd.f32 %v8508_v40, %v8507_v37 }
0x12aa   :  { %v11059_v47 = vadd.f32 %v11058_v11, %v8509_v42 }
0x12c6   :  { %v8542_v48 = vpop.f32.mrb[40].mxu1 }
0x12c7   :  { %v8543_v44 = vpop.f32.mrb[41].mxu1 }
0x12c8   :  { %v8544_v41 = vadd.f32 %v8543_v44, %v8542_v48 }
0x12ca   :  { %v11060_v50 = vadd.f32 %v11059_v47, %v8544_v41 }
0x12e6   :  { %v8577_v52 = vpop.f32.mrb[42].mxu1 }
0x12e7   :  { %v8578_v55 = vpop.f32.mrb[43].mxu1 }
0x12e8   :  { %v8579_v61 = vadd.f32 %v8578_v55, %v8577_v52 }
0x12ea   :  { %v11061_v14 = vadd.f32 %v11060_v50, %v8579_v61 }
0x1310   :  { %v8053_v8 = vpop.f32.mrb[36].mxu0 }
0x1311   :  { %v11062_v25 = vadd.f32 %v11061_v14, %v8053_v8  ;;  %v8055_v2 = vpop.f32.mrb[37].mxu0 }
0x1313   :  { %v8058_v6 = vmax.f32 %v11062_v25, 0.0 }
0x1315   :  { %8707 = vmatmul.mubr.f32.vlgmr.msra.gmra.mrb[44].mxu1 %v8058_v6 }
0x13e8   :  { %v8142_v56 = vpop.f32.mrb[44].mxu1 }
0x13e9   :  { %v8143_v53 = vadd.f32 %v8142_v56, %v8075_v49  ;;  %v8708_v57 = vpop.f32.mrb[45].mxu1 }
0x13eb   :  { %8146 = vst [vmem:[#allocation19 + $0x1] sm:$0x1] %v8143_v53 }
0x13ec   :  { %11449 = shalt.err (!%p11446_p0)
}
0x13ed   :  { %s11450_s7 = scalar_lea.hbm %s12257_s11, 32 }
0x13ee   :  { %p11451_p1 = scmp.ne.s32.totalorder %s12257_s11, %s11450_s7  ;;  %p11454_p2 = scmp.lt.u32.totalorder %s11450_s7, %s12257_s11 }
0x13f0   :  { %p11456_p3 = pnand %p11454_p2, %p11451_p1 }
0x13f2   :  { %11459 = shalt.err (!%p11456_p3)
}
0x13f3   :  { %8156 = dma.vmem_to_hbm [thread:$0]  %s8154_s26, 32, %s12257_s11, [#allocation4]  }
0x13f4   :  { %11472 = dma.done.wait [#allocation4], 32  }
0x13f5   :  { %11473 = vsyncadd [#allocation4], 4294967264 }
0x13f6   :  { %8160 = vsyncpa [#allocation3], 1 }
0x13f7   :  { %8161 = vsyncpa [#allocation6], 1 }
0x13f8   :  { %8162 = vsyncpa [#allocation9], 1 }
0x13f9   :  { %8163 = vsyncpa [#allocation12], 1 }
0x13fa   :  { %8164 = vsyncpa [#allocation15], 1 }
0x13fb   :  { %8165 = vsyncpa [#allocation18], 1 }
0x13fc   :  { %8166 = vsyncpa [#allocation4], 1 }

</bundles_post_ra>
